<compile_context>
chip_gen: v7x
topology: tpu7x:2x2x1
jax: 0.10.0
libtpu: 0.0.40
codegen_flags: <defaults>
</compile_context>

<pallas_src>
import functools

import jax
import jax.numpy as jnp
from jax import lax
from jax.experimental import pallas as pl
from jax.experimental.pallas import tpu as pltpu

LANE = 128   # lane width: channel axes are zero-padded to multiples of this
HALO = 3     # 7x7 depthwise conv -> 3-pixel halo on each side
WPAD = 8     # right-side W padding in the scratch (>= 2*HALO, multiple of 8)


def _round_up(v, m):
    return (v + m - 1) // m * m


def _pick_block_rows(H, W, target_rows=128):
    """Largest divisor of H such that block_rows * W <= target_rows (>= 1)."""
    bh = max(1, min(H, max(1, target_rows // W)))
    while H % bh:
        bh -= 1
    return bh


def _bottleneck_kernel(x_ref, dww_ref, gnw_ref, gnb_ref,
                       w1_ref, b1_ref, w2_ref, b2_ref, gamma_ref,
                       out_ref, xpad_s, dwout_s,
                       *, H, W, C, Cp, BH, eps):
    f32 = jnp.float32
    Wr = W + WPAD                 # padded row width inside the scratch
    nrows = BH * Wr               # flattened rows of one padded row strip
    nblk = H // BH
    tile_m = BH * W               # flattened rows of one unpadded row block

    # ---- halo zeroing (cheap: 6 rows + 8 pad columns) + aligned interior copy ----
    zrow = jnp.zeros((HALO, Wr, Cp), f32)
    xpad_s[pl.ds(0, HALO), :, :] = zrow
    xpad_s[pl.ds(H + HALO, HALO), :, :] = zrow
    xpad_s[pl.ds(HALO, H), pl.ds(W, WPAD), :] = jnp.zeros((H, WPAD, Cp), f32)
    xpad_s[pl.ds(HALO, H), pl.ds(0, W), :] = x_ref[...].astype(f32)

    dww = dww_ref[...]            # (49, Cp) f32 depthwise taps (channel-padded)

    # ---- pass A: depthwise 7x7 per row block; dx shifts via pltpu.roll (XLU) ----
    # The strip is flattened to (BH*Wr, Cp); a circular sublane roll by (3-kx)
    # reproduces zero padding exactly because every wrap lands in the 8 zero
    # pad columns on the right of each image row.
    # GroupNorm sum is folded into this pass (padded channels are exactly 0).
    s_total = jnp.zeros((), f32)
    for rb in range(nblk):
        acc = jnp.zeros((nrows, Cp), f32)
        for ky in range(7):
            strip = xpad_s[pl.ds(rb * BH + ky, BH), :, :].reshape(nrows, Cp)
            for kx in range(7):
                sh = (HALO - kx) % nrows
                shifted = strip if sh == 0 else pltpu.roll(strip, sh, axis=0)
                acc = acc + shifted * dww[ky * 7 + kx]
        acc = acc.reshape(BH, Wr, Cp)[:, :W, :].reshape(tile_m, Cp)
        dwout_s[pl.ds(rb * tile_m, tile_m), :] = acc
        s_total = s_total + jnp.sum(acc)

    # ---- GroupNorm(num_groups=1): two-pass centered stats over H*W*C ----
    total = f32(H * W * C)
    mean = s_total / total
    cmask = (lax.broadcasted_iota(jnp.int32, (1, Cp), 1) < C).astype(f32)
    ssq = jnp.zeros((), f32)
    for rb in range(nblk):
        blk = dwout_s[pl.ds(rb * tile_m, tile_m), :]
        d = (blk - mean) * cmask              # exclude padded channels
        ssq = ssq + jnp.sum(d * d)
    inv = lax.rsqrt(ssq / total + eps)
    a_vec = inv * gnw_ref[...]                # (1, Cp)  fused normalize+affine
    b_vec = gnb_ref[...] - mean * a_vec       # (1, Cp)  (padded channels -> 0)

    # ---- pass C (per row block): normalize -> 1x1 expand (bf16 MXU) -> GELU ->
    #      1x1 project (bf16 MXU) -> LayerScaler -> residual, lane-dense store ----
    w1 = w1_ref[...]
    b1 = b1_ref[...]
    w2 = w2_ref[...]
    b2 = b2_ref[...]
    gam = gamma_ref[...]
    for rb in range(nblk):
        blk = dwout_s[pl.ds(rb * tile_m, tile_m), :]
        xn = blk * a_vec + b_vec
        h = jnp.dot(xn.astype(jnp.bfloat16), w1,
                    preferred_element_type=f32) + b1
        h = jax.nn.gelu(h, approximate=True)          # tanh approx -> EUP slot
        y = jnp.dot(h.astype(jnp.bfloat16), w2,
                    preferred_element_type=f32) + b2
        res = x_ref[pl.ds(rb * BH, BH), :, :].astype(f32).reshape(tile_m, Cp)
        y = y * gam + res                    # LayerScaler + StochasticDepth(p=0) + residual
        out_ref[pl.ds(rb * BH, BH), :, :] = y.reshape(BH, W, Cp).astype(out_ref.dtype)


def bottleneck_block_pallas(x_nchw, params):
    """x_nchw: (N, C, H, W).  Returns (N, C, H, W)."""
    dw_w, gn_w, gn_b, w1, b1, w2, b2, gamma = params
    C, Cexp = w1.shape
    Cout = w2.shape[1]
    assert Cout == C, "residual add requires in_features == out_features"
    N, Cin, H, W = x_nchw.shape
    assert Cin == C
    # TODO(synk): pad W up to a multiple of 8 in the wrapper for general sizes.
    assert W % 8 == 0, "W must be a multiple of 8 (sublane alignment)"

    Cp = _round_up(C, LANE)      # lane-dense channel padding
    Cep = _round_up(Cexp, LANE)
    f32, bf16 = jnp.float32, jnp.bfloat16

    def padc(a, axis, target):
        pad = [(0, 0)] * a.ndim
        pad[axis] = (0, target - a.shape[axis])
        return jnp.pad(a, pad)

    # pre-cast + zero-pad all weights/vectors once outside the kernel.
    # zero padding keeps every padded channel exactly 0 end-to-end.
    dw_p = padc(dw_w.astype(f32).reshape(49, C), 1, Cp)        # (49, Cp)
    gnw_p = padc(gn_w.reshape(1, C).astype(f32), 1, Cp)
    gnb_p = padc(gn_b.reshape(1, C).astype(f32), 1, Cp)
    w1_p = padc(padc(w1.astype(bf16), 0, Cp), 1, Cep)          # (Cp, Cep) bf16
    b1_p = padc(b1.reshape(1, Cexp).astype(f32), 1, Cep)
    w2_p = padc(padc(w2.astype(bf16), 0, Cep), 1, Cp)          # (Cep, Cp) bf16
    b2_p = padc(b2.reshape(1, Cout).astype(f32), 1, Cp)
    gamma_p = padc(gamma.reshape(1, Cout).astype(f32), 1, Cp)

    x = jnp.transpose(x_nchw, (0, 2, 3, 1))                    # NCHW -> NHWC (glue)
    x_p = padc(x, 3, Cp)                                       # lane-dense channels

    BH = _pick_block_rows(H, W)                                # row-block height
    kernel = functools.partial(_bottleneck_kernel, H=H, W=W, C=C, Cp=Cp,
                               BH=BH, eps=1e-5)

    # TODO(synk): for v7x, single-buffer the constant weight specs
    # (pipeline_mode=pl.Buffered(1)), consider fp8 weights, and add a parallel
    # row-block grid axis so both TensorCores stay busy when N == 1.
    # TODO(synk): bf16 depthwise taps on v6e/v7x (native bf16 VPU); kept f32
    # here for v5e compatibility and accuracy.
    out = pl.pallas_call(
        kernel,
        out_shape=jax.ShapeDtypeStruct((N, H, W, Cp), x.dtype),
        grid_spec=pltpu.PrefetchScalarGridSpec(
            num_scalar_prefetch=0,
            grid=(N,),
            in_specs=[
                pl.BlockSpec((None, H, W, Cp), lambda n: (n, 0, 0, 0)),  # x (also residual)
                pl.BlockSpec((49, Cp), lambda n: (0, 0)),                # depthwise taps (f32)
                pl.BlockSpec((1, Cp), lambda n: (0, 0)),                 # GN weight
                pl.BlockSpec((1, Cp), lambda n: (0, 0)),                 # GN bias
                pl.BlockSpec((Cp, Cep), lambda n: (0, 0)),               # 1x1 expand w (bf16)
                pl.BlockSpec((1, Cep), lambda n: (0, 0)),                # expand bias
                pl.BlockSpec((Cep, Cp), lambda n: (0, 0)),               # 1x1 project w (bf16)
                pl.BlockSpec((1, Cp), lambda n: (0, 0)),                 # project bias
                pl.BlockSpec((1, Cp), lambda n: (0, 0)),                 # layer-scale gamma
            ],
            out_specs=pl.BlockSpec((None, H, W, Cp), lambda n: (n, 0, 0, 0)),
            scratch_shapes=[
                pltpu.VMEM((H + 2 * HALO, W + WPAD, Cp), jnp.float32),   # halo-padded input
                pltpu.VMEM((H * W, Cp), jnp.float32),                    # depthwise conv output
            ],
        ),
        compiler_params=pltpu.CompilerParams(
            dimension_semantics=("parallel",),
            vmem_limit_bytes=32 * 1024 * 1024,   # explicit budget (v5e default 16MiB, v7x 64MiB physical)
        ),
    )(x_p, dw_p, gnw_p, gnb_p, w1_p, b1_p, w2_p, b2_p, gamma_p)

    out = out[..., :Cout]                                      # drop channel padding
    return jnp.transpose(out, (0, 3, 1, 2))                    # NHWC -> NCHW


def bottleneck_block_ref(x_nchw, params):
    """Pure-JAX reference faithful to the PyTorch module (f32, exact-erf GELU)."""
    dw_w, gn_w, gn_b, w1, b1, w2, b2, gamma = params
    x = jnp.transpose(x_nchw, (0, 2, 3, 1)).astype(jnp.float32)
    N, H, W, C = x.shape
    xpad = jnp.pad(x, ((0, 0), (3, 3), (3, 3), (0, 0)))
    acc = jnp.zeros((N, H, W, C), jnp.float32)
    for dy in range(7):
        for dx in range(7):
            acc = acc + xpad[:, dy:dy + H, dx:dx + W, :] * dw_w[dy, dx]
    mean = jnp.mean(acc, axis=(1, 2, 3), keepdims=True)
    var = jnp.mean((acc - mean) ** 2, axis=(1, 2, 3), keepdims=True)
    xn = (acc - mean) / jnp.sqrt(var + 1e-5)
    xn = xn * gn_w.reshape(1, 1, 1, C) + gn_b.reshape(1, 1, 1, C)
    h = jnp.einsum('nhwc,ce->nhwe', xn, w1) + b1.reshape(1, 1, 1, -1)
    h = 0.5 * h * (1.0 + lax.erf(h / jnp.sqrt(2.0)))
    y = jnp.einsum('nhwe,eo->nhwo', h, w2) + b2.reshape(1, 1, 1, -1)
    y = y * gamma.reshape(1, 1, 1, -1)
    y = y + x
    return jnp.transpose(y, (0, 3, 1, 2))


def make_params(key, in_features, out_features, expansion=4,
                layer_scaler_init_value=1e-6):
    assert in_features == out_features, "residual add requires in == out"
    C, Cout = in_features, out_features
    Cexp = out_features * expansion
    k = jax.random.split(key, 5)
    dw_w = 0.1 * jax.random.normal(k[0], (7, 7, C), jnp.float32)       # depthwise weight
    gn_w = jnp.ones((1, C), jnp.float32)                               # GroupNorm affine
    gn_b = jnp.zeros((1, C), jnp.float32)
    w1 = 0.1 * jax.random.normal(k[1], (C, Cexp), jnp.float32)         # 1x1 expand
    b1 = 0.02 * jax.random.normal(k[2], (1, Cexp), jnp.float32)
    w2 = 0.1 * jax.random.normal(k[3], (Cexp, Cout), jnp.float32)      # 1x1 project
    b2 = 0.02 * jax.random.normal(k[4], (1, Cout), jnp.float32)
    gamma = jnp.full((1, Cout), layer_scaler_init_value, jnp.float32)  # LayerScaler
    # TODO(synk): StochasticDepth with drop_p > 0 (training-time RNG) not implemented;
    # drop_p = 0.0 here, which is an identity (matches module defaults).
    return (dw_w, gn_w, gn_b, w1, b1, w2, b2, gamma)


if __name__ == "__main__":
    N, C, H, W = 2, 4, 16, 16
    key = jax.random.PRNGKey(0)
    kx, kp = jax.random.split(key)
    x = jax.random.normal(kx, (N, C, H, W), jnp.float32)
    params = make_params(kp, in_features=C, out_features=C, expansion=4)

    # Check 1: module defaults (gamma = 1e-6), tight tolerance.
    out = jax.block_until_ready(bottleneck_block_pallas(x, params))
    ref = bottleneck_block_ref(x, params)
    assert out.shape == (N, C, H, W)
    assert jnp.allclose(out, ref, rtol=1e-4, atol=1e-4), \
        f"max abs err {jnp.max(jnp.abs(out - ref))}"

    # Check 2: gamma = 1.0 so the block path (not the residual) dominates.
    # Looser tolerance: kernel uses bf16 MXU inputs + tanh-GELU vs the f32/erf
    # reference (intentional deviation, documented).
    params_g1 = params[:-1] + (jnp.ones_like(params[-1]),)
    out1 = jax.block_until_ready(bottleneck_block_pallas(x, params_g1))
    ref1 = bottleneck_block_ref(x, params_g1)
    assert jnp.allclose(out1, ref1, rtol=5e-2, atol=5e-2), \
        f"max abs err {jnp.max(jnp.abs(out1 - ref1))}"

    print("KERNEL_OK")
</pallas_src>

<mosaic_0001>
module attributes {stable_mosaic.version = 11 : i64} {
  func.func @_bottleneck_kernel(%arg0: i32, %arg1: memref<1x16x16x128xf32, #tpu.memory_space<vmem>>, %arg2: memref<49x128xf32, #tpu.memory_space<vmem>>, %arg3: memref<1x128xf32, #tpu.memory_space<vmem>>, %arg4: memref<1x128xf32, #tpu.memory_space<vmem>>, %arg5: memref<128x128xbf16, #tpu.memory_space<vmem>>, %arg6: memref<1x128xf32, #tpu.memory_space<vmem>>, %arg7: memref<128x128xbf16, #tpu.memory_space<vmem>>, %arg8: memref<1x128xf32, #tpu.memory_space<vmem>>, %arg9: memref<1x128xf32, #tpu.memory_space<vmem>>, %arg10: memref<1x16x16x128xf32, #tpu.memory_space<vmem>>, %arg11: memref<22x24x128xf32, #tpu.memory_space<vmem>>, %arg12: memref<256x128xf32, #tpu.memory_space<vmem>>) attributes {dimension_semantics = [#tpu.dimension_semantics<parallel>], iteration_bounds = array<i64: 2>, scalar_prefetch = 0 : i64, scratch_operands = 2 : i64, tpu.core_type = #tpu.core_type<tc>, window_params = [{transform_indices = @transform_0, window_bounds = array<i64: 1, 16, 16, 128>}, {pipeline_mode = #tpu.pipeline_mode<synchronous>, transform_indices = @transform_1, window_bounds = array<i64: 49, 128>}, {pipeline_mode = #tpu.pipeline_mode<synchronous>, transform_indices = @transform_2, window_bounds = array<i64: 1, 128>}, {pipeline_mode = #tpu.pipeline_mode<synchronous>, transform_indices = @transform_3, window_bounds = array<i64: 1, 128>}, {pipeline_mode = #tpu.pipeline_mode<synchronous>, transform_indices = @transform_4, window_bounds = array<i64: 128, 128>}, {pipeline_mode = #tpu.pipeline_mode<synchronous>, transform_indices = @transform_5, window_bounds = array<i64: 1, 128>}, {pipeline_mode = #tpu.pipeline_mode<synchronous>, transform_indices = @transform_6, window_bounds = array<i64: 128, 128>}, {pipeline_mode = #tpu.pipeline_mode<synchronous>, transform_indices = @transform_7, window_bounds = array<i64: 1, 128>}, {pipeline_mode = #tpu.pipeline_mode<synchronous>, transform_indices = @transform_8, window_bounds = array<i64: 1, 128>}, {transform_indices = @transform_9, window_bounds = array<i64: 1, 16, 16, 128>}]} {
    %cst = arith.constant 0.000000e+00 : f32
    %0 = vector.broadcast %cst : f32 to vector<3x24x128xf32>
    %c0 = arith.constant 0 : index
    %c0_0 = arith.constant 0 : index
    %c0_1 = arith.constant 0 : index
    %1 = vector.load %arg11[%c0, %c0_0, %c0_1] : memref<22x24x128xf32, #tpu.memory_space<vmem>>, vector<3x24x128xf32>
    tpu.vector_store %arg11[%c0, %c0_0, %c0_1], %0 {strides = array<i32>} : memref<22x24x128xf32, #tpu.memory_space<vmem>>, vector<3x24x128xf32>,
    %c19 = arith.constant 19 : index
    %c0_2 = arith.constant 0 : index
    %c0_3 = arith.constant 0 : index
    %2 = vector.load %arg11[%c19, %c0_2, %c0_3] : memref<22x24x128xf32, #tpu.memory_space<vmem>>, vector<3x24x128xf32>
    tpu.vector_store %arg11[%c19, %c0_2, %c0_3], %0 {strides = array<i32>} : memref<22x24x128xf32, #tpu.memory_space<vmem>>, vector<3x24x128xf32>,
    %cst_4 = arith.constant 0.000000e+00 : f32
    %3 = vector.broadcast %cst_4 : f32 to vector<16x8x128xf32>
    %c3 = arith.constant 3 : index
    %c16 = arith.constant 16 : index
    %c0_5 = arith.constant 0 : index
    %4 = vector.load %arg11[%c3, %c16, %c0_5] : memref<22x24x128xf32, #tpu.memory_space<vmem>>, vector<16x8x128xf32>
    tpu.vector_store %arg11[%c3, %c16, %c0_5], %3 {strides = array<i32>} : memref<22x24x128xf32, #tpu.memory_space<vmem>>, vector<16x8x128xf32>,
    %c0_6 = arith.constant 0 : index
    %c0_7 = arith.constant 0 : index
    %c0_8 = arith.constant 0 : index
    %c0_9 = arith.constant 0 : index
    %5 = vector.load %arg1[%c0_6, %c0_7, %c0_8, %c0_9] : memref<1x16x16x128xf32, #tpu.memory_space<vmem>>, vector<1x16x16x128xf32>
    %6 = vector.shape_cast %5 : vector<1x16x16x128xf32> to vector<16x16x128xf32>
    %c3_10 = arith.constant 3 : index
    %c0_11 = arith.constant 0 : index
    %c0_12 = arith.constant 0 : index
    %7 = vector.load %arg11[%c3_10, %c0_11, %c0_12] : memref<22x24x128xf32, #tpu.memory_space<vmem>>, vector<16x16x128xf32>
    tpu.vector_store %arg11[%c3_10, %c0_11, %c0_12], %6 {strides = array<i32>} : memref<22x24x128xf32, #tpu.memory_space<vmem>>, vector<16x16x128xf32>,
    %c0_13 = arith.constant 0 : index
    %c0_14 = arith.constant 0 : index
    %8 = vector.load %arg2[%c0_13, %c0_14] : memref<49x128xf32, #tpu.memory_space<vmem>>, vector<49x128xf32>
    %cst_15 = arith.constant 0.000000e+00 : f32
    %9 = vector.broadcast %cst_15 : f32 to vector<192x128xf32>
    %c0_16 = arith.constant 0 : index
    %c0_17 = arith.constant 0 : index
    %c0_18 = arith.constant 0 : index
    %10 = vector.load %arg11[%c0_16, %c0_17, %c0_18] : memref<22x24x128xf32, #tpu.memory_space<vmem>>, vector<8x24x128xf32>
    %11 = vector.shape_cast %10 : vector<8x24x128xf32> to vector<192x128xf32>
    %c3_i32 = arith.constant 3 : i32
    %12 = tpu.dynamic_rotate %11 by %c3_i32 dim 0 : vector<192x128xf32>, i32 -> vector<192x128xf32>
    %13 = vector.extract_strided_slice %8 {offsets = [0, 0], sizes = [1, 128], strides = [1, 1]} : vector<49x128xf32> to vector<1x128xf32>
    %14 = vector.shape_cast %13 : vector<1x128xf32> to vector<128xf32>
    %15 = vector.shape_cast %14 : vector<128xf32> to vector<1x128xf32>
    %16 = vector.broadcast %15 : vector<1x128xf32> to vector<192x128xf32>
    %17 = arith.mulf %12, %16 : vector<192x128xf32>
    %18 = arith.addf %9, %17 : vector<192x128xf32>
    %c2_i32 = arith.constant 2 : i32
    %19 = tpu.dynamic_rotate %11 by %c2_i32 dim 0 : vector<192x128xf32>, i32 -> vector<192x128xf32>
    %20 = vector.extract_strided_slice %8 {offsets = [1, 0], sizes = [1, 128], strides = [1, 1]} : vector<49x128xf32> to vector<1x128xf32>
    %21 = vector.shape_cast %20 : vector<1x128xf32> to vector<128xf32>
    %22 = vector.shape_cast %21 : vector<128xf32> to vector<1x128xf32>
    %23 = vector.broadcast %22 : vector<1x128xf32> to vector<192x128xf32>
    %24 = arith.mulf %19, %23 : vector<192x128xf32>
    %25 = arith.addf %18, %24 : vector<192x128xf32>
    %c1_i32 = arith.constant 1 : i32
    %26 = tpu.dynamic_rotate %11 by %c1_i32 dim 0 : vector<192x128xf32>, i32 -> vector<192x128xf32>
    %27 = vector.extract_strided_slice %8 {offsets = [2, 0], sizes = [1, 128], strides = [1, 1]} : vector<49x128xf32> to vector<1x128xf32>
    %28 = vector.shape_cast %27 : vector<1x128xf32> to vector<128xf32>
    %29 = vector.shape_cast %28 : vector<128xf32> to vector<1x128xf32>
    %30 = vector.broadcast %29 : vector<1x128xf32> to vector<192x128xf32>
    %31 = arith.mulf %26, %30 : vector<192x128xf32>
    %32 = arith.addf %25, %31 : vector<192x128xf32>
    %33 = vector.extract_strided_slice %8 {offsets = [3, 0], sizes = [1, 128], strides = [1, 1]} : vector<49x128xf32> to vector<1x128xf32>
    %34 = vector.shape_cast %33 : vector<1x128xf32> to vector<128xf32>
    %35 = vector.shape_cast %34 : vector<128xf32> to vector<1x128xf32>
    %36 = vector.broadcast %35 : vector<1x128xf32> to vector<192x128xf32>
    %37 = arith.mulf %11, %36 : vector<192x128xf32>
    %38 = arith.addf %32, %37 : vector<192x128xf32>
    %c191_i32 = arith.constant 191 : i32
    %39 = tpu.dynamic_rotate %11 by %c191_i32 dim 0 : vector<192x128xf32>, i32 -> vector<192x128xf32>
    %40 = vector.extract_strided_slice %8 {offsets = [4, 0], sizes = [1, 128], strides = [1, 1]} : vector<49x128xf32> to vector<1x128xf32>
    %41 = vector.shape_cast %40 : vector<1x128xf32> to vector<128xf32>
    %42 = vector.shape_cast %41 : vector<128xf32> to vector<1x128xf32>
    %43 = vector.broadcast %42 : vector<1x128xf32> to vector<192x128xf32>
    %44 = arith.mulf %39, %43 : vector<192x128xf32>
    %45 = arith.addf %38, %44 : vector<192x128xf32>
    %c190_i32 = arith.constant 190 : i32
    %46 = tpu.dynamic_rotate %11 by %c190_i32 dim 0 : vector<192x128xf32>, i32 -> vector<192x128xf32>
    %47 = vector.extract_strided_slice %8 {offsets = [5, 0], sizes = [1, 128], strides = [1, 1]} : vector<49x128xf32> to vector<1x128xf32>
    %48 = vector.shape_cast %47 : vector<1x128xf32> to vector<128xf32>
    %49 = vector.shape_cast %48 : vector<128xf32> to vector<1x128xf32>
    %50 = vector.broadcast %49 : vector<1x128xf32> to vector<192x128xf32>
    %51 = arith.mulf %46, %50 : vector<192x128xf32>
    %52 = arith.addf %45, %51 : vector<192x128xf32>
    %c189_i32 = arith.constant 189 : i32
    %53 = tpu.dynamic_rotate %11 by %c189_i32 dim 0 : vector<192x128xf32>, i32 -> vector<192x128xf32>
    %54 = vector.extract_strided_slice %8 {offsets = [6, 0], sizes = [1, 128], strides = [1, 1]} : vector<49x128xf32> to vector<1x128xf32>
    %55 = vector.shape_cast %54 : vector<1x128xf32> to vector<128xf32>
    %56 = vector.shape_cast %55 : vector<128xf32> to vector<1x128xf32>
    %57 = vector.broadcast %56 : vector<1x128xf32> to vector<192x128xf32>
    %58 = arith.mulf %53, %57 : vector<192x128xf32>
    %59 = arith.addf %52, %58 : vector<192x128xf32>
    %c1 = arith.constant 1 : index
    %c0_19 = arith.constant 0 : index
    %c0_20 = arith.constant 0 : index
    %60 = vector.load %arg11[%c1, %c0_19, %c0_20] : memref<22x24x128xf32, #tpu.memory_space<vmem>>, vector<8x24x128xf32>
    %61 = vector.shape_cast %60 : vector<8x24x128xf32> to vector<192x128xf32>
    %c3_i32_21 = arith.constant 3 : i32
    %62 = tpu.dynamic_rotate %61 by %c3_i32_21 dim 0 : vector<192x128xf32>, i32 -> vector<192x128xf32>
    %63 = vector.extract_strided_slice %8 {offsets = [7, 0], sizes = [1, 128], strides = [1, 1]} : vector<49x128xf32> to vector<1x128xf32>
    %64 = vector.shape_cast %63 : vector<1x128xf32> to vector<128xf32>
    %65 = vector.shape_cast %64 : vector<128xf32> to vector<1x128xf32>
    %66 = vector.broadcast %65 : vector<1x128xf32> to vector<192x128xf32>
    %67 = arith.mulf %62, %66 : vector<192x128xf32>
    %68 = arith.addf %59, %67 : vector<192x128xf32>
    %c2_i32_22 = arith.constant 2 : i32
    %69 = tpu.dynamic_rotate %61 by %c2_i32_22 dim 0 : vector<192x128xf32>, i32 -> vector<192x128xf32>
    %70 = vector.extract_strided_slice %8 {offsets = [8, 0], sizes = [1, 128], strides = [1, 1]} : vector<49x128xf32> to vector<1x128xf32>
    %71 = vector.shape_cast %70 : vector<1x128xf32> to vector<128xf32>
    %72 = vector.shape_cast %71 : vector<128xf32> to vector<1x128xf32>
    %73 = vector.broadcast %72 : vector<1x128xf32> to vector<192x128xf32>
    %74 = arith.mulf %69, %73 : vector<192x128xf32>
    %75 = arith.addf %68, %74 : vector<192x128xf32>
    %c1_i32_23 = arith.constant 1 : i32
    %76 = tpu.dynamic_rotate %61 by %c1_i32_23 dim 0 : vector<192x128xf32>, i32 -> vector<192x128xf32>
    %77 = vector.extract_strided_slice %8 {offsets = [9, 0], sizes = [1, 128], strides = [1, 1]} : vector<49x128xf32> to vector<1x128xf32>
    %78 = vector.shape_cast %77 : vector<1x128xf32> to vector<128xf32>
    %79 = vector.shape_cast %78 : vector<128xf32> to vector<1x128xf32>
    %80 = vector.broadcast %79 : vector<1x128xf32> to vector<192x128xf32>
    %81 = arith.mulf %76, %80 : vector<192x128xf32>
    %82 = arith.addf %75, %81 : vector<192x128xf32>
    %83 = vector.extract_strided_slice %8 {offsets = [10, 0], sizes = [1, 128], strides = [1, 1]} : vector<49x128xf32> to vector<1x128xf32>
    %84 = vector.shape_cast %83 : vector<1x128xf32> to vector<128xf32>
    %85 = vector.shape_cast %84 : vector<128xf32> to vector<1x128xf32>
    %86 = vector.broadcast %85 : vector<1x128xf32> to vector<192x128xf32>
    %87 = arith.mulf %61, %86 : vector<192x128xf32>
    %88 = arith.addf %82, %87 : vector<192x128xf32>
    %c191_i32_24 = arith.constant 191 : i32
    %89 = tpu.dynamic_rotate %61 by %c191_i32_24 dim 0 : vector<192x128xf32>, i32 -> vector<192x128xf32>
    %90 = vector.extract_strided_slice %8 {offsets = [11, 0], sizes = [1, 128], strides = [1, 1]} : vector<49x128xf32> to vector<1x128xf32>
    %91 = vector.shape_cast %90 : vector<1x128xf32> to vector<128xf32>
    %92 = vector.shape_cast %91 : vector<128xf32> to vector<1x128xf32>
    %93 = vector.broadcast %92 : vector<1x128xf32> to vector<192x128xf32>
    %94 = arith.mulf %89, %93 : vector<192x128xf32>
    %95 = arith.addf %88, %94 : vector<192x128xf32>
    %c190_i32_25 = arith.constant 190 : i32
    %96 = tpu.dynamic_rotate %61 by %c190_i32_25 dim 0 : vector<192x128xf32>, i32 -> vector<192x128xf32>
    %97 = vector.extract_strided_slice %8 {offsets = [12, 0], sizes = [1, 128], strides = [1, 1]} : vector<49x128xf32> to vector<1x128xf32>
    %98 = vector.shape_cast %97 : vector<1x128xf32> to vector<128xf32>
    %99 = vector.shape_cast %98 : vector<128xf32> to vector<1x128xf32>
    %100 = vector.broadcast %99 : vector<1x128xf32> to vector<192x128xf32>
    %101 = arith.mulf %96, %100 : vector<192x128xf32>
    %102 = arith.addf %95, %101 : vector<192x128xf32>
    %c189_i32_26 = arith.constant 189 : i32
    %103 = tpu.dynamic_rotate %61 by %c189_i32_26 dim 0 : vector<192x128xf32>, i32 -> vector<192x128xf32>
    %104 = vector.extract_strided_slice %8 {offsets = [13, 0], sizes = [1, 128], strides = [1, 1]} : vector<49x128xf32> to vector<1x128xf32>
    %105 = vector.shape_cast %104 : vector<1x128xf32> to vector<128xf32>
    %106 = vector.shape_cast %105 : vector<128xf32> to vector<1x128xf32>
    %107 = vector.broadcast %106 : vector<1x128xf32> to vector<192x128xf32>
    %108 = arith.mulf %103, %107 : vector<192x128xf32>
    %109 = arith.addf %102, %108 : vector<192x128xf32>
    %c2 = arith.constant 2 : index
    %c0_27 = arith.constant 0 : index
    %c0_28 = arith.constant 0 : index
    %110 = vector.load %arg11[%c2, %c0_27, %c0_28] : memref<22x24x128xf32, #tpu.memory_space<vmem>>, vector<8x24x128xf32>
    %111 = vector.shape_cast %110 : vector<8x24x128xf32> to vector<192x128xf32>
    %c3_i32_29 = arith.constant 3 : i32
    %112 = tpu.dynamic_rotate %111 by %c3_i32_29 dim 0 : vector<192x128xf32>, i32 -> vector<192x128xf32>
    %113 = vector.extract_strided_slice %8 {offsets = [14, 0], sizes = [1, 128], strides = [1, 1]} : vector<49x128xf32> to vector<1x128xf32>
    %114 = vector.shape_cast %113 : vector<1x128xf32> to vector<128xf32>
    %115 = vector.shape_cast %114 : vector<128xf32> to vector<1x128xf32>
    %116 = vector.broadcast %115 : vector<1x128xf32> to vector<192x128xf32>
    %117 = arith.mulf %112, %116 : vector<192x128xf32>
    %118 = arith.addf %109, %117 : vector<192x128xf32>
    %c2_i32_30 = arith.constant 2 : i32
    %119 = tpu.dynamic_rotate %111 by %c2_i32_30 dim 0 : vector<192x128xf32>, i32 -> vector<192x128xf32>
    %120 = vector.extract_strided_slice %8 {offsets = [15, 0], sizes = [1, 128], strides = [1, 1]} : vector<49x128xf32> to vector<1x128xf32>
    %121 = vector.shape_cast %120 : vector<1x128xf32> to vector<128xf32>
    %122 = vector.shape_cast %121 : vector<128xf32> to vector<1x128xf32>
    %123 = vector.broadcast %122 : vector<1x128xf32> to vector<192x128xf32>
    %124 = arith.mulf %119, %123 : vector<192x128xf32>
    %125 = arith.addf %118, %124 : vector<192x128xf32>
    %c1_i32_31 = arith.constant 1 : i32
    %126 = tpu.dynamic_rotate %111 by %c1_i32_31 dim 0 : vector<192x128xf32>, i32 -> vector<192x128xf32>
    %127 = vector.extract_strided_slice %8 {offsets = [16, 0], sizes = [1, 128], strides = [1, 1]} : vector<49x128xf32> to vector<1x128xf32>
    %128 = vector.shape_cast %127 : vector<1x128xf32> to vector<128xf32>
    %129 = vector.shape_cast %128 : vector<128xf32> to vector<1x128xf32>
    %130 = vector.broadcast %129 : vector<1x128xf32> to vector<192x128xf32>
    %131 = arith.mulf %126, %130 : vector<192x128xf32>
    %132 = arith.addf %125, %131 : vector<192x128xf32>
    %133 = vector.extract_strided_slice %8 {offsets = [17, 0], sizes = [1, 128], strides = [1, 1]} : vector<49x128xf32> to vector<1x128xf32>
    %134 = vector.shape_cast %133 : vector<1x128xf32> to vector<128xf32>
    %135 = vector.shape_cast %134 : vector<128xf32> to vector<1x128xf32>
    %136 = vector.broadcast %135 : vector<1x128xf32> to vector<192x128xf32>
    %137 = arith.mulf %111, %136 : vector<192x128xf32>
    %138 = arith.addf %132, %137 : vector<192x128xf32>
    %c191_i32_32 = arith.constant 191 : i32
    %139 = tpu.dynamic_rotate %111 by %c191_i32_32 dim 0 : vector<192x128xf32>, i32 -> vector<192x128xf32>
    %140 = vector.extract_strided_slice %8 {offsets = [18, 0], sizes = [1, 128], strides = [1, 1]} : vector<49x128xf32> to vector<1x128xf32>
    %141 = vector.shape_cast %140 : vector<1x128xf32> to vector<128xf32>
    %142 = vector.shape_cast %141 : vector<128xf32> to vector<1x128xf32>
    %143 = vector.broadcast %142 : vector<1x128xf32> to vector<192x128xf32>
    %144 = arith.mulf %139, %143 : vector<192x128xf32>
    %145 = arith.addf %138, %144 : vector<192x128xf32>
    %c190_i32_33 = arith.constant 190 : i32
    %146 = tpu.dynamic_rotate %111 by %c190_i32_33 dim 0 : vector<192x128xf32>, i32 -> vector<192x128xf32>
    %147 = vector.extract_strided_slice %8 {offsets = [19, 0], sizes = [1, 128], strides = [1, 1]} : vector<49x128xf32> to vector<1x128xf32>
    %148 = vector.shape_cast %147 : vector<1x128xf32> to vector<128xf32>
    %149 = vector.shape_cast %148 : vector<128xf32> to vector<1x128xf32>
    %150 = vector.broadcast %149 : vector<1x128xf32> to vector<192x128xf32>
    %151 = arith.mulf %146, %150 : vector<192x128xf32>
    %152 = arith.addf %145, %151 : vector<192x128xf32>
    %c189_i32_34 = arith.constant 189 : i32
    %153 = tpu.dynamic_rotate %111 by %c189_i32_34 dim 0 : vector<192x128xf32>, i32 -> vector<192x128xf32>
    %154 = vector.extract_strided_slice %8 {offsets = [20, 0], sizes = [1, 128], strides = [1, 1]} : vector<49x128xf32> to vector<1x128xf32>
    %155 = vector.shape_cast %154 : vector<1x128xf32> to vector<128xf32>
    %156 = vector.shape_cast %155 : vector<128xf32> to vector<1x128xf32>
    %157 = vector.broadcast %156 : vector<1x128xf32> to vector<192x128xf32>
    %158 = arith.mulf %153, %157 : vector<192x128xf32>
    %159 = arith.addf %152, %158 : vector<192x128xf32>
    %c3_35 = arith.constant 3 : index
    %c0_36 = arith.constant 0 : index
    %c0_37 = arith.constant 0 : index
    %160 = vector.load %arg11[%c3_35, %c0_36, %c0_37] : memref<22x24x128xf32, #tpu.memory_space<vmem>>, vector<8x24x128xf32>
    %161 = vector.shape_cast %160 : vector<8x24x128xf32> to vector<192x128xf32>
    %c3_i32_38 = arith.constant 3 : i32
    %162 = tpu.dynamic_rotate %161 by %c3_i32_38 dim 0 : vector<192x128xf32>, i32 -> vector<192x128xf32>
    %163 = vector.extract_strided_slice %8 {offsets = [21, 0], sizes = [1, 128], strides = [1, 1]} : vector<49x128xf32> to vector<1x128xf32>
    %164 = vector.shape_cast %163 : vector<1x128xf32> to vector<128xf32>
    %165 = vector.shape_cast %164 : vector<128xf32> to vector<1x128xf32>
    %166 = vector.broadcast %165 : vector<1x128xf32> to vector<192x128xf32>
    %167 = arith.mulf %162, %166 : vector<192x128xf32>
    %168 = arith.addf %159, %167 : vector<192x128xf32>
    %c2_i32_39 = arith.constant 2 : i32
    %169 = tpu.dynamic_rotate %161 by %c2_i32_39 dim 0 : vector<192x128xf32>, i32 -> vector<192x128xf32>
    %170 = vector.extract_strided_slice %8 {offsets = [22, 0], sizes = [1, 128], strides = [1, 1]} : vector<49x128xf32> to vector<1x128xf32>
    %171 = vector.shape_cast %170 : vector<1x128xf32> to vector<128xf32>
    %172 = vector.shape_cast %171 : vector<128xf32> to vector<1x128xf32>
    %173 = vector.broadcast %172 : vector<1x128xf32> to vector<192x128xf32>
    %174 = arith.mulf %169, %173 : vector<192x128xf32>
    %175 = arith.addf %168, %174 : vector<192x128xf32>
    %c1_i32_40 = arith.constant 1 : i32
    %176 = tpu.dynamic_rotate %161 by %c1_i32_40 dim 0 : vector<192x128xf32>, i32 -> vector<192x128xf32>
    %177 = vector.extract_strided_slice %8 {offsets = [23, 0], sizes = [1, 128], strides = [1, 1]} : vector<49x128xf32> to vector<1x128xf32>
    %178 = vector.shape_cast %177 : vector<1x128xf32> to vector<128xf32>
    %179 = vector.shape_cast %178 : vector<128xf32> to vector<1x128xf32>
    %180 = vector.broadcast %179 : vector<1x128xf32> to vector<192x128xf32>
    %181 = arith.mulf %176, %180 : vector<192x128xf32>
    %182 = arith.addf %175, %181 : vector<192x128xf32>
    %183 = vector.extract_strided_slice %8 {offsets = [24, 0], sizes = [1, 128], strides = [1, 1]} : vector<49x128xf32> to vector<1x128xf32>
    %184 = vector.shape_cast %183 : vector<1x128xf32> to vector<128xf32>
    %185 = vector.shape_cast %184 : vector<128xf32> to vector<1x128xf32>
    %186 = vector.broadcast %185 : vector<1x128xf32> to vector<192x128xf32>
    %187 = arith.mulf %161, %186 : vector<192x128xf32>
    %188 = arith.addf %182, %187 : vector<192x128xf32>
    %c191_i32_41 = arith.constant 191 : i32
    %189 = tpu.dynamic_rotate %161 by %c191_i32_41 dim 0 : vector<192x128xf32>, i32 -> vector<192x128xf32>
    %190 = vector.extract_strided_slice %8 {offsets = [25, 0], sizes = [1, 128], strides = [1, 1]} : vector<49x128xf32> to vector<1x128xf32>
    %191 = vector.shape_cast %190 : vector<1x128xf32> to vector<128xf32>
    %192 = vector.shape_cast %191 : vector<128xf32> to vector<1x128xf32>
    %193 = vector.broadcast %192 : vector<1x128xf32> to vector<192x128xf32>
    %194 = arith.mulf %189, %193 : vector<192x128xf32>
    %195 = arith.addf %188, %194 : vector<192x128xf32>
    %c190_i32_42 = arith.constant 190 : i32
    %196 = tpu.dynamic_rotate %161 by %c190_i32_42 dim 0 : vector<192x128xf32>, i32 -> vector<192x128xf32>
    %197 = vector.extract_strided_slice %8 {offsets = [26, 0], sizes = [1, 128], strides = [1, 1]} : vector<49x128xf32> to vector<1x128xf32>
    %198 = vector.shape_cast %197 : vector<1x128xf32> to vector<128xf32>
    %199 = vector.shape_cast %198 : vector<128xf32> to vector<1x128xf32>
    %200 = vector.broadcast %199 : vector<1x128xf32> to vector<192x128xf32>
    %201 = arith.mulf %196, %200 : vector<192x128xf32>
    %202 = arith.addf %195, %201 : vector<192x128xf32>
    %c189_i32_43 = arith.constant 189 : i32
    %203 = tpu.dynamic_rotate %161 by %c189_i32_43 dim 0 : vector<192x128xf32>, i32 -> vector<192x128xf32>
    %204 = vector.extract_strided_slice %8 {offsets = [27, 0], sizes = [1, 128], strides = [1, 1]} : vector<49x128xf32> to vector<1x128xf32>
    %205 = vector.shape_cast %204 : vector<1x128xf32> to vector<128xf32>
    %206 = vector.shape_cast %205 : vector<128xf32> to vector<1x128xf32>
    %207 = vector.broadcast %206 : vector<1x128xf32> to vector<192x128xf32>
    %208 = arith.mulf %203, %207 : vector<192x128xf32>
    %209 = arith.addf %202, %208 : vector<192x128xf32>
    %c4 = arith.constant 4 : index
    %c0_44 = arith.constant 0 : index
    %c0_45 = arith.constant 0 : index
    %210 = vector.load %arg11[%c4, %c0_44, %c0_45] : memref<22x24x128xf32, #tpu.memory_space<vmem>>, vector<8x24x128xf32>
    %211 = vector.shape_cast %210 : vector<8x24x128xf32> to vector<192x128xf32>
    %c3_i32_46 = arith.constant 3 : i32
    %212 = tpu.dynamic_rotate %211 by %c3_i32_46 dim 0 : vector<192x128xf32>, i32 -> vector<192x128xf32>
    %213 = vector.extract_strided_slice %8 {offsets = [28, 0], sizes = [1, 128], strides = [1, 1]} : vector<49x128xf32> to vector<1x128xf32>
    %214 = vector.shape_cast %213 : vector<1x128xf32> to vector<128xf32>
    %215 = vector.shape_cast %214 : vector<128xf32> to vector<1x128xf32>
    %216 = vector.broadcast %215 : vector<1x128xf32> to vector<192x128xf32>
    %217 = arith.mulf %212, %216 : vector<192x128xf32>
    %218 = arith.addf %209, %217 : vector<192x128xf32>
    %c2_i32_47 = arith.constant 2 : i32
    %219 = tpu.dynamic_rotate %211 by %c2_i32_47 dim 0 : vector<192x128xf32>, i32 -> vector<192x128xf32>
    %220 = vector.extract_strided_slice %8 {offsets = [29, 0], sizes = [1, 128], strides = [1, 1]} : vector<49x128xf32> to vector<1x128xf32>
    %221 = vector.shape_cast %220 : vector<1x128xf32> to vector<128xf32>
    %222 = vector.shape_cast %221 : vector<128xf32> to vector<1x128xf32>
    %223 = vector.broadcast %222 : vector<1x128xf32> to vector<192x128xf32>
    %224 = arith.mulf %219, %223 : vector<192x128xf32>
    %225 = arith.addf %218, %224 : vector<192x128xf32>
    %c1_i32_48 = arith.constant 1 : i32
    %226 = tpu.dynamic_rotate %211 by %c1_i32_48 dim 0 : vector<192x128xf32>, i32 -> vector<192x128xf32>
    %227 = vector.extract_strided_slice %8 {offsets = [30, 0], sizes = [1, 128], strides = [1, 1]} : vector<49x128xf32> to vector<1x128xf32>
    %228 = vector.shape_cast %227 : vector<1x128xf32> to vector<128xf32>
    %229 = vector.shape_cast %228 : vector<128xf32> to vector<1x128xf32>
    %230 = vector.broadcast %229 : vector<1x128xf32> to vector<192x128xf32>
    %231 = arith.mulf %226, %230 : vector<192x128xf32>
    %232 = arith.addf %225, %231 : vector<192x128xf32>
    %233 = vector.extract_strided_slice %8 {offsets = [31, 0], sizes = [1, 128], strides = [1, 1]} : vector<49x128xf32> to vector<1x128xf32>
    %234 = vector.shape_cast %233 : vector<1x128xf32> to vector<128xf32>
    %235 = vector.shape_cast %234 : vector<128xf32> to vector<1x128xf32>
    %236 = vector.broadcast %235 : vector<1x128xf32> to vector<192x128xf32>
    %237 = arith.mulf %211, %236 : vector<192x128xf32>
    %238 = arith.addf %232, %237 : vector<192x128xf32>
    %c191_i32_49 = arith.constant 191 : i32
    %239 = tpu.dynamic_rotate %211 by %c191_i32_49 dim 0 : vector<192x128xf32>, i32 -> vector<192x128xf32>
    %240 = vector.extract_strided_slice %8 {offsets = [32, 0], sizes = [1, 128], strides = [1, 1]} : vector<49x128xf32> to vector<1x128xf32>
    %241 = vector.shape_cast %240 : vector<1x128xf32> to vector<128xf32>
    %242 = vector.shape_cast %241 : vector<128xf32> to vector<1x128xf32>
    %243 = vector.broadcast %242 : vector<1x128xf32> to vector<192x128xf32>
    %244 = arith.mulf %239, %243 : vector<192x128xf32>
    %245 = arith.addf %238, %244 : vector<192x128xf32>
    %c190_i32_50 = arith.constant 190 : i32
    %246 = tpu.dynamic_rotate %211 by %c190_i32_50 dim 0 : vector<192x128xf32>, i32 -> vector<192x128xf32>
    %247 = vector.extract_strided_slice %8 {offsets = [33, 0], sizes = [1, 128], strides = [1, 1]} : vector<49x128xf32> to vector<1x128xf32>
    %248 = vector.shape_cast %247 : vector<1x128xf32> to vector<128xf32>
    %249 = vector.shape_cast %248 : vector<128xf32> to vector<1x128xf32>
    %250 = vector.broadcast %249 : vector<1x128xf32> to vector<192x128xf32>
    %251 = arith.mulf %246, %250 : vector<192x128xf32>
    %252 = arith.addf %245, %251 : vector<192x128xf32>
    %c189_i32_51 = arith.constant 189 : i32
    %253 = tpu.dynamic_rotate %211 by %c189_i32_51 dim 0 : vector<192x128xf32>, i32 -> vector<192x128xf32>
    %254 = vector.extract_strided_slice %8 {offsets = [34, 0], sizes = [1, 128], strides = [1, 1]} : vector<49x128xf32> to vector<1x128xf32>
    %255 = vector.shape_cast %254 : vector<1x128xf32> to vector<128xf32>
    %256 = vector.shape_cast %255 : vector<128xf32> to vector<1x128xf32>
    %257 = vector.broadcast %256 : vector<1x128xf32> to vector<192x128xf32>
    %258 = arith.mulf %253, %257 : vector<192x128xf32>
    %259 = arith.addf %252, %258 : vector<192x128xf32>
    %c5 = arith.constant 5 : index
    %c0_52 = arith.constant 0 : index
    %c0_53 = arith.constant 0 : index
    %260 = vector.load %arg11[%c5, %c0_52, %c0_53] : memref<22x24x128xf32, #tpu.memory_space<vmem>>, vector<8x24x128xf32>
    %261 = vector.shape_cast %260 : vector<8x24x128xf32> to vector<192x128xf32>
    %c3_i32_54 = arith.constant 3 : i32
    %262 = tpu.dynamic_rotate %261 by %c3_i32_54 dim 0 : vector<192x128xf32>, i32 -> vector<192x128xf32>
    %263 = vector.extract_strided_slice %8 {offsets = [35, 0], sizes = [1, 128], strides = [1, 1]} : vector<49x128xf32> to vector<1x128xf32>
    %264 = vector.shape_cast %263 : vector<1x128xf32> to vector<128xf32>
    %265 = vector.shape_cast %264 : vector<128xf32> to vector<1x128xf32>
    %266 = vector.broadcast %265 : vector<1x128xf32> to vector<192x128xf32>
    %267 = arith.mulf %262, %266 : vector<192x128xf32>
    %268 = arith.addf %259, %267 : vector<192x128xf32>
    %c2_i32_55 = arith.constant 2 : i32
    %269 = tpu.dynamic_rotate %261 by %c2_i32_55 dim 0 : vector<192x128xf32>, i32 -> vector<192x128xf32>
    %270 = vector.extract_strided_slice %8 {offsets = [36, 0], sizes = [1, 128], strides = [1, 1]} : vector<49x128xf32> to vector<1x128xf32>
    %271 = vector.shape_cast %270 : vector<1x128xf32> to vector<128xf32>
    %272 = vector.shape_cast %271 : vector<128xf32> to vector<1x128xf32>
    %273 = vector.broadcast %272 : vector<1x128xf32> to vector<192x128xf32>
    %274 = arith.mulf %269, %273 : vector<192x128xf32>
    %275 = arith.addf %268, %274 : vector<192x128xf32>
    %c1_i32_56 = arith.constant 1 : i32
    %276 = tpu.dynamic_rotate %261 by %c1_i32_56 dim 0 : vector<192x128xf32>, i32 -> vector<192x128xf32>
    %277 = vector.extract_strided_slice %8 {offsets = [37, 0], sizes = [1, 128], strides = [1, 1]} : vector<49x128xf32> to vector<1x128xf32>
    %278 = vector.shape_cast %277 : vector<1x128xf32> to vector<128xf32>
    %279 = vector.shape_cast %278 : vector<128xf32> to vector<1x128xf32>
    %280 = vector.broadcast %279 : vector<1x128xf32> to vector<192x128xf32>
    %281 = arith.mulf %276, %280 : vector<192x128xf32>
    %282 = arith.addf %275, %281 : vector<192x128xf32>
    %283 = vector.extract_strided_slice %8 {offsets = [38, 0], sizes = [1, 128], strides = [1, 1]} : vector<49x128xf32> to vector<1x128xf32>
    %284 = vector.shape_cast %283 : vector<1x128xf32> to vector<128xf32>
    %285 = vector.shape_cast %284 : vector<128xf32> to vector<1x128xf32>
    %286 = vector.broadcast %285 : vector<1x128xf32> to vector<192x128xf32>
    %287 = arith.mulf %261, %286 : vector<192x128xf32>
    %288 = arith.addf %282, %287 : vector<192x128xf32>
    %c191_i32_57 = arith.constant 191 : i32
    %289 = tpu.dynamic_rotate %261 by %c191_i32_57 dim 0 : vector<192x128xf32>, i32 -> vector<192x128xf32>
    %290 = vector.extract_strided_slice %8 {offsets = [39, 0], sizes = [1, 128], strides = [1, 1]} : vector<49x128xf32> to vector<1x128xf32>
    %291 = vector.shape_cast %290 : vector<1x128xf32> to vector<128xf32>
    %292 = vector.shape_cast %291 : vector<128xf32> to vector<1x128xf32>
    %293 = vector.broadcast %292 : vector<1x128xf32> to vector<192x128xf32>
    %294 = arith.mulf %289, %293 : vector<192x128xf32>
    %295 = arith.addf %288, %294 : vector<192x128xf32>
    %c190_i32_58 = arith.constant 190 : i32
    %296 = tpu.dynamic_rotate %261 by %c190_i32_58 dim 0 : vector<192x128xf32>, i32 -> vector<192x128xf32>
    %297 = vector.extract_strided_slice %8 {offsets = [40, 0], sizes = [1, 128], strides = [1, 1]} : vector<49x128xf32> to vector<1x128xf32>
    %298 = vector.shape_cast %297 : vector<1x128xf32> to vector<128xf32>
    %299 = vector.shape_cast %298 : vector<128xf32> to vector<1x128xf32>
    %300 = vector.broadcast %299 : vector<1x128xf32> to vector<192x128xf32>
    %301 = arith.mulf %296, %300 : vector<192x128xf32>
    %302 = arith.addf %295, %301 : vector<192x128xf32>
    %c189_i32_59 = arith.constant 189 : i32
    %303 = tpu.dynamic_rotate %261 by %c189_i32_59 dim 0 : vector<192x128xf32>, i32 -> vector<192x128xf32>
    %304 = vector.extract_strided_slice %8 {offsets = [41, 0], sizes = [1, 128], strides = [1, 1]} : vector<49x128xf32> to vector<1x128xf32>
    %305 = vector.shape_cast %304 : vector<1x128xf32> to vector<128xf32>
    %306 = vector.shape_cast %305 : vector<128xf32> to vector<1x128xf32>
    %307 = vector.broadcast %306 : vector<1x128xf32> to vector<192x128xf32>
    %308 = arith.mulf %303, %307 : vector<192x128xf32>
    %309 = arith.addf %302, %308 : vector<192x128xf32>
    %c6 = arith.constant 6 : index
    %c0_60 = arith.constant 0 : index
    %c0_61 = arith.constant 0 : index
    %310 = vector.load %arg11[%c6, %c0_60, %c0_61] : memref<22x24x128xf32, #tpu.memory_space<vmem>>, vector<8x24x128xf32>
    %311 = vector.shape_cast %310 : vector<8x24x128xf32> to vector<192x128xf32>
    %c3_i32_62 = arith.constant 3 : i32
    %312 = tpu.dynamic_rotate %311 by %c3_i32_62 dim 0 : vector<192x128xf32>, i32 -> vector<192x128xf32>
    %313 = vector.extract_strided_slice %8 {offsets = [42, 0], sizes = [1, 128], strides = [1, 1]} : vector<49x128xf32> to vector<1x128xf32>
    %314 = vector.shape_cast %313 : vector<1x128xf32> to vector<128xf32>
    %315 = vector.shape_cast %314 : vector<128xf32> to vector<1x128xf32>
    %316 = vector.broadcast %315 : vector<1x128xf32> to vector<192x128xf32>
    %317 = arith.mulf %312, %316 : vector<192x128xf32>
    %318 = arith.addf %309, %317 : vector<192x128xf32>
    %c2_i32_63 = arith.constant 2 : i32
    %319 = tpu.dynamic_rotate %311 by %c2_i32_63 dim 0 : vector<192x128xf32>, i32 -> vector<192x128xf32>
    %320 = vector.extract_strided_slice %8 {offsets = [43, 0], sizes = [1, 128], strides = [1, 1]} : vector<49x128xf32> to vector<1x128xf32>
    %321 = vector.shape_cast %320 : vector<1x128xf32> to vector<128xf32>
    %322 = vector.shape_cast %321 : vector<128xf32> to vector<1x128xf32>
    %323 = vector.broadcast %322 : vector<1x128xf32> to vector<192x128xf32>
    %324 = arith.mulf %319, %323 : vector<192x128xf32>
    %325 = arith.addf %318, %324 : vector<192x128xf32>
    %c1_i32_64 = arith.constant 1 : i32
    %326 = tpu.dynamic_rotate %311 by %c1_i32_64 dim 0 : vector<192x128xf32>, i32 -> vector<192x128xf32>
    %327 = vector.extract_strided_slice %8 {offsets = [44, 0], sizes = [1, 128], strides = [1, 1]} : vector<49x128xf32> to vector<1x128xf32>
    %328 = vector.shape_cast %327 : vector<1x128xf32> to vector<128xf32>
    %329 = vector.shape_cast %328 : vector<128xf32> to vector<1x128xf32>
    %330 = vector.broadcast %329 : vector<1x128xf32> to vector<192x128xf32>
    %331 = arith.mulf %326, %330 : vector<192x128xf32>
    %332 = arith.addf %325, %331 : vector<192x128xf32>
    %333 = vector.extract_strided_slice %8 {offsets = [45, 0], sizes = [1, 128], strides = [1, 1]} : vector<49x128xf32> to vector<1x128xf32>
    %334 = vector.shape_cast %333 : vector<1x128xf32> to vector<128xf32>
    %335 = vector.shape_cast %334 : vector<128xf32> to vector<1x128xf32>
    %336 = vector.broadcast %335 : vector<1x128xf32> to vector<192x128xf32>
    %337 = arith.mulf %311, %336 : vector<192x128xf32>
    %338 = arith.addf %332, %337 : vector<192x128xf32>
    %c191_i32_65 = arith.constant 191 : i32
    %339 = tpu.dynamic_rotate %311 by %c191_i32_65 dim 0 : vector<192x128xf32>, i32 -> vector<192x128xf32>
    %340 = vector.extract_strided_slice %8 {offsets = [46, 0], sizes = [1, 128], strides = [1, 1]} : vector<49x128xf32> to vector<1x128xf32>
    %341 = vector.shape_cast %340 : vector<1x128xf32> to vector<128xf32>
    %342 = vector.shape_cast %341 : vector<128xf32> to vector<1x128xf32>
    %343 = vector.broadcast %342 : vector<1x128xf32> to vector<192x128xf32>
    %344 = arith.mulf %339, %343 : vector<192x128xf32>
    %345 = arith.addf %338, %344 : vector<192x128xf32>
    %c190_i32_66 = arith.constant 190 : i32
    %346 = tpu.dynamic_rotate %311 by %c190_i32_66 dim 0 : vector<192x128xf32>, i32 -> vector<192x128xf32>
    %347 = vector.extract_strided_slice %8 {offsets = [47, 0], sizes = [1, 128], strides = [1, 1]} : vector<49x128xf32> to vector<1x128xf32>
    %348 = vector.shape_cast %347 : vector<1x128xf32> to vector<128xf32>
    %349 = vector.shape_cast %348 : vector<128xf32> to vector<1x128xf32>
    %350 = vector.broadcast %349 : vector<1x128xf32> to vector<192x128xf32>
    %351 = arith.mulf %346, %350 : vector<192x128xf32>
    %352 = arith.addf %345, %351 : vector<192x128xf32>
    %c189_i32_67 = arith.constant 189 : i32
    %353 = tpu.dynamic_rotate %311 by %c189_i32_67 dim 0 : vector<192x128xf32>, i32 -> vector<192x128xf32>
    %354 = vector.extract_strided_slice %8 {offsets = [48, 0], sizes = [1, 128], strides = [1, 1]} : vector<49x128xf32> to vector<1x128xf32>
    %355 = vector.shape_cast %354 : vector<1x128xf32> to vector<128xf32>
    %356 = vector.shape_cast %355 : vector<128xf32> to vector<1x128xf32>
    %357 = vector.broadcast %356 : vector<1x128xf32> to vector<192x128xf32>
    %358 = arith.mulf %353, %357 : vector<192x128xf32>
    %359 = arith.addf %352, %358 : vector<192x128xf32>
    %360 = vector.shape_cast %359 : vector<192x128xf32> to vector<8x24x128xf32>
    %361 = vector.extract_strided_slice %360 {offsets = [0, 0, 0], sizes = [8, 16, 128], strides = [1, 1, 1]} : vector<8x24x128xf32> to vector<8x16x128xf32>
    %362 = vector.shape_cast %361 : vector<8x16x128xf32> to vector<128x128xf32>
    %c0_68 = arith.constant 0 : index
    %c0_69 = arith.constant 0 : index
    %363 = vector.load %arg12[%c0_68, %c0_69] : memref<256x128xf32, #tpu.memory_space<vmem>>, vector<128x128xf32>
    tpu.vector_store %arg12[%c0_68, %c0_69], %362 {strides = array<i32>} : memref<256x128xf32, #tpu.memory_space<vmem>>, vector<128x128xf32>,
    %364 = vector.shape_cast %362 : vector<128x128xf32> to vector<1x128x128xf32>
    %cst_70 = arith.constant dense<0.000000e+00> : vector<1xf32>
    %365 = vector.multi_reduction <add>, %364, %cst_70 [1, 2] : vector<1x128x128xf32> to vector<1xf32>
    %366 = vector.shape_cast %365 : vector<1xf32> to vector<1x1x1xf32>
    %367 = vector.extract %366[0, 0, 0] : f32 from vector<1x1x1xf32>
    %cst_71 = arith.constant 0.000000e+00 : f32
    %368 = arith.addf %cst_71, %367 : f32
    %cst_72 = arith.constant 0.000000e+00 : f32
    %369 = vector.broadcast %cst_72 : f32 to vector<192x128xf32>
    %c8 = arith.constant 8 : index
    %c0_73 = arith.constant 0 : index
    %c0_74 = arith.constant 0 : index
    %370 = vector.load %arg11[%c8, %c0_73, %c0_74] : memref<22x24x128xf32, #tpu.memory_space<vmem>>, vector<8x24x128xf32>
    %371 = vector.shape_cast %370 : vector<8x24x128xf32> to vector<192x128xf32>
    %c3_i32_75 = arith.constant 3 : i32
    %372 = tpu.dynamic_rotate %371 by %c3_i32_75 dim 0 : vector<192x128xf32>, i32 -> vector<192x128xf32>
    %373 = vector.extract_strided_slice %8 {offsets = [0, 0], sizes = [1, 128], strides = [1, 1]} : vector<49x128xf32> to vector<1x128xf32>
    %374 = vector.shape_cast %373 : vector<1x128xf32> to vector<128xf32>
    %375 = vector.shape_cast %374 : vector<128xf32> to vector<1x128xf32>
    %376 = vector.broadcast %375 : vector<1x128xf32> to vector<192x128xf32>
    %377 = arith.mulf %372, %376 : vector<192x128xf32>
    %378 = arith.addf %369, %377 : vector<192x128xf32>
    %c2_i32_76 = arith.constant 2 : i32
    %379 = tpu.dynamic_rotate %371 by %c2_i32_76 dim 0 : vector<192x128xf32>, i32 -> vector<192x128xf32>
    %380 = vector.extract_strided_slice %8 {offsets = [1, 0], sizes = [1, 128], strides = [1, 1]} : vector<49x128xf32> to vector<1x128xf32>
    %381 = vector.shape_cast %380 : vector<1x128xf32> to vector<128xf32>
    %382 = vector.shape_cast %381 : vector<128xf32> to vector<1x128xf32>
    %383 = vector.broadcast %382 : vector<1x128xf32> to vector<192x128xf32>
    %384 = arith.mulf %379, %383 : vector<192x128xf32>
    %385 = arith.addf %378, %384 : vector<192x128xf32>
    %c1_i32_77 = arith.constant 1 : i32
    %386 = tpu.dynamic_rotate %371 by %c1_i32_77 dim 0 : vector<192x128xf32>, i32 -> vector<192x128xf32>
    %387 = vector.extract_strided_slice %8 {offsets = [2, 0], sizes = [1, 128], strides = [1, 1]} : vector<49x128xf32> to vector<1x128xf32>
    %388 = vector.shape_cast %387 : vector<1x128xf32> to vector<128xf32>
    %389 = vector.shape_cast %388 : vector<128xf32> to vector<1x128xf32>
    %390 = vector.broadcast %389 : vector<1x128xf32> to vector<192x128xf32>
    %391 = arith.mulf %386, %390 : vector<192x128xf32>
    %392 = arith.addf %385, %391 : vector<192x128xf32>
    %393 = vector.extract_strided_slice %8 {offsets = [3, 0], sizes = [1, 128], strides = [1, 1]} : vector<49x128xf32> to vector<1x128xf32>
    %394 = vector.shape_cast %393 : vector<1x128xf32> to vector<128xf32>
    %395 = vector.shape_cast %394 : vector<128xf32> to vector<1x128xf32>
    %396 = vector.broadcast %395 : vector<1x128xf32> to vector<192x128xf32>
    %397 = arith.mulf %371, %396 : vector<192x128xf32>
    %398 = arith.addf %392, %397 : vector<192x128xf32>
    %c191_i32_78 = arith.constant 191 : i32
    %399 = tpu.dynamic_rotate %371 by %c191_i32_78 dim 0 : vector<192x128xf32>, i32 -> vector<192x128xf32>
    %400 = vector.extract_strided_slice %8 {offsets = [4, 0], sizes = [1, 128], strides = [1, 1]} : vector<49x128xf32> to vector<1x128xf32>
    %401 = vector.shape_cast %400 : vector<1x128xf32> to vector<128xf32>
    %402 = vector.shape_cast %401 : vector<128xf32> to vector<1x128xf32>
    %403 = vector.broadcast %402 : vector<1x128xf32> to vector<192x128xf32>
    %404 = arith.mulf %399, %403 : vector<192x128xf32>
    %405 = arith.addf %398, %404 : vector<192x128xf32>
    %c190_i32_79 = arith.constant 190 : i32
    %406 = tpu.dynamic_rotate %371 by %c190_i32_79 dim 0 : vector<192x128xf32>, i32 -> vector<192x128xf32>
    %407 = vector.extract_strided_slice %8 {offsets = [5, 0], sizes = [1, 128], strides = [1, 1]} : vector<49x128xf32> to vector<1x128xf32>
    %408 = vector.shape_cast %407 : vector<1x128xf32> to vector<128xf32>
    %409 = vector.shape_cast %408 : vector<128xf32> to vector<1x128xf32>
    %410 = vector.broadcast %409 : vector<1x128xf32> to vector<192x128xf32>
    %411 = arith.mulf %406, %410 : vector<192x128xf32>
    %412 = arith.addf %405, %411 : vector<192x128xf32>
    %c189_i32_80 = arith.constant 189 : i32
    %413 = tpu.dynamic_rotate %371 by %c189_i32_80 dim 0 : vector<192x128xf32>, i32 -> vector<192x128xf32>
    %414 = vector.extract_strided_slice %8 {offsets = [6, 0], sizes = [1, 128], strides = [1, 1]} : vector<49x128xf32> to vector<1x128xf32>
    %415 = vector.shape_cast %414 : vector<1x128xf32> to vector<128xf32>
    %416 = vector.shape_cast %415 : vector<128xf32> to vector<1x128xf32>
    %417 = vector.broadcast %416 : vector<1x128xf32> to vector<192x128xf32>
    %418 = arith.mulf %413, %417 : vector<192x128xf32>
    %419 = arith.addf %412, %418 : vector<192x128xf32>
    %c9 = arith.constant 9 : index
    %c0_81 = arith.constant 0 : index
    %c0_82 = arith.constant 0 : index
    %420 = vector.load %arg11[%c9, %c0_81, %c0_82] : memref<22x24x128xf32, #tpu.memory_space<vmem>>, vector<8x24x128xf32>
    %421 = vector.shape_cast %420 : vector<8x24x128xf32> to vector<192x128xf32>
    %c3_i32_83 = arith.constant 3 : i32
    %422 = tpu.dynamic_rotate %421 by %c3_i32_83 dim 0 : vector<192x128xf32>, i32 -> vector<192x128xf32>
    %423 = vector.extract_strided_slice %8 {offsets = [7, 0], sizes = [1, 128], strides = [1, 1]} : vector<49x128xf32> to vector<1x128xf32>
    %424 = vector.shape_cast %423 : vector<1x128xf32> to vector<128xf32>
    %425 = vector.shape_cast %424 : vector<128xf32> to vector<1x128xf32>
    %426 = vector.broadcast %425 : vector<1x128xf32> to vector<192x128xf32>
    %427 = arith.mulf %422, %426 : vector<192x128xf32>
    %428 = arith.addf %419, %427 : vector<192x128xf32>
    %c2_i32_84 = arith.constant 2 : i32
    %429 = tpu.dynamic_rotate %421 by %c2_i32_84 dim 0 : vector<192x128xf32>, i32 -> vector<192x128xf32>
    %430 = vector.extract_strided_slice %8 {offsets = [8, 0], sizes = [1, 128], strides = [1, 1]} : vector<49x128xf32> to vector<1x128xf32>
    %431 = vector.shape_cast %430 : vector<1x128xf32> to vector<128xf32>
    %432 = vector.shape_cast %431 : vector<128xf32> to vector<1x128xf32>
    %433 = vector.broadcast %432 : vector<1x128xf32> to vector<192x128xf32>
    %434 = arith.mulf %429, %433 : vector<192x128xf32>
    %435 = arith.addf %428, %434 : vector<192x128xf32>
    %c1_i32_85 = arith.constant 1 : i32
    %436 = tpu.dynamic_rotate %421 by %c1_i32_85 dim 0 : vector<192x128xf32>, i32 -> vector<192x128xf32>
    %437 = vector.extract_strided_slice %8 {offsets = [9, 0], sizes = [1, 128], strides = [1, 1]} : vector<49x128xf32> to vector<1x128xf32>
    %438 = vector.shape_cast %437 : vector<1x128xf32> to vector<128xf32>
    %439 = vector.shape_cast %438 : vector<128xf32> to vector<1x128xf32>
    %440 = vector.broadcast %439 : vector<1x128xf32> to vector<192x128xf32>
    %441 = arith.mulf %436, %440 : vector<192x128xf32>
    %442 = arith.addf %435, %441 : vector<192x128xf32>
    %443 = vector.extract_strided_slice %8 {offsets = [10, 0], sizes = [1, 128], strides = [1, 1]} : vector<49x128xf32> to vector<1x128xf32>
    %444 = vector.shape_cast %443 : vector<1x128xf32> to vector<128xf32>
    %445 = vector.shape_cast %444 : vector<128xf32> to vector<1x128xf32>
    %446 = vector.broadcast %445 : vector<1x128xf32> to vector<192x128xf32>
    %447 = arith.mulf %421, %446 : vector<192x128xf32>
    %448 = arith.addf %442, %447 : vector<192x128xf32>
    %c191_i32_86 = arith.constant 191 : i32
    %449 = tpu.dynamic_rotate %421 by %c191_i32_86 dim 0 : vector<192x128xf32>, i32 -> vector<192x128xf32>
    %450 = vector.extract_strided_slice %8 {offsets = [11, 0], sizes = [1, 128], strides = [1, 1]} : vector<49x128xf32> to vector<1x128xf32>
    %451 = vector.shape_cast %450 : vector<1x128xf32> to vector<128xf32>
    %452 = vector.shape_cast %451 : vector<128xf32> to vector<1x128xf32>
    %453 = vector.broadcast %452 : vector<1x128xf32> to vector<192x128xf32>
    %454 = arith.mulf %449, %453 : vector<192x128xf32>
    %455 = arith.addf %448, %454 : vector<192x128xf32>
    %c190_i32_87 = arith.constant 190 : i32
    %456 = tpu.dynamic_rotate %421 by %c190_i32_87 dim 0 : vector<192x128xf32>, i32 -> vector<192x128xf32>
    %457 = vector.extract_strided_slice %8 {offsets = [12, 0], sizes = [1, 128], strides = [1, 1]} : vector<49x128xf32> to vector<1x128xf32>
    %458 = vector.shape_cast %457 : vector<1x128xf32> to vector<128xf32>
    %459 = vector.shape_cast %458 : vector<128xf32> to vector<1x128xf32>
    %460 = vector.broadcast %459 : vector<1x128xf32> to vector<192x128xf32>
    %461 = arith.mulf %456, %460 : vector<192x128xf32>
    %462 = arith.addf %455, %461 : vector<192x128xf32>
    %c189_i32_88 = arith.constant 189 : i32
    %463 = tpu.dynamic_rotate %421 by %c189_i32_88 dim 0 : vector<192x128xf32>, i32 -> vector<192x128xf32>
    %464 = vector.extract_strided_slice %8 {offsets = [13, 0], sizes = [1, 128], strides = [1, 1]} : vector<49x128xf32> to vector<1x128xf32>
    %465 = vector.shape_cast %464 : vector<1x128xf32> to vector<128xf32>
    %466 = vector.shape_cast %465 : vector<128xf32> to vector<1x128xf32>
    %467 = vector.broadcast %466 : vector<1x128xf32> to vector<192x128xf32>
    %468 = arith.mulf %463, %467 : vector<192x128xf32>
    %469 = arith.addf %462, %468 : vector<192x128xf32>
    %c10 = arith.constant 10 : index
    %c0_89 = arith.constant 0 : index
    %c0_90 = arith.constant 0 : index
    %470 = vector.load %arg11[%c10, %c0_89, %c0_90] : memref<22x24x128xf32, #tpu.memory_space<vmem>>, vector<8x24x128xf32>
    %471 = vector.shape_cast %470 : vector<8x24x128xf32> to vector<192x128xf32>
    %c3_i32_91 = arith.constant 3 : i32
    %472 = tpu.dynamic_rotate %471 by %c3_i32_91 dim 0 : vector<192x128xf32>, i32 -> vector<192x128xf32>
    %473 = vector.extract_strided_slice %8 {offsets = [14, 0], sizes = [1, 128], strides = [1, 1]} : vector<49x128xf32> to vector<1x128xf32>
    %474 = vector.shape_cast %473 : vector<1x128xf32> to vector<128xf32>
    %475 = vector.shape_cast %474 : vector<128xf32> to vector<1x128xf32>
    %476 = vector.broadcast %475 : vector<1x128xf32> to vector<192x128xf32>
    %477 = arith.mulf %472, %476 : vector<192x128xf32>
    %478 = arith.addf %469, %477 : vector<192x128xf32>
    %c2_i32_92 = arith.constant 2 : i32
    %479 = tpu.dynamic_rotate %471 by %c2_i32_92 dim 0 : vector<192x128xf32>, i32 -> vector<192x128xf32>
    %480 = vector.extract_strided_slice %8 {offsets = [15, 0], sizes = [1, 128], strides = [1, 1]} : vector<49x128xf32> to vector<1x128xf32>
    %481 = vector.shape_cast %480 : vector<1x128xf32> to vector<128xf32>
    %482 = vector.shape_cast %481 : vector<128xf32> to vector<1x128xf32>
    %483 = vector.broadcast %482 : vector<1x128xf32> to vector<192x128xf32>
    %484 = arith.mulf %479, %483 : vector<192x128xf32>
    %485 = arith.addf %478, %484 : vector<192x128xf32>
    %c1_i32_93 = arith.constant 1 : i32
    %486 = tpu.dynamic_rotate %471 by %c1_i32_93 dim 0 : vector<192x128xf32>, i32 -> vector<192x128xf32>
    %487 = vector.extract_strided_slice %8 {offsets = [16, 0], sizes = [1, 128], strides = [1, 1]} : vector<49x128xf32> to vector<1x128xf32>
    %488 = vector.shape_cast %487 : vector<1x128xf32> to vector<128xf32>
    %489 = vector.shape_cast %488 : vector<128xf32> to vector<1x128xf32>
    %490 = vector.broadcast %489 : vector<1x128xf32> to vector<192x128xf32>
    %491 = arith.mulf %486, %490 : vector<192x128xf32>
    %492 = arith.addf %485, %491 : vector<192x128xf32>
    %493 = vector.extract_strided_slice %8 {offsets = [17, 0], sizes = [1, 128], strides = [1, 1]} : vector<49x128xf32> to vector<1x128xf32>
    %494 = vector.shape_cast %493 : vector<1x128xf32> to vector<128xf32>
    %495 = vector.shape_cast %494 : vector<128xf32> to vector<1x128xf32>
    %496 = vector.broadcast %495 : vector<1x128xf32> to vector<192x128xf32>
    %497 = arith.mulf %471, %496 : vector<192x128xf32>
    %498 = arith.addf %492, %497 : vector<192x128xf32>
    %c191_i32_94 = arith.constant 191 : i32
    %499 = tpu.dynamic_rotate %471 by %c191_i32_94 dim 0 : vector<192x128xf32>, i32 -> vector<192x128xf32>
    %500 = vector.extract_strided_slice %8 {offsets = [18, 0], sizes = [1, 128], strides = [1, 1]} : vector<49x128xf32> to vector<1x128xf32>
    %501 = vector.shape_cast %500 : vector<1x128xf32> to vector<128xf32>
    %502 = vector.shape_cast %501 : vector<128xf32> to vector<1x128xf32>
    %503 = vector.broadcast %502 : vector<1x128xf32> to vector<192x128xf32>
    %504 = arith.mulf %499, %503 : vector<192x128xf32>
    %505 = arith.addf %498, %504 : vector<192x128xf32>
    %c190_i32_95 = arith.constant 190 : i32
    %506 = tpu.dynamic_rotate %471 by %c190_i32_95 dim 0 : vector<192x128xf32>, i32 -> vector<192x128xf32>
    %507 = vector.extract_strided_slice %8 {offsets = [19, 0], sizes = [1, 128], strides = [1, 1]} : vector<49x128xf32> to vector<1x128xf32>
    %508 = vector.shape_cast %507 : vector<1x128xf32> to vector<128xf32>
    %509 = vector.shape_cast %508 : vector<128xf32> to vector<1x128xf32>
    %510 = vector.broadcast %509 : vector<1x128xf32> to vector<192x128xf32>
    %511 = arith.mulf %506, %510 : vector<192x128xf32>
    %512 = arith.addf %505, %511 : vector<192x128xf32>
    %c189_i32_96 = arith.constant 189 : i32
    %513 = tpu.dynamic_rotate %471 by %c189_i32_96 dim 0 : vector<192x128xf32>, i32 -> vector<192x128xf32>
    %514 = vector.extract_strided_slice %8 {offsets = [20, 0], sizes = [1, 128], strides = [1, 1]} : vector<49x128xf32> to vector<1x128xf32>
    %515 = vector.shape_cast %514 : vector<1x128xf32> to vector<128xf32>
    %516 = vector.shape_cast %515 : vector<128xf32> to vector<1x128xf32>
    %517 = vector.broadcast %516 : vector<1x128xf32> to vector<192x128xf32>
    %518 = arith.mulf %513, %517 : vector<192x128xf32>
    %519 = arith.addf %512, %518 : vector<192x128xf32>
    %c11 = arith.constant 11 : index
    %c0_97 = arith.constant 0 : index
    %c0_98 = arith.constant 0 : index
    %520 = vector.load %arg11[%c11, %c0_97, %c0_98] : memref<22x24x128xf32, #tpu.memory_space<vmem>>, vector<8x24x128xf32>
    %521 = vector.shape_cast %520 : vector<8x24x128xf32> to vector<192x128xf32>
    %c3_i32_99 = arith.constant 3 : i32
    %522 = tpu.dynamic_rotate %521 by %c3_i32_99 dim 0 : vector<192x128xf32>, i32 -> vector<192x128xf32>
    %523 = vector.extract_strided_slice %8 {offsets = [21, 0], sizes = [1, 128], strides = [1, 1]} : vector<49x128xf32> to vector<1x128xf32>
    %524 = vector.shape_cast %523 : vector<1x128xf32> to vector<128xf32>
    %525 = vector.shape_cast %524 : vector<128xf32> to vector<1x128xf32>
    %526 = vector.broadcast %525 : vector<1x128xf32> to vector<192x128xf32>
    %527 = arith.mulf %522, %526 : vector<192x128xf32>
    %528 = arith.addf %519, %527 : vector<192x128xf32>
    %c2_i32_100 = arith.constant 2 : i32
    %529 = tpu.dynamic_rotate %521 by %c2_i32_100 dim 0 : vector<192x128xf32>, i32 -> vector<192x128xf32>
    %530 = vector.extract_strided_slice %8 {offsets = [22, 0], sizes = [1, 128], strides = [1, 1]} : vector<49x128xf32> to vector<1x128xf32>
    %531 = vector.shape_cast %530 : vector<1x128xf32> to vector<128xf32>
    %532 = vector.shape_cast %531 : vector<128xf32> to vector<1x128xf32>
    %533 = vector.broadcast %532 : vector<1x128xf32> to vector<192x128xf32>
    %534 = arith.mulf %529, %533 : vector<192x128xf32>
    %535 = arith.addf %528, %534 : vector<192x128xf32>
    %c1_i32_101 = arith.constant 1 : i32
    %536 = tpu.dynamic_rotate %521 by %c1_i32_101 dim 0 : vector<192x128xf32>, i32 -> vector<192x128xf32>
    %537 = vector.extract_strided_slice %8 {offsets = [23, 0], sizes = [1, 128], strides = [1, 1]} : vector<49x128xf32> to vector<1x128xf32>
    %538 = vector.shape_cast %537 : vector<1x128xf32> to vector<128xf32>
    %539 = vector.shape_cast %538 : vector<128xf32> to vector<1x128xf32>
    %540 = vector.broadcast %539 : vector<1x128xf32> to vector<192x128xf32>
    %541 = arith.mulf %536, %540 : vector<192x128xf32>
    %542 = arith.addf %535, %541 : vector<192x128xf32>
    %543 = vector.extract_strided_slice %8 {offsets = [24, 0], sizes = [1, 128], strides = [1, 1]} : vector<49x128xf32> to vector<1x128xf32>
    %544 = vector.shape_cast %543 : vector<1x128xf32> to vector<128xf32>
    %545 = vector.shape_cast %544 : vector<128xf32> to vector<1x128xf32>
    %546 = vector.broadcast %545 : vector<1x128xf32> to vector<192x128xf32>
    %547 = arith.mulf %521, %546 : vector<192x128xf32>
    %548 = arith.addf %542, %547 : vector<192x128xf32>
    %c191_i32_102 = arith.constant 191 : i32
    %549 = tpu.dynamic_rotate %521 by %c191_i32_102 dim 0 : vector<192x128xf32>, i32 -> vector<192x128xf32>
    %550 = vector.extract_strided_slice %8 {offsets = [25, 0], sizes = [1, 128], strides = [1, 1]} : vector<49x128xf32> to vector<1x128xf32>
    %551 = vector.shape_cast %550 : vector<1x128xf32> to vector<128xf32>
    %552 = vector.shape_cast %551 : vector<128xf32> to vector<1x128xf32>
    %553 = vector.broadcast %552 : vector<1x128xf32> to vector<192x128xf32>
    %554 = arith.mulf %549, %553 : vector<192x128xf32>
    %555 = arith.addf %548, %554 : vector<192x128xf32>
    %c190_i32_103 = arith.constant 190 : i32
    %556 = tpu.dynamic_rotate %521 by %c190_i32_103 dim 0 : vector<192x128xf32>, i32 -> vector<192x128xf32>
    %557 = vector.extract_strided_slice %8 {offsets = [26, 0], sizes = [1, 128], strides = [1, 1]} : vector<49x128xf32> to vector<1x128xf32>
    %558 = vector.shape_cast %557 : vector<1x128xf32> to vector<128xf32>
    %559 = vector.shape_cast %558 : vector<128xf32> to vector<1x128xf32>
    %560 = vector.broadcast %559 : vector<1x128xf32> to vector<192x128xf32>
    %561 = arith.mulf %556, %560 : vector<192x128xf32>
    %562 = arith.addf %555, %561 : vector<192x128xf32>
    %c189_i32_104 = arith.constant 189 : i32
    %563 = tpu.dynamic_rotate %521 by %c189_i32_104 dim 0 : vector<192x128xf32>, i32 -> vector<192x128xf32>
    %564 = vector.extract_strided_slice %8 {offsets = [27, 0], sizes = [1, 128], strides = [1, 1]} : vector<49x128xf32> to vector<1x128xf32>
    %565 = vector.shape_cast %564 : vector<1x128xf32> to vector<128xf32>
    %566 = vector.shape_cast %565 : vector<128xf32> to vector<1x128xf32>
    %567 = vector.broadcast %566 : vector<1x128xf32> to vector<192x128xf32>
    %568 = arith.mulf %563, %567 : vector<192x128xf32>
    %569 = arith.addf %562, %568 : vector<192x128xf32>
    %c12 = arith.constant 12 : index
    %c0_105 = arith.constant 0 : index
    %c0_106 = arith.constant 0 : index
    %570 = vector.load %arg11[%c12, %c0_105, %c0_106] : memref<22x24x128xf32, #tpu.memory_space<vmem>>, vector<8x24x128xf32>
    %571 = vector.shape_cast %570 : vector<8x24x128xf32> to vector<192x128xf32>
    %c3_i32_107 = arith.constant 3 : i32
    %572 = tpu.dynamic_rotate %571 by %c3_i32_107 dim 0 : vector<192x128xf32>, i32 -> vector<192x128xf32>
    %573 = vector.extract_strided_slice %8 {offsets = [28, 0], sizes = [1, 128], strides = [1, 1]} : vector<49x128xf32> to vector<1x128xf32>
    %574 = vector.shape_cast %573 : vector<1x128xf32> to vector<128xf32>
    %575 = vector.shape_cast %574 : vector<128xf32> to vector<1x128xf32>
    %576 = vector.broadcast %575 : vector<1x128xf32> to vector<192x128xf32>
    %577 = arith.mulf %572, %576 : vector<192x128xf32>
    %578 = arith.addf %569, %577 : vector<192x128xf32>
    %c2_i32_108 = arith.constant 2 : i32
    %579 = tpu.dynamic_rotate %571 by %c2_i32_108 dim 0 : vector<192x128xf32>, i32 -> vector<192x128xf32>
    %580 = vector.extract_strided_slice %8 {offsets = [29, 0], sizes = [1, 128], strides = [1, 1]} : vector<49x128xf32> to vector<1x128xf32>
    %581 = vector.shape_cast %580 : vector<1x128xf32> to vector<128xf32>
    %582 = vector.shape_cast %581 : vector<128xf32> to vector<1x128xf32>
    %583 = vector.broadcast %582 : vector<1x128xf32> to vector<192x128xf32>
    %584 = arith.mulf %579, %583 : vector<192x128xf32>
    %585 = arith.addf %578, %584 : vector<192x128xf32>
    %c1_i32_109 = arith.constant 1 : i32
    %586 = tpu.dynamic_rotate %571 by %c1_i32_109 dim 0 : vector<192x128xf32>, i32 -> vector<192x128xf32>
    %587 = vector.extract_strided_slice %8 {offsets = [30, 0], sizes = [1, 128], strides = [1, 1]} : vector<49x128xf32> to vector<1x128xf32>
    %588 = vector.shape_cast %587 : vector<1x128xf32> to vector<128xf32>
    %589 = vector.shape_cast %588 : vector<128xf32> to vector<1x128xf32>
    %590 = vector.broadcast %589 : vector<1x128xf32> to vector<192x128xf32>
    %591 = arith.mulf %586, %590 : vector<192x128xf32>
    %592 = arith.addf %585, %591 : vector<192x128xf32>
    %593 = vector.extract_strided_slice %8 {offsets = [31, 0], sizes = [1, 128], strides = [1, 1]} : vector<49x128xf32> to vector<1x128xf32>
    %594 = vector.shape_cast %593 : vector<1x128xf32> to vector<128xf32>
    %595 = vector.shape_cast %594 : vector<128xf32> to vector<1x128xf32>
    %596 = vector.broadcast %595 : vector<1x128xf32> to vector<192x128xf32>
    %597 = arith.mulf %571, %596 : vector<192x128xf32>
    %598 = arith.addf %592, %597 : vector<192x128xf32>
    %c191_i32_110 = arith.constant 191 : i32
    %599 = tpu.dynamic_rotate %571 by %c191_i32_110 dim 0 : vector<192x128xf32>, i32 -> vector<192x128xf32>
    %600 = vector.extract_strided_slice %8 {offsets = [32, 0], sizes = [1, 128], strides = [1, 1]} : vector<49x128xf32> to vector<1x128xf32>
    %601 = vector.shape_cast %600 : vector<1x128xf32> to vector<128xf32>
    %602 = vector.shape_cast %601 : vector<128xf32> to vector<1x128xf32>
    %603 = vector.broadcast %602 : vector<1x128xf32> to vector<192x128xf32>
    %604 = arith.mulf %599, %603 : vector<192x128xf32>
    %605 = arith.addf %598, %604 : vector<192x128xf32>
    %c190_i32_111 = arith.constant 190 : i32
    %606 = tpu.dynamic_rotate %571 by %c190_i32_111 dim 0 : vector<192x128xf32>, i32 -> vector<192x128xf32>
    %607 = vector.extract_strided_slice %8 {offsets = [33, 0], sizes = [1, 128], strides = [1, 1]} : vector<49x128xf32> to vector<1x128xf32>
    %608 = vector.shape_cast %607 : vector<1x128xf32> to vector<128xf32>
    %609 = vector.shape_cast %608 : vector<128xf32> to vector<1x128xf32>
    %610 = vector.broadcast %609 : vector<1x128xf32> to vector<192x128xf32>
    %611 = arith.mulf %606, %610 : vector<192x128xf32>
    %612 = arith.addf %605, %611 : vector<192x128xf32>
    %c189_i32_112 = arith.constant 189 : i32
    %613 = tpu.dynamic_rotate %571 by %c189_i32_112 dim 0 : vector<192x128xf32>, i32 -> vector<192x128xf32>
    %614 = vector.extract_strided_slice %8 {offsets = [34, 0], sizes = [1, 128], strides = [1, 1]} : vector<49x128xf32> to vector<1x128xf32>
    %615 = vector.shape_cast %614 : vector<1x128xf32> to vector<128xf32>
    %616 = vector.shape_cast %615 : vector<128xf32> to vector<1x128xf32>
    %617 = vector.broadcast %616 : vector<1x128xf32> to vector<192x128xf32>
    %618 = arith.mulf %613, %617 : vector<192x128xf32>
    %619 = arith.addf %612, %618 : vector<192x128xf32>
    %c13 = arith.constant 13 : index
    %c0_113 = arith.constant 0 : index
    %c0_114 = arith.constant 0 : index
    %620 = vector.load %arg11[%c13, %c0_113, %c0_114] : memref<22x24x128xf32, #tpu.memory_space<vmem>>, vector<8x24x128xf32>
    %621 = vector.shape_cast %620 : vector<8x24x128xf32> to vector<192x128xf32>
    %c3_i32_115 = arith.constant 3 : i32
    %622 = tpu.dynamic_rotate %621 by %c3_i32_115 dim 0 : vector<192x128xf32>, i32 -> vector<192x128xf32>
    %623 = vector.extract_strided_slice %8 {offsets = [35, 0], sizes = [1, 128], strides = [1, 1]} : vector<49x128xf32> to vector<1x128xf32>
    %624 = vector.shape_cast %623 : vector<1x128xf32> to vector<128xf32>
    %625 = vector.shape_cast %624 : vector<128xf32> to vector<1x128xf32>
    %626 = vector.broadcast %625 : vector<1x128xf32> to vector<192x128xf32>
    %627 = arith.mulf %622, %626 : vector<192x128xf32>
    %628 = arith.addf %619, %627 : vector<192x128xf32>
    %c2_i32_116 = arith.constant 2 : i32
    %629 = tpu.dynamic_rotate %621 by %c2_i32_116 dim 0 : vector<192x128xf32>, i32 -> vector<192x128xf32>
    %630 = vector.extract_strided_slice %8 {offsets = [36, 0], sizes = [1, 128], strides = [1, 1]} : vector<49x128xf32> to vector<1x128xf32>
    %631 = vector.shape_cast %630 : vector<1x128xf32> to vector<128xf32>
    %632 = vector.shape_cast %631 : vector<128xf32> to vector<1x128xf32>
    %633 = vector.broadcast %632 : vector<1x128xf32> to vector<192x128xf32>
    %634 = arith.mulf %629, %633 : vector<192x128xf32>
    %635 = arith.addf %628, %634 : vector<192x128xf32>
    %c1_i32_117 = arith.constant 1 : i32
    %636 = tpu.dynamic_rotate %621 by %c1_i32_117 dim 0 : vector<192x128xf32>, i32 -> vector<192x128xf32>
    %637 = vector.extract_strided_slice %8 {offsets = [37, 0], sizes = [1, 128], strides = [1, 1]} : vector<49x128xf32> to vector<1x128xf32>
    %638 = vector.shape_cast %637 : vector<1x128xf32> to vector<128xf32>
    %639 = vector.shape_cast %638 : vector<128xf32> to vector<1x128xf32>
    %640 = vector.broadcast %639 : vector<1x128xf32> to vector<192x128xf32>
    %641 = arith.mulf %636, %640 : vector<192x128xf32>
    %642 = arith.addf %635, %641 : vector<192x128xf32>
    %643 = vector.extract_strided_slice %8 {offsets = [38, 0], sizes = [1, 128], strides = [1, 1]} : vector<49x128xf32> to vector<1x128xf32>
    %644 = vector.shape_cast %643 : vector<1x128xf32> to vector<128xf32>
    %645 = vector.shape_cast %644 : vector<128xf32> to vector<1x128xf32>
    %646 = vector.broadcast %645 : vector<1x128xf32> to vector<192x128xf32>
    %647 = arith.mulf %621, %646 : vector<192x128xf32>
    %648 = arith.addf %642, %647 : vector<192x128xf32>
    %c191_i32_118 = arith.constant 191 : i32
    %649 = tpu.dynamic_rotate %621 by %c191_i32_118 dim 0 : vector<192x128xf32>, i32 -> vector<192x128xf32>
    %650 = vector.extract_strided_slice %8 {offsets = [39, 0], sizes = [1, 128], strides = [1, 1]} : vector<49x128xf32> to vector<1x128xf32>
    %651 = vector.shape_cast %650 : vector<1x128xf32> to vector<128xf32>
    %652 = vector.shape_cast %651 : vector<128xf32> to vector<1x128xf32>
    %653 = vector.broadcast %652 : vector<1x128xf32> to vector<192x128xf32>
    %654 = arith.mulf %649, %653 : vector<192x128xf32>
    %655 = arith.addf %648, %654 : vector<192x128xf32>
    %c190_i32_119 = arith.constant 190 : i32
    %656 = tpu.dynamic_rotate %621 by %c190_i32_119 dim 0 : vector<192x128xf32>, i32 -> vector<192x128xf32>
    %657 = vector.extract_strided_slice %8 {offsets = [40, 0], sizes = [1, 128], strides = [1, 1]} : vector<49x128xf32> to vector<1x128xf32>
    %658 = vector.shape_cast %657 : vector<1x128xf32> to vector<128xf32>
    %659 = vector.shape_cast %658 : vector<128xf32> to vector<1x128xf32>
    %660 = vector.broadcast %659 : vector<1x128xf32> to vector<192x128xf32>
    %661 = arith.mulf %656, %660 : vector<192x128xf32>
    %662 = arith.addf %655, %661 : vector<192x128xf32>
    %c189_i32_120 = arith.constant 189 : i32
    %663 = tpu.dynamic_rotate %621 by %c189_i32_120 dim 0 : vector<192x128xf32>, i32 -> vector<192x128xf32>
    %664 = vector.extract_strided_slice %8 {offsets = [41, 0], sizes = [1, 128], strides = [1, 1]} : vector<49x128xf32> to vector<1x128xf32>
    %665 = vector.shape_cast %664 : vector<1x128xf32> to vector<128xf32>
    %666 = vector.shape_cast %665 : vector<128xf32> to vector<1x128xf32>
    %667 = vector.broadcast %666 : vector<1x128xf32> to vector<192x128xf32>
    %668 = arith.mulf %663, %667 : vector<192x128xf32>
    %669 = arith.addf %662, %668 : vector<192x128xf32>
    %c14 = arith.constant 14 : index
    %c0_121 = arith.constant 0 : index
    %c0_122 = arith.constant 0 : index
    %670 = vector.load %arg11[%c14, %c0_121, %c0_122] : memref<22x24x128xf32, #tpu.memory_space<vmem>>, vector<8x24x128xf32>
    %671 = vector.shape_cast %670 : vector<8x24x128xf32> to vector<192x128xf32>
    %c3_i32_123 = arith.constant 3 : i32
    %672 = tpu.dynamic_rotate %671 by %c3_i32_123 dim 0 : vector<192x128xf32>, i32 -> vector<192x128xf32>
    %673 = vector.extract_strided_slice %8 {offsets = [42, 0], sizes = [1, 128], strides = [1, 1]} : vector<49x128xf32> to vector<1x128xf32>
    %674 = vector.shape_cast %673 : vector<1x128xf32> to vector<128xf32>
    %675 = vector.shape_cast %674 : vector<128xf32> to vector<1x128xf32>
    %676 = vector.broadcast %675 : vector<1x128xf32> to vector<192x128xf32>
    %677 = arith.mulf %672, %676 : vector<192x128xf32>
    %678 = arith.addf %669, %677 : vector<192x128xf32>
    %c2_i32_124 = arith.constant 2 : i32
    %679 = tpu.dynamic_rotate %671 by %c2_i32_124 dim 0 : vector<192x128xf32>, i32 -> vector<192x128xf32>
    %680 = vector.extract_strided_slice %8 {offsets = [43, 0], sizes = [1, 128], strides = [1, 1]} : vector<49x128xf32> to vector<1x128xf32>
    %681 = vector.shape_cast %680 : vector<1x128xf32> to vector<128xf32>
    %682 = vector.shape_cast %681 : vector<128xf32> to vector<1x128xf32>
    %683 = vector.broadcast %682 : vector<1x128xf32> to vector<192x128xf32>
    %684 = arith.mulf %679, %683 : vector<192x128xf32>
    %685 = arith.addf %678, %684 : vector<192x128xf32>
    %c1_i32_125 = arith.constant 1 : i32
    %686 = tpu.dynamic_rotate %671 by %c1_i32_125 dim 0 : vector<192x128xf32>, i32 -> vector<192x128xf32>
    %687 = vector.extract_strided_slice %8 {offsets = [44, 0], sizes = [1, 128], strides = [1, 1]} : vector<49x128xf32> to vector<1x128xf32>
    %688 = vector.shape_cast %687 : vector<1x128xf32> to vector<128xf32>
    %689 = vector.shape_cast %688 : vector<128xf32> to vector<1x128xf32>
    %690 = vector.broadcast %689 : vector<1x128xf32> to vector<192x128xf32>
    %691 = arith.mulf %686, %690 : vector<192x128xf32>
    %692 = arith.addf %685, %691 : vector<192x128xf32>
    %693 = vector.extract_strided_slice %8 {offsets = [45, 0], sizes = [1, 128], strides = [1, 1]} : vector<49x128xf32> to vector<1x128xf32>
    %694 = vector.shape_cast %693 : vector<1x128xf32> to vector<128xf32>
    %695 = vector.shape_cast %694 : vector<128xf32> to vector<1x128xf32>
    %696 = vector.broadcast %695 : vector<1x128xf32> to vector<192x128xf32>
    %697 = arith.mulf %671, %696 : vector<192x128xf32>
    %698 = arith.addf %692, %697 : vector<192x128xf32>
    %c191_i32_126 = arith.constant 191 : i32
    %699 = tpu.dynamic_rotate %671 by %c191_i32_126 dim 0 : vector<192x128xf32>, i32 -> vector<192x128xf32>
    %700 = vector.extract_strided_slice %8 {offsets = [46, 0], sizes = [1, 128], strides = [1, 1]} : vector<49x128xf32> to vector<1x128xf32>
    %701 = vector.shape_cast %700 : vector<1x128xf32> to vector<128xf32>
    %702 = vector.shape_cast %701 : vector<128xf32> to vector<1x128xf32>
    %703 = vector.broadcast %702 : vector<1x128xf32> to vector<192x128xf32>
    %704 = arith.mulf %699, %703 : vector<192x128xf32>
    %705 = arith.addf %698, %704 : vector<192x128xf32>
    %c190_i32_127 = arith.constant 190 : i32
    %706 = tpu.dynamic_rotate %671 by %c190_i32_127 dim 0 : vector<192x128xf32>, i32 -> vector<192x128xf32>
    %707 = vector.extract_strided_slice %8 {offsets = [47, 0], sizes = [1, 128], strides = [1, 1]} : vector<49x128xf32> to vector<1x128xf32>
    %708 = vector.shape_cast %707 : vector<1x128xf32> to vector<128xf32>
    %709 = vector.shape_cast %708 : vector<128xf32> to vector<1x128xf32>
    %710 = vector.broadcast %709 : vector<1x128xf32> to vector<192x128xf32>
    %711 = arith.mulf %706, %710 : vector<192x128xf32>
    %712 = arith.addf %705, %711 : vector<192x128xf32>
    %c189_i32_128 = arith.constant 189 : i32
    %713 = tpu.dynamic_rotate %671 by %c189_i32_128 dim 0 : vector<192x128xf32>, i32 -> vector<192x128xf32>
    %714 = vector.extract_strided_slice %8 {offsets = [48, 0], sizes = [1, 128], strides = [1, 1]} : vector<49x128xf32> to vector<1x128xf32>
    %715 = vector.shape_cast %714 : vector<1x128xf32> to vector<128xf32>
    %716 = vector.shape_cast %715 : vector<128xf32> to vector<1x128xf32>
    %717 = vector.broadcast %716 : vector<1x128xf32> to vector<192x128xf32>
    %718 = arith.mulf %713, %717 : vector<192x128xf32>
    %719 = arith.addf %712, %718 : vector<192x128xf32>
    %720 = vector.shape_cast %719 : vector<192x128xf32> to vector<8x24x128xf32>
    %721 = vector.extract_strided_slice %720 {offsets = [0, 0, 0], sizes = [8, 16, 128], strides = [1, 1, 1]} : vector<8x24x128xf32> to vector<8x16x128xf32>
    %722 = vector.shape_cast %721 : vector<8x16x128xf32> to vector<128x128xf32>
    %c128 = arith.constant 128 : index
    %c0_129 = arith.constant 0 : index
    %723 = vector.load %arg12[%c128, %c0_129] : memref<256x128xf32, #tpu.memory_space<vmem>>, vector<128x128xf32>
    tpu.vector_store %arg12[%c128, %c0_129], %722 {strides = array<i32>} : memref<256x128xf32, #tpu.memory_space<vmem>>, vector<128x128xf32>,
    %724 = vector.shape_cast %722 : vector<128x128xf32> to vector<1x128x128xf32>
    %cst_130 = arith.constant dense<0.000000e+00> : vector<1xf32>
    %725 = vector.multi_reduction <add>, %724, %cst_130 [1, 2] : vector<1x128x128xf32> to vector<1xf32>
    %726 = vector.shape_cast %725 : vector<1xf32> to vector<1x1x1xf32>
    %727 = vector.extract %726[0, 0, 0] : f32 from vector<1x1x1xf32>
    %728 = arith.addf %368, %727 : f32
    %cst_131 = arith.constant 1.024000e+03 : f32
    %729 = arith.divf %728, %cst_131 : f32
    %730 = tpu.iota {dimensions = array<i32: 1>} : vector<1x128xi32>
    %c4_i32 = arith.constant 4 : i32
    %731 = vector.broadcast %c4_i32 : i32 to vector<1x128xi32>
    %732 = arith.cmpi slt, %730, %731 : vector<1x128xi32>
    %733 = arith.extui %732 : vector<1x128xi1> to vector<1x128xi32>
    %734 = arith.sitofp %733 : vector<1x128xi32> to vector<1x128xf32>
    %c0_132 = arith.constant 0 : index
    %c0_133 = arith.constant 0 : index
    %735 = vector.load %arg12[%c0_132, %c0_133] : memref<256x128xf32, #tpu.memory_space<vmem>>, vector<128x128xf32>
    %736 = vector.broadcast %729 : f32 to vector<128x128xf32>
    %737 = arith.subf %735, %736 : vector<128x128xf32>
    %738 = vector.broadcast %734 : vector<1x128xf32> to vector<128x128xf32>
    %739 = arith.mulf %737, %738 : vector<128x128xf32>
    %740 = arith.mulf %739, %739 : vector<128x128xf32>
    %741 = vector.shape_cast %740 : vector<128x128xf32> to vector<1x128x128xf32>
    %cst_134 = arith.constant dense<0.000000e+00> : vector<1xf32>
    %742 = vector.multi_reduction <add>, %741, %cst_134 [1, 2] : vector<1x128x128xf32> to vector<1xf32>
    %743 = vector.shape_cast %742 : vector<1xf32> to vector<1x1x1xf32>
    %744 = vector.extract %743[0, 0, 0] : f32 from vector<1x1x1xf32>
    %cst_135 = arith.constant 0.000000e+00 : f32
    %745 = arith.addf %cst_135, %744 : f32
    %c128_136 = arith.constant 128 : index
    %c0_137 = arith.constant 0 : index
    %746 = vector.load %arg12[%c128_136, %c0_137] : memref<256x128xf32, #tpu.memory_space<vmem>>, vector<128x128xf32>
    %747 = vector.broadcast %729 : f32 to vector<128x128xf32>
    %748 = arith.subf %746, %747 : vector<128x128xf32>
    %749 = vector.broadcast %734 : vector<1x128xf32> to vector<128x128xf32>
    %750 = arith.mulf %748, %749 : vector<128x128xf32>
    %751 = arith.mulf %750, %750 : vector<128x128xf32>
    %752 = vector.shape_cast %751 : vector<128x128xf32> to vector<1x128x128xf32>
    %cst_138 = arith.constant dense<0.000000e+00> : vector<1xf32>
    %753 = vector.multi_reduction <add>, %752, %cst_138 [1, 2] : vector<1x128x128xf32> to vector<1xf32>
    %754 = vector.shape_cast %753 : vector<1xf32> to vector<1x1x1xf32>
    %755 = vector.extract %754[0, 0, 0] : f32 from vector<1x1x1xf32>
    %756 = arith.addf %745, %755 : f32
    %cst_139 = arith.constant 1.024000e+03 : f32
    %757 = arith.divf %756, %cst_139 : f32
    %cst_140 = arith.constant 9.99999974E-6 : f32
    %758 = arith.addf %757, %cst_140 : f32
    %759 = math.rsqrt %758 : f32
    %c0_141 = arith.constant 0 : index
    %c0_142 = arith.constant 0 : index
    %760 = vector.load %arg3[%c0_141, %c0_142] : memref<1x128xf32, #tpu.memory_space<vmem>>, vector<1x128xf32>
    %761 = vector.broadcast %759 : f32 to vector<1x128xf32>
    %762 = arith.mulf %761, %760 : vector<1x128xf32>
    %c0_143 = arith.constant 0 : index
    %c0_144 = arith.constant 0 : index
    %763 = vector.load %arg4[%c0_143, %c0_144] : memref<1x128xf32, #tpu.memory_space<vmem>>, vector<1x128xf32>
    %764 = vector.broadcast %729 : f32 to vector<1x128xf32>
    %765 = arith.mulf %764, %762 : vector<1x128xf32>
    %766 = arith.subf %763, %765 : vector<1x128xf32>
    %c0_145 = arith.constant 0 : index
    %c0_146 = arith.constant 0 : index
    %767 = vector.load %arg5[%c0_145, %c0_146] : memref<128x128xbf16, #tpu.memory_space<vmem>>, vector<128x128xbf16>
    %c0_147 = arith.constant 0 : index
    %c0_148 = arith.constant 0 : index
    %768 = vector.load %arg6[%c0_147, %c0_148] : memref<1x128xf32, #tpu.memory_space<vmem>>, vector<1x128xf32>
    %c0_149 = arith.constant 0 : index
    %c0_150 = arith.constant 0 : index
    %769 = vector.load %arg7[%c0_149, %c0_150] : memref<128x128xbf16, #tpu.memory_space<vmem>>, vector<128x128xbf16>
    %c0_151 = arith.constant 0 : index
    %c0_152 = arith.constant 0 : index
    %770 = vector.load %arg8[%c0_151, %c0_152] : memref<1x128xf32, #tpu.memory_space<vmem>>, vector<1x128xf32>
    %c0_153 = arith.constant 0 : index
    %c0_154 = arith.constant 0 : index
    %771 = vector.load %arg9[%c0_153, %c0_154] : memref<1x128xf32, #tpu.memory_space<vmem>>, vector<1x128xf32>
    %c0_155 = arith.constant 0 : index
    %c0_156 = arith.constant 0 : index
    %772 = vector.load %arg12[%c0_155, %c0_156] : memref<256x128xf32, #tpu.memory_space<vmem>>, vector<128x128xf32>
    %773 = vector.broadcast %762 : vector<1x128xf32> to vector<128x128xf32>
    %774 = arith.mulf %772, %773 : vector<128x128xf32>
    %775 = vector.broadcast %766 : vector<1x128xf32> to vector<128x128xf32>
    %776 = arith.addf %774, %775 : vector<128x128xf32>
    %777 = arith.truncf %776 : vector<128x128xf32> to vector<128x128xbf16>
    %cst_157 = arith.constant dense<0.000000e+00> : vector<128x128xf32>
    %778 = tpu.matmul %777, %767, %cst_157 {dimension_numbers = #tpu.dot_dimension_numbers<[1], [0], [0], [1], [0, 0, 1, 1], [], []>} : vector<128x128xbf16>, vector<128x128xbf16>, vector<128x128xf32> -> vector<128x128xf32>
    %779 = vector.broadcast %768 : vector<1x128xf32> to vector<128x128xf32>
    %780 = arith.addf %778, %779 : vector<128x128xf32>
    %781 = arith.mulf %780, %780 : vector<128x128xf32>
    %782 = arith.mulf %780, %781 : vector<128x128xf32>
    %cst_158 = arith.constant 4.471500e-02 : f32
    %783 = vector.broadcast %cst_158 : f32 to vector<128x128xf32>
    %784 = arith.mulf %783, %782 : vector<128x128xf32>
    %785 = arith.addf %780, %784 : vector<128x128xf32>
    %cst_159 = arith.constant 0.797884583 : f32
    %786 = vector.broadcast %cst_159 : f32 to vector<128x128xf32>
    %787 = arith.mulf %786, %785 : vector<128x128xf32>
    %788 = math.tanh %787 : vector<128x128xf32>
    %cst_160 = arith.constant 1.000000e+00 : f32
    %789 = vector.broadcast %cst_160 : f32 to vector<128x128xf32>
    %790 = arith.addf %789, %788 : vector<128x128xf32>
    %cst_161 = arith.constant 5.000000e-01 : f32
    %791 = vector.broadcast %cst_161 : f32 to vector<128x128xf32>
    %792 = arith.mulf %791, %790 : vector<128x128xf32>
    %793 = arith.mulf %780, %792 : vector<128x128xf32>
    %794 = arith.truncf %793 : vector<128x128xf32> to vector<128x128xbf16>
    %cst_162 = arith.constant dense<0.000000e+00> : vector<128x128xf32>
    %795 = tpu.matmul %794, %769, %cst_162 {dimension_numbers = #tpu.dot_dimension_numbers<[1], [0], [0], [1], [0, 0, 1, 1], [], []>} : vector<128x128xbf16>, vector<128x128xbf16>, vector<128x128xf32> -> vector<128x128xf32>
    %796 = vector.broadcast %770 : vector<1x128xf32> to vector<128x128xf32>
    %797 = arith.addf %795, %796 : vector<128x128xf32>
    %c0_163 = arith.constant 0 : index
    %c0_164 = arith.constant 0 : index
    %c0_165 = arith.constant 0 : index
    %c0_166 = arith.constant 0 : index
    %798 = vector.load %arg1[%c0_163, %c0_164, %c0_165, %c0_166] : memref<1x16x16x128xf32, #tpu.memory_space<vmem>>, vector<1x8x16x128xf32>
    %799 = vector.shape_cast %798 : vector<1x8x16x128xf32> to vector<8x16x128xf32>
    %800 = vector.shape_cast %799 : vector<8x16x128xf32> to vector<128x128xf32>
    %801 = vector.broadcast %771 : vector<1x128xf32> to vector<128x128xf32>
    %802 = arith.mulf %797, %801 : vector<128x128xf32>
    %803 = arith.addf %802, %800 : vector<128x128xf32>
    %804 = vector.shape_cast %803 : vector<128x128xf32> to vector<8x16x128xf32>
    %c0_167 = arith.constant 0 : index
    %c0_168 = arith.constant 0 : index
    %c0_169 = arith.constant 0 : index
    %c0_170 = arith.constant 0 : index
    %805 = vector.load %arg10[%c0_167, %c0_168, %c0_169, %c0_170] : memref<1x16x16x128xf32, #tpu.memory_space<vmem>>, vector<1x8x16x128xf32>
    %806 = vector.shape_cast %805 : vector<1x8x16x128xf32> to vector<8x16x128xf32>
    %807 = vector.shape_cast %804 : vector<8x16x128xf32> to vector<1x8x16x128xf32>
    tpu.vector_store %arg10[%c0_167, %c0_168, %c0_169, %c0_170], %807 {strides = array<i32>} : memref<1x16x16x128xf32, #tpu.memory_space<vmem>>, vector<1x8x16x128xf32>,
    %c128_171 = arith.constant 128 : index
    %c0_172 = arith.constant 0 : index
    %808 = vector.load %arg12[%c128_171, %c0_172] : memref<256x128xf32, #tpu.memory_space<vmem>>, vector<128x128xf32>
    %809 = vector.broadcast %762 : vector<1x128xf32> to vector<128x128xf32>
    %810 = arith.mulf %808, %809 : vector<128x128xf32>
    %811 = vector.broadcast %766 : vector<1x128xf32> to vector<128x128xf32>
    %812 = arith.addf %810, %811 : vector<128x128xf32>
    %813 = arith.truncf %812 : vector<128x128xf32> to vector<128x128xbf16>
    %cst_173 = arith.constant dense<0.000000e+00> : vector<128x128xf32>
    %814 = tpu.matmul %813, %767, %cst_173 {dimension_numbers = #tpu.dot_dimension_numbers<[1], [0], [0], [1], [0, 0, 1, 1], [], []>} : vector<128x128xbf16>, vector<128x128xbf16>, vector<128x128xf32> -> vector<128x128xf32>
    %815 = vector.broadcast %768 : vector<1x128xf32> to vector<128x128xf32>
    %816 = arith.addf %814, %815 : vector<128x128xf32>
    %817 = arith.mulf %816, %816 : vector<128x128xf32>
    %818 = arith.mulf %816, %817 : vector<128x128xf32>
    %cst_174 = arith.constant 4.471500e-02 : f32
    %819 = vector.broadcast %cst_174 : f32 to vector<128x128xf32>
    %820 = arith.mulf %819, %818 : vector<128x128xf32>
    %821 = arith.addf %816, %820 : vector<128x128xf32>
    %cst_175 = arith.constant 0.797884583 : f32
    %822 = vector.broadcast %cst_175 : f32 to vector<128x128xf32>
    %823 = arith.mulf %822, %821 : vector<128x128xf32>
    %824 = math.tanh %823 : vector<128x128xf32>
    %cst_176 = arith.constant 1.000000e+00 : f32
    %825 = vector.broadcast %cst_176 : f32 to vector<128x128xf32>
    %826 = arith.addf %825, %824 : vector<128x128xf32>
    %cst_177 = arith.constant 5.000000e-01 : f32
    %827 = vector.broadcast %cst_177 : f32 to vector<128x128xf32>
    %828 = arith.mulf %827, %826 : vector<128x128xf32>
    %829 = arith.mulf %816, %828 : vector<128x128xf32>
    %830 = arith.truncf %829 : vector<128x128xf32> to vector<128x128xbf16>
    %cst_178 = arith.constant dense<0.000000e+00> : vector<128x128xf32>
    %831 = tpu.matmul %830, %769, %cst_178 {dimension_numbers = #tpu.dot_dimension_numbers<[1], [0], [0], [1], [0, 0, 1, 1], [], []>} : vector<128x128xbf16>, vector<128x128xbf16>, vector<128x128xf32> -> vector<128x128xf32>
    %832 = vector.broadcast %770 : vector<1x128xf32> to vector<128x128xf32>
    %833 = arith.addf %831, %832 : vector<128x128xf32>
    %c0_179 = arith.constant 0 : index
    %c8_180 = arith.constant 8 : index
    %c0_181 = arith.constant 0 : index
    %c0_182 = arith.constant 0 : index
    %834 = vector.load %arg1[%c0_179, %c8_180, %c0_181, %c0_182] : memref<1x16x16x128xf32, #tpu.memory_space<vmem>>, vector<1x8x16x128xf32>
    %835 = vector.shape_cast %834 : vector<1x8x16x128xf32> to vector<8x16x128xf32>
    %836 = vector.shape_cast %835 : vector<8x16x128xf32> to vector<128x128xf32>
    %837 = vector.broadcast %771 : vector<1x128xf32> to vector<128x128xf32>
    %838 = arith.mulf %833, %837 : vector<128x128xf32>
    %839 = arith.addf %838, %836 : vector<128x128xf32>
    %840 = vector.shape_cast %839 : vector<128x128xf32> to vector<8x16x128xf32>
    %c0_183 = arith.constant 0 : index
    %c8_184 = arith.constant 8 : index
    %c0_185 = arith.constant 0 : index
    %c0_186 = arith.constant 0 : index
    %841 = vector.load %arg10[%c0_183, %c8_184, %c0_185, %c0_186] : memref<1x16x16x128xf32, #tpu.memory_space<vmem>>, vector<1x8x16x128xf32>
    %842 = vector.shape_cast %841 : vector<1x8x16x128xf32> to vector<8x16x128xf32>
    %843 = vector.shape_cast %840 : vector<8x16x128xf32> to vector<1x8x16x128xf32>
    tpu.vector_store %arg10[%c0_183, %c8_184, %c0_185, %c0_186], %843 {strides = array<i32>} : memref<1x16x16x128xf32, #tpu.memory_space<vmem>>, vector<1x8x16x128xf32>,
    return
  }
  func.func @transform_0(%arg0: i32) -> (i32, i32, i32, i32) {
    %c0_i32 = arith.constant 0 : i32
    %c0_i32_0 = arith.constant 0 : i32
    %c0_i32_1 = arith.constant 0 : i32
    %c0_i32_2 = arith.constant 0 : i32
    return %arg0, %c0_i32, %c0_i32_0, %c0_i32_1 : i32, i32, i32, i32
  }
  func.func @transform_1(%arg0: i32) -> (i32, i32) {
    %c0_i32 = arith.constant 0 : i32
    %c0_i32_0 = arith.constant 0 : i32
    %c0_i32_1 = arith.constant 0 : i32
    return %c0_i32, %c0_i32_0 : i32, i32
  }
  func.func @transform_2(%arg0: i32) -> (i32, i32) {
    %c0_i32 = arith.constant 0 : i32
    %c0_i32_0 = arith.constant 0 : i32
    %c0_i32_1 = arith.constant 0 : i32
    return %c0_i32, %c0_i32_0 : i32, i32
  }
  func.func @transform_3(%arg0: i32) -> (i32, i32) {
    %c0_i32 = arith.constant 0 : i32
    %c0_i32_0 = arith.constant 0 : i32
    %c0_i32_1 = arith.constant 0 : i32
    return %c0_i32, %c0_i32_0 : i32, i32
  }
  func.func @transform_4(%arg0: i32) -> (i32, i32) {
    %c0_i32 = arith.constant 0 : i32
    %c0_i32_0 = arith.constant 0 : i32
    %c0_i32_1 = arith.constant 0 : i32
    return %c0_i32, %c0_i32_0 : i32, i32
  }
  func.func @transform_5(%arg0: i32) -> (i32, i32) {
    %c0_i32 = arith.constant 0 : i32
    %c0_i32_0 = arith.constant 0 : i32
    %c0_i32_1 = arith.constant 0 : i32
    return %c0_i32, %c0_i32_0 : i32, i32
  }
  func.func @transform_6(%arg0: i32) -> (i32, i32) {
    %c0_i32 = arith.constant 0 : i32
    %c0_i32_0 = arith.constant 0 : i32
    %c0_i32_1 = arith.constant 0 : i32
    return %c0_i32, %c0_i32_0 : i32, i32
  }
  func.func @transform_7(%arg0: i32) -> (i32, i32) {
    %c0_i32 = arith.constant 0 : i32
    %c0_i32_0 = arith.constant 0 : i32
    %c0_i32_1 = arith.constant 0 : i32
    return %c0_i32, %c0_i32_0 : i32, i32
  }
  func.func @transform_8(%arg0: i32) -> (i32, i32) {
    %c0_i32 = arith.constant 0 : i32
    %c0_i32_0 = arith.constant 0 : i32
    %c0_i32_1 = arith.constant 0 : i32
    return %c0_i32, %c0_i32_0 : i32, i32
  }
  func.func @transform_9(%arg0: i32) -> (i32, i32, i32, i32) {
    %c0_i32 = arith.constant 0 : i32
    %c0_i32_0 = arith.constant 0 : i32
    %c0_i32_1 = arith.constant 0 : i32
    %c0_i32_2 = arith.constant 0 : i32
    return %arg0, %c0_i32, %c0_i32_0, %c0_i32_1 : i32, i32, i32, i32
  }
}

</mosaic_0001>

<bundles_post_ra>
// kernel: tpu_custom_call.1
= control target key start
LH: loop header
LB: loop body
LE: loop exit
PB: predicated region body
PF: predicated region fallthrough
CT: control target
= control target key end

     0   :  { %s15555_s0 = inlined_call_operand.hbm [shape: f32[2,16,16,128], index: 0, kind: input, shape index: {}]   ;;  %s15556_s1 = inlined_call_operand.hbm [shape: f32[49,128], index: 1, kind: input, shape index: {}]   ;;  %s15557_s2 = inlined_call_operand.vmem [shape: f32[1,128], index: 2, kind: input, shape index: {}]   ;;  %s15558_s3 = inlined_call_operand.vmem [shape: f32[1,128], index: 3, kind: input, shape index: {}]   ;;  %s15559_s4 = inlined_call_operand.hbm [shape: bf16[128,128], index: 4, kind: input, shape index: {}]   ;;  %s15560_s5 = inlined_call_operand.vmem [shape: f32[1,128], index: 5, kind: input, shape index: {}]   ;;  %s15561_s6 = inlined_call_operand.hbm [shape: bf16[128,128], index: 6, kind: input, shape index: {}]   ;;  %s15562_s7 = inlined_call_operand.vmem [shape: f32[1,128], index: 7, kind: input, shape index: {}]   ;;  %s15563_s8 = inlined_call_operand.vmem [shape: f32[1,128], index: 8, kind: input, shape index: {}]   ;;  %s15564_s9 = inlined_call_operand.hbm [shape: f32[2,16,16,128], index: 9, kind: output, shape index: {}]  }
   0x1   :  { %16284 = sst [smem:[#allocation169_spill]] %s15556_s1 }
   0x2   :  { %16285 = sst [smem:[#allocation170_spill]] %s15564_s9 }
   0x3   :  { %14 = vsyncpa [#allocation5], 0 }
   0x4   :  { %16 = vsyncpa [#allocation5 + $0x1], 0 }
   0x5   :  { %17 = vsyncpa [#allocation8], 0 }
   0x6   :  { %18 = vsyncpa [#allocation11], 0 }
   0x7   :  { %19 = vsyncpa [#allocation6], 0 }
   0x8   :  { %21 = vsyncpa [#allocation6 + $0x1], 0  ;;  %s9778_s30 = smov 0   ;;  %s9780_s10 = smov 0  }
   0x9   :  { %s9782_s11 = smov 0   ;;  %s9784_s12 = smov 0  }
   0xa LB: > { %16286 = sst [smem:[#allocation17_spill]] %s9702_s30  ;;  %s9799_s13 = sadd.s32 4294967295, %s9714_s12   ;;  %s9714_s12 = sphi %s9784_s12, %s17708_s12   ;;  %s9710_s11 = sphi %s9782_s11, %s17707_s11   ;;  %s9706_s10 = sphi %s9780_s10, %s17706_s10   ;;  %s9702_s30 = sphi %s9778_s30, %s17705_s30  }
   0xb   : > { %s9028_s14 = sadd.s32 4294967294, %s9714_s12   ;;  %p47_p0 = scmp.ne.s32.totalorder %s9706_s10, %s9702_s30 }
   0xc   : > { %p15565_p1 = scmp.eq.s32.totalorder %s9799_s13, 0  ;;  %p245_p3 = scmp.eq.s32.totalorder %s9028_s14, 1 }
   0xd   : > { %p9029_p5 = scmp.ge.s32.totalorder %s9714_s12, 1  ;;  %p252_p7 = scmp.lt.s32.totalorder %s9714_s12, 3 }
   0xe   : > { %p9808_p4 = por %p15565_p1, %p47_p0  ;;  %p9813_p6 = por %p245_p3, %p47_p0 }
   0xf   : > { %p9818_p8 = pnand %p9029_p5, %p252_p7  ;;  %s9716_s18 = smov [#allocation7]  }
  0x10   : > { %s16287_s15 = scalar_select %p9808_p4, 1, 0 }
  0x11   : > { %s16288_s16 = scalar_select %p9813_p6, 1, 0 }
  0x12   : > { %s16290_s17 = scalar_select %p9818_p8, 1, 0 }
  0x13   : > { %16289 = sst [smem:[#allocation18_spill]] %s16288_s16  ;;  %s264_s19 = sshll.u32 %s9716_s18, 4  ;;  %s9822_s19 = int_to_ptr.vmem [resolvable:$true] %s264_s19 }
  0x14   : > { %p9321_p9 = pneg %p9818_p8  ;;  %s9717_s21 = smov [#allocation9]  }
  0x15   : > { %s283_s22 = sshll.u32 %s9717_s21, 4  ;;  %s16292_s1 = sld [smem:[#allocation169_spill]]  ;;  %s9833_s22 = int_to_ptr.vmem [resolvable:$true] %s283_s22 }
  0x16   : > { %p9829_p11 = pnand %p9321_p9, %p15565_p1 }
  0x18   : > { %p9843_p13 = pneg %p9829_p11 }
  0x1b   : > { %s9526_s25 = scalar_lea.hbm %s16292_s1, 896 }
  0x1c   : > { %p9527_p12 = scmp.ne.s32.totalorder %s16292_s1, %s9526_s25  ;;  %p9533_p5 = scmp.lt.u32.totalorder %s9526_s25, %s16292_s1 }
  0x1e   : > { %p9529_p0 = pnand %p9843_p13, %p9527_p12 }
  0x20   : > { %p9530_p3 = pneg %p9529_p0 }
  0x22   : > { %p9535_p7 = pnand %p9533_p5, %p9530_p3 }
  0x24   : > { %9538 = shalt.err (!%p9535_p7)
}
  0x25   : > { %s9539_s18 = scalar_lea.vmem %s9822_s19, 896  ;;  %p9547_p2 = scmp.lt.s32.totalorder %s9822_s19, %s9822_s19 }
  0x26   : > { %p9540_p9 = scmp.ne.s32.totalorder %s9822_s19, %s9539_s18  ;;  %p9548_p6 = scmp.lt.s32.totalorder %s9539_s18, %s9539_s18 }
  0x28   : > { %p9542_p10 = pnand %p9540_p9, %p9843_p13  ;;  %p9549_p12 = por %p9548_p6, %p9547_p2 }
  0x2a   : > { %p9543_p1 = pneg %p9542_p10 }
  0x2c   : > { %p9550_p0 = pnand %p9549_p12, %p9543_p1 }
  0x2e   : > { %9553 = shalt.err (!%p9550_p0)
}
  0x2f   : > { %s15568_s21 = smov 128   ;;  %s15569_s23 = smov 8  }
  0x30   : > { %9324 = dma.hbm_to_vmem [thread:$0]  (!%p9829_p11), %s16292_s1, 896, %s9822_s19, [#allocation8], %s15568_s21, %s15568_s21, %s15569_s23  }
  0x31   : > { %s9554_s29 = scalar_lea.hbm %s15559_s4, 1024 }
  0x32   : > { %p9555_p1 = scmp.ne.s32.totalorder %s15559_s4, %s9554_s29  ;;  %p9561_p10 = scmp.lt.u32.totalorder %s9554_s29, %s15559_s4 }
  0x34   : > { %p9557_p2 = pnand %p9555_p1, %p9843_p13 }
  0x36   : > { %p9558_p6 = pneg %p9557_p2 }
  0x38   : > { %p9563_p3 = pnand %p9561_p10, %p9558_p6 }
  0x3a   : > { %9566 = shalt.err (!%p9563_p3)
}
  0x3b   : > { %s9567_s19 = scalar_lea.vmem %s9833_s22, 1024  ;;  %p9575_p12 = scmp.lt.s32.totalorder %s9833_s22, %s9833_s22 }
  0x3c   : > { %p9568_p5 = scmp.ne.s32.totalorder %s9833_s22, %s9567_s19  ;;  %p9576_p0 = scmp.lt.s32.totalorder %s9567_s19, %s9567_s19 }
  0x3e   : > { %p9570_p7 = pnand %p9568_p5, %p9843_p13  ;;  %p9577_p1 = por %p9576_p0, %p9575_p12 }
  0x40   : > { %p9571_p9 = pneg %p9570_p7 }
  0x42   : > { %p9578_p2 = pnand %p9577_p1, %p9571_p9 }
  0x44   : > { %9581 = shalt.err (!%p9578_p2)
}
  0x45   : > { %s9720_s24 = smov 64   ;;  %s9721_s30 = smov 4  }
  0x46   : > { %9327 = dma.hbm_to_vmem [thread:$0]  (!%p9829_p11), %s15559_s4, 1024, %s9833_s22, [#allocation8], %s9720_s24, %s9720_s24, %s9721_s30  }
  0x47   : > { %s9722_s26 = smov [#allocation10]   ;;  %s9891_s29 = sadd.s32 1, %s9714_s12  }
  0x48   : > { %s299_s27 = sshll.u32 %s9722_s26, 4  ;;  %s9582_s19 = scalar_lea.hbm %s15561_s6, 1024  ;;  %s300_s27 = int_to_ptr.vmem [resolvable:$true] %s299_s27 }
  0x49   : > { %p9583_p6 = scmp.ne.s32.totalorder %s15561_s6, %s9582_s19  ;;  %p9589_p5 = scmp.lt.u32.totalorder %s9582_s19, %s15561_s6 }
  0x4b   : > { %p9585_p10 = pnand %p9583_p6, %p9843_p13 }
  0x4d   : > { %p9586_p3 = pneg %p9585_p10 }
  0x4f   : > { %p9591_p7 = pnand %p9589_p5, %p9586_p3 }
  0x51   : > { %9594 = shalt.err (!%p9591_p7)
}
  0x52   : > { %s9595_s22 = scalar_lea.vmem %s300_s27, 1024  ;;  %p9603_p1 = scmp.lt.s32.totalorder %s300_s27, %s300_s27 }
  0x53   : > { %p9596_p9 = scmp.ne.s32.totalorder %s300_s27, %s9595_s22  ;;  %p9604_p2 = scmp.lt.s32.totalorder %s9595_s22, %s9595_s22 }
  0x55   : > { %p9598_p12 = pnand %p9596_p9, %p9843_p13  ;;  %p9605_p4 = por %p9604_p2, %p9603_p1 }
  0x57   : > { %p9599_p0 = pneg %p9598_p12 }
  0x59   : > { %p9606_p8 = pnand %p9605_p4, %p9599_p0 }
  0x5b   : > { %9609 = shalt.err (!%p9606_p8)
}
  0x5c   : > { %9330 = dma.hbm_to_vmem [thread:$0]  (!%p9829_p11), %s15561_s6, 1024, %s300_s27, [#allocation11], %s9720_s24, %s9720_s24, %s9721_s30  }
  0x5d   : > { %s31_s1 = ssub.s32 %s9714_s12, %s9891_s29  ;;  %s34_s9 = sadd.s32 1, %s9710_s11 }
  0x5e   : > { %p32_p4 = scmp.eq.s32.totalorder %s31_s1, 0  ;;  %p41_p8 = scmp.ne.s32.totalorder %s9710_s11, %s9706_s10 }
  0x5f   : > { %p42_p13 = scmp.eq.s32.totalorder %s9714_s12, 0  ;;  %p9342_p6 = scmp.lt.s32.totalorder %s9714_s12, 2 }
  0x60   : > { %s9919_s20 = scalar_select %p32_p4, %s9710_s11, %s34_s9  }
  0x61   : > { %p43_p10 = por %p42_p13, %p41_p8  ;;  %p16294_p3 = scmp.eq.s32.totalorder %s9799_s13, 1 }
  0x62   : > { %s319_s16 = sand.u32 1, %s9710_s11   ;;  %s9101_s25 = sshll.u32 %s9714_s12, 12 }
  0x63   : > { %p9923_p5 = por %p16294_p3, %p41_p8  ;;  %s9034_s26 = sshll.u32 %s319_s16, 8 }
  0x64   : > { %s9932_s24 = scalar_lea.hbm %s15555_s0, %s9101_s25  ;;  %s323_s30 = scalar_lea.vmem [#allocation4], %s9034_s26 }
  0x65   : > { %s330_s27 = sshll.u32 %s323_s30, 4  ;;  %p9934_p11 = pnand %p9342_p6, %p43_p10  ;;  %s9938_s27 = int_to_ptr.vmem [resolvable:$true] %s330_s27 }
  0x66   : > { %s9940_s22 = scalar_lea.sflag [#allocation5], %s319_s16  ;;  %s9610_s21 = scalar_lea.hbm %s9932_s24, 4096 }
  0x67   : > { %p9611_p7 = scmp.ne.s32.totalorder %s9932_s24, %s9610_s21  ;;  %p9612_p9 = pneg %p9934_p11 }
  0x68   : > { %s9615_s9 = scalar_lea.hbm %s15555_s0, 8192  ;;  %p9616_p1 = scmp.lt.u32.totalorder %s9932_s24, %s15555_s0 }
  0x69   : > { %p9613_p12 = pnand %p9612_p9, %p9611_p7  ;;  %p9617_p2 = scmp.lt.u32.totalorder %s9615_s9, %s9610_s21 }
  0x6a   : > { %p9619_p8 = scmp.lt.u32.totalorder %s9610_s21, %s9932_s24 }
  0x6b   : > { %p9614_p0 = pneg %p9613_p12  ;;  %p9618_p4 = por %p9617_p2, %p9616_p1 }
  0x6d   : > { %p9620_p13 = por %p9619_p8, %p9618_p4 }
  0x6f   : > { %p9621_p6 = pnand %p9620_p13, %p9614_p0 }
  0x71   : > { %9624 = shalt.err (!%p9621_p6)
}
  0x72   : > { %s9625_s16 = scalar_lea.vmem %s9938_s27, 4096  ;;  %s9723_s14 = smov [#allocation4]  }
  0x73   : > { %p9626_p10 = scmp.ne.s32.totalorder %s9938_s27, %s9625_s16  ;;  %s9630_s18 = sshll.u32 %s9723_s14, 4  ;;  %s9631_s18 = int_to_ptr.vmem [resolvable:$false] %s9630_s18 }
  0x74   : > { %s9632_s30 = scalar_lea.vmem %s9631_s18, 8192  ;;  %p9633_p12 = scmp.lt.s32.totalorder %s9938_s27, %s9631_s18 }
  0x75   : > { %p9628_p3 = pnand %p9626_p10, %p9612_p9  ;;  %p9634_p1 = scmp.lt.s32.totalorder %s9632_s30, %s9625_s16 }
  0x77   : > { %p9629_p7 = pneg %p9628_p3  ;;  %p9635_p2 = por %p9634_p1, %p9633_p12 }
  0x79   : > { %p9636_p4 = pnand %p9635_p2, %p9629_p7 }
  0x7b   : > { %9639 = shalt.err (!%p9636_p4)
}
  0x7c   : > { %s16297_s21 = smov 8   ;;  %s16298_s23 = smov 128  }
  0x7d   : > { %9334 = dma.hbm_to_vmem [thread:$0]  (!%p9934_p11), %s9932_s24, 4096, %s9938_s27, %s9940_s22, %s16298_s23, %s16298_s23, %s16297_s21  }
  0x7e   : > { %p16299_p9 = scmp.ne.s32.totalorder %s16290_s17, 0 }
  0x80   : > { %342 = sbr.rel (%p16299_p9) target bundleno = 2122 (0x84a), region = 56 }
  0x87   : > { %s9974_s1 = sand.u32 1, %s9706_s10   ;;  %p16300_p0 = scmp.ne.s32.totalorder %s16287_s15, 0 }
  0x88   : > { %s9038_s9 = sshll.u32 %s9974_s1, 8  ;;  %s345_s25 = scalar_lea.sflag [#allocation5], %s9974_s1 }
  0x89   : > { %s9980_s19 = scalar_lea.vmem [#allocation4], %s9038_s9 }
  0x8a   : > { %9685 = dma.done.wait (%p16300_p0), %s345_s25, 4096  }
  0x8b   : > { %9687 = vsyncadd (%p16300_p0), %s345_s25, 4294963200  ;;  %p16301_p11 = scmp.eq.s32.totalorder %s9799_s13, 0 }
  0x8d   : > { %9689 = dma.done.wait (%p16301_p11), [#allocation8], 1920   ;;  %p16302_p8 = pmov %p16301_p11 }
  0x8f   : > { %9691 = vsyncadd (%p16302_p8), [#allocation8], 4294965376  ;;  %p16303_p13 = pmov %p16302_p8 }
  0x90   : > { %p16304_p6 = pmov %p16302_p8 }
  0x91   : > { %9693 = dma.done.wait (%p16303_p13), [#allocation11], 1024  }
  0x92   : > { %9695 = vsyncadd (%p16304_p6), [#allocation11], 4294966272  ;;  %v15574_v0 = vlaneseq  ;;  %v9998_v2 = vld [vmem:[%s9980_s19] sm:$0xff]  ;;  %v15573_v3 = vmov 0.0   ;;  %v10013_v8 = vld [vmem:[%s9980_s19 + $0x8] sm:$0xff] }
  0x93   : > { %v10001_v4 = vrot.slane %v15573_v3, 5  ;;  %v10004_v5 = vrot.slane %v15573_v3, 6  ;;  %v10007_v6 = vrot.slane %v15573_v3, 7  ;;  %v10010_v7 = vrot.slane %v15573_v3, 1  ;;  %v10016_v9 = vld [vmem:[%s9980_s19 + $0x10] sm:$0xff]  ;;  %v10019_v10 = vld [vmem:[%s9980_s19 + $0x18] sm:$0xff] }
  0x94   : > { %v9995_v1 = vshrl.u32 %v15574_v0, 7  ;;  %v10025_v12 = vrot.slane %v15573_v3, 2  ;;  %v10028_v13 = vrot.slane %v15573_v3, 3  ;;  %v10031_v14 = vld [vmem:[%s9980_s19 + $0x20] sm:$0xff]  ;;  %v10034_v15 = vld [vmem:[%s9980_s19 + $0x28] sm:$0xff]  ;;  %v10037_v16 = vld [vmem:[%s9980_s19 + $0x30] sm:$0xff] }
  0x95   : > { %16306 = vst [vmem:[#allocation20_spill] sm:$0xff] %v10001_v4  ;;  %16307 = vst [vmem:[#allocation21_spill] sm:$0xff] %v10004_v5  ;;  %v10049_v20 = vld [vmem:[%s9980_s19 + $0x38] sm:$0xff]  ;;  %v10052_v21 = vld [vmem:[%s9980_s19 + $0x40] sm:$0xff]  ;;  %v536_v26 = vrot.slane %v9998_v2, 5  ;;  %v537_v27 = vrot.slane %v10013_v8, 5 }
  0x96   : > { %16305 = vst [vmem:[#allocation19_spill] sm:$0xff] %v9995_v1  ;;  %16308 = vst [vmem:[#allocation22_spill] sm:$0xff] %v10007_v6  ;;  %v10022_v11 = vsub.s32 0, %v9995_v1  ;;  %v10040_v17 = vsub.s32 1, %v9995_v1  ;;  %v10043_v18 = vsub.s32 2, %v9995_v1  ;;  %v10046_v19 = vsub.s32 3, %v9995_v1 }
  0x97   : > { %16309 = vst [vmem:[#allocation23_spill] sm:$0xff] %v10010_v7  ;;  %16311 = vst [vmem:[#allocation25_spill] sm:$0xff] %v10025_v12  ;;  %v10055_v22 = vld [vmem:[%s9980_s19 + $0x48] sm:$0xff]  ;;  %v10058_v23 = vsub.s32 4, %v9995_v1  ;;  %v10061_v24 = vsub.s32 5, %v9995_v1  ;;  %v10064_v25 = vsub.s32 6, %v9995_v1 }
  0x98   : > { %16310 = vst [vmem:[#allocation24_spill] sm:$0xff] %v10022_v11  ;;  %16312 = vst [vmem:[#allocation26_spill] sm:$0xff] %v10028_v13  ;;  %v539_v28 = vrot.slane %v10016_v9, 5  ;;  %v10070_v29 = vsub.s32 7, %v9995_v1  ;;  %v540_v30 = vrot.slane %v10019_v10, 5  ;;  %v542_v31 = vrot.slane %v10031_v14, 5 }
  0x99   : > { %16313 = vst [vmem:[#allocation27_spill] sm:$0xff] %v10040_v17  ;;  %16314 = vst [vmem:[#allocation28_spill] sm:$0xff] %v10043_v18  ;;  %v543_v32 = vrot.slane %v10034_v15, 5  ;;  %v545_v33 = vrot.slane %v10037_v16, 5  ;;  %v546_v34 = vrot.slane %v10049_v20, 5  ;;  %v548_v35 = vrot.slane %v10052_v21, 5 }
  0x9a   : > { %16315 = vst [vmem:[#allocation29_spill] sm:$0xff] %v10046_v19  ;;  %16316 = vst [vmem:[#allocation30_spill] sm:$0xff] %v10058_v23  ;;  %v549_v36 = vrot.slane %v10055_v22, 5  ;;  %vm553_vm0 = vcmp.lt.s32.totalorder %v9995_v1, 3  ;;  %v615_v37 = vrot.slane %v9998_v2, 6  ;;  %v616_v38 = vrot.slane %v10013_v8, 6 }
  0x9b   : > { %16317 = vst [vmem:[#allocation31_spill] sm:$0xff] %v10061_v24  ;;  %16318 = vst [vmem:[#allocation32_spill] sm:$0xff] %v10064_v25  ;;  %v618_v39 = vrot.slane %v10016_v9, 6  ;;  %v619_v40 = vrot.slane %v10019_v10, 6  ;;  %v621_v41 = vrot.slane %v10031_v14, 6  ;;  %vm630_vm1 = vcmp.lt.s32.totalorder %v9995_v1, 2 }
  0x9c   : > { %16319 = vst [vmem:[#allocation33_spill] sm:$0xff] %v10070_v29  ;;  %v10086_v42 = vld [vmem:[#allocation7] sm:$0xff]  ;;  %v622_v43 = vrot.slane %v10034_v15, 6  ;;  %v624_v44 = vrot.slane %v10037_v16, 6  ;;  %v625_v45 = vrot.slane %v10049_v20, 6  ;;  %v10093_v46 = vsel %vm553_vm0, %v542_v31, %v543_v32 }
  0x9d   : > { %16320 = vst [vmem:[#allocation34_spill] sm:$0xff] %v10093_v46  ;;  %v10098_v47 = vsel %vm553_vm0, %v10001_v4, %v542_v31  ;;  %v10102_v48 = vsel %vm553_vm0, %v539_v28, %v540_v30  ;;  %v10107_v49 = vsel %vm553_vm0, %v10001_v4, %v539_v28  ;;  %v10112_v50 = vsel %vm553_vm0, %v10001_v4, %v548_v35 }
  0x9e   : > { %16321 = vst [vmem:[#allocation35_spill] sm:$0xff] %v10098_v47  ;;  %16322 = vst [vmem:[#allocation36_spill] sm:$0xff] %v10102_v48  ;;  %v10116_v51 = vsel %vm553_vm0, %v545_v33, %v546_v34  ;;  %v10121_v52 = vsel %vm553_vm0, %v10001_v4, %v545_v33  ;;  %v10125_v53 = vrot.slane %v10086_v42, %v10022_v11  ;;  %v627_v58 = vrot.slane %v10052_v21, 6 }
  0x9f   : > { %16323 = vst [vmem:[#allocation37_spill] sm:$0xff] %v10107_v49  ;;  %16324 = vst [vmem:[#allocation38_spill] sm:$0xff] %v10112_v50  ;;  %v10129_v54 = vsel %vm553_vm0, %v548_v35, %v549_v36  ;;  %v10133_v55 = vsel %vm553_vm0, %v536_v26, %v537_v27  ;;  %v10138_v56 = vsel %vm553_vm0, %v10001_v4, %v536_v26  ;;  %v628_v59 = vrot.slane %v10055_v22, 6 }
  0xa0   : > { %16325 = vst [vmem:[#allocation39_spill] sm:$0xff] %v10116_v51  ;;  %16326 = vst [vmem:[#allocation40_spill] sm:$0xff] %v10121_v52  ;;  %v10142_v57 = vsel %vm630_vm1, %v615_v37, %v616_v38  ;;  %v10148_v60 = vsel %vm630_vm1, %v624_v44, %v625_v45  ;;  %v10153_v61 = vsel %vm630_vm1, %v10004_v5, %v621_v41  ;;  %vm707_vm2 = vcmp.lt.s32.totalorder %v9995_v1, 1 }
  0xa1   : > { %16327 = vst [vmem:[#allocation41_spill] sm:$0xff] %v10125_v53  ;;  %16328 = vst [vmem:[#allocation42_spill] sm:$0xff] %v10129_v54  ;;  %v10158_v62 = vsel %vm630_vm1, %v10004_v5, %v624_v44  ;;  %v10162_v63 = vsel %vm630_vm1, %v621_v41, %v622_v43  ;;  %v10166_v26 = vsel %vm630_vm1, %v618_v39, %v619_v40  ;;  %v692_v11 = vrot.slane %v9998_v2, 7 }
  0xa2   : > { %16329 = vst [vmem:[#allocation43_spill] sm:$0xff] %v10133_v55  ;;  %16330 = vst [vmem:[#allocation44_spill] sm:$0xff] %v10138_v56  ;;  %v10170_v27 = vrot.slane %v10086_v42, %v10040_v17  ;;  %v574_v28 = vmul.f32 %v10125_v53, %v10001_v4  ;;  %v580_v30 = vmul.f32 %v10125_v53, %v10138_v56  ;;  %v702_v56 = vrot.slane %v10049_v20, 7 }
  0xa3   : > { %16331 = vst [vmem:[#allocation45_spill] sm:$0xff] %v10142_v57  ;;  %16332 = vst [vmem:[#allocation46_spill] sm:$0xff] %v10148_v60  ;;  %v581_v31 = vmul.f32 %v10125_v53, %v10133_v55  ;;  %v10181_v32 = vsel %vm630_vm1, %v10004_v5, %v615_v37  ;;  %v582_v33 = vmul.f32 %v10125_v53, %v10107_v49  ;;  %v705_v49 = vrot.slane %v10055_v22, 7 }
  0xa4   : > { %16333 = vst [vmem:[#allocation47_spill] sm:$0xff] %v10153_v61  ;;  %16334 = vst [vmem:[#allocation48_spill] sm:$0xff] %v10158_v62  ;;  %v583_v34 = vmul.f32 %v10125_v53, %v10102_v48  ;;  %v584_v35 = vmul.f32 %v10125_v53, %v10098_v47  ;;  %v10192_v36 = vsel %vm630_vm1, %v10004_v5, %v618_v39  ;;  %vm820_vm3 = vcmp.lt.s32.totalorder %v9995_v1, 7 }
  0xa5   : > { %16335 = vst [vmem:[#allocation49_spill] sm:$0xff] %v10162_v63  ;;  %16336 = vst [vmem:[#allocation50_spill] sm:$0xff] %v10166_v26  ;;  %v585_v38 = vmul.f32 %v10125_v53, %v10093_v46  ;;  %v586_v37 = vmul.f32 %v10125_v53, %v10121_v52  ;;  %v587_v40 = vmul.f32 %v10125_v53, %v10116_v51  ;;  %vm897_vm4 = vcmp.lt.s32.totalorder %v9995_v1, 6 }
  0xa6   : > { %16337 = vst [vmem:[#allocation51_spill] sm:$0xff] %v10170_v27  ;;  %16338 = vst [vmem:[#allocation52_spill] sm:$0xff] %v10181_v32  ;;  %v588_v41 = vmul.f32 %v10125_v53, %v10112_v50  ;;  %v589_v43 = vmul.f32 %v10125_v53, %v10129_v54  ;;  %v10207_v39 = vsel %vm630_vm1, %v627_v58, %v628_v59  ;;  %v695_v54 = vrot.slane %v10016_v9, 7 }
  0xa7   : > { %16339 = vst [vmem:[#allocation53_spill] sm:$0xff] %v10192_v36  ;;  %16340 = vst [vmem:[#allocation54_spill] sm:$0xff] %v10207_v39  ;;  %v651_v44 = vmul.f32 %v10170_v27, %v10004_v5  ;;  %v657_v45 = vmul.f32 %v10170_v27, %v10181_v32  ;;  %v10216_v3 = vsel %vm630_vm1, %v10004_v5, %v627_v58  ;;  %v693_v32 = vrot.slane %v10013_v8, 7 }
  0xa8   : > { %16341 = vst [vmem:[#allocation55_spill] sm:$0xff] %v10216_v3  ;;  %v658_v0 = vmul.f32 %v10170_v27, %v10142_v57  ;;  %v659_v53 = vmul.f32 %v10170_v27, %v10192_v36  ;;  %v660_v59 = vmul.f32 %v10170_v27, %v10166_v26  ;;  %v661_v17 = vmul.f32 %v10170_v27, %v10153_v61 }
  0xa9   : > { %v662_v58 = vmul.f32 %v10170_v27, %v10162_v63  ;;  %v663_v57 = vmul.f32 %v10170_v27, %v10158_v62  ;;  %v664_v36 = vmul.f32 %v10170_v27, %v10148_v60  ;;  %v696_v26 = vrot.slane %v10019_v10, 7 }
  0xaa   : > { %v665_v61 = vmul.f32 %v10170_v27, %v10216_v3  ;;  %v666_v5 = vmul.f32 %v10170_v27, %v10207_v39  ;;  %v667_v50 = vadd.f32 %v651_v44, %v574_v28  ;;  %v673_v51 = vadd.f32 %v657_v45, %v580_v30 }
  0xab   : > { %v674_v52 = vadd.f32 %v658_v0, %v581_v31  ;;  %v675_v46 = vadd.f32 %v659_v53, %v582_v33  ;;  %v676_v47 = vadd.f32 %v660_v59, %v583_v34  ;;  %v698_v63 = vrot.slane %v10031_v14, 7 }
  0xac   : > { %v677_v48 = vadd.f32 %v661_v17, %v584_v35  ;;  %v699_v62 = vrot.slane %v10034_v15, 7  ;;  %v704_v60 = vrot.slane %v10052_v21, 7  ;;  %v678_v55 = vadd.f32 %v662_v58, %v585_v38 }
  0xad   : > { %v701_v3 = vrot.slane %v10037_v16, 7  ;;  %v10248_v28 = vrot.slane %v10086_v42, %v10043_v18  ;;  %v679_v0 = vadd.f32 %v663_v57, %v586_v37  ;;  %v680_v53 = vadd.f32 %v664_v36, %v587_v40 }
  0xae   : > { %v681_v30 = vadd.f32 %v665_v61, %v588_v41  ;;  %v10253_v17 = vsel %vm707_vm2, %v10007_v6, %v692_v11  ;;  %v10258_v31 = vsel %vm707_vm2, %v10007_v6, %v698_v63  ;;  %v10262_v33 = vsel %vm707_vm2, %v695_v54, %v696_v26 }
  0xaf   : > { %16342 = vst [vmem:[#allocation56_spill] sm:$0xff] %v10248_v28  ;;  %16343 = vst [vmem:[#allocation57_spill] sm:$0xff] %v10253_v17  ;;  %v10267_v57 = vsel %vm707_vm2, %v10007_v6, %v695_v54  ;;  %v10271_v61 = vsel %vm707_vm2, %v692_v11, %v693_v32  ;;  %v682_v34 = vadd.f32 %v666_v5, %v589_v43  ;;  %v805_v32 = vrot.slane %v9998_v2, 1 }
  0xb0   : > { %16344 = vst [vmem:[#allocation58_spill] sm:$0xff] %v10258_v31  ;;  %16345 = vst [vmem:[#allocation59_spill] sm:$0xff] %v10262_v33  ;;  %v10275_v35 = vsel %vm707_vm2, %v704_v60, %v705_v49  ;;  %v10280_v36 = vsel %vm707_vm2, %v10007_v6, %v704_v60  ;;  %v10284_v26 = vsel %vm707_vm2, %v698_v63, %v699_v62  ;;  %v806_v38 = vrot.slane %v10013_v8, 1 }
  0xb1   : > { %16346 = vst [vmem:[#allocation60_spill] sm:$0xff] %v10267_v57  ;;  %16347 = vst [vmem:[#allocation61_spill] sm:$0xff] %v10271_v61  ;;  %v10288_v54 = vsel %vm707_vm2, %v701_v3, %v702_v56  ;;  %v10293_v5 = vsel %vm707_vm2, %v10007_v6, %v701_v3  ;;  %v728_v11 = vmul.f32 %v10248_v28, %v10007_v6  ;;  %v808_v37 = vrot.slane %v10016_v9, 1 }
  0xb2   : > { %16348 = vst [vmem:[#allocation62_spill] sm:$0xff] %v10275_v35  ;;  %16349 = vst [vmem:[#allocation63_spill] sm:$0xff] %v10280_v36  ;;  %v734_v49 = vmul.f32 %v10248_v28, %v10253_v17  ;;  %v735_v60 = vmul.f32 %v10248_v28, %v10271_v61  ;;  %v736_v62 = vmul.f32 %v10248_v28, %v10267_v57  ;;  %v809_v44 = vrot.slane %v10019_v10, 1 }
  0xb3   : > { %16350 = vst [vmem:[#allocation64_spill] sm:$0xff] %v10284_v26  ;;  %16351 = vst [vmem:[#allocation65_spill] sm:$0xff] %v10288_v54  ;;  %v737_v56 = vmul.f32 %v10248_v28, %v10262_v33  ;;  %v738_v63 = vmul.f32 %v10248_v28, %v10258_v31  ;;  %v10309_v3 = vrot.slane %v10086_v42, %v10046_v19  ;;  %v895_v6 = vrot.slane %v10055_v22, 2 }
  0xb4   : > { %16352 = vst [vmem:[#allocation66_spill] sm:$0xff] %v10293_v5  ;;  %v739_v40 = vmul.f32 %v10248_v28, %v10284_v26  ;;  %v740_v41 = vmul.f32 %v10248_v28, %v10293_v5  ;;  %v741_v43 = vmul.f32 %v10248_v28, %v10288_v54  ;;  %v742_v45 = vmul.f32 %v10248_v28, %v10280_v36 }
  0xb5   : > { %16353 = vst [vmem:[#allocation67_spill] sm:$0xff] %v10309_v3  ;;  %v743_v59 = vmul.f32 %v10248_v28, %v10275_v35  ;;  %v744_v58 = vadd.f32 %v728_v11, %v667_v50  ;;  %v750_v27 = vadd.f32 %v734_v49, %v673_v51  ;;  %v751_v19 = vadd.f32 %v735_v60, %v674_v52 }
  0xb6   : > { %v752_v31 = vadd.f32 %v736_v62, %v675_v46  ;;  %v753_v33 = vadd.f32 %v737_v56, %v676_v47  ;;  %v754_v26 = vadd.f32 %v738_v63, %v677_v48  ;;  %v764_v5 = vmul.f32 0.0, %v10309_v3 }
  0xb7   : > { %v770_v54 = vmul.f32 %v10309_v3, %v9998_v2  ;;  %v771_v57 = vmul.f32 %v10309_v3, %v10013_v8  ;;  %v772_v36 = vmul.f32 %v10309_v3, %v10016_v9  ;;  %v755_v28 = vadd.f32 %v739_v40, %v678_v55 }
  0xb8   : > { %v756_v50 = vadd.f32 %v740_v41, %v679_v0  ;;  %v773_v46 = vmul.f32 %v10309_v3, %v10019_v10  ;;  %v774_v47 = vmul.f32 %v10309_v3, %v10031_v14  ;;  %v757_v48 = vadd.f32 %v741_v43, %v680_v53 }
  0xb9   : > { %v758_v51 = vadd.f32 %v742_v45, %v681_v30  ;;  %v759_v52 = vadd.f32 %v743_v59, %v682_v34  ;;  %v775_v11 = vmul.f32 %v10309_v3, %v10034_v15  ;;  %v776_v49 = vmul.f32 %v10309_v3, %v10037_v16 }
  0xba   : > { %v777_v60 = vmul.f32 %v10309_v3, %v10049_v20  ;;  %v778_v55 = vmul.f32 %v10309_v3, %v10052_v21  ;;  %v779_v0 = vmul.f32 %v10309_v3, %v10055_v22  ;;  %v780_v62 = vadd.f32 %v764_v5, %v744_v58 }
  0xbb   : > { %v786_v56 = vadd.f32 %v770_v54, %v750_v27  ;;  %v787_v53 = vadd.f32 %v771_v57, %v751_v19  ;;  %v788_v30 = vadd.f32 %v772_v36, %v752_v31  ;;  %v789_v34 = vadd.f32 %v773_v46, %v753_v33 }
  0xbc   : > { %v790_v63 = vadd.f32 %v774_v47, %v754_v26  ;;  %v811_v40 = vrot.slane %v10031_v14, 1  ;;  %v812_v41 = vrot.slane %v10034_v15, 1  ;;  %v814_v43 = vrot.slane %v10037_v16, 1 }
  0xbd   : > { %v815_v45 = vrot.slane %v10049_v20, 1  ;;  %v817_v59 = vrot.slane %v10052_v21, 1  ;;  %v818_v35 = vrot.slane %v10055_v22, 1  ;;  %v791_v61 = vadd.f32 %v775_v11, %v755_v28 }
  0xbe   : > { %v792_v3 = vadd.f32 %v776_v49, %v756_v50  ;;  %v793_v5 = vadd.f32 %v777_v60, %v757_v48  ;;  %v10355_v19 = vrot.slane %v10086_v42, %v10058_v23  ;;  %v794_v27 = vadd.f32 %v778_v55, %v758_v51 }
  0xbf   : > { %v795_v31 = vadd.f32 %v779_v0, %v759_v52  ;;  %v10360_v33 = vsel %vm820_vm3, %v809_v44, %v10010_v7  ;;  %v10364_v57 = vsel %vm820_vm3, %v805_v32, %v806_v38  ;;  %v10369_v28 = vsel %vm820_vm3, %v815_v45, %v10010_v7 }
  0xc0   : > { %16354 = vst [vmem:[#allocation68_spill] sm:$0xff] %v10355_v19  ;;  %16355 = vst [vmem:[#allocation69_spill] sm:$0xff] %v10360_v33  ;;  %v10373_v36 = vsel %vm820_vm3, %v811_v40, %v812_v41  ;;  %v10377_v26 = vsel %vm820_vm3, %v808_v37, %v809_v44  ;;  %v10382_v54 = vsel %vm820_vm3, %v806_v38, %v10010_v7  ;;  %v882_v46 = vrot.slane %v9998_v2, 2 }
  0xc1   : > { %16356 = vst [vmem:[#allocation70_spill] sm:$0xff] %v10364_v57  ;;  %16357 = vst [vmem:[#allocation71_spill] sm:$0xff] %v10369_v28  ;;  %v10388_v32 = vsel %vm820_vm3, %v818_v35, %v10010_v7  ;;  %v10392_v58 = vsel %vm820_vm3, %v817_v59, %v818_v35  ;;  %v10396_v37 = vsel %vm820_vm3, %v814_v43, %v815_v45  ;;  %v883_v35 = vrot.slane %v10013_v8, 2 }
  0xc2   : > { %16358 = vst [vmem:[#allocation72_spill] sm:$0xff] %v10373_v36  ;;  %16359 = vst [vmem:[#allocation73_spill] sm:$0xff] %v10377_v26  ;;  %v10401_v38 = vsel %vm820_vm3, %v812_v41, %v10010_v7  ;;  %v841_v44 = vmul.f32 %v10355_v19, %v10010_v7  ;;  %v847_v50 = vmul.f32 %v10355_v19, %v10364_v57  ;;  %v885_v60 = vrot.slane %v10016_v9, 2 }
  0xc3   : > { %16360 = vst [vmem:[#allocation74_spill] sm:$0xff] %v10382_v54  ;;  %16361 = vst [vmem:[#allocation75_spill] sm:$0xff] %v10388_v32  ;;  %v848_v47 = vmul.f32 %v10355_v19, %v10382_v54  ;;  %v849_v48 = vmul.f32 %v10355_v19, %v10377_v26  ;;  %v850_v51 = vmul.f32 %v10355_v19, %v10360_v33  ;;  %v886_v55 = vrot.slane %v10019_v10, 2 }
  0xc4   : > { %16362 = vst [vmem:[#allocation76_spill] sm:$0xff] %v10392_v58  ;;  %16363 = vst [vmem:[#allocation77_spill] sm:$0xff] %v10396_v37  ;;  %v851_v52 = vmul.f32 %v10355_v19, %v10373_v36  ;;  %v852_v11 = vmul.f32 %v10355_v19, %v10401_v38  ;;  %v853_v49 = vmul.f32 %v10355_v19, %v10396_v37  ;;  %v888_v40 = vrot.slane %v10031_v14, 2 }
  0xc5   : > { %16364 = vst [vmem:[#allocation78_spill] sm:$0xff] %v10401_v38  ;;  %v854_v0 = vmul.f32 %v10355_v19, %v10369_v28  ;;  %v889_v41 = vrot.slane %v10034_v15, 2  ;;  %v891_v43 = vrot.slane %v10037_v16, 2  ;;  %v855_v45 = vmul.f32 %v10355_v19, %v10392_v58 }
  0xc6   : > { %v856_v59 = vmul.f32 %v10355_v19, %v10388_v32  ;;  %v857_v23 = vadd.f32 %v841_v44, %v780_v62  ;;  %v863_v37 = vadd.f32 %v847_v50, %v786_v56  ;;  %v864_v38 = vadd.f32 %v848_v47, %v787_v53 }
  0xc7   : > { %v865_v36 = vadd.f32 %v849_v48, %v788_v30  ;;  %v866_v33 = vadd.f32 %v850_v51, %v789_v34  ;;  %v867_v26 = vadd.f32 %v851_v52, %v790_v63  ;;  %v868_v54 = vadd.f32 %v852_v11, %v791_v61 }
  0xc8   : > { %v869_v28 = vadd.f32 %v853_v49, %v792_v3  ;;  %v892_v57 = vrot.slane %v10049_v20, 2  ;;  %v10435_v7 = vrot.slane %v10086_v42, %v10061_v24  ;;  %v870_v17 = vadd.f32 %v854_v0, %v793_v5 }
  0xc9   : > { %v894_v58 = vrot.slane %v10052_v21, 2  ;;  %v10441_v62 = vsel %vm897_vm4, %v882_v46, %v883_v35  ;;  %v871_v56 = vadd.f32 %v855_v45, %v794_v27  ;;  %v10443_v53 = vadd.f32 %v856_v59, %v795_v31 }
  0xca   : > { %16365 = vst [vmem:[#allocation79_spill] sm:$0xff] %v10435_v7  ;;  %16366 = vst [vmem:[#allocation80_spill] sm:$0xff] %v10441_v62  ;;  %v10447_v61 = vsel %vm897_vm4, %v885_v60, %v886_v55  ;;  %v10452_v3 = vsel %vm897_vm4, %v883_v35, %v10025_v12  ;;  %v10457_v30 = vsel %vm897_vm4, %v892_v57, %v10025_v12  ;;  %vm974_vm5 = vcmp.lt.s32.totalorder %v9995_v1, 5 }
  0xcb   : > { %16367 = vst [vmem:[#allocation81_spill] sm:$0xff] %v10447_v61  ;;  %16368 = vst [vmem:[#allocation82_spill] sm:$0xff] %v10452_v3  ;;  %v10462_v34 = vsel %vm897_vm4, %v889_v41, %v10025_v12  ;;  %v10466_v63 = vsel %vm897_vm4, %v888_v40, %v889_v41  ;;  %v10471_v5 = vsel %vm897_vm4, %v886_v55, %v10025_v12  ;;  %v959_v48 = vrot.slane %v9998_v2, 3 }
  0xcc   : > { %16369 = vst [vmem:[#allocation83_spill] sm:$0xff] %v10457_v30  ;;  %16370 = vst [vmem:[#allocation84_spill] sm:$0xff] %v10462_v34  ;;  %v10477_v27 = vsel %vm897_vm4, %v895_v6, %v10025_v12  ;;  %v10481_v31 = vsel %vm897_vm4, %v891_v43, %v892_v57  ;;  %v918_v44 = vmul.f32 %v10435_v7, %v10025_v12  ;;  %v960_v52 = vrot.slane %v10013_v8, 3 }
  0xcd   : > { %16371 = vst [vmem:[#allocation85_spill] sm:$0xff] %v10466_v63  ;;  %16372 = vst [vmem:[#allocation86_spill] sm:$0xff] %v10471_v5  ;;  %v924_v50 = vmul.f32 %v10435_v7, %v10441_v62  ;;  %v10489_v46 = vsel %vm897_vm4, %v894_v58, %v895_v6  ;;  %v925_v35 = vmul.f32 %v10435_v7, %v10452_v3  ;;  %v962_v11 = vrot.slane %v10016_v9, 3 }
  0xce   : > { %16373 = vst [vmem:[#allocation87_spill] sm:$0xff] %v10477_v27  ;;  %16374 = vst [vmem:[#allocation88_spill] sm:$0xff] %v10481_v31  ;;  %v926_v47 = vmul.f32 %v10435_v7, %v10447_v61  ;;  %v927_v57 = vmul.f32 %v10435_v7, %v10471_v5  ;;  %v928_v51 = vmul.f32 %v10435_v7, %v10466_v63  ;;  %v963_v60 = vrot.slane %v10019_v10, 3  ;;  %v16417_v61 = vld [vmem:[#allocation22_spill] sm:$0xff] }
  0xcf   : > { %16375 = vst [vmem:[#allocation89_spill] sm:$0xff] %v10489_v46  ;;  %v929_v6 = vmul.f32 %v10435_v7, %v10462_v34  ;;  %v930_v58 = vmul.f32 %v10435_v7, %v10481_v31  ;;  %v931_v49 = vmul.f32 %v10435_v7, %v10457_v30  ;;  %v932_v55 = vmul.f32 %v10435_v7, %v10489_v46 }
  0xd0   : > { %v933_v0 = vmul.f32 %v10435_v7, %v10477_v27  ;;  %v934_v40 = vadd.f32 %v918_v44, %v857_v23  ;;  %v940_v41 = vadd.f32 %v924_v50, %v863_v37  ;;  %v941_v43 = vadd.f32 %v925_v35, %v864_v38 }
  0xd1   : > { %v942_v45 = vadd.f32 %v926_v47, %v865_v36  ;;  %v965_v59 = vrot.slane %v10031_v14, 3  ;;  %v966_v19 = vrot.slane %v10034_v15, 3  ;;  %v943_v24 = vadd.f32 %v927_v57, %v866_v33  ;;  %v10524_v36 = vld [vmem:[%s9980_s19 + $0x50] sm:$0xff] }
  0xd2   : > { %v944_v31 = vadd.f32 %v928_v51, %v867_v26  ;;  %v968_v30 = vrot.slane %v10037_v16, 3  ;;  %v969_v34 = vrot.slane %v10049_v20, 3  ;;  %v945_v46 = vadd.f32 %v929_v6, %v868_v54 }
  0xd3   : > { %v971_v63 = vrot.slane %v10052_v21, 3  ;;  %v972_v7 = vrot.slane %v10055_v22, 3  ;;  %v10521_v23 = vrot.slane %v10086_v42, %v10064_v25  ;;  %v946_v37 = vadd.f32 %v930_v58, %v869_v28  ;;  %v10549_v28 = vld [vmem:[%s9980_s19 + $0x58] sm:$0xff] }
  0xd4   : > { %v947_v38 = vadd.f32 %v931_v49, %v870_v17  ;;  %v948_v33 = vadd.f32 %v932_v55, %v871_v56  ;;  %v10528_v26 = vsel %vm974_vm5, %v959_v48, %v960_v52  ;;  %v10532_v54 = vsel %vm974_vm5, %v965_v59, %v966_v19 }
  0xd5   : > { %16376 = vst [vmem:[#allocation90_spill] sm:$0xff] %v10521_v23  ;;  %16377 = vst [vmem:[#allocation91_spill] sm:$0xff] %v10528_v26  ;;  %v10537_v44 = vsel %vm974_vm5, %v963_v60, %v10028_v13  ;;  %v10541_v50 = vsel %vm974_vm5, %v962_v11, %v963_v60  ;;  %v10546_v17 = vsel %vm974_vm5, %v960_v52, %v10028_v13  ;;  %v1073_v11 = vrot.slane %v10524_v36, 5 }
  0xd6   : > { %16378 = vst [vmem:[#allocation92_spill] sm:$0xff] %v10532_v54  ;;  %16379 = vst [vmem:[#allocation93_spill] sm:$0xff] %v10537_v44  ;;  %v10554_v56 = vsel %vm974_vm5, %v972_v7, %v10028_v13  ;;  %v10559_v35 = vsel %vm974_vm5, %v969_v34, %v10028_v13  ;;  %v10563_v47 = vsel %vm974_vm5, %v968_v30, %v969_v34  ;;  %v1074_v49 = vrot.slane %v10549_v28, 5 }
  0xd7   : > { %16380 = vst [vmem:[#allocation94_spill] sm:$0xff] %v10541_v50  ;;  %16381 = vst [vmem:[#allocation95_spill] sm:$0xff] %v10546_v17  ;;  %v10568_v48 = vsel %vm974_vm5, %v966_v19, %v10028_v13  ;;  %v10572_v57 = vsel %vm974_vm5, %v971_v63, %v972_v7  ;;  %v995_v51 = vmul.f32 %v10521_v23, %v10028_v13  ;;  %v1149_v59 = vrot.slane %v10524_v36, 6 }
  0xd8   : > { %16382 = vst [vmem:[#allocation96_spill] sm:$0xff] %v10554_v56  ;;  %16383 = vst [vmem:[#allocation97_spill] sm:$0xff] %v10559_v35  ;;  %v1001_v52 = vmul.f32 %v10521_v23, %v10528_v26  ;;  %v1002_v30 = vmul.f32 %v10521_v23, %v10546_v17  ;;  %v1003_v34 = vmul.f32 %v10521_v23, %v10541_v50  ;;  %v1150_v25 = vrot.slane %v10549_v28, 6 }
  0xd9   : > { %16384 = vst [vmem:[#allocation98_spill] sm:$0xff] %v10563_v47  ;;  %16385 = vst [vmem:[#allocation99_spill] sm:$0xff] %v10568_v48  ;;  %v1004_v19 = vmul.f32 %v10521_v23, %v10537_v44  ;;  %v1005_v7 = vmul.f32 %v10521_v23, %v10532_v54  ;;  %v1006_v63 = vmul.f32 %v10521_v23, %v10568_v48 }
  0xda   : > { %16386 = vst [vmem:[#allocation100_spill] sm:$0xff] %v10572_v57  ;;  %v1007_v6 = vmul.f32 %v10521_v23, %v10563_v47  ;;  %v1008_v58 = vmul.f32 %v10521_v23, %v10559_v35  ;;  %v949_v60 = vadd.f32 %v933_v0, %v10443_v53  ;;  %v10597_v55 = vrot.slane %v10086_v42, %v10070_v29 }
  0xdb   : > { %v1009_v48 = vmul.f32 %v10521_v23, %v10572_v57  ;;  %v1010_v47 = vmul.f32 %v10521_v23, %v10554_v56  ;;  %v1011_v54 = vadd.f32 %v995_v51, %v934_v40  ;;  %v1017_v35 = vadd.f32 %v1001_v52, %v940_v41  ;;  %v16390_v41 = vld [vmem:[#allocation44_spill] sm:$0xff]  ;;  %v16394_v52 = vld [vmem:[#allocation35_spill] sm:$0xff]  ;;  %v16399_v23 = vld [vmem:[#allocation42_spill] sm:$0xff] }
  0xdc   : > { %16387 = vst [vmem:[#allocation101_spill] sm:$0xff] %v10597_v55  ;;  %v1018_v44 = vadd.f32 %v1002_v30, %v941_v43  ;;  %v1019_v50 = vadd.f32 %v1003_v34, %v942_v45  ;;  %v1020_v17 = vadd.f32 %v1004_v19, %v943_v24  ;;  %v1021_v53 = vadd.f32 %v1005_v7, %v944_v31  ;;  %v16391_v24 = vld [vmem:[#allocation43_spill] sm:$0xff]  ;;  %v16392_v45 = vld [vmem:[#allocation37_spill] sm:$0xff]  ;;  %v16395_v30 = vld [vmem:[#allocation34_spill] sm:$0xff] }
  0xdd   : > { %v1022_v0 = vadd.f32 %v1006_v63, %v945_v46  ;;  %v1023_v26 = vadd.f32 %v1007_v6, %v946_v37  ;;  %v1024_v42 = vadd.f32 %v1008_v58, %v947_v38  ;;  %v10607_v29 = vsel %vm553_vm0, %v1073_v11, %v1074_v49  ;;  %v10620_v46 = vld [vmem:[#allocation7 + $0x8] sm:$0xff]  ;;  %v16393_v38 = vld [vmem:[#allocation36_spill] sm:$0xff]  ;;  %v16397_v63 = vld [vmem:[#allocation39_spill] sm:$0xff] }
  0xde   : > { %16388 = vst [vmem:[#allocation102_spill] sm:$0xff] %v10607_v29  ;;  %v10612_v57 = vsel %vm553_vm0, %v10001_v4, %v1073_v11  ;;  %v1096_v40 = vmul.f32 %v10597_v55, %v10001_v4  ;;  %v1100_v43 = vmul.f32 %v10597_v55, %v16390_v41  ;;  %v1101_v31 = vmul.f32 %v10597_v55, %v16391_v24  ;;  %v16396_v19 = vld [vmem:[#allocation40_spill] sm:$0xff]  ;;  %v16398_v58 = vld [vmem:[#allocation38_spill] sm:$0xff] }
  0xdf   : > { %16389 = vst [vmem:[#allocation103_spill] sm:$0xff] %v10612_v57  ;;  %v1102_v37 = vmul.f32 %v10597_v55, %v16392_v45  ;;  %v1103_v51 = vmul.f32 %v10597_v55, %v16393_v38  ;;  %v1104_v11 = vmul.f32 %v10597_v55, %v16394_v52  ;;  %v1105_v34 = vmul.f32 %v10597_v55, %v16395_v30  ;;  %v16400_v56 = vld [vmem:[#allocation24_spill] sm:$0xff] }
  0xe0   : > { %v1106_v7 = vmul.f32 %v10597_v55, %v16396_v19  ;;  %v1107_v6 = vmul.f32 %v10597_v55, %v16397_v63  ;;  %v1108_v49 = vmul.f32 %v10597_v55, %v16398_v58  ;;  %v1109_v45 = vmul.f32 %v10597_v55, %v16399_v23 }
  0xe1   : > { %v1025_v24 = vadd.f32 %v1009_v48, %v948_v33  ;;  %v1026_v38 = vadd.f32 %v1010_v47, %v949_v60  ;;  %v1110_v52 = vmul.f32 %v10597_v55, %v10612_v57  ;;  %v1111_v30 = vmul.f32 %v10597_v55, %v10607_v29 }
  0xe2   : > { %v1112_v41 = vadd.f32 %v1096_v40, %v1011_v54  ;;  %v1116_v4 = vadd.f32 %v1100_v43, %v1011_v54  ;;  %v1117_v19 = vadd.f32 %v1101_v31, %v1011_v54  ;;  %v10644_v63 = vrot.slane %v10620_v46, %v16400_v56  ;;  %v16403_v40 = vld [vmem:[#allocation21_spill] sm:$0xff]  ;;  %v16408_v43 = vld [vmem:[#allocation50_spill] sm:$0xff] }
  0xe3   : > { %v1118_v13 = vadd.f32 %v1102_v37, %v1017_v35  ;;  %v1119_v58 = vadd.f32 %v1103_v51, %v1018_v44  ;;  %v1120_v27 = vadd.f32 %v1104_v11, %v1019_v50  ;;  %v1121_v5 = vadd.f32 %v1105_v34, %v1020_v17  ;;  %v16405_v50 = vld [vmem:[#allocation52_spill] sm:$0xff] }
  0xe4   : > { %16401 = vst [vmem:[#allocation104_spill] sm:$0xff] %v10644_v63  ;;  %v1122_v23 = vadd.f32 %v1106_v7, %v1021_v53  ;;  %v1123_v33 = vadd.f32 %v1107_v6, %v1022_v0  ;;  %v1124_v47 = vadd.f32 %v1108_v49, %v1023_v26  ;;  %v1125_v48 = vadd.f32 %v1109_v45, %v1024_v42  ;;  %v16406_v53 = vld [vmem:[#allocation45_spill] sm:$0xff]  ;;  %v16414_v6 = vld [vmem:[#allocation27_spill] sm:$0xff] }
  0xe5   : > { %v1126_v60 = vadd.f32 %v1110_v52, %v1025_v24  ;;  %v1127_v57 = vadd.f32 %v1111_v30, %v1026_v38  ;;  %v10648_v55 = vsel %vm630_vm1, %v1149_v59, %v1150_v25  ;;  %v10653_v54 = vsel %vm630_vm1, %v16403_v40, %v1149_v59  ;;  %v16407_v25 = vld [vmem:[#allocation53_spill] sm:$0xff]  ;;  %v16409_v24 = vld [vmem:[#allocation47_spill] sm:$0xff]  ;;  %v16411_v38 = vld [vmem:[#allocation48_spill] sm:$0xff] }
  0xe6   : > { %16402 = vst [vmem:[#allocation105_spill] sm:$0xff] %v10648_v55  ;;  %16404 = vst [vmem:[#allocation106_spill] sm:$0xff] %v10653_v54  ;;  %v1172_v44 = vmul.f32 %v10644_v63, %v16403_v40  ;;  %v1176_v17 = vmul.f32 %v10644_v63, %v16405_v50  ;;  %v1225_v26 = vrot.slane %v10524_v36, 7  ;;  %v1226_v35 = vrot.slane %v10549_v28, 7  ;;  %v16410_v45 = vld [vmem:[#allocation49_spill] sm:$0xff]  ;;  %v16412_v52 = vld [vmem:[#allocation46_spill] sm:$0xff] }
  0xe7   : > { %v1177_v0 = vmul.f32 %v10644_v63, %v16406_v53  ;;  %v1178_v42 = vmul.f32 %v10644_v63, %v16407_v25  ;;  %v1179_v59 = vmul.f32 %v10644_v63, %v16408_v43  ;;  %v1180_v31 = vmul.f32 %v10644_v63, %v16409_v24  ;;  %v16413_v30 = vld [vmem:[#allocation55_spill] sm:$0xff] }
  0xe8   : > { %v1181_v37 = vmul.f32 %v10644_v63, %v16410_v45  ;;  %v1182_v51 = vmul.f32 %v10644_v63, %v16411_v38  ;;  %v1183_v11 = vmul.f32 %v10644_v63, %v16412_v52  ;;  %v1184_v34 = vmul.f32 %v10644_v63, %v16413_v30 }
  0xe9   : > { %v1185_v7 = vmul.f32 %v10644_v63, %v10207_v39  ;;  %v10681_v49 = vrot.slane %v10620_v46, %v16414_v6  ;;  %v10685_v56 = vrot.slane %v10620_v46, %v10043_v18  ;;  %v1186_v38 = vmul.f32 %v10644_v63, %v10653_v54 }
  0xea   : > { %v1187_v52 = vmul.f32 %v10644_v63, %v10648_v55  ;;  %v1188_v30 = vadd.f32 %v1172_v44, %v1112_v41  ;;  %v1192_v24 = vadd.f32 %v1176_v17, %v1116_v4  ;;  %v1193_v43 = vadd.f32 %v1177_v0, %v1117_v19  ;;  %v16419_v63 = vld [vmem:[#allocation57_spill] sm:$0xff]  ;;  %v16425_v44 = vld [vmem:[#allocation66_spill] sm:$0xff] }
  0xeb   : > { %16415 = vst [vmem:[#allocation107_spill] sm:$0xff] %v10681_v49  ;;  %16416 = vst [vmem:[#allocation108_spill] sm:$0xff] %v10685_v56  ;;  %v1194_v39 = vadd.f32 %v1178_v42, %v1118_v13  ;;  %v1195_v25 = vadd.f32 %v1179_v59, %v1119_v58  ;;  %v1196_v53 = vadd.f32 %v1180_v31, %v1120_v27  ;;  %v16420_v41 = vld [vmem:[#allocation61_spill] sm:$0xff]  ;;  %v16421_v27 = vld [vmem:[#allocation60_spill] sm:$0xff] }
  0xec   : > { %v1197_v6 = vadd.f32 %v1181_v37, %v1121_v5  ;;  %v1198_v50 = vadd.f32 %v1182_v51, %v1122_v23  ;;  %v1199_v40 = vadd.f32 %v1183_v11, %v1123_v33  ;;  %v1200_v29 = vadd.f32 %v1184_v34, %v1124_v47  ;;  %v16422_v23 = vld [vmem:[#allocation59_spill] sm:$0xff]  ;;  %v16423_v58 = vld [vmem:[#allocation58_spill] sm:$0xff]  ;;  %v16424_v47 = vld [vmem:[#allocation64_spill] sm:$0xff] }
  0xed   : > { %v1201_v18 = vadd.f32 %v1185_v7, %v1125_v48  ;;  %v10695_v45 = vsel %vm707_vm2, %v16417_v61, %v1225_v26  ;;  %v1248_v54 = vmul.f32 %v10681_v49, %v16417_v61  ;;  %v1252_v4 = vmul.f32 %v10681_v49, %v16419_v63  ;;  %v16426_v0 = vld [vmem:[#allocation65_spill] sm:$0xff]  ;;  %v16427_v59 = vld [vmem:[#allocation63_spill] sm:$0xff]  ;;  %v16429_v11 = vld [vmem:[#allocation62_spill] sm:$0xff] }
  0xee   : > { %16418 = vst [vmem:[#allocation109_spill] sm:$0xff] %v10695_v45  ;;  %v1253_v13 = vmul.f32 %v10681_v49, %v16420_v41  ;;  %v1254_v5 = vmul.f32 %v10681_v49, %v16421_v27  ;;  %v1255_v19 = vmul.f32 %v10681_v49, %v16422_v23  ;;  %v1256_v33 = vmul.f32 %v10681_v49, %v16423_v58 }
  0xef   : > { %v1257_v48 = vmul.f32 %v10681_v49, %v16424_v47  ;;  %v1258_v17 = vmul.f32 %v10681_v49, %v16425_v44  ;;  %v1259_v42 = vmul.f32 %v10681_v49, %v16426_v0  ;;  %v1260_v31 = vmul.f32 %v10681_v49, %v16427_v59 }
  0xf0   : > { %v1202_v37 = vadd.f32 %v1186_v38, %v1126_v60  ;;  %v10719_v51 = vsel %vm707_vm2, %v1225_v26, %v1226_v35  ;;  %v1261_v34 = vmul.f32 %v10681_v49, %v16429_v11  ;;  %v1262_v7 = vmul.f32 %v10681_v49, %v10695_v45 }
  0xf1   : > { %16428 = vst [vmem:[#allocation110_spill] sm:$0xff] %v10719_v51  ;;  %v1203_v47 = vadd.f32 %v1187_v52, %v1127_v57  ;;  %v1263_v44 = vmul.f32 %v10681_v49, %v10719_v51  ;;  %v1264_v58 = vadd.f32 %v1248_v54, %v1188_v30  ;;  %v1268_v0 = vadd.f32 %v1252_v4, %v1192_v24 }
  0xf2   : > { %v1269_v23 = vadd.f32 %v1253_v13, %v1193_v43  ;;  %v1270_v27 = vadd.f32 %v1254_v5, %v1194_v39  ;;  %v1271_v59 = vadd.f32 %v1255_v19, %v1195_v25  ;;  %v1272_v60 = vadd.f32 %v1256_v33, %v1196_v53  ;;  %v16430_v25 = vld [vmem:[#allocation29_spill] sm:$0xff] }
  0xf3   : > { %v1273_v38 = vadd.f32 %v1257_v48, %v1197_v6  ;;  %v1274_v41 = vadd.f32 %v1258_v17, %v1198_v50  ;;  %v1275_v26 = vadd.f32 %v1259_v42, %v1199_v40  ;;  %v1276_v35 = vadd.f32 %v1260_v31, %v1200_v29 }
  0xf4   : > { %v1277_v63 = vadd.f32 %v1261_v34, %v1201_v18  ;;  %v1278_v61 = vadd.f32 %v1262_v7, %v1202_v37  ;;  %v1284_v11 = vmul.f32 0.0, %v10685_v56  ;;  %v1288_v57 = vmul.f32 %v10685_v56, %v9998_v2  ;;  %v16441_v37 = vld [vmem:[#allocation72_spill] sm:$0xff]  ;;  %v16442_v34 = vld [vmem:[#allocation78_spill] sm:$0xff] }
  0xf5   : > { %v1289_v52 = vmul.f32 %v10685_v56, %v10013_v8  ;;  %v1290_v54 = vmul.f32 %v10685_v56, %v10016_v9  ;;  %v1291_v39 = vmul.f32 %v10685_v56, %v10019_v10  ;;  %v1292_v40 = vmul.f32 %v10685_v56, %v10031_v14 }
  0xf6   : > { %v1293_v18 = vmul.f32 %v10685_v56, %v10034_v15  ;;  %v1294_v29 = vmul.f32 %v10685_v56, %v10037_v16  ;;  %v1295_v2 = vmul.f32 %v10685_v56, %v10049_v20  ;;  %v1296_v8 = vmul.f32 %v10685_v56, %v10052_v21 }
  0xf7   : > { %v1279_v50 = vadd.f32 %v1263_v44, %v1203_v47  ;;  %v1297_v9 = vmul.f32 %v10685_v56, %v10055_v22  ;;  %v1298_v10 = vmul.f32 %v10685_v56, %v10524_v36  ;;  %v1299_v14 = vmul.f32 %v10685_v56, %v10549_v28  ;;  %v16432_v47 = vld [vmem:[#allocation23_spill] sm:$0xff] }
  0xf8   : > { %v1300_v15 = vadd.f32 %v1284_v11, %v1264_v58  ;;  %v1304_v53 = vadd.f32 %v1288_v57, %v1268_v0  ;;  %v1337_v16 = vrot.slane %v10524_v36, 1  ;;  %v10755_v20 = vrot.slane %v10620_v46, %v16430_v25  ;;  %v16439_v0 = vld [vmem:[#allocation73_spill] sm:$0xff]  ;;  %v16445_v57 = vld [vmem:[#allocation76_spill] sm:$0xff] }
  0xf9   : > { %v1305_v43 = vadd.f32 %v1289_v52, %v1269_v23  ;;  %v1306_v21 = vadd.f32 %v1290_v54, %v1270_v27  ;;  %v1307_v24 = vadd.f32 %v1291_v39, %v1271_v59  ;;  %v1308_v30 = vadd.f32 %v1292_v40, %v1272_v60  ;;  %v16437_v23 = vld [vmem:[#allocation70_spill] sm:$0xff]  ;;  %v16440_v59 = vld [vmem:[#allocation69_spill] sm:$0xff] }
  0xfa   : > { %16431 = vst [vmem:[#allocation111_spill] sm:$0xff] %v10755_v20  ;;  %v1309_v6 = vadd.f32 %v1293_v18, %v1273_v38  ;;  %v1310_v22 = vadd.f32 %v1294_v29, %v1274_v41  ;;  %v1311_v4 = vadd.f32 %v1295_v2, %v1275_v26  ;;  %v1312_v13 = vadd.f32 %v1296_v8, %v1276_v35  ;;  %v16443_v60 = vld [vmem:[#allocation77_spill] sm:$0xff]  ;;  %v16444_v26 = vld [vmem:[#allocation71_spill] sm:$0xff] }
  0xfb   : > { %v1313_v5 = vadd.f32 %v1297_v9, %v1277_v63  ;;  %v1314_v19 = vadd.f32 %v1298_v10, %v1278_v61  ;;  %v1315_v33 = vadd.f32 %v1299_v14, %v1279_v50  ;;  %v16433_v58 = vrot.slane %v10549_v28, 1  ;;  %v16438_v63 = vld [vmem:[#allocation74_spill] sm:$0xff] }
  0xfc   : > { %v1360_v41 = vmul.f32 %v10755_v20, %v16432_v47  ;;  %v1364_v61 = vmul.f32 %v10755_v20, %v16437_v23  ;;  %v1365_v17 = vmul.f32 %v10755_v20, %v16438_v63  ;;  %v1366_v42 = vmul.f32 %v10755_v20, %v16439_v0  ;;  %v16446_v9 = vld [vmem:[#allocation30_spill] sm:$0xff] }
  0xfd   : > { %v10762_v48 = vsel %vm820_vm3, %v16433_v58, %v16432_v47  ;;  %v16435_v44 = vmov %v16433_v58  ;;  %v1367_v31 = vmul.f32 %v10755_v20, %v16440_v59  ;;  %v1368_v11 = vmul.f32 %v10755_v20, %v16441_v37 }
  0xfe   : > { %16434 = vst [vmem:[#allocation112_spill] sm:$0xff] %v10762_v48  ;;  %v10768_v27 = vsel %vm820_vm3, %v1337_v16, %v16435_v44  ;;  %v1369_v7 = vmul.f32 %v10755_v20, %v16442_v34  ;;  %v1370_v38 = vmul.f32 %v10755_v20, %v16443_v60  ;;  %v1371_v35 = vmul.f32 %v10755_v20, %v16444_v26 }
  0xff   : > { %16436 = vst [vmem:[#allocation113_spill] sm:$0xff] %v10768_v27  ;;  %v1372_v52 = vmul.f32 %v10755_v20, %v16445_v57  ;;  %v1373_v54 = vmul.f32 %v10755_v20, %v10388_v32  ;;  %v1374_v39 = vmul.f32 %v10755_v20, %v10768_v27  ;;  %v1375_v40 = vmul.f32 %v10755_v20, %v10762_v48 }
 0x100   : > { %v1413_v18 = vrot.slane %v10524_v36, 2  ;;  %v1414_v29 = vrot.slane %v10549_v28, 2  ;;  %v1376_v2 = vadd.f32 %v1360_v41, %v1300_v15  ;;  %v1380_v8 = vadd.f32 %v1364_v61, %v1304_v53  ;;  %v16454_v41 = vld [vmem:[#allocation88_spill] sm:$0xff] }
 0x101   : > { %v1381_v50 = vadd.f32 %v1365_v17, %v1305_v43  ;;  %v10800_v10 = vrot.slane %v10620_v46, %v16446_v9  ;;  %v1382_v14 = vadd.f32 %v1366_v42, %v1306_v21  ;;  %v1383_v16 = vadd.f32 %v1367_v31, %v1307_v24  ;;  %v16455_v17 = vld [vmem:[#allocation83_spill] sm:$0xff]  ;;  %v16456_v31 = vld [vmem:[#allocation89_spill] sm:$0xff] }
 0x102   : > { %v1384_v58 = vadd.f32 %v1368_v11, %v1308_v30  ;;  %v1385_v44 = vadd.f32 %v1369_v7, %v1309_v6  ;;  %v1386_v56 = vadd.f32 %v1370_v38, %v1310_v22  ;;  %v1387_v49 = vadd.f32 %v1371_v35, %v1311_v4  ;;  %v16450_v30 = vld [vmem:[#allocation81_spill] sm:$0xff]  ;;  %v16451_v22 = vld [vmem:[#allocation86_spill] sm:$0xff]  ;;  %v16457_v7 = vld [vmem:[#allocation87_spill] sm:$0xff] }
 0x103   : > { %16447 = vst [vmem:[#allocation114_spill] sm:$0xff] %v10800_v10  ;;  %v1388_v27 = vadd.f32 %v1372_v52, %v1312_v13  ;;  %v1389_v32 = vadd.f32 %v1373_v54, %v1313_v5  ;;  %v1390_v20 = vadd.f32 %v1374_v39, %v1314_v19  ;;  %v1391_v48 = vadd.f32 %v1375_v40, %v1315_v33  ;;  %v16452_v13 = vld [vmem:[#allocation85_spill] sm:$0xff]  ;;  %v16453_v19 = vld [vmem:[#allocation84_spill] sm:$0xff]  ;;  %v16458_v40 = vld [vmem:[#allocation31_spill] sm:$0xff] }
 0x104   : > { %v10805_v15 = vsel %vm897_vm4, %v1414_v29, %v10025_v12  ;;  %v10809_v53 = vsel %vm897_vm4, %v1413_v18, %v1414_v29  ;;  %v1436_v43 = vmul.f32 %v10800_v10, %v10025_v12  ;;  %v1440_v21 = vmul.f32 %v10800_v10, %v10441_v62 }
 0x105   : > { %16448 = vst [vmem:[#allocation115_spill] sm:$0xff] %v10805_v15  ;;  %16449 = vst [vmem:[#allocation116_spill] sm:$0xff] %v10809_v53  ;;  %v1441_v24 = vmul.f32 %v10800_v10, %v10452_v3  ;;  %v1442_v6 = vmul.f32 %v10800_v10, %v16450_v30  ;;  %v1443_v4 = vmul.f32 %v10800_v10, %v16451_v22  ;;  %v1489_v54 = vrot.slane %v10524_v36, 3  ;;  %v16460_v3 = vld [vmem:[#allocation26_spill] sm:$0xff] }
 0x106   : > { %v1444_v5 = vmul.f32 %v10800_v10, %v16452_v13  ;;  %v1445_v33 = vmul.f32 %v10800_v10, %v16453_v19  ;;  %v1446_v61 = vmul.f32 %v10800_v10, %v16454_v41  ;;  %v1447_v42 = vmul.f32 %v10800_v10, %v16455_v17 }
 0x107   : > { %v1448_v11 = vmul.f32 %v10800_v10, %v16456_v31  ;;  %v1449_v38 = vmul.f32 %v10800_v10, %v16457_v7  ;;  %v1450_v35 = vmul.f32 %v10800_v10, %v10809_v53  ;;  %v1451_v52 = vmul.f32 %v10800_v10, %v10805_v15 }
 0x108   : > { %v1490_v39 = vrot.slane %v10549_v28, 3  ;;  %v10841_v18 = vrot.slane %v10620_v46, %v16458_v40  ;;  %v1452_v29 = vadd.f32 %v1436_v43, %v1376_v2  ;;  %v1456_v9 = vadd.f32 %v1440_v21, %v1380_v8  ;;  %v16462_v8 = vld [vmem:[#allocation91_spill] sm:$0xff] }
 0x109   : > { %v1457_v31 = vadd.f32 %v1441_v24, %v1381_v50  ;;  %v1458_v7 = vadd.f32 %v1442_v6, %v1382_v14  ;;  %v1459_v17 = vadd.f32 %v1443_v4, %v1383_v16  ;;  %v1460_v41 = vadd.f32 %v1444_v5, %v1384_v58  ;;  %v10853_v14 = vld [vmem:[%s9980_s19 + $0x60] sm:$0xff]  ;;  %v10856_v16 = vld [vmem:[%s9980_s19 + $0x68] sm:$0xff]  ;;  %v16468_v21 = vld [vmem:[#allocation99_spill] sm:$0xff] }
 0x10a   : > { %16459 = vst [vmem:[#allocation117_spill] sm:$0xff] %v10841_v18  ;;  %v1461_v53 = vadd.f32 %v1445_v33, %v1385_v44  ;;  %v1462_v19 = vadd.f32 %v1446_v61, %v1386_v56  ;;  %v1463_v13 = vadd.f32 %v1447_v42, %v1387_v49  ;;  %v1464_v10 = vadd.f32 %v1448_v11, %v1388_v27  ;;  %v16464_v56 = vld [vmem:[#allocation95_spill] sm:$0xff]  ;;  %v16466_v27 = vld [vmem:[#allocation93_spill] sm:$0xff]  ;;  %v16467_v44 = vld [vmem:[#allocation92_spill] sm:$0xff] }
 0x10b   : > { %v1465_v15 = vadd.f32 %v1449_v38, %v1389_v32  ;;  %v1466_v22 = vadd.f32 %v1450_v35, %v1390_v20  ;;  %v1467_v30 = vadd.f32 %v1451_v52, %v1391_v48  ;;  %v10846_v40 = vsel %vm974_vm5, %v1490_v39, %v16460_v3  ;;  %v16465_v20 = vld [vmem:[#allocation94_spill] sm:$0xff]  ;;  %v16470_v5 = vld [vmem:[#allocation97_spill] sm:$0xff]  ;;  %v16471_v61 = vld [vmem:[#allocation100_spill] sm:$0xff] }
 0x10c   : > { %16461 = vst [vmem:[#allocation118_spill] sm:$0xff] %v10846_v40  ;;  %v1512_v2 = vmul.f32 %v10841_v18, %v16460_v3  ;;  %v1516_v50 = vmul.f32 %v10841_v18, %v16462_v8  ;;  %v10860_v32 = vsel %vm974_vm5, %v1489_v54, %v1490_v39  ;;  %v1517_v49 = vmul.f32 %v10841_v18, %v16464_v56  ;;  %v16469_v6 = vld [vmem:[#allocation98_spill] sm:$0xff]  ;;  %v16472_v11 = vld [vmem:[#allocation96_spill] sm:$0xff] }
 0x10d   : > { %16463 = vst [vmem:[#allocation119_spill] sm:$0xff] %v10860_v32  ;;  %v1518_v48 = vmul.f32 %v10841_v18, %v16465_v20  ;;  %v1519_v58 = vmul.f32 %v10841_v18, %v16466_v27  ;;  %v1520_v43 = vmul.f32 %v10841_v18, %v16467_v44  ;;  %v1521_v24 = vmul.f32 %v10841_v18, %v16468_v21  ;;  %v16473_v20 = vld [vmem:[#allocation32_spill] sm:$0xff] }
 0x10e   : > { %v1522_v4 = vmul.f32 %v10841_v18, %v16469_v6  ;;  %v1523_v33 = vmul.f32 %v10841_v18, %v16470_v5  ;;  %v1524_v42 = vmul.f32 %v10841_v18, %v16471_v61  ;;  %v1525_v38 = vmul.f32 %v10841_v18, %v16472_v11 }
 0x10f   : > { %v1526_v35 = vmul.f32 %v10841_v18, %v10860_v32  ;;  %v1527_v52 = vmul.f32 %v10841_v18, %v10846_v40  ;;  %v1528_v54 = vadd.f32 %v1512_v2, %v1452_v29  ;;  %v1532_v39 = vadd.f32 %v1516_v50, %v1456_v9  ;;  %v16476_v2 = vld [vmem:[#allocation20_spill] sm:$0xff]  ;;  %v16482_v50 = vld [vmem:[#allocation37_spill] sm:$0xff] }
 0x110   : > { %v1590_v21 = vrot.slane %v10853_v14, 5  ;;  %v1591_v6 = vrot.slane %v10856_v16, 5  ;;  %v1533_v44 = vadd.f32 %v1517_v49, %v1457_v31  ;;  %v1534_v5 = vadd.f32 %v1518_v48, %v1458_v7  ;;  %v16483_v48 = vld [vmem:[#allocation36_spill] sm:$0xff] }
 0x111   : > { %v1535_v27 = vadd.f32 %v1519_v58, %v1459_v17  ;;  %v10888_v61 = vrot.slane %v10620_v46, %v16473_v20  ;;  %v1536_v11 = vadd.f32 %v1520_v43, %v1460_v41  ;;  %v1537_v56 = vadd.f32 %v1521_v24, %v1461_v53  ;;  %v16484_v43 = vld [vmem:[#allocation35_spill] sm:$0xff]  ;;  %v16485_v24 = vld [vmem:[#allocation34_spill] sm:$0xff] }
 0x112   : > { %v1538_v8 = vadd.f32 %v1522_v4, %v1462_v19  ;;  %v1539_v32 = vadd.f32 %v1523_v33, %v1463_v13  ;;  %v1540_v3 = vadd.f32 %v1524_v42, %v1464_v10  ;;  %v1541_v62 = vadd.f32 %v1525_v38, %v1465_v15  ;;  %v16478_v10 = vld [vmem:[#allocation44_spill] sm:$0xff]  ;;  %v16481_v19 = vld [vmem:[#allocation43_spill] sm:$0xff]  ;;  %v16488_v38 = vld [vmem:[#allocation38_spill] sm:$0xff] }
 0x113   : > { %16474 = vst [vmem:[#allocation120_spill] sm:$0xff] %v10888_v61  ;;  %v1542_v18 = vadd.f32 %v1526_v35, %v1466_v22  ;;  %v1543_v29 = vadd.f32 %v1527_v52, %v1467_v30  ;;  %v10892_v9 = vsel %vm553_vm0, %v1590_v21, %v1591_v6  ;;  %v10897_v17 = vsel %vm553_vm0, %v16476_v2, %v1590_v21  ;;  %v16479_v30 = vld [vmem:[#allocation33_spill] sm:$0xff]  ;;  %v16486_v4 = vld [vmem:[#allocation40_spill] sm:$0xff]  ;;  %v16487_v33 = vld [vmem:[#allocation39_spill] sm:$0xff] }
 0x114   : > { %16475 = vst [vmem:[#allocation121_spill] sm:$0xff] %v10892_v9  ;;  %16477 = vst [vmem:[#allocation122_spill] sm:$0xff] %v10897_v17  ;;  %v1666_v31 = vrot.slane %v10853_v14, 6  ;;  %v1667_v41 = vrot.slane %v10856_v16, 6  ;;  %v1613_v53 = vmul.f32 %v10888_v61, %v16476_v2  ;;  %v1615_v15 = vmul.f32 %v10888_v61, %v16478_v10  ;;  %v16489_v52 = vld [vmem:[#allocation42_spill] sm:$0xff] }
 0x115   : > { %v10907_v22 = vrot.slane %v10620_v46, %v16479_v30  ;;  %v1616_v7 = vmul.f32 %v10888_v61, %v16481_v19  ;;  %v1617_v49 = vmul.f32 %v10888_v61, %v16482_v50  ;;  %v1618_v58 = vmul.f32 %v10888_v61, %v16483_v48  ;;  %v16490_v30 = vld [vmem:[#allocation103_spill] sm:$0xff]  ;;  %v16491_v48 = vld [vmem:[#allocation102_spill] sm:$0xff] }
 0x116   : > { %v1619_v21 = vmul.f32 %v10888_v61, %v16484_v43  ;;  %v1620_v6 = vmul.f32 %v10888_v61, %v16485_v24  ;;  %v1621_v46 = vmul.f32 %v10888_v61, %v16486_v4  ;;  %v1622_v42 = vmul.f32 %v10888_v61, %v16487_v33 }
 0x117   : > { %16480 = vst [vmem:[#allocation123_spill] sm:$0xff] %v10907_v22  ;;  %v1623_v35 = vmul.f32 %v10888_v61, %v16488_v38  ;;  %v1624_v13 = vmul.f32 %v10888_v61, %v16489_v52  ;;  %v1625_v20 = vmul.f32 %v10888_v61, %v16490_v30  ;;  %v1626_v43 = vmul.f32 %v10888_v61, %v16491_v48 }
 0x118   : > { %v1627_v24 = vmul.f32 %v10888_v61, %v10897_v17  ;;  %v1628_v4 = vmul.f32 %v10888_v61, %v10892_v9  ;;  %v1629_v50 = vadd.f32 %v1613_v53, %v1528_v54  ;;  %v1631_v33 = vadd.f32 %v1615_v15, %v1528_v54  ;;  %v16493_v53 = vld [vmem:[#allocation21_spill] sm:$0xff] }
 0x119   : > { %v1743_v19 = vrot.slane %v10856_v16, 7  ;;  %v1632_v38 = vadd.f32 %v1616_v7, %v1528_v54  ;;  %v1633_v10 = vadd.f32 %v1617_v49, %v1532_v39  ;;  %v1634_v2 = vadd.f32 %v1618_v58, %v1533_v44  ;;  %v16494_v54 = vld [vmem:[#allocation52_spill] sm:$0xff]  ;;  %v10964_v49 = vld [vmem:[#allocation7 + $0x10] sm:$0xff]  ;;  %v16503_v58 = vld [vmem:[#allocation55_spill] sm:$0xff] }
 0x11a   : > { %v1635_v52 = vadd.f32 %v1619_v21, %v1534_v5  ;;  %v1636_v40 = vadd.f32 %v1620_v6, %v1535_v27  ;;  %v1637_v12 = vadd.f32 %v1621_v46, %v1536_v11  ;;  %v1638_v30 = vadd.f32 %v1622_v42, %v1537_v56  ;;  %v16495_v5 = vld [vmem:[#allocation45_spill] sm:$0xff]  ;;  %v16504_v21 = vld [vmem:[#allocation54_spill] sm:$0xff] }
 0x11b   : > { %v1639_v57 = vadd.f32 %v1623_v35, %v1538_v8  ;;  %v1640_v26 = vadd.f32 %v1624_v13, %v1539_v32  ;;  %v1641_v48 = vadd.f32 %v1625_v20, %v1540_v3  ;;  %v1642_v60 = vadd.f32 %v1626_v43, %v1541_v62  ;;  %v16496_v56 = vld [vmem:[#allocation53_spill] sm:$0xff]  ;;  %v16497_v3 = vld [vmem:[#allocation50_spill] sm:$0xff] }
 0x11c   : > { %v1643_v34 = vadd.f32 %v1627_v24, %v1542_v18  ;;  %v1644_v17 = vadd.f32 %v1628_v4, %v1543_v29  ;;  %v10939_v61 = vsel %vm630_vm1, %v1666_v31, %v1667_v41  ;;  %v1689_v15 = vmul.f32 %v10907_v22, %v16493_v53  ;;  %v16498_v18 = vld [vmem:[#allocation47_spill] sm:$0xff]  ;;  %v16500_v11 = vld [vmem:[#allocation49_spill] sm:$0xff]  ;;  %v16501_v29 = vld [vmem:[#allocation48_spill] sm:$0xff] }
 0x11d   : > { %16492 = vst [vmem:[#allocation124_spill] sm:$0xff] %v10939_v61  ;;  %v1691_v44 = vmul.f32 %v10907_v22, %v16494_v54  ;;  %v1692_v27 = vmul.f32 %v10907_v22, %v16495_v5  ;;  %v1693_v8 = vmul.f32 %v10907_v22, %v16496_v56  ;;  %v1694_v62 = vmul.f32 %v10907_v22, %v16497_v3  ;;  %v16502_v13 = vld [vmem:[#allocation46_spill] sm:$0xff]  ;;  %v16506_v5 = vld [vmem:[#allocation24_spill] sm:$0xff] }
 0x11e   : > { %v1695_v32 = vmul.f32 %v10907_v22, %v16498_v18  ;;  %v10956_v20 = vsel %vm630_vm1, %v16493_v53, %v1666_v31  ;;  %v1696_v39 = vmul.f32 %v10907_v22, %v16500_v11  ;;  %v1697_v41 = vmul.f32 %v10907_v22, %v16501_v29  ;;  %v16505_v6 = vld [vmem:[#allocation106_spill] sm:$0xff] }
 0x11f   : > { %16499 = vst [vmem:[#allocation125_spill] sm:$0xff] %v10956_v20  ;;  %v1698_v7 = vmul.f32 %v10907_v22, %v16502_v13  ;;  %v1699_v43 = vmul.f32 %v10907_v22, %v16503_v58  ;;  %v1700_v24 = vmul.f32 %v10907_v22, %v16504_v21  ;;  %v1701_v31 = vmul.f32 %v10907_v22, %v16505_v6 }
 0x120   : > { %v1702_v4 = vmul.f32 %v10907_v22, %v10648_v55  ;;  %v1703_v46 = vmul.f32 %v10907_v22, %v10956_v20  ;;  %v1704_v42 = vmul.f32 %v10907_v22, %v10939_v61  ;;  %v1705_v35 = vadd.f32 %v1689_v15, %v1629_v50  ;;  %v16518_v15 = vld [vmem:[#allocation61_spill] sm:$0xff] }
 0x121   : > { %v1707_v13 = vadd.f32 %v1691_v44, %v1631_v33  ;;  %v1708_v29 = vadd.f32 %v1692_v27, %v1632_v38  ;;  %v1709_v11 = vadd.f32 %v1693_v8, %v1633_v10  ;;  %v1710_v58 = vadd.f32 %v1694_v62, %v1634_v2  ;;  %v16519_v27 = vld [vmem:[#allocation60_spill] sm:$0xff]  ;;  %v16520_v62 = vld [vmem:[#allocation59_spill] sm:$0xff] }
 0x122   : > { %v1711_v18 = vadd.f32 %v1695_v32, %v1635_v52  ;;  %v1712_v3 = vadd.f32 %v1696_v39, %v1636_v40  ;;  %v1713_v21 = vadd.f32 %v1697_v41, %v1637_v12  ;;  %v1714_v56 = vadd.f32 %v1698_v7, %v1638_v30  ;;  %v16511_v12 = vld [vmem:[#allocation22_spill] sm:$0xff]  ;;  %v16513_v30 = vld [vmem:[#allocation27_spill] sm:$0xff]  ;;  %v16522_v7 = vld [vmem:[#allocation64_spill] sm:$0xff] }
 0x123   : > { %v10980_v6 = vrot.slane %v10964_v49, %v16506_v5  ;;  %v1715_v55 = vadd.f32 %v1699_v43, %v1639_v57  ;;  %v1716_v54 = vadd.f32 %v1700_v24, %v1640_v26  ;;  %v1717_v53 = vadd.f32 %v1701_v31, %v1641_v48  ;;  %v16515_v57 = vld [vmem:[#allocation28_spill] sm:$0xff]  ;;  %v16517_v48 = vld [vmem:[#allocation57_spill] sm:$0xff]  ;;  %v16521_v39 = vld [vmem:[#allocation58_spill] sm:$0xff] }
 0x124   : > { %v1718_v20 = vadd.f32 %v1702_v4, %v1642_v60  ;;  %v1719_v9 = vadd.f32 %v1703_v46, %v1643_v34  ;;  %v1720_v37 = vadd.f32 %v1704_v42, %v1644_v17  ;;  %v16508_v50 = vrot.slane %v10853_v14, 7  ;;  %v16523_v24 = vld [vmem:[#allocation66_spill] sm:$0xff]  ;;  %v16524_v4 = vld [vmem:[#allocation65_spill] sm:$0xff]  ;;  %v16525_v42 = vld [vmem:[#allocation63_spill] sm:$0xff] }
 0x125   : > { %16507 = vst [vmem:[#allocation126_spill] sm:$0xff] %v10980_v6  ;;  %v10997_v26 = vrot.slane %v10964_v49, %v16513_v30  ;;  %v11003_v17 = vrot.slane %v10964_v49, %v16515_v57  ;;  %v1767_v33 = vmul.f32 %v10980_v6, %v16517_v48  ;;  %v1768_v44 = vmul.f32 %v10980_v6, %v16518_v15 }
 0x126   : > { %v10986_v10 = vsel %vm707_vm2, %v16508_v50, %v1743_v19  ;;  %v16510_v40 = vmov %v16508_v50  ;;  %v1765_v19 = vmul.f32 %v10980_v6, %v16511_v12  ;;  %v1769_v8 = vmul.f32 %v10980_v6, %v16519_v27 }
 0x127   : > { %16509 = vst [vmem:[#allocation127_spill] sm:$0xff] %v10986_v10  ;;  %v10993_v2 = vsel %vm707_vm2, %v16511_v12, %v16510_v40  ;;  %16514 = vst [vmem:[#allocation129_spill] sm:$0xff] %v10997_v26  ;;  %v1770_v32 = vmul.f32 %v10980_v6, %v16520_v62  ;;  %v1771_v41 = vmul.f32 %v10980_v6, %v16521_v39  ;;  %v16526_v40 = vld [vmem:[#allocation62_spill] sm:$0xff] }
 0x128   : > { %16512 = vst [vmem:[#allocation128_spill] sm:$0xff] %v10993_v2  ;;  %16516 = vst [vmem:[#allocation130_spill] sm:$0xff] %v11003_v17  ;;  %v1772_v43 = vmul.f32 %v10980_v6, %v16522_v7  ;;  %v1773_v31 = vmul.f32 %v10980_v6, %v16523_v24  ;;  %v1774_v46 = vmul.f32 %v10980_v6, %v16524_v4 }
 0x129   : > { %v1775_v50 = vmul.f32 %v10980_v6, %v16525_v42  ;;  %v1776_v38 = vmul.f32 %v10980_v6, %v16526_v40  ;;  %v1777_v52 = vmul.f32 %v10980_v6, %v10695_v45  ;;  %v1778_v34 = vmul.f32 %v10980_v6, %v10719_v51 }
 0x12a   : > { %v1779_v60 = vmul.f32 %v10980_v6, %v10993_v2  ;;  %v1780_v22 = vmul.f32 %v10980_v6, %v10986_v10  ;;  %v1781_v57 = vadd.f32 %v1765_v19, %v1705_v35  ;;  %v1783_v4 = vadd.f32 %v1767_v33, %v1707_v13 }
 0x12b   : > { %v11039_v42 = vrot.slane %v10964_v49, %v16430_v25  ;;  %v1784_v40 = vadd.f32 %v1768_v44, %v1708_v29  ;;  %v1785_v24 = vadd.f32 %v1769_v8, %v1709_v11  ;;  %v1786_v45 = vadd.f32 %v1770_v32, %v1710_v58  ;;  %v11043_v29 = vld [vmem:[%s9980_s19] sm:$0xff]  ;;  %v11068_v58 = vld [vmem:[%s9980_s19 + $0x28] sm:$0xff] }
 0x12c   : > { %v1787_v7 = vadd.f32 %v1771_v41, %v1711_v18  ;;  %v1788_v51 = vadd.f32 %v1772_v43, %v1712_v3  ;;  %v1789_v39 = vadd.f32 %v1773_v31, %v1713_v21  ;;  %v1790_v2 = vadd.f32 %v1774_v46, %v1714_v56  ;;  %16528 = vst [vmem:[#allocation61_spill] sm:$0xff] %v11043_v29  ;;  %v11048_v3 = vld [vmem:[%s9980_s19 + $0x8] sm:$0xff]  ;;  %v11083_v44 = vld [vmem:[%s9980_s19 + $0x40] sm:$0xff] }
 0x12d   : > { %16527 = vst [vmem:[#allocation57_spill] sm:$0xff] %v11039_v42  ;;  %v1791_v62 = vadd.f32 %v1775_v50, %v1715_v55  ;;  %v1792_v35 = vadd.f32 %v1776_v38, %v1716_v54  ;;  %v1793_v19 = vadd.f32 %v1777_v52, %v1717_v53  ;;  %v1794_v13 = vadd.f32 %v1778_v34, %v1718_v20  ;;  %v11053_v54 = vld [vmem:[%s9980_s19 + $0x10] sm:$0xff]  ;;  %v11058_v53 = vld [vmem:[%s9980_s19 + $0x18] sm:$0xff]  ;;  %v11063_v20 = vld [vmem:[%s9980_s19 + $0x20] sm:$0xff] }
 0x12e   : > { %v1795_v33 = vadd.f32 %v1779_v60, %v1719_v9  ;;  %v1801_v6 = vmul.f32 0.0, %v10997_v26  ;;  %v1803_v18 = vmul.f32 %v11043_v29, %v10997_v26  ;;  %16529 = vst [vmem:[#allocation60_spill] sm:$0xff] %v11048_v3  ;;  %v1804_v55 = vmul.f32 %v11048_v3, %v10997_v26  ;;  %16530 = vst [vmem:[#allocation131_spill] sm:$0xff] %v11053_v54  ;;  %v11073_v34 = vld [vmem:[%s9980_s19 + $0x30] sm:$0xff]  ;;  %v11078_v38 = vld [vmem:[%s9980_s19 + $0x38] sm:$0xff] }
 0x12f   : > { %v1805_v9 = vmul.f32 %v11053_v54, %v10997_v26  ;;  %16531 = vst [vmem:[#allocation132_spill] sm:$0xff] %v11058_v53  ;;  %v1806_v56 = vmul.f32 %v11058_v53, %v10997_v26  ;;  %16532 = vst [vmem:[#allocation133_spill] sm:$0xff] %v11063_v20  ;;  %v1807_v11 = vmul.f32 %v11063_v20, %v10997_v26  ;;  %v11088_v32 = vld [vmem:[%s9980_s19 + $0x48] sm:$0xff]  ;;  %v16538_v10 = vrot.slane %v10856_v16, 1 }
 0x130   : > { %16533 = vst [vmem:[#allocation134_spill] sm:$0xff] %v11068_v58  ;;  %v1808_v21 = vmul.f32 %v11068_v58, %v10997_v26  ;;  %16534 = vst [vmem:[#allocation135_spill] sm:$0xff] %v11073_v34  ;;  %v1809_v60 = vmul.f32 %v11073_v34, %v10997_v26  ;;  %v1810_v52 = vmul.f32 %v11078_v38, %v10997_v26 }
 0x131   : > { %16535 = vst [vmem:[#allocation136_spill] sm:$0xff] %v11078_v38  ;;  %16536 = vst [vmem:[#allocation137_spill] sm:$0xff] %v11083_v44  ;;  %v1811_v8 = vmul.f32 %v11083_v44, %v10997_v26  ;;  %v1812_v41 = vmul.f32 %v11088_v32, %v10997_v26  ;;  %v1813_v43 = vmul.f32 %v10997_v26, %v10524_v36 }
 0x132   : > { %16537 = vst [vmem:[#allocation138_spill] sm:$0xff] %v11088_v32  ;;  %v1796_v31 = vadd.f32 %v1780_v22, %v1720_v37  ;;  %v1814_v46 = vmul.f32 %v10997_v26, %v10549_v28  ;;  %v1815_v50 = vmul.f32 %v10997_v26, %v10853_v14  ;;  %v1816_v25 = vmul.f32 %v10997_v26, %v10856_v16 }
 0x133   : > { %v1817_v38 = vadd.f32 %v1801_v6, %v1781_v57  ;;  %v1819_v44 = vadd.f32 %v1803_v18, %v1783_v4  ;;  %v1820_v34 = vadd.f32 %v1804_v55, %v1784_v40  ;;  %v1821_v58 = vadd.f32 %v1805_v9, %v1785_v24  ;;  %v16544_v4 = vld [vmem:[#allocation78_spill] sm:$0xff]  ;;  %v16547_v18 = vld [vmem:[#allocation76_spill] sm:$0xff]  ;;  %v16548_v9 = vld [vmem:[#allocation75_spill] sm:$0xff] }
 0x134   : > { %v1822_v20 = vadd.f32 %v1806_v56, %v1786_v45  ;;  %v1823_v53 = vadd.f32 %v1807_v11, %v1787_v7  ;;  %v1824_v32 = vadd.f32 %v1808_v21, %v1788_v51  ;;  %v1825_v54 = vadd.f32 %v1809_v60, %v1789_v39  ;;  %v16543_v7 = vld [vmem:[#allocation72_spill] sm:$0xff]  ;;  %v16549_v11 = vld [vmem:[#allocation113_spill] sm:$0xff] }
 0x135   : > { %v1826_v3 = vadd.f32 %v1810_v52, %v1790_v2  ;;  %v1827_v36 = vadd.f32 %v1811_v8, %v1791_v62  ;;  %v1828_v37 = vadd.f32 %v1812_v41, %v1792_v35  ;;  %v1829_v22 = vadd.f32 %v1813_v43, %v1793_v19  ;;  %v16545_v35 = vld [vmem:[#allocation77_spill] sm:$0xff]  ;;  %v16550_v52 = vld [vmem:[#allocation112_spill] sm:$0xff] }
 0x136   : > { %v1830_v29 = vadd.f32 %v1814_v46, %v1794_v13  ;;  %v1831_v28 = vadd.f32 %v1815_v50, %v1795_v33  ;;  %v11105_v26 = vsel %vm820_vm3, %v16538_v10, %v16432_v47  ;;  %v16540_v6 = vmov %v16538_v10  ;;  %v16546_v13 = vld [vmem:[#allocation71_spill] sm:$0xff] }
 0x137   : > { %16539 = vst [vmem:[#allocation139_spill] sm:$0xff] %v11105_v26  ;;  %v16541_v45 = vrot.slane %v10853_v14, 1  ;;  %v1877_v2 = vmul.f32 %v11003_v17, %v16432_v47  ;;  %v1879_v57 = vmul.f32 %v11003_v17, %v16437_v23  ;;  %v1880_v62 = vmul.f32 %v11003_v17, %v16438_v63 }
 0x138   : > { %v1881_v10 = vmul.f32 %v11003_v17, %v16439_v0  ;;  %v1882_v39 = vmul.f32 %v11003_v17, %v16440_v59  ;;  %v1883_v24 = vmul.f32 %v11003_v17, %v16543_v7  ;;  %v1884_v40 = vmul.f32 %v11003_v17, %v16544_v4  ;;  %v16551_v0 = vld [vmem:[#allocation25_spill] sm:$0xff] }
 0x139   : > { %v11113_v51 = vsel %vm820_vm3, %v16541_v45, %v16540_v6  ;;  %v1885_v19 = vmul.f32 %v11003_v17, %v16545_v35  ;;  %v1886_v33 = vmul.f32 %v11003_v17, %v16546_v13  ;;  %v1887_v55 = vmul.f32 %v11003_v17, %v16547_v18 }
 0x13a   : > { %16542 = vst [vmem:[#allocation140_spill] sm:$0xff] %v11113_v51  ;;  %v1888_v56 = vmul.f32 %v11003_v17, %v16548_v9  ;;  %v1889_v21 = vmul.f32 %v11003_v17, %v16549_v11  ;;  %v1832_v60 = vadd.f32 %v1816_v25, %v1796_v31  ;;  %v1890_v8 = vmul.f32 %v11003_v17, %v16550_v52 }
 0x13b   : > { %v1891_v41 = vmul.f32 %v11003_v17, %v11113_v51  ;;  %v1892_v43 = vmul.f32 %v11003_v17, %v11105_v26  ;;  %v1893_v46 = vadd.f32 %v1877_v2, %v1817_v38  ;;  %v1895_v50 = vadd.f32 %v1879_v57, %v1819_v44  ;;  %v16562_v2 = vld [vmem:[#allocation84_spill] sm:$0xff] }
 0x13c   : > { %v1896_v6 = vadd.f32 %v1880_v62, %v1820_v34  ;;  %v1897_v45 = vadd.f32 %v1881_v10, %v1821_v58  ;;  %v1898_v18 = vadd.f32 %v1882_v39, %v1822_v20  ;;  %v1899_v13 = vadd.f32 %v1883_v24, %v1823_v53  ;;  %v16554_v53 = vld [vmem:[#allocation80_spill] sm:$0xff]  ;;  %v16556_v34 = vld [vmem:[#allocation81_spill] sm:$0xff]  ;;  %v16564_v39 = vld [vmem:[#allocation83_spill] sm:$0xff] }
 0x13d   : > { %v1900_v9 = vadd.f32 %v1884_v40, %v1824_v32  ;;  %v1901_v35 = vadd.f32 %v1885_v19, %v1825_v54  ;;  %v1902_v4 = vadd.f32 %v1886_v33, %v1826_v3  ;;  %v1903_v11 = vadd.f32 %v1887_v55, %v1827_v36  ;;  %v16555_v3 = vld [vmem:[#allocation82_spill] sm:$0xff]  ;;  %v16563_v62 = vld [vmem:[#allocation88_spill] sm:$0xff]  ;;  %v16565_v40 = vld [vmem:[#allocation89_spill] sm:$0xff] }
 0x13e   : > { %v1904_v25 = vadd.f32 %v1888_v56, %v1828_v37  ;;  %v1905_v31 = vadd.f32 %v1889_v21, %v1829_v22  ;;  %v1906_v7 = vadd.f32 %v1890_v8, %v1830_v29  ;;  %v1907_v52 = vadd.f32 %v1891_v41, %v1831_v28  ;;  %v16560_v37 = vld [vmem:[#allocation86_spill] sm:$0xff]  ;;  %v16561_v28 = vld [vmem:[#allocation85_spill] sm:$0xff]  ;;  %v16566_v33 = vld [vmem:[#allocation87_spill] sm:$0xff] }
 0x13f   : > { %v1908_v59 = vadd.f32 %v1892_v43, %v1832_v60  ;;  %v16552_v51 = vrot.slane %v10856_v16, 2  ;;  %v1953_v20 = vmul.f32 %v11039_v42, %v16551_v0  ;;  %v1955_v54 = vmul.f32 %v11039_v42, %v16554_v53  ;;  %v16567_v56 = vld [vmem:[#allocation116_spill] sm:$0xff]  ;;  %v16568_v60 = vld [vmem:[#allocation115_spill] sm:$0xff] }
 0x140   : > { %v1956_v58 = vmul.f32 %v11039_v42, %v16555_v3  ;;  %v1957_v29 = vmul.f32 %v11039_v42, %v16556_v34  ;;  %v16558_v32 = vrot.slane %v10853_v14, 2  ;;  %v1958_v22 = vmul.f32 %v11039_v42, %v16560_v37  ;;  %v16571_v34 = vld [vmem:[#allocation30_spill] sm:$0xff] }
 0x141   : > { %v11150_v38 = vsel %vm897_vm4, %v16552_v51, %v16551_v0  ;;  %v16557_v44 = vmov %v16552_v51  ;;  %v1959_v51 = vmul.f32 %v11039_v42, %v16561_v28  ;;  %v1960_v57 = vmul.f32 %v11039_v42, %v16562_v2 }
 0x142   : > { %16553 = vst [vmem:[#allocation141_spill] sm:$0xff] %v11150_v38  ;;  %v11166_v36 = vsel %vm897_vm4, %v16558_v32, %v16557_v44  ;;  %v1961_v10 = vmul.f32 %v11039_v42, %v16563_v62  ;;  %v1962_v24 = vmul.f32 %v11039_v42, %v16564_v39  ;;  %v1963_v19 = vmul.f32 %v11039_v42, %v16565_v40  ;;  %v11191_v40 = vld [vmem:[%s9980_s19 + $0x70] sm:$0xff]  ;;  %v11194_v62 = vld [vmem:[%s9980_s19 + $0x78] sm:$0xff] }
 0x143   : > { %16559 = vst [vmem:[#allocation142_spill] sm:$0xff] %v11166_v36  ;;  %v1964_v55 = vmul.f32 %v11039_v42, %v16566_v33  ;;  %v1965_v21 = vmul.f32 %v11039_v42, %v16567_v56  ;;  %v1966_v8 = vmul.f32 %v11039_v42, %v16568_v60  ;;  %v1967_v41 = vmul.f32 %v11039_v42, %v11166_v36 }
 0x144   : > { %v1968_v43 = vmul.f32 %v11039_v42, %v11150_v38  ;;  %v1969_v44 = vadd.f32 %v1953_v20, %v1893_v46  ;;  %v1971_v32 = vadd.f32 %v1955_v54, %v1895_v50  ;;  %v1972_v17 = vadd.f32 %v1956_v58, %v1896_v6  ;;  %16569 = vst [vmem:[#allocation143_spill] sm:$0xff] %v11191_v40  ;;  %v16573_v58 = vld [vmem:[#allocation26_spill] sm:$0xff] }
 0x145   : > { %v1973_v39 = vadd.f32 %v1957_v29, %v1897_v45  ;;  %16570 = vst [vmem:[#allocation144_spill] sm:$0xff] %v11194_v62  ;;  %v1974_v33 = vadd.f32 %v1958_v22, %v1898_v18  ;;  %v1975_v2 = vadd.f32 %v1959_v51, %v1899_v13  ;;  %v2006_v56 = vrot.slane %v10853_v14, 3  ;;  %v16580_v22 = vld [vmem:[#allocation94_spill] sm:$0xff] }
 0x146   : > { %v2007_v60 = vrot.slane %v10856_v16, 3  ;;  %v1976_v28 = vadd.f32 %v1960_v57, %v1900_v9  ;;  %v1977_v37 = vadd.f32 %v1961_v10, %v1901_v35  ;;  %v1978_v36 = vadd.f32 %v1962_v24, %v1902_v4  ;;  %v16576_v35 = vld [vmem:[#allocation31_spill] sm:$0xff]  ;;  %v16581_v57 = vld [vmem:[#allocation93_spill] sm:$0xff]  ;;  %v16582_v24 = vld [vmem:[#allocation92_spill] sm:$0xff] }
 0x147   : > { %v11200_v42 = vrot.slane %v10964_v49, %v16571_v34  ;;  %v1979_v46 = vadd.f32 %v1963_v19, %v1903_v11  ;;  %v1980_v50 = vadd.f32 %v1964_v55, %v1904_v25  ;;  %v1981_v6 = vadd.f32 %v1965_v21, %v1905_v31  ;;  %v16579_v31 = vld [vmem:[#allocation95_spill] sm:$0xff]  ;;  %v16584_v21 = vld [vmem:[#allocation98_spill] sm:$0xff] }
 0x148   : > { %v1982_v45 = vadd.f32 %v1966_v8, %v1906_v7  ;;  %v1983_v20 = vadd.f32 %v1967_v41, %v1907_v52  ;;  %v1984_v54 = vadd.f32 %v1968_v43, %v1908_v59  ;;  %v2106_v18 = vrot.slane %v11191_v40, 5  ;;  %v16578_v52 = vld [vmem:[#allocation91_spill] sm:$0xff]  ;;  %v16585_v8 = vld [vmem:[#allocation97_spill] sm:$0xff]  ;;  %v16586_v43 = vld [vmem:[#allocation100_spill] sm:$0xff] }
 0x149   : > { %16572 = vst [vmem:[#allocation145_spill] sm:$0xff] %v11200_v42  ;;  %v2107_v13 = vrot.slane %v11194_v62, 5  ;;  %v11207_v9 = vsel %vm974_vm5, %v2007_v60, %v16573_v58  ;;  %v11211_v4 = vsel %vm974_vm5, %v2006_v56, %v2007_v60  ;;  %v11215_v11 = vrot.slane %v10964_v49, %v16576_v35  ;;  %v16583_v55 = vld [vmem:[#allocation99_spill] sm:$0xff]  ;;  %v16587_v35 = vld [vmem:[#allocation96_spill] sm:$0xff] }
 0x14a   : > { %16574 = vst [vmem:[#allocation146_spill] sm:$0xff] %v11207_v9  ;;  %16575 = vst [vmem:[#allocation147_spill] sm:$0xff] %v11211_v4  ;;  %v2029_v59 = vmul.f32 %v11200_v42, %v16573_v58  ;;  %v2031_v25 = vmul.f32 %v11200_v42, %v16578_v52  ;;  %v2032_v29 = vmul.f32 %v11200_v42, %v16579_v31  ;;  %v16589_v31 = vld [vmem:[#allocation118_spill] sm:$0xff] }
 0x14b   : > { %16577 = vst [vmem:[#allocation148_spill] sm:$0xff] %v11215_v11  ;;  %v2033_v51 = vmul.f32 %v11200_v42, %v16580_v22  ;;  %v2034_v10 = vmul.f32 %v11200_v42, %v16581_v57  ;;  %v2035_v19 = vmul.f32 %v11200_v42, %v16582_v24  ;;  %v2036_v56 = vmul.f32 %v11200_v42, %v16583_v55  ;;  %v16588_v22 = vld [vmem:[#allocation119_spill] sm:$0xff] }
 0x14c   : > { %v2037_v60 = vmul.f32 %v11200_v42, %v16584_v21  ;;  %v2038_v41 = vmul.f32 %v11200_v42, %v16585_v8  ;;  %v2039_v7 = vmul.f32 %v11200_v42, %v16586_v43  ;;  %v2040_v34 = vmul.f32 %v11200_v42, %v16587_v35 }
 0x14d   : > { %v2041_v57 = vmul.f32 %v11200_v42, %v16588_v22  ;;  %v2042_v24 = vmul.f32 %v11200_v42, %v16589_v31  ;;  %v2043_v55 = vmul.f32 %v11200_v42, %v11211_v4  ;;  %v2044_v21 = vmul.f32 %v11200_v42, %v11207_v9  ;;  %v16591_v9 = vld [vmem:[#allocation20_spill] sm:$0xff] }
 0x14e   : > { %v2183_v8 = vrot.slane %v11194_v62, 6  ;;  %v2045_v52 = vadd.f32 %v2029_v59, %v1969_v44  ;;  %v2047_v58 = vadd.f32 %v2031_v25, %v1971_v32  ;;  %v2048_v43 = vadd.f32 %v2032_v29, %v1972_v17  ;;  %v16597_v32 = vld [vmem:[#allocation35_spill] sm:$0xff]  ;;  %v16602_v59 = vld [vmem:[#allocation42_spill] sm:$0xff] }
 0x14f   : > { %v2049_v38 = vadd.f32 %v2033_v51, %v1973_v39  ;;  %v2050_v3 = vadd.f32 %v2034_v10, %v1974_v33  ;;  %v2051_v35 = vadd.f32 %v2035_v19, %v1975_v2  ;;  %v2052_v53 = vadd.f32 %v2036_v56, %v1976_v28  ;;  %v16593_v39 = vld [vmem:[#allocation44_spill] sm:$0xff]  ;;  %v16603_v29 = vld [vmem:[#allocation103_spill] sm:$0xff] }
 0x150   : > { %v2053_v0 = vadd.f32 %v2037_v60, %v1977_v37  ;;  %v2054_v22 = vadd.f32 %v2038_v41, %v1978_v36  ;;  %v2055_v26 = vadd.f32 %v2039_v7, %v1979_v46  ;;  %v2056_v63 = vadd.f32 %v2040_v34, %v1980_v50  ;;  %v16594_v37 = vld [vmem:[#allocation43_spill] sm:$0xff]  ;;  %v16595_v34 = vld [vmem:[#allocation37_spill] sm:$0xff]  ;;  %v16596_v33 = vld [vmem:[#allocation36_spill] sm:$0xff] }
 0x151   : > { %v2057_v31 = vadd.f32 %v2041_v57, %v1981_v6  ;;  %v2058_v23 = vadd.f32 %v2042_v24, %v1982_v45  ;;  %v2059_v47 = vadd.f32 %v2043_v55, %v1983_v20  ;;  %v2060_v4 = vadd.f32 %v2044_v21, %v1984_v54  ;;  %v16598_v50 = vld [vmem:[#allocation34_spill] sm:$0xff]  ;;  %v16599_v45 = vld [vmem:[#allocation40_spill] sm:$0xff]  ;;  %v16600_v54 = vld [vmem:[#allocation39_spill] sm:$0xff] }
 0x152   : > { %v11251_v42 = vsel %vm553_vm0, %v2106_v18, %v2107_v13  ;;  %v11256_v17 = vsel %vm553_vm0, %v16591_v9, %v2106_v18  ;;  %v2129_v28 = vmul.f32 %v11215_v11, %v16593_v39  ;;  %v2130_v36 = vmul.f32 %v11215_v11, %v16594_v37  ;;  %v16601_v13 = vld [vmem:[#allocation38_spill] sm:$0xff]  ;;  %v16606_v55 = vld [vmem:[#allocation121_spill] sm:$0xff] }
 0x153   : > { %16590 = vst [vmem:[#allocation149_spill] sm:$0xff] %v11251_v42  ;;  %16592 = vst [vmem:[#allocation150_spill] sm:$0xff] %v11256_v17  ;;  %v2131_v2 = vmul.f32 %v11215_v11, %v16595_v34  ;;  %v2132_v44 = vmul.f32 %v11215_v11, %v16596_v33  ;;  %v2133_v46 = vmul.f32 %v11215_v11, %v16597_v32  ;;  %v16604_v57 = vld [vmem:[#allocation102_spill] sm:$0xff]  ;;  %v16608_v32 = vld [vmem:[#allocation32_spill] sm:$0xff] }
 0x154   : > { %v2134_v6 = vmul.f32 %v11215_v11, %v16598_v50  ;;  %v2135_v20 = vmul.f32 %v11215_v11, %v16599_v45  ;;  %v2136_v18 = vmul.f32 %v11215_v11, %v16600_v54  ;;  %v2137_v7 = vmul.f32 %v11215_v11, %v16601_v13  ;;  %v16605_v24 = vld [vmem:[#allocation122_spill] sm:$0xff] }
 0x155   : > { %v2138_v25 = vmul.f32 %v11215_v11, %v16602_v59  ;;  %v2139_v51 = vmul.f32 %v11215_v11, %v16603_v29  ;;  %v2140_v10 = vmul.f32 %v11215_v11, %v16604_v57  ;;  %v2141_v19 = vmul.f32 %v11215_v11, %v16605_v24  ;;  %v11290_v57 = vld [vmem:[#allocation7 + $0x18] sm:$0xff] }
 0x156   : > { %v2142_v56 = vmul.f32 %v11215_v11, %v16606_v55  ;;  %v2143_v21 = vmul.f32 %v11215_v11, %v11256_v17  ;;  %v2144_v60 = vmul.f32 %v11215_v11, %v11251_v42  ;;  %v2145_v41 = vadd.f32 %v2129_v28, %v2045_v52  ;;  %16607 = vst [vmem:[#allocation44_spill] sm:$0xff] %v11290_v57 }
 0x157   : > { %v2146_v39 = vadd.f32 %v2130_v36, %v2045_v52  ;;  %v2147_v37 = vadd.f32 %v2131_v2, %v2047_v58  ;;  %v2148_v59 = vadd.f32 %v2132_v44, %v2048_v43  ;;  %v2149_v29 = vadd.f32 %v2133_v46, %v2049_v38  ;;  %v16620_v36 = vld [vmem:[#allocation45_spill] sm:$0xff]  ;;  %v16622_v46 = vld [vmem:[#allocation50_spill] sm:$0xff] }
 0x158   : > { %v2150_v13 = vadd.f32 %v2134_v6, %v2050_v3  ;;  %v2151_v54 = vadd.f32 %v2135_v20, %v2051_v35  ;;  %v2152_v45 = vadd.f32 %v2136_v18, %v2052_v53  ;;  %v2153_v24 = vadd.f32 %v2137_v7, %v2053_v0  ;;  %v16613_v0 = vld [vmem:[#allocation21_spill] sm:$0xff]  ;;  %v16618_v35 = vld [vmem:[#allocation52_spill] sm:$0xff]  ;;  %v16623_v20 = vld [vmem:[#allocation47_spill] sm:$0xff] }
 0x159   : > { %v2154_v50 = vadd.f32 %v2138_v25, %v2054_v22  ;;  %v11294_v55 = vrot.slane %v10964_v49, %v16608_v32  ;;  %v2155_v17 = vadd.f32 %v2139_v51, %v2055_v26  ;;  %v2156_v33 = vadd.f32 %v2140_v10, %v2056_v63  ;;  %v16624_v7 = vld [vmem:[#allocation49_spill] sm:$0xff]  ;;  %v16625_v51 = vld [vmem:[#allocation48_spill] sm:$0xff] }
 0x15a   : > { %v2157_v34 = vadd.f32 %v2141_v19, %v2057_v31  ;;  %v2158_v11 = vadd.f32 %v2142_v56, %v2058_v23  ;;  %v2159_v28 = vadd.f32 %v2143_v21, %v2059_v47  ;;  %v2160_v52 = vadd.f32 %v2144_v60, %v2060_v4  ;;  %v16615_v23 = vld [vmem:[#allocation33_spill] sm:$0xff]  ;;  %v16626_v19 = vld [vmem:[#allocation46_spill] sm:$0xff]  ;;  %v16627_v21 = vld [vmem:[#allocation55_spill] sm:$0xff] }
 0x15b   : > { %16609 = vst [vmem:[#allocation43_spill] sm:$0xff] %v11294_v55  ;;  %v16610_v58 = vrot.slane %v11191_v40, 6  ;;  %v2258_v26 = vrot.slane %v11191_v40, 7  ;;  %v2259_v63 = vrot.slane %v11194_v62, 7  ;;  %v11313_v47 = vrot.slane %v10964_v49, %v16615_v23  ;;  %v16621_v49 = vld [vmem:[#allocation53_spill] sm:$0xff] }
 0x15c   : > { %v11317_v4 = vrot.slane %v11290_v57, %v16506_v5  ;;  %v2205_v31 = vmul.f32 %v11294_v55, %v16618_v35  ;;  %v11325_v43 = vrot.slane %v11290_v57, %v16513_v30  ;;  %v2206_v2 = vmul.f32 %v11294_v55, %v16620_v36  ;;  %v16629_v35 = vld [vmem:[#allocation106_spill] sm:$0xff]  ;;  %v16630_v22 = vld [vmem:[#allocation105_spill] sm:$0xff] }
 0x15d   : > { %v11300_v38 = vsel %vm630_vm1, %v16610_v58, %v2183_v8  ;;  %v16612_v53 = vmov %v16610_v58  ;;  %16616 = vst [vmem:[#allocation153_spill] sm:$0xff] %v11313_v47  ;;  %v2207_v44 = vmul.f32 %v11294_v55, %v16621_v49  ;;  %v2208_v6 = vmul.f32 %v11294_v55, %v16622_v46  ;;  %v16628_v58 = vld [vmem:[#allocation54_spill] sm:$0xff]  ;;  %v16631_v30 = vld [vmem:[#allocation125_spill] sm:$0xff] }
 0x15e   : > { %16611 = vst [vmem:[#allocation151_spill] sm:$0xff] %v11300_v38  ;;  %v11307_v3 = vsel %vm630_vm1, %v16613_v0, %v16612_v53  ;;  %16617 = vst [vmem:[#allocation154_spill] sm:$0xff] %v11317_v4  ;;  %v2209_v18 = vmul.f32 %v11294_v55, %v16623_v20  ;;  %v2210_v25 = vmul.f32 %v11294_v55, %v16624_v7 }
 0x15f   : > { %16614 = vst [vmem:[#allocation152_spill] sm:$0xff] %v11307_v3  ;;  %16619 = vst [vmem:[#allocation52_spill] sm:$0xff] %v11325_v43  ;;  %v2211_v10 = vmul.f32 %v11294_v55, %v16625_v51  ;;  %v2212_v56 = vmul.f32 %v11294_v55, %v16626_v19  ;;  %v2213_v60 = vmul.f32 %v11294_v55, %v16627_v21 }
 0x160   : > { %v2214_v53 = vmul.f32 %v11294_v55, %v16628_v58  ;;  %v2215_v36 = vmul.f32 %v11294_v55, %v16629_v35  ;;  %v2216_v8 = vmul.f32 %v11294_v55, %v16630_v22  ;;  %v2217_v5 = vmul.f32 %v11294_v55, %v16631_v30 }
 0x161   : > { %v2218_v23 = vmul.f32 %v11294_v55, %v10939_v61  ;;  %v2219_v32 = vmul.f32 %v11294_v55, %v11307_v3  ;;  %v2220_v21 = vmul.f32 %v11294_v55, %v11300_v38  ;;  %v2221_v19 = vadd.f32 %v2205_v31, %v2145_v41  ;;  %v16639_v41 = vld [vmem:[#allocation63_spill] sm:$0xff] }
 0x162   : > { %v2222_v58 = vadd.f32 %v2206_v2, %v2146_v39  ;;  %v2223_v51 = vadd.f32 %v2207_v44, %v2147_v37  ;;  %v2224_v7 = vadd.f32 %v2208_v6, %v2148_v59  ;;  %v2225_v35 = vadd.f32 %v2209_v18, %v2149_v29  ;;  %v16640_v39 = vld [vmem:[#allocation62_spill] sm:$0xff] }
 0x163   : > { %v2226_v20 = vadd.f32 %v2210_v25, %v2150_v13  ;;  %v2227_v46 = vadd.f32 %v2211_v10, %v2151_v54  ;;  %v2228_v22 = vadd.f32 %v2212_v56, %v2152_v45  ;;  %v2229_v49 = vadd.f32 %v2213_v60, %v2153_v24  ;;  %v16637_v13 = vld [vmem:[#allocation66_spill] sm:$0xff]  ;;  %v16638_v24 = vld [vmem:[#allocation65_spill] sm:$0xff] }
 0x164   : > { %v2230_v0 = vadd.f32 %v2214_v53, %v2154_v50  ;;  %v2231_v30 = vadd.f32 %v2215_v36, %v2155_v17  ;;  %v2232_v42 = vadd.f32 %v2216_v8, %v2156_v33  ;;  %v2233_v9 = vadd.f32 %v2217_v5, %v2157_v34  ;;  %v16635_v33 = vld [vmem:[#allocation58_spill] sm:$0xff]  ;;  %v16636_v50 = vld [vmem:[#allocation64_spill] sm:$0xff]  ;;  %v16644_v8 = vld [vmem:[#allocation127_spill] sm:$0xff] }
 0x165   : > { %v2234_v61 = vadd.f32 %v2218_v23, %v2158_v11  ;;  %v2235_v57 = vadd.f32 %v2219_v32, %v2159_v28  ;;  %v2236_v43 = vadd.f32 %v2220_v21, %v2160_v52  ;;  %v11359_v3 = vsel %vm707_vm2, %v2258_v26, %v2259_v63  ;;  %v16634_v11 = vld [vmem:[#allocation59_spill] sm:$0xff]  ;;  %v16641_v28 = vld [vmem:[#allocation109_spill] sm:$0xff]  ;;  %v16643_v23 = vld [vmem:[#allocation128_spill] sm:$0xff] }
 0x166   : > { %16632 = vst [vmem:[#allocation45_spill] sm:$0xff] %v11359_v3  ;;  %v11364_v59 = vsel %vm707_vm2, %v16511_v12, %v2258_v26  ;;  %v2281_v45 = vmul.f32 %v11313_v47, %v16517_v48  ;;  %v2282_v17 = vmul.f32 %v11313_v47, %v16518_v15  ;;  %v2283_v5 = vmul.f32 %v11313_v47, %v16519_v27  ;;  %v16642_v26 = vld [vmem:[#allocation110_spill] sm:$0xff] }
 0x167   : > { %16633 = vst [vmem:[#allocation155_spill] sm:$0xff] %v11364_v59  ;;  %v2284_v34 = vmul.f32 %v11313_v47, %v16634_v11  ;;  %v2285_v32 = vmul.f32 %v11313_v47, %v16635_v33  ;;  %v2286_v54 = vmul.f32 %v11313_v47, %v16636_v50  ;;  %v2287_v29 = vmul.f32 %v11313_v47, %v16637_v13 }
 0x168   : > { %v2288_v48 = vmul.f32 %v11313_v47, %v16638_v24  ;;  %v2289_v15 = vmul.f32 %v11313_v47, %v16639_v41  ;;  %v2290_v37 = vmul.f32 %v11313_v47, %v16640_v39  ;;  %v2291_v52 = vmul.f32 %v11313_v47, %v16641_v28 }
 0x169   : > { %v2292_v63 = vmul.f32 %v11313_v47, %v16642_v26  ;;  %v2293_v31 = vmul.f32 %v11313_v47, %v16643_v23  ;;  %v2294_v2 = vmul.f32 %v11313_v47, %v16644_v8  ;;  %v2295_v44 = vmul.f32 %v11313_v47, %v11364_v59 }
 0x16a   : > { %v2296_v6 = vmul.f32 %v11313_v47, %v11359_v3  ;;  %v2297_v18 = vadd.f32 %v2281_v45, %v2221_v19  ;;  %v2298_v25 = vadd.f32 %v2282_v17, %v2222_v58  ;;  %v2299_v10 = vadd.f32 %v2283_v5, %v2223_v51  ;;  %v16645_v47 = vld [vmem:[#allocation61_spill] sm:$0xff]  ;;  %v16646_v51 = vld [vmem:[#allocation60_spill] sm:$0xff]  ;;  %v16654_v45 = vld [vmem:[#allocation138_spill] sm:$0xff] }
 0x16b   : > { %v2300_v56 = vadd.f32 %v2284_v34, %v2224_v7  ;;  %v2301_v21 = vadd.f32 %v2285_v32, %v2225_v35  ;;  %v2302_v60 = vadd.f32 %v2286_v54, %v2226_v20  ;;  %v2303_v53 = vadd.f32 %v2287_v29, %v2227_v46  ;;  %v16647_v20 = vld [vmem:[#allocation131_spill] sm:$0xff]  ;;  %v16653_v58 = vld [vmem:[#allocation137_spill] sm:$0xff]  ;;  %v11419_v5 = vld [vmem:[%s9980_s19 + $0x50] sm:$0xff] }
 0x16c   : > { %v2304_v36 = vadd.f32 %v2288_v48, %v2228_v22  ;;  %v2305_v55 = vadd.f32 %v2289_v15, %v2229_v49  ;;  %v2306_v26 = vadd.f32 %v2290_v37, %v2230_v0  ;;  %v2307_v23 = vadd.f32 %v2291_v52, %v2231_v30  ;;  %v16648_v22 = vld [vmem:[#allocation132_spill] sm:$0xff]  ;;  %v16649_v30 = vld [vmem:[#allocation133_spill] sm:$0xff]  ;;  %16655 = vst [vmem:[#allocation59_spill] sm:$0xff] %v11419_v5  ;;  %v11424_v32 = vld [vmem:[%s9980_s19 + $0x58] sm:$0xff] }
 0x16d   : > { %v2308_v28 = vadd.f32 %v2292_v63, %v2232_v42  ;;  %v2309_v8 = vadd.f32 %v2293_v31, %v2233_v9  ;;  %v2310_v39 = vadd.f32 %v2294_v2, %v2234_v61  ;;  %v2311_v59 = vadd.f32 %v2295_v44, %v2235_v57  ;;  %v16650_v9 = vld [vmem:[#allocation134_spill] sm:$0xff]  ;;  %v16651_v57 = vld [vmem:[#allocation135_spill] sm:$0xff]  ;;  %16656 = vst [vmem:[#allocation61_spill] sm:$0xff] %v11424_v32 }
 0x16e   : > { %v2312_v41 = vadd.f32 %v2296_v6, %v2236_v43  ;;  %v2317_v19 = vmul.f32 %v16645_v47, %v11317_v4  ;;  %v2318_v7 = vmul.f32 %v16646_v51, %v11317_v4  ;;  %v2319_v46 = vmul.f32 %v16647_v20, %v11317_v4  ;;  %v16652_v47 = vld [vmem:[#allocation136_spill] sm:$0xff] }
 0x16f   : > { %v2320_v0 = vmul.f32 %v16648_v22, %v11317_v4  ;;  %v2321_v42 = vmul.f32 %v16649_v30, %v11317_v4  ;;  %v2322_v61 = vmul.f32 %v16650_v9, %v11317_v4  ;;  %v2323_v43 = vmul.f32 %v16651_v57, %v11317_v4  ;;  %v16657_v30 = vld [vmem:[#allocation23_spill] sm:$0xff] }
 0x170   : > { %v2324_v49 = vmul.f32 %v16652_v47, %v11317_v4  ;;  %v2325_v35 = vmul.f32 %v16653_v58, %v11317_v4  ;;  %v2326_v17 = vmul.f32 %v16654_v45, %v11317_v4  ;;  %v2327_v34 = vmul.f32 %v11419_v5, %v11317_v4 }
 0x171   : > { %v2328_v54 = vmul.f32 %v11424_v32, %v11317_v4  ;;  %v2329_v29 = vmul.f32 %v11317_v4, %v10853_v14  ;;  %v2330_v48 = vmul.f32 %v11317_v4, %v10856_v16  ;;  %v2331_v15 = vmul.f32 %v11317_v4, %v11191_v40 }
 0x172   : > { %v2332_v37 = vmul.f32 %v11317_v4, %v11194_v62  ;;  %v2333_v52 = vadd.f32 %v2317_v19, %v2297_v18  ;;  %v2334_v63 = vadd.f32 %v2318_v7, %v2298_v25  ;;  %v2335_v31 = vadd.f32 %v2319_v46, %v2299_v10  ;;  %v16670_v7 = vld [vmem:[#allocation77_spill] sm:$0xff] }
 0x173   : > { %v2336_v2 = vadd.f32 %v2320_v0, %v2300_v56  ;;  %v2337_v44 = vadd.f32 %v2321_v42, %v2301_v21  ;;  %v2338_v6 = vadd.f32 %v2322_v61, %v2302_v60  ;;  %v2339_v51 = vadd.f32 %v2323_v43, %v2303_v53  ;;  %v16667_v56 = vld [vmem:[#allocation69_spill] sm:$0xff]  ;;  %v16668_v60 = vld [vmem:[#allocation72_spill] sm:$0xff]  ;;  %v16673_v43 = vld [vmem:[#allocation75_spill] sm:$0xff] }
 0x174   : > { %v2340_v32 = vadd.f32 %v2324_v49, %v2304_v36  ;;  %v2341_v5 = vadd.f32 %v2325_v35, %v2305_v55  ;;  %v2342_v45 = vadd.f32 %v2326_v17, %v2306_v26  ;;  %v2343_v14 = vadd.f32 %v2327_v34, %v2307_v23  ;;  %v16664_v26 = vld [vmem:[#allocation52_spill] sm:$0xff]  ;;  %v16666_v23 = vld [vmem:[#allocation73_spill] sm:$0xff]  ;;  %v16669_v36 = vld [vmem:[#allocation78_spill] sm:$0xff] }
 0x175   : > { %v2344_v58 = vadd.f32 %v2328_v54, %v2308_v28  ;;  %v2345_v47 = vadd.f32 %v2329_v29, %v2309_v8  ;;  %v2346_v16 = vadd.f32 %v2330_v48, %v2310_v39  ;;  %v2347_v57 = vadd.f32 %v2331_v15, %v2311_v59  ;;  %v16663_v28 = vld [vmem:[#allocation70_spill] sm:$0xff]  ;;  %v16672_v42 = vld [vmem:[#allocation76_spill] sm:$0xff]  ;;  %v16674_v35 = vld [vmem:[#allocation113_spill] sm:$0xff] }
 0x176   : > { %v2348_v9 = vadd.f32 %v2332_v37, %v2312_v41  ;;  %v16658_v22 = vrot.slane %v11194_v62, 1  ;;  %v16661_v10 = vrot.slane %v11191_v40, 1  ;;  %v2393_v39 = vmul.f32 %v16664_v26, %v16663_v28  ;;  %v16665_v59 = vld [vmem:[#allocation74_spill] sm:$0xff]  ;;  %v16675_v34 = vld [vmem:[#allocation112_spill] sm:$0xff]  ;;  %v16677_v15 = vld [vmem:[#allocation139_spill] sm:$0xff] }
 0x177   : > { %v2394_v41 = vmul.f32 %v16664_v26, %v16665_v59  ;;  %v2395_v8 = vmul.f32 %v16664_v26, %v16666_v23  ;;  %v2396_v21 = vmul.f32 %v16664_v26, %v16667_v56  ;;  %v2397_v53 = vmul.f32 %v16664_v26, %v16668_v60  ;;  %v16676_v29 = vld [vmem:[#allocation140_spill] sm:$0xff] }
 0x178   : > { %v11441_v18 = vsel %vm820_vm3, %v16658_v22, %v16657_v30  ;;  %v16660_v25 = vmov %v16658_v22  ;;  %v2398_v19 = vmul.f32 %v16664_v26, %v16669_v36  ;;  %v2399_v46 = vmul.f32 %v16664_v26, %v16670_v7  ;;  %v16671_v22 = vld [vmem:[#allocation71_spill] sm:$0xff]  ;;  %v11484_v36 = vld [vmem:[%s9980_s19 + $0x80] sm:$0xff] }
 0x179   : > { %16659 = vst [vmem:[#allocation60_spill] sm:$0xff] %v11441_v18  ;;  %v11449_v55 = vsel %vm820_vm3, %v16661_v10, %v16660_v25  ;;  %v2400_v0 = vmul.f32 %v16664_v26, %v16671_v22  ;;  %v2401_v61 = vmul.f32 %v16664_v26, %v16672_v42  ;;  %v2402_v49 = vmul.f32 %v16664_v26, %v16673_v43  ;;  %v16680_v56 = vld [vmem:[#allocation28_spill] sm:$0xff] }
 0x17a   : > { %16662 = vst [vmem:[#allocation156_spill] sm:$0xff] %v11449_v55  ;;  %v2403_v17 = vmul.f32 %v16664_v26, %v16674_v35  ;;  %v2404_v54 = vmul.f32 %v16664_v26, %v16675_v34  ;;  %v2405_v48 = vmul.f32 %v16664_v26, %v16676_v29  ;;  %v2406_v37 = vmul.f32 %v16664_v26, %v16677_v15  ;;  %v11487_v29 = vld [vmem:[%s9980_s19 + $0x88] sm:$0xff] }
 0x17b   : > { %v2407_v25 = vmul.f32 %v16664_v26, %v11449_v55  ;;  %v2408_v10 = vmul.f32 %v16664_v26, %v11441_v18  ;;  %v2409_v28 = vadd.f32 %v2393_v39, %v2333_v52  ;;  %v2410_v59 = vadd.f32 %v2394_v41, %v2334_v63  ;;  %16678 = vst [vmem:[#allocation70_spill] sm:$0xff] %v11484_v36  ;;  %v16681_v26 = vld [vmem:[#allocation44_spill] sm:$0xff]  ;;  %v16683_v39 = vld [vmem:[#allocation25_spill] sm:$0xff] }
 0x17c   : > { %v2411_v4 = vadd.f32 %v2395_v8, %v2335_v31  ;;  %v2412_v35 = vadd.f32 %v2396_v21, %v2336_v2  ;;  %v2413_v43 = vadd.f32 %v2397_v53, %v2337_v44  ;;  %v2414_v42 = vadd.f32 %v2398_v19, %v2338_v6  ;;  %16679 = vst [vmem:[#allocation74_spill] sm:$0xff] %v11487_v29  ;;  %v16685_v41 = vld [vmem:[#allocation29_spill] sm:$0xff] }
 0x17d   : > { %v2415_v22 = vadd.f32 %v2399_v46, %v2339_v51  ;;  %v2416_v34 = vadd.f32 %v2400_v0, %v2340_v32  ;;  %v2417_v7 = vadd.f32 %v2401_v61, %v2341_v5  ;;  %v2418_v15 = vadd.f32 %v2402_v49, %v2342_v45  ;;  %v16690_v53 = vld [vmem:[#allocation81_spill] sm:$0xff]  ;;  %v16691_v46 = vld [vmem:[#allocation86_spill] sm:$0xff] }
 0x17e   : > { %v2446_v60 = vrot.slane %v11191_v40, 2  ;;  %v2447_v55 = vrot.slane %v11194_v62, 2  ;;  %v11493_v52 = vrot.slane %v16681_v26, %v16680_v56  ;;  %v2419_v63 = vadd.f32 %v2403_v17, %v2343_v14  ;;  %v16692_v61 = vld [vmem:[#allocation85_spill] sm:$0xff]  ;;  %v16693_v17 = vld [vmem:[#allocation84_spill] sm:$0xff] }
 0x17f   : > { %v2420_v31 = vadd.f32 %v2404_v54, %v2344_v58  ;;  %v2421_v2 = vadd.f32 %v2405_v48, %v2345_v47  ;;  %v2422_v44 = vadd.f32 %v2406_v37, %v2346_v16  ;;  %v2423_v6 = vadd.f32 %v2407_v25, %v2347_v57  ;;  %v16688_v57 = vld [vmem:[#allocation80_spill] sm:$0xff]  ;;  %v16689_v16 = vld [vmem:[#allocation82_spill] sm:$0xff]  ;;  %v16695_v48 = vld [vmem:[#allocation83_spill] sm:$0xff] }
 0x180   : > { %16682 = vst [vmem:[#allocation44_spill] sm:$0xff] %v11493_v52  ;;  %v2424_v32 = vadd.f32 %v2408_v10, %v2348_v9  ;;  %v2522_v5 = vrot.slane %v11191_v40, 3  ;;  %v2523_v51 = vrot.slane %v11194_v62, 3  ;;  %v11500_v45 = vsel %vm897_vm4, %v2447_v55, %v16683_v39  ;;  %v16696_v25 = vld [vmem:[#allocation89_spill] sm:$0xff]  ;;  %v16698_v14 = vld [vmem:[#allocation116_spill] sm:$0xff] }
 0x181   : > { %16684 = vst [vmem:[#allocation157_spill] sm:$0xff] %v11500_v45  ;;  %v11504_v8 = vrot.slane %v16681_v26, %v16685_v41  ;;  %v11510_v9 = vsel %vm897_vm4, %v2446_v60, %v2447_v55  ;;  %v2469_v58 = vmul.f32 %v11493_v52, %v16688_v57  ;;  %v2470_v21 = vmul.f32 %v11493_v52, %v16689_v16  ;;  %v16694_v55 = vld [vmem:[#allocation88_spill] sm:$0xff]  ;;  %v16697_v57 = vld [vmem:[#allocation87_spill] sm:$0xff] }
 0x182   : > { %16687 = vst [vmem:[#allocation159_spill] sm:$0xff] %v11510_v9  ;;  %v2471_v19 = vmul.f32 %v11493_v52, %v16690_v53  ;;  %v2472_v0 = vmul.f32 %v11493_v52, %v16691_v46  ;;  %v2473_v49 = vmul.f32 %v11493_v52, %v16692_v61  ;;  %v2474_v54 = vmul.f32 %v11493_v52, %v16693_v17  ;;  %v16699_v41 = vld [vmem:[#allocation115_spill] sm:$0xff]  ;;  %v16700_v61 = vld [vmem:[#allocation142_spill] sm:$0xff]  ;;  %v16701_v46 = vld [vmem:[#allocation141_spill] sm:$0xff] }
 0x183   : > { %16686 = vst [vmem:[#allocation158_spill] sm:$0xff] %v11504_v8  ;;  %v2475_v60 = vmul.f32 %v11493_v52, %v16694_v55  ;;  %v2476_v37 = vmul.f32 %v11493_v52, %v16695_v48  ;;  %v2477_v10 = vmul.f32 %v11493_v52, %v16696_v25  ;;  %v2478_v16 = vmul.f32 %v11493_v52, %v16697_v57 }
 0x184   : > { %v2479_v47 = vmul.f32 %v11493_v52, %v16698_v14  ;;  %v2480_v56 = vmul.f32 %v11493_v52, %v16699_v41  ;;  %v2481_v17 = vmul.f32 %v11493_v52, %v16700_v61  ;;  %v2482_v55 = vmul.f32 %v11493_v52, %v16701_v46 }
 0x185   : > { %v2483_v48 = vmul.f32 %v11493_v52, %v11510_v9  ;;  %v2484_v25 = vmul.f32 %v11493_v52, %v11500_v45  ;;  %v2485_v53 = vadd.f32 %v2469_v58, %v2409_v28  ;;  %v2486_v57 = vadd.f32 %v2470_v21, %v2410_v59  ;;  %v16702_v9 = vld [vmem:[#allocation26_spill] sm:$0xff]  ;;  %v16709_v28 = vld [vmem:[#allocation92_spill] sm:$0xff]  ;;  %v16715_v21 = vld [vmem:[#allocation119_spill] sm:$0xff] }
 0x186   : > { %v2487_v39 = vadd.f32 %v2471_v19, %v2411_v4  ;;  %v2488_v18 = vadd.f32 %v2472_v0, %v2412_v35  ;;  %v2489_v14 = vadd.f32 %v2473_v49, %v2413_v43  ;;  %v2490_v23 = vadd.f32 %v2474_v54, %v2414_v42  ;;  %v16705_v42 = vld [vmem:[#allocation91_spill] sm:$0xff]  ;;  %v16716_v0 = vld [vmem:[#allocation118_spill] sm:$0xff] }
 0x187   : > { %v2491_v30 = vadd.f32 %v2475_v60, %v2415_v22  ;;  %v2492_v41 = vadd.f32 %v2476_v37, %v2416_v34  ;;  %v2493_v62 = vadd.f32 %v2477_v10, %v2417_v7  ;;  %v2494_v40 = vadd.f32 %v2478_v16, %v2418_v15  ;;  %v16706_v7 = vld [vmem:[#allocation95_spill] sm:$0xff]  ;;  %v16708_v34 = vld [vmem:[#allocation93_spill] sm:$0xff] }
 0x188   : > { %v2495_v61 = vadd.f32 %v2479_v47, %v2419_v63  ;;  %v2496_v20 = vadd.f32 %v2480_v56, %v2420_v31  ;;  %v2497_v3 = vadd.f32 %v2481_v17, %v2421_v2  ;;  %v2498_v46 = vadd.f32 %v2482_v55, %v2422_v44  ;;  %v16707_v56 = vld [vmem:[#allocation94_spill] sm:$0xff]  ;;  %v16710_v63 = vld [vmem:[#allocation99_spill] sm:$0xff]  ;;  %v16714_v47 = vld [vmem:[#allocation96_spill] sm:$0xff] }
 0x189   : > { %v2499_v24 = vadd.f32 %v2483_v48, %v2423_v6  ;;  %v2500_v13 = vadd.f32 %v2484_v25, %v2424_v32  ;;  %v11547_v52 = vsel %vm974_vm5, %v2523_v51, %v16702_v9  ;;  %v11551_v4 = vsel %vm974_vm5, %v2522_v5, %v2523_v51  ;;  %v16711_v2 = vld [vmem:[#allocation98_spill] sm:$0xff]  ;;  %v16712_v6 = vld [vmem:[#allocation97_spill] sm:$0xff]  ;;  %v16713_v5 = vld [vmem:[#allocation100_spill] sm:$0xff] }
 0x18a   : > { %16703 = vst [vmem:[#allocation80_spill] sm:$0xff] %v11547_v52  ;;  %16704 = vst [vmem:[#allocation82_spill] sm:$0xff] %v11551_v4  ;;  %v2545_v22 = vmul.f32 %v11504_v8, %v16705_v42  ;;  %v2546_v43 = vmul.f32 %v11504_v8, %v16706_v7  ;;  %v2547_v35 = vmul.f32 %v11504_v8, %v16707_v56  ;;  %v16717_v17 = vld [vmem:[#allocation147_spill] sm:$0xff]  ;;  %v16718_v55 = vld [vmem:[#allocation146_spill] sm:$0xff] }
 0x18b   : > { %v2548_v15 = vmul.f32 %v11504_v8, %v16708_v34  ;;  %v2549_v59 = vmul.f32 %v11504_v8, %v16709_v28  ;;  %v2550_v31 = vmul.f32 %v11504_v8, %v16710_v63  ;;  %v2551_v44 = vmul.f32 %v11504_v8, %v16711_v2 }
 0x18c   : > { %v2552_v32 = vmul.f32 %v11504_v8, %v16712_v6  ;;  %v2553_v51 = vmul.f32 %v11504_v8, %v16713_v5  ;;  %v2554_v58 = vmul.f32 %v11504_v8, %v16714_v47  ;;  %v2555_v19 = vmul.f32 %v11504_v8, %v16715_v21  ;;  %v16719_v5 = vld [vmem:[#allocation30_spill] sm:$0xff] }
 0x18d   : > { %v2556_v49 = vmul.f32 %v11504_v8, %v16716_v0  ;;  %v2557_v54 = vmul.f32 %v11504_v8, %v16717_v17  ;;  %v2558_v60 = vmul.f32 %v11504_v8, %v16718_v55  ;;  %v2559_v48 = vmul.f32 %v11504_v8, %v11551_v4 }
 0x18e   : > { %v2560_v37 = vmul.f32 %v11504_v8, %v11547_v52  ;;  %v2561_v25 = vadd.f32 %v2545_v22, %v2485_v53  ;;  %v2562_v10 = vadd.f32 %v2546_v43, %v2486_v57  ;;  %v2563_v16 = vadd.f32 %v2547_v35, %v2487_v39  ;;  %v16725_v39 = vld [vmem:[#allocation20_spill] sm:$0xff]  ;;  %v16731_v22 = vld [vmem:[#allocation35_spill] sm:$0xff]  ;;  %v16732_v35 = vld [vmem:[#allocation34_spill] sm:$0xff] }
 0x18f   : > { %v2564_v42 = vadd.f32 %v2548_v15, %v2488_v18  ;;  %v2565_v7 = vadd.f32 %v2549_v59, %v2489_v14  ;;  %v2566_v21 = vadd.f32 %v2550_v31, %v2490_v23  ;;  %v2567_v47 = vadd.f32 %v2551_v44, %v2491_v30  ;;  %v16733_v59 = vld [vmem:[#allocation40_spill] sm:$0xff]  ;;  %v16734_v44 = vld [vmem:[#allocation39_spill] sm:$0xff] }
 0x190   : > { %v2568_v0 = vadd.f32 %v2552_v32, %v2492_v41  ;;  %v11587_v17 = vrot.slane %v16681_v26, %v16719_v5  ;;  %v2569_v6 = vadd.f32 %v2553_v51, %v2493_v62  ;;  %v2570_v55 = vadd.f32 %v2554_v58, %v2494_v40  ;;  %v16735_v51 = vld [vmem:[#allocation38_spill] sm:$0xff] }
 0x191   : > { %v2571_v2 = vadd.f32 %v2555_v19, %v2495_v61  ;;  %v2572_v63 = vadd.f32 %v2556_v49, %v2496_v20  ;;  %v2573_v4 = vadd.f32 %v2557_v54, %v2497_v3  ;;  %v2574_v28 = vadd.f32 %v2558_v60, %v2498_v46  ;;  %v16728_v20 = vld [vmem:[#allocation31_spill] sm:$0xff]  ;;  %v16730_v61 = vld [vmem:[#allocation36_spill] sm:$0xff]  ;;  %v16736_v19 = vld [vmem:[#allocation42_spill] sm:$0xff] }
 0x192   : > { %16720 = vst [vmem:[#allocation91_spill] sm:$0xff] %v11587_v17  ;;  %v2575_v34 = vadd.f32 %v2559_v48, %v2499_v24  ;;  %v2576_v8 = vadd.f32 %v2560_v37, %v2500_v13  ;;  %v16721_v53 = vrot.slane %v11487_v29, 5  ;;  %v16722_v18 = vrot.slane %v11484_v36, 5  ;;  %v16727_v13 = vld [vmem:[#allocation37_spill] sm:$0xff]  ;;  %v16737_v54 = vld [vmem:[#allocation103_spill] sm:$0xff]  ;;  %v16738_v48 = vld [vmem:[#allocation102_spill] sm:$0xff] }
 0x193   : > { %v2699_v40 = vrot.slane %v11484_v36, 6  ;;  %v2700_v3 = vrot.slane %v11487_v29, 6  ;;  %v2646_v24 = vmul.f32 %v11587_v17, %v16727_v13  ;;  %v11610_v41 = vrot.slane %v16681_v26, %v16728_v20  ;;  %v16742_v46 = vld [vmem:[#allocation149_spill] sm:$0xff] }
 0x194   : > { %v11595_v30 = vsel %vm553_vm0, %v16722_v18, %v16721_v53  ;;  %v16724_v23 = vmov %v16722_v18  ;;  %v2647_v57 = vmul.f32 %v11587_v17, %v16730_v61  ;;  %v2648_v43 = vmul.f32 %v11587_v17, %v16731_v22  ;;  %v16739_v53 = vld [vmem:[#allocation122_spill] sm:$0xff] }
 0x195   : > { %16723 = vst [vmem:[#allocation95_spill] sm:$0xff] %v11595_v30  ;;  %v11602_v62 = vsel %vm553_vm0, %v16725_v39, %v16724_v23  ;;  %16729 = vst [vmem:[#allocation37_spill] sm:$0xff] %v11610_v41  ;;  %v2649_v15 = vmul.f32 %v11587_v17, %v16732_v35  ;;  %v2650_v31 = vmul.f32 %v11587_v17, %v16733_v59  ;;  %v16740_v23 = vld [vmem:[#allocation121_spill] sm:$0xff]  ;;  %v16741_v61 = vld [vmem:[#allocation150_spill] sm:$0xff] }
 0x196   : > { %16726 = vst [vmem:[#allocation160_spill] sm:$0xff] %v11602_v62  ;;  %v2651_v32 = vmul.f32 %v11587_v17, %v16734_v44  ;;  %v2652_v58 = vmul.f32 %v11587_v17, %v16735_v51  ;;  %v2653_v49 = vmul.f32 %v11587_v17, %v16736_v19  ;;  %v2654_v60 = vmul.f32 %v11587_v17, %v16737_v54 }
 0x197   : > { %v2655_v37 = vmul.f32 %v11587_v17, %v16738_v48  ;;  %v2656_v18 = vmul.f32 %v11587_v17, %v16739_v53  ;;  %v2657_v13 = vmul.f32 %v11587_v17, %v16740_v23  ;;  %v2658_v14 = vmul.f32 %v11587_v17, %v16741_v61 }
 0x198   : > { %v2659_v20 = vmul.f32 %v11587_v17, %v16742_v46  ;;  %v2660_v5 = vmul.f32 %v11587_v17, %v11602_v62  ;;  %v2661_v54 = vmul.f32 %v11587_v17, %v11595_v30  ;;  %v2662_v19 = vadd.f32 %v2646_v24, %v2561_v25  ;;  %v16744_v25 = vld [vmem:[#allocation21_spill] sm:$0xff] }
 0x199   : > { %v2663_v48 = vadd.f32 %v2647_v57, %v2562_v10  ;;  %v2664_v51 = vadd.f32 %v2648_v43, %v2563_v16  ;;  %v2665_v44 = vadd.f32 %v2649_v15, %v2564_v42  ;;  %v2666_v53 = vadd.f32 %v2650_v31, %v2565_v7  ;;  %v16752_v16 = vld [vmem:[#allocation55_spill] sm:$0xff]  ;;  %v16753_v7 = vld [vmem:[#allocation54_spill] sm:$0xff]  ;;  %v16756_v57 = vld [vmem:[#allocation125_spill] sm:$0xff] }
 0x19a   : > { %v2667_v59 = vadd.f32 %v2651_v32, %v2566_v21  ;;  %v2668_v35 = vadd.f32 %v2652_v58, %v2567_v47  ;;  %v2669_v23 = vadd.f32 %v2653_v49, %v2568_v0  ;;  %v2670_v22 = vadd.f32 %v2654_v60, %v2569_v6  ;;  %v16746_v21 = vld [vmem:[#allocation53_spill] sm:$0xff]  ;;  %v16747_v6 = vld [vmem:[#allocation50_spill] sm:$0xff]  ;;  %v16757_v15 = vld [vmem:[#allocation124_spill] sm:$0xff] }
 0x19b   : > { %v2671_v39 = vadd.f32 %v2655_v37, %v2570_v55  ;;  %v2672_v61 = vadd.f32 %v2656_v18, %v2571_v2  ;;  %v2673_v52 = vadd.f32 %v2657_v13, %v2572_v63  ;;  %v2674_v56 = vadd.f32 %v2658_v14, %v2573_v4  ;;  %v16748_v63 = vld [vmem:[#allocation47_spill] sm:$0xff]  ;;  %v16751_v0 = vld [vmem:[#allocation46_spill] sm:$0xff]  ;;  %v16758_v32 = vld [vmem:[#allocation152_spill] sm:$0xff] }
 0x19c   : > { %v2675_v46 = vadd.f32 %v2659_v20, %v2574_v28  ;;  %v2676_v9 = vadd.f32 %v2660_v5, %v2575_v34  ;;  %v2677_v45 = vadd.f32 %v2661_v54, %v2576_v8  ;;  %v11646_v62 = vsel %vm630_vm1, %v2699_v40, %v2700_v3  ;;  %v16749_v34 = vld [vmem:[#allocation49_spill] sm:$0xff]  ;;  %v16750_v28 = vld [vmem:[#allocation48_spill] sm:$0xff]  ;;  %v16754_v3 = vld [vmem:[#allocation106_spill] sm:$0xff] }
 0x19d   : > { %16743 = vst [vmem:[#allocation36_spill] sm:$0xff] %v11646_v62  ;;  %v11651_v10 = vsel %vm630_vm1, %v16744_v25, %v2699_v40  ;;  %v2722_v47 = vmul.f32 %v11610_v41, %v16746_v21  ;;  %v2723_v2 = vmul.f32 %v11610_v41, %v16747_v6  ;;  %v2724_v4 = vmul.f32 %v11610_v41, %v16748_v63  ;;  %v16755_v20 = vld [vmem:[#allocation105_spill] sm:$0xff] }
 0x19e   : > { %16745 = vst [vmem:[#allocation161_spill] sm:$0xff] %v11651_v10  ;;  %v2725_v8 = vmul.f32 %v11610_v41, %v16749_v34  ;;  %v2726_v5 = vmul.f32 %v11610_v41, %v16750_v28  ;;  %v2727_v55 = vmul.f32 %v11610_v41, %v16751_v0  ;;  %v2728_v42 = vmul.f32 %v11610_v41, %v16752_v16 }
 0x19f   : > { %v2729_v40 = vmul.f32 %v11610_v41, %v16753_v7  ;;  %v2730_v24 = vmul.f32 %v11610_v41, %v16754_v3  ;;  %v2731_v14 = vmul.f32 %v11610_v41, %v16755_v20  ;;  %v2732_v43 = vmul.f32 %v11610_v41, %v16756_v57  ;;  %v16759_v7 = vld [vmem:[#allocation32_spill] sm:$0xff] }
 0x1a0   : > { %v2733_v31 = vmul.f32 %v11610_v41, %v16757_v15  ;;  %v2734_v58 = vmul.f32 %v11610_v41, %v16758_v32  ;;  %v2735_v49 = vmul.f32 %v11610_v41, %v11300_v38  ;;  %v2736_v54 = vmul.f32 %v11610_v41, %v11651_v10  ;;  %v11685_v15 = vld [vmem:[#allocation7 + $0x20] sm:$0xff] }
 0x1a1   : > { %v2737_v60 = vmul.f32 %v11610_v41, %v11646_v62  ;;  %v2738_v37 = vadd.f32 %v2722_v47, %v2662_v19  ;;  %v2739_v18 = vadd.f32 %v2723_v2, %v2663_v48  ;;  %v2740_v13 = vadd.f32 %v2724_v4, %v2664_v51  ;;  %v16770_v47 = vld [vmem:[#allocation27_spill] sm:$0xff] }
 0x1a2   : > { %v2741_v21 = vadd.f32 %v2725_v8, %v2665_v44  ;;  %v2742_v6 = vadd.f32 %v2726_v5, %v2666_v53  ;;  %v2743_v17 = vadd.f32 %v2727_v55, %v2667_v59  ;;  %v2744_v57 = vadd.f32 %v2728_v42, %v2668_v35  ;;  %v16772_v5 = vld [vmem:[#allocation66_spill] sm:$0xff]  ;;  %v16773_v55 = vld [vmem:[#allocation65_spill] sm:$0xff] }
 0x1a3   : > { %v2745_v20 = vadd.f32 %v2729_v40, %v2669_v23  ;;  %v2746_v32 = vadd.f32 %v2730_v24, %v2670_v22  ;;  %v2747_v3 = vadd.f32 %v2731_v14, %v2671_v39  ;;  %v11689_v38 = vrot.slane %v16681_v26, %v16759_v7  ;;  %v16774_v40 = vld [vmem:[#allocation63_spill] sm:$0xff]  ;;  %v16775_v14 = vld [vmem:[#allocation62_spill] sm:$0xff] }
 0x1a4   : > { %v2748_v10 = vadd.f32 %v2732_v43, %v2672_v61  ;;  %v2749_v16 = vadd.f32 %v2733_v31, %v2673_v52  ;;  %v2750_v0 = vadd.f32 %v2734_v58, %v2674_v56  ;;  %v2751_v41 = vadd.f32 %v2735_v49, %v2675_v46  ;;  %v16766_v52 = vld [vmem:[#allocation33_spill] sm:$0xff]  ;;  %v16768_v46 = vld [vmem:[#allocation24_spill] sm:$0xff]  ;;  %v16777_v58 = vld [vmem:[#allocation110_spill] sm:$0xff] }
 0x1a5   : > { %16760 = vst [vmem:[#allocation53_spill] sm:$0xff] %v11689_v38  ;;  %v2752_v19 = vadd.f32 %v2736_v54, %v2676_v9  ;;  %v2753_v48 = vadd.f32 %v2737_v60, %v2677_v45  ;;  %v16761_v44 = vrot.slane %v11487_v29, 7  ;;  %v16762_v59 = vrot.slane %v11484_v36, 7  ;;  %v16776_v31 = vld [vmem:[#allocation109_spill] sm:$0xff]  ;;  %v16778_v54 = vld [vmem:[#allocation128_spill] sm:$0xff] }
 0x1a6   : > { %v11708_v56 = vrot.slane %v16681_v26, %v16766_v52  ;;  %v11714_v51 = vrot.slane %v11685_v15, %v16768_v46  ;;  %v2798_v53 = vmul.f32 %v11689_v38, %v16519_v27  ;;  %v11722_v2 = vrot.slane %v11685_v15, %v16770_v47  ;;  %v16781_v61 = vld [vmem:[#allocation45_spill] sm:$0xff] }
 0x1a7   : > { %v11697_v35 = vsel %vm707_vm2, %v16762_v59, %v16761_v44  ;;  %v16764_v39 = vmov %v16762_v59  ;;  %v2799_v26 = vmul.f32 %v11689_v38, %v16634_v11  ;;  %v2800_v4 = vmul.f32 %v11689_v38, %v16635_v33  ;;  %v16779_v44 = vld [vmem:[#allocation127_spill] sm:$0xff] }
 0x1a8   : > { %16763 = vst [vmem:[#allocation50_spill] sm:$0xff] %v11697_v35  ;;  %v11704_v22 = vsel %vm707_vm2, %v16511_v12, %v16764_v39  ;;  %16767 = vst [vmem:[#allocation49_spill] sm:$0xff] %v11708_v56  ;;  %v2801_v8 = vmul.f32 %v11689_v38, %v16636_v50  ;;  %v2802_v27 = vmul.f32 %v11689_v38, %v16772_v5  ;;  %v16780_v39 = vld [vmem:[#allocation155_spill] sm:$0xff] }
 0x1a9   : > { %16765 = vst [vmem:[#allocation47_spill] sm:$0xff] %v11704_v22  ;;  %16769 = vst [vmem:[#allocation162_spill] sm:$0xff] %v11714_v51  ;;  %v2803_v42 = vmul.f32 %v11689_v38, %v16773_v55  ;;  %v2804_v24 = vmul.f32 %v11689_v38, %v16774_v40  ;;  %v2805_v43 = vmul.f32 %v11689_v38, %v16775_v14 }
 0x1aa   : > { %16771 = vst [vmem:[#allocation163_spill] sm:$0xff] %v11722_v2  ;;  %v2806_v11 = vmul.f32 %v11689_v38, %v16776_v31  ;;  %v2807_v49 = vmul.f32 %v11689_v38, %v16777_v58  ;;  %v2808_v60 = vmul.f32 %v11689_v38, %v16778_v54  ;;  %v2809_v59 = vmul.f32 %v11689_v38, %v16779_v44 }
 0x1ab   : > { %v2810_v23 = vmul.f32 %v11689_v38, %v16780_v39  ;;  %v2811_v45 = vmul.f32 %v11689_v38, %v16781_v61  ;;  %v2812_v9 = vmul.f32 %v11689_v38, %v11704_v22  ;;  %v2813_v47 = vmul.f32 %v11689_v38, %v11697_v35  ;;  %v16782_v38 = vld [vmem:[#allocation131_spill] sm:$0xff] }
 0x1ac   : > { %v2814_v46 = vadd.f32 %v2798_v53, %v2738_v37  ;;  %v2815_v52 = vadd.f32 %v2799_v26, %v2739_v18  ;;  %v2816_v58 = vadd.f32 %v2800_v4, %v2740_v13  ;;  %v2817_v31 = vadd.f32 %v2801_v8, %v2741_v21  ;;  %v16783_v18 = vld [vmem:[#allocation132_spill] sm:$0xff]  ;;  %v16794_v4 = vld [vmem:[#allocation143_spill] sm:$0xff] }
 0x1ad   : > { %v2818_v54 = vadd.f32 %v2802_v27, %v2742_v6  ;;  %v2819_v14 = vadd.f32 %v2803_v42, %v2743_v17  ;;  %v2820_v40 = vadd.f32 %v2804_v24, %v2744_v57  ;;  %v2821_v44 = vadd.f32 %v2805_v43, %v2745_v20  ;;  %v16784_v17 = vld [vmem:[#allocation133_spill] sm:$0xff]  ;;  %v16785_v20 = vld [vmem:[#allocation134_spill] sm:$0xff]  ;;  %v11775_v53 = vld [vmem:[%s9980_s19 + $0x60] sm:$0xff] }
 0x1ae   : > { %v2822_v55 = vadd.f32 %v2806_v11, %v2746_v32  ;;  %v2823_v5 = vadd.f32 %v2807_v49, %v2747_v3  ;;  %v2824_v39 = vadd.f32 %v2808_v60, %v2748_v10  ;;  %v2825_v50 = vadd.f32 %v2809_v59, %v2749_v16  ;;  %v16786_v10 = vld [vmem:[#allocation135_spill] sm:$0xff]  ;;  %v16788_v32 = vld [vmem:[#allocation137_spill] sm:$0xff]  ;;  %16792 = vst [vmem:[#allocation131_spill] sm:$0xff] %v11775_v53  ;;  %v16795_v27 = vld [vmem:[#allocation144_spill] sm:$0xff] }
 0x1af   : > { %v2826_v61 = vadd.f32 %v2810_v23, %v2750_v0  ;;  %v2827_v33 = vadd.f32 %v2811_v45, %v2751_v41  ;;  %v2828_v22 = vadd.f32 %v2812_v9, %v2752_v19  ;;  %v2829_v12 = vadd.f32 %v2813_v47, %v2753_v48  ;;  %v16787_v0 = vld [vmem:[#allocation136_spill] sm:$0xff]  ;;  %v16790_v19 = vld [vmem:[#allocation59_spill] sm:$0xff]  ;;  %v16791_v45 = vld [vmem:[#allocation61_spill] sm:$0xff] }
 0x1b0   : > { %v2834_v37 = vmul.f32 %v16782_v38, %v11708_v56  ;;  %v2835_v13 = vmul.f32 %v16783_v18, %v11708_v56  ;;  %v2836_v57 = vmul.f32 %v16784_v17, %v11708_v56  ;;  %v2837_v3 = vmul.f32 %v16785_v20, %v11708_v56  ;;  %v16789_v38 = vld [vmem:[#allocation138_spill] sm:$0xff]  ;;  %v11780_v47 = vld [vmem:[%s9980_s19 + $0x68] sm:$0xff] }
 0x1b1   : > { %v2838_v16 = vmul.f32 %v16786_v10, %v11708_v56  ;;  %v2839_v41 = vmul.f32 %v16787_v0, %v11708_v56  ;;  %v2840_v21 = vmul.f32 %v16788_v32, %v11708_v56  ;;  %v2841_v6 = vmul.f32 %v16789_v38, %v11708_v56  ;;  %16793 = vst [vmem:[#allocation132_spill] sm:$0xff] %v11780_v47 }
 0x1b2   : > { %v2842_v48 = vmul.f32 %v16790_v19, %v11708_v56  ;;  %v2843_v9 = vmul.f32 %v16791_v45, %v11708_v56  ;;  %v2844_v23 = vmul.f32 %v11775_v53, %v11708_v56  ;;  %v2845_v26 = vmul.f32 %v11780_v47, %v11708_v56  ;;  %v16796_v19 = vld [vmem:[#allocation23_spill] sm:$0xff] }
 0x1b3   : > { %v2846_v8 = vmul.f32 %v11708_v56, %v16794_v4  ;;  %v2847_v42 = vmul.f32 %v11708_v56, %v16795_v27  ;;  %v2848_v24 = vmul.f32 %v11708_v56, %v11484_v36  ;;  %v2849_v43 = vmul.f32 %v11708_v56, %v11487_v29 }
 0x1b4   : > { %v2850_v11 = vadd.f32 %v2834_v37, %v2814_v46  ;;  %v2851_v49 = vadd.f32 %v2835_v13, %v2815_v52  ;;  %v2852_v60 = vadd.f32 %v2836_v57, %v2816_v58  ;;  %v2853_v59 = vadd.f32 %v2837_v3, %v2817_v31  ;;  %v16806_v31 = vld [vmem:[#allocation77_spill] sm:$0xff]  ;;  %v16809_v13 = vld [vmem:[#allocation75_spill] sm:$0xff] }
 0x1b5   : > { %v2854_v18 = vadd.f32 %v2838_v16, %v2818_v54  ;;  %v2855_v17 = vadd.f32 %v2839_v41, %v2819_v14  ;;  %v2856_v20 = vadd.f32 %v2840_v21, %v2820_v40  ;;  %v2857_v10 = vadd.f32 %v2841_v6, %v2821_v44  ;;  %v16805_v14 = vld [vmem:[#allocation78_spill] sm:$0xff]  ;;  %v16807_v54 = vld [vmem:[#allocation71_spill] sm:$0xff]  ;;  %v16810_v3 = vld [vmem:[#allocation113_spill] sm:$0xff] }
 0x1b6   : > { %v2858_v0 = vadd.f32 %v2842_v48, %v2822_v55  ;;  %v2859_v32 = vadd.f32 %v2843_v9, %v2823_v5  ;;  %v2860_v38 = vadd.f32 %v2844_v23, %v2824_v39  ;;  %v2861_v4 = vadd.f32 %v2845_v26, %v2825_v50  ;;  %v16802_v50 = vld [vmem:[#allocation73_spill] sm:$0xff]  ;;  %v16808_v39 = vld [vmem:[#allocation76_spill] sm:$0xff]  ;;  %v16813_v9 = vld [vmem:[#allocation139_spill] sm:$0xff] }
 0x1b7   : > { %v2862_v47 = vadd.f32 %v2846_v8, %v2826_v61  ;;  %v2863_v27 = vadd.f32 %v2847_v42, %v2827_v33  ;;  %v2864_v53 = vadd.f32 %v2848_v24, %v2828_v22  ;;  %v2865_v45 = vadd.f32 %v2849_v43, %v2829_v12  ;;  %v16803_v22 = vld [vmem:[#allocation69_spill] sm:$0xff]  ;;  %v16804_v61 = vld [vmem:[#allocation72_spill] sm:$0xff] }
 0x1b8   : > { %v16797_v35 = vrot.slane %v11487_v29, 1  ;;  %v16800_v40 = vrot.slane %v11484_v36, 1  ;;  %v2910_v33 = vmul.f32 %v11714_v51, %v16802_v50  ;;  %v2911_v12 = vmul.f32 %v11714_v51, %v16803_v22  ;;  %v16811_v41 = vld [vmem:[#allocation112_spill] sm:$0xff] }
 0x1b9   : > { %v2912_v55 = vmul.f32 %v11714_v51, %v16804_v61  ;;  %v2914_v58 = vmul.f32 %v11714_v51, %v16806_v31  ;;  %v2915_v44 = vmul.f32 %v11714_v51, %v16807_v54  ;;  %v2916_v37 = vmul.f32 %v11714_v51, %v16808_v39  ;;  %v16812_v6 = vld [vmem:[#allocation140_spill] sm:$0xff] }
 0x1ba   : > { %v11797_v52 = vsel %vm820_vm3, %v16797_v35, %v16796_v19  ;;  %v16799_v46 = vmov %v16797_v35  ;;  %v2913_v35 = vmul.f32 %v11714_v51, %v16805_v14  ;;  %v2917_v57 = vmul.f32 %v11714_v51, %v16809_v13  ;;  %v16814_v26 = vld [vmem:[#allocation156_spill] sm:$0xff] }
 0x1bb   : > { %16798 = vst [vmem:[#allocation133_spill] sm:$0xff] %v11797_v52  ;;  %v11805_v5 = vsel %vm820_vm3, %v16800_v40, %v16799_v46  ;;  %v2918_v16 = vmul.f32 %v11714_v51, %v16810_v3  ;;  %v2919_v21 = vmul.f32 %v11714_v51, %v16811_v41  ;;  %v2920_v48 = vmul.f32 %v11714_v51, %v16812_v6  ;;  %v16815_v42 = vld [vmem:[#allocation60_spill] sm:$0xff] }
 0x1bc   : > { %16801 = vst [vmem:[#allocation134_spill] sm:$0xff] %v11805_v5  ;;  %v2921_v23 = vmul.f32 %v11714_v51, %v16813_v9  ;;  %v2922_v8 = vmul.f32 %v11714_v51, %v16814_v26  ;;  %v2923_v24 = vmul.f32 %v11714_v51, %v16815_v42  ;;  %v2924_v43 = vmul.f32 %v11714_v51, %v11805_v5  ;;  %v16816_v5 = vld [vmem:[#allocation25_spill] sm:$0xff] }
 0x1bd   : > { %v2925_v46 = vmul.f32 %v11714_v51, %v11797_v52  ;;  %v2926_v40 = vadd.f32 %v2910_v33, %v2850_v11  ;;  %v2927_v50 = vadd.f32 %v2911_v12, %v2851_v49  ;;  %v2928_v22 = vadd.f32 %v2912_v55, %v2852_v60  ;;  %v16829_v12 = vld [vmem:[#allocation87_spill] sm:$0xff] }
 0x1be   : > { %v2929_v56 = vadd.f32 %v2913_v35, %v2853_v59  ;;  %v2930_v6 = vadd.f32 %v2914_v58, %v2854_v18  ;;  %v2931_v41 = vadd.f32 %v2915_v44, %v2855_v17  ;;  %v2932_v3 = vadd.f32 %v2916_v37, %v2856_v20  ;;  %v16822_v18 = vld [vmem:[#allocation81_spill] sm:$0xff]  ;;  %v16830_v35 = vld [vmem:[#allocation116_spill] sm:$0xff]  ;;  %v16831_v44 = vld [vmem:[#allocation115_spill] sm:$0xff] }
 0x1bf   : > { %v2933_v9 = vadd.f32 %v2917_v57, %v2857_v10  ;;  %v2934_v13 = vadd.f32 %v2918_v16, %v2858_v0  ;;  %v2935_v39 = vadd.f32 %v2919_v21, %v2859_v32  ;;  %v2936_v26 = vadd.f32 %v2920_v48, %v2860_v38  ;;  %v16824_v17 = vld [vmem:[#allocation85_spill] sm:$0xff]  ;;  %v16825_v10 = vld [vmem:[#allocation84_spill] sm:$0xff]  ;;  %v16827_v38 = vld [vmem:[#allocation83_spill] sm:$0xff] }
 0x1c0   : > { %v2937_v54 = vadd.f32 %v2921_v23, %v2861_v4  ;;  %v2938_v31 = vadd.f32 %v2922_v8, %v2862_v47  ;;  %v2939_v42 = vadd.f32 %v2923_v24, %v2863_v27  ;;  %v2940_v14 = vadd.f32 %v2924_v43, %v2864_v53  ;;  %v16823_v53 = vld [vmem:[#allocation86_spill] sm:$0xff]  ;;  %v16826_v0 = vld [vmem:[#allocation88_spill] sm:$0xff]  ;;  %v16828_v27 = vld [vmem:[#allocation89_spill] sm:$0xff] }
 0x1c1   : > { %v2941_v61 = vadd.f32 %v2925_v46, %v2865_v45  ;;  %v16817_v19 = vrot.slane %v11487_v29, 2  ;;  %v16820_v60 = vrot.slane %v11484_v36, 2  ;;  %v2986_v47 = vmul.f32 %v11722_v2, %v16822_v18  ;;  %v16832_v57 = vld [vmem:[#allocation142_spill] sm:$0xff]  ;;  %v16833_v21 = vld [vmem:[#allocation141_spill] sm:$0xff]  ;;  %v16834_v23 = vld [vmem:[#allocation159_spill] sm:$0xff] }
 0x1c2   : > { %v2987_v45 = vmul.f32 %v11722_v2, %v16823_v53  ;;  %v2988_v20 = vmul.f32 %v11722_v2, %v16824_v17  ;;  %v2990_v32 = vmul.f32 %v11722_v2, %v16826_v0  ;;  %v2991_v4 = vmul.f32 %v11722_v2, %v16827_v38  ;;  %v16835_v24 = vld [vmem:[#allocation157_spill] sm:$0xff]  ;;  %v16838_v0 = vld [vmem:[#allocation28_spill] sm:$0xff] }
 0x1c3   : > { %v11844_v11 = vsel %vm897_vm4, %v16817_v19, %v16816_v5  ;;  %v16819_v49 = vmov %v16817_v19  ;;  %v2989_v19 = vmul.f32 %v11722_v2, %v16825_v10  ;;  %v2992_v33 = vmul.f32 %v11722_v2, %v16828_v27 }
 0x1c4   : > { %16818 = vst [vmem:[#allocation135_spill] sm:$0xff] %v11844_v11  ;;  %v11852_v59 = vsel %vm897_vm4, %v16820_v60, %v16819_v49  ;;  %v2993_v55 = vmul.f32 %v11722_v2, %v16829_v12  ;;  %v2994_v58 = vmul.f32 %v11722_v2, %v16830_v35  ;;  %v2995_v37 = vmul.f32 %v11722_v2, %v16831_v44  ;;  %v11887_v44 = vld [vmem:[%s9980_s19 + $0x90] sm:$0xff] }
 0x1c5   : > { %16821 = vst [vmem:[#allocation136_spill] sm:$0xff] %v11852_v59  ;;  %v2996_v16 = vmul.f32 %v11722_v2, %v16832_v57  ;;  %v2997_v48 = vmul.f32 %v11722_v2, %v16833_v21  ;;  %v2998_v8 = vmul.f32 %v11722_v2, %v16834_v23  ;;  %v2999_v43 = vmul.f32 %v11722_v2, %v16835_v24  ;;  %v11890_v21 = vld [vmem:[%s9980_s19 + $0x98] sm:$0xff] }
 0x1c6   : > { %v3000_v46 = vmul.f32 %v11722_v2, %v11852_v59  ;;  %v3001_v49 = vmul.f32 %v11722_v2, %v11844_v11  ;;  %v3002_v60 = vadd.f32 %v2986_v47, %v2926_v40  ;;  %v3003_v18 = vadd.f32 %v2987_v45, %v2927_v50  ;;  %16836 = vst [vmem:[#allocation137_spill] sm:$0xff] %v11887_v44  ;;  %v16856_v2 = vld [vmem:[#allocation146_spill] sm:$0xff] }
 0x1c7   : > { %v3004_v53 = vadd.f32 %v2988_v20, %v2928_v22  ;;  %v3005_v51 = vadd.f32 %v2989_v19, %v2929_v56  ;;  %v3006_v57 = vadd.f32 %v2990_v32, %v2930_v6  ;;  %16837 = vst [vmem:[#allocation138_spill] sm:$0xff] %v11890_v21  ;;  %v3007_v35 = vadd.f32 %v2991_v4, %v2931_v41  ;;  %v16847_v32 = vld [vmem:[#allocation92_spill] sm:$0xff] }
 0x1c8   : > { %v3008_v23 = vadd.f32 %v2992_v33, %v2932_v3  ;;  %v3009_v12 = vadd.f32 %v2993_v55, %v2933_v9  ;;  %v3010_v27 = vadd.f32 %v2994_v58, %v2934_v13  ;;  %v3011_v24 = vadd.f32 %v2995_v37, %v2935_v39  ;;  %v16840_v13 = vld [vmem:[#allocation26_spill] sm:$0xff]  ;;  %v16842_v9 = vld [vmem:[#allocation29_spill] sm:$0xff]  ;;  %v16848_v33 = vld [vmem:[#allocation99_spill] sm:$0xff] }
 0x1c9   : > { %v3039_v38 = vrot.slane %v11484_v36, 3  ;;  %v3040_v59 = vrot.slane %v11487_v29, 3  ;;  %v11896_v40 = vrot.slane %v11685_v15, %v16838_v0  ;;  %v3012_v50 = vadd.f32 %v2996_v16, %v2936_v26  ;;  %v16849_v58 = vld [vmem:[#allocation98_spill] sm:$0xff]  ;;  %v16850_v16 = vld [vmem:[#allocation97_spill] sm:$0xff]  ;;  %v16855_v26 = vld [vmem:[#allocation147_spill] sm:$0xff] }
 0x1ca   : > { %v3013_v56 = vadd.f32 %v2997_v48, %v2937_v54  ;;  %v3014_v6 = vadd.f32 %v2998_v8, %v2938_v31  ;;  %v3015_v22 = vadd.f32 %v2999_v43, %v2939_v42  ;;  %v3016_v47 = vadd.f32 %v3000_v46, %v2940_v14  ;;  %v16845_v14 = vld [vmem:[#allocation94_spill] sm:$0xff]  ;;  %v16846_v42 = vld [vmem:[#allocation93_spill] sm:$0xff]  ;;  %v16852_v8 = vld [vmem:[#allocation96_spill] sm:$0xff] }
 0x1cb   : > { %16839 = vst [vmem:[#allocation143_spill] sm:$0xff] %v11896_v40  ;;  %v3017_v45 = vadd.f32 %v3001_v49, %v2941_v61  ;;  %v3140_v41 = vrot.slane %v11887_v44, 5  ;;  %v3141_v3 = vrot.slane %v11890_v21, 5  ;;  %v11903_v39 = vsel %vm974_vm5, %v3040_v59, %v16840_v13  ;;  %v16853_v46 = vld [vmem:[#allocation119_spill] sm:$0xff] }
 0x1cc   : > { %16841 = vst [vmem:[#allocation144_spill] sm:$0xff] %v11903_v39  ;;  %v11907_v20 = vrot.slane %v11685_v15, %v16842_v9  ;;  %v11913_v61 = vsel %vm974_vm5, %v3039_v38, %v3040_v59  ;;  %v3062_v54 = vmul.f32 %v11896_v40, %v16845_v14  ;;  %v3063_v19 = vmul.f32 %v11896_v40, %v16846_v42  ;;  %v16851_v59 = vld [vmem:[#allocation100_spill] sm:$0xff]  ;;  %v16854_v14 = vld [vmem:[#allocation118_spill] sm:$0xff] }
 0x1cd   : > { %16844 = vst [vmem:[#allocation69_spill] sm:$0xff] %v11913_v61  ;;  %v3064_v4 = vmul.f32 %v11896_v40, %v16847_v32  ;;  %v3065_v55 = vmul.f32 %v11896_v40, %v16848_v33  ;;  %v3066_v37 = vmul.f32 %v11896_v40, %v16849_v58  ;;  %v3067_v48 = vmul.f32 %v11896_v40, %v16850_v16  ;;  %v16857_v33 = vld [vmem:[#allocation82_spill] sm:$0xff]  ;;  %v16858_v32 = vld [vmem:[#allocation80_spill] sm:$0xff] }
 0x1ce   : > { %16843 = vst [vmem:[#allocation73_spill] sm:$0xff] %v11907_v20  ;;  %v3068_v38 = vmul.f32 %v11896_v40, %v16851_v59  ;;  %v3069_v43 = vmul.f32 %v11896_v40, %v16852_v8  ;;  %v3070_v49 = vmul.f32 %v11896_v40, %v16853_v46  ;;  %v3071_v42 = vmul.f32 %v11896_v40, %v16854_v14 }
 0x1cf   : > { %v3072_v31 = vmul.f32 %v11896_v40, %v16855_v26  ;;  %v3073_v58 = vmul.f32 %v11896_v40, %v16856_v2  ;;  %v3074_v16 = vmul.f32 %v11896_v40, %v16857_v33  ;;  %v3075_v59 = vmul.f32 %v11896_v40, %v16858_v32 }
 0x1d0   : > { %v3076_v8 = vmul.f32 %v11896_v40, %v11913_v61  ;;  %v3077_v46 = vmul.f32 %v11896_v40, %v11903_v39  ;;  %v3078_v9 = vadd.f32 %v3062_v54, %v3002_v60  ;;  %v3079_v14 = vadd.f32 %v3063_v19, %v3003_v18  ;;  %v16860_v60 = vld [vmem:[#allocation20_spill] sm:$0xff]  ;;  %v16865_v18 = vld [vmem:[#allocation39_spill] sm:$0xff]  ;;  %v16871_v19 = vld [vmem:[#allocation121_spill] sm:$0xff] }
 0x1d1   : > { %v3080_v13 = vadd.f32 %v3064_v4, %v3004_v53  ;;  %v3081_v0 = vadd.f32 %v3065_v55, %v3005_v51  ;;  %v3082_v26 = vadd.f32 %v3066_v37, %v3006_v57  ;;  %v3083_v11 = vadd.f32 %v3067_v48, %v3007_v35  ;;  %v16862_v35 = vld [vmem:[#allocation35_spill] sm:$0xff]  ;;  %v16872_v55 = vld [vmem:[#allocation150_spill] sm:$0xff]  ;;  %v16873_v37 = vld [vmem:[#allocation149_spill] sm:$0xff] }
 0x1d2   : > { %v3084_v10 = vadd.f32 %v3068_v38, %v3008_v23  ;;  %v3085_v2 = vadd.f32 %v3069_v43, %v3009_v12  ;;  %v3086_v17 = vadd.f32 %v3070_v49, %v3010_v27  ;;  %v3087_v5 = vadd.f32 %v3071_v42, %v3011_v24  ;;  %v16863_v27 = vld [vmem:[#allocation34_spill] sm:$0xff]  ;;  %v16864_v23 = vld [vmem:[#allocation40_spill] sm:$0xff] }
 0x1d3   : > { %v3088_v33 = vadd.f32 %v3072_v31, %v3012_v50  ;;  %v3089_v52 = vadd.f32 %v3073_v58, %v3013_v56  ;;  %v3090_v29 = vadd.f32 %v3074_v16, %v3014_v6  ;;  %v3091_v32 = vadd.f32 %v3075_v59, %v3015_v22  ;;  %v16866_v50 = vld [vmem:[#allocation38_spill] sm:$0xff]  ;;  %v16874_v48 = vld [vmem:[#allocation160_spill] sm:$0xff] }
 0x1d4   : > { %v3092_v36 = vadd.f32 %v3076_v8, %v3016_v47  ;;  %v3093_v62 = vadd.f32 %v3077_v46, %v3017_v45  ;;  %v11949_v61 = vsel %vm553_vm0, %v3140_v41, %v3141_v3  ;;  %v11954_v51 = vsel %vm553_vm0, %v16860_v60, %v3140_v41  ;;  %v16867_v6 = vld [vmem:[#allocation42_spill] sm:$0xff]  ;;  %v16868_v47 = vld [vmem:[#allocation103_spill] sm:$0xff] }
 0x1d5   : > { %16859 = vst [vmem:[#allocation81_spill] sm:$0xff] %v11949_v61  ;;  %16861 = vst [vmem:[#allocation86_spill] sm:$0xff] %v11954_v51  ;;  %v3163_v12 = vmul.f32 %v11907_v20, %v16862_v35  ;;  %v3164_v57 = vmul.f32 %v11907_v20, %v16863_v27  ;;  %v3165_v24 = vmul.f32 %v11907_v20, %v16864_v23  ;;  %v16869_v41 = vld [vmem:[#allocation102_spill] sm:$0xff] }
 0x1d6   : > { %v3166_v53 = vmul.f32 %v11907_v20, %v16865_v18  ;;  %v3167_v56 = vmul.f32 %v11907_v20, %v16866_v50  ;;  %v3168_v22 = vmul.f32 %v11907_v20, %v16867_v6  ;;  %v3169_v45 = vmul.f32 %v11907_v20, %v16868_v47  ;;  %v16870_v31 = vld [vmem:[#allocation122_spill] sm:$0xff] }
 0x1d7   : > { %v3170_v3 = vmul.f32 %v11907_v20, %v16869_v41  ;;  %v3171_v54 = vmul.f32 %v11907_v20, %v16870_v31  ;;  %v3172_v4 = vmul.f32 %v11907_v20, %v16871_v19  ;;  %v3173_v58 = vmul.f32 %v11907_v20, %v16872_v55  ;;  %v16875_v19 = vld [vmem:[#allocation30_spill] sm:$0xff] }
 0x1d8   : > { %v3174_v16 = vmul.f32 %v11907_v20, %v16873_v37  ;;  %v3175_v59 = vmul.f32 %v11907_v20, %v16874_v48  ;;  %v3176_v38 = vmul.f32 %v11907_v20, %v11595_v30  ;;  %v3177_v8 = vmul.f32 %v11907_v20, %v11954_v51 }
 0x1d9   : > { %v3178_v43 = vmul.f32 %v11907_v20, %v11949_v61  ;;  %v3179_v46 = vadd.f32 %v3163_v12, %v3078_v9  ;;  %v3180_v49 = vadd.f32 %v3164_v57, %v3079_v14  ;;  %v3181_v42 = vadd.f32 %v3165_v24, %v3080_v13  ;;  %v16887_v57 = vld [vmem:[#allocation54_spill] sm:$0xff] }
 0x1da   : > { %v3182_v35 = vadd.f32 %v3166_v53, %v3081_v0  ;;  %v3183_v27 = vadd.f32 %v3167_v56, %v3082_v26  ;;  %v3184_v40 = vadd.f32 %v3168_v22, %v3083_v11  ;;  %v3185_v55 = vadd.f32 %v3169_v45, %v3084_v10  ;;  %v16888_v53 = vld [vmem:[#allocation106_spill] sm:$0xff]  ;;  %v16889_v22 = vld [vmem:[#allocation105_spill] sm:$0xff] }
 0x1db   : > { %v3186_v37 = vadd.f32 %v3170_v3, %v3085_v2  ;;  %v11990_v48 = vrot.slane %v11685_v15, %v16875_v19  ;;  %v3187_v31 = vadd.f32 %v3171_v54, %v3086_v17  ;;  %v3188_v30 = vadd.f32 %v3172_v4, %v3087_v5  ;;  %v16890_v3 = vld [vmem:[#allocation125_spill] sm:$0xff]  ;;  %v16891_v54 = vld [vmem:[#allocation124_spill] sm:$0xff] }
 0x1dc   : > { %v3189_v41 = vadd.f32 %v3173_v58, %v3088_v33  ;;  %v3190_v47 = vadd.f32 %v3174_v16, %v3089_v52  ;;  %v3191_v51 = vadd.f32 %v3175_v59, %v3090_v29  ;;  %v3192_v6 = vadd.f32 %v3176_v38, %v3091_v32  ;;  %v16882_v52 = vld [vmem:[#allocation31_spill] sm:$0xff]  ;;  %v16885_v33 = vld [vmem:[#allocation46_spill] sm:$0xff]  ;;  %v16892_v58 = vld [vmem:[#allocation152_spill] sm:$0xff] }
 0x1dd   : > { %16876 = vst [vmem:[#allocation94_spill] sm:$0xff] %v11990_v48  ;;  %v3193_v50 = vadd.f32 %v3177_v8, %v3092_v36  ;;  %v3194_v20 = vadd.f32 %v3178_v43, %v3093_v62  ;;  %v16877_v9 = vrot.slane %v11890_v21, 6  ;;  %v16878_v0 = vrot.slane %v11887_v44, 6  ;;  %v16893_v59 = vld [vmem:[#allocation151_spill] sm:$0xff]  ;;  %v16894_v8 = vld [vmem:[#allocation161_spill] sm:$0xff] }
 0x1de   : > { %v3292_v29 = vrot.slane %v11887_v44, 7  ;;  %v3293_v36 = vrot.slane %v11890_v21, 7  ;;  %v3239_v62 = vmul.f32 %v11990_v48, %v16748_v63  ;;  %v12013_v17 = vrot.slane %v11685_v15, %v16882_v52  ;;  %v16886_v63 = vld [vmem:[#allocation55_spill] sm:$0xff] }
 0x1df   : > { %v11998_v11 = vsel %vm630_vm1, %v16878_v0, %v16877_v9  ;;  %v16880_v2 = vmov %v16878_v0  ;;  %v12017_v10 = vrot.slane %v11685_v15, %v16759_v7  ;;  %v3240_v26 = vmul.f32 %v11990_v48, %v16749_v34  ;;  %v16895_v9 = vld [vmem:[#allocation36_spill] sm:$0xff] }
 0x1e0   : > { %16879 = vst [vmem:[#allocation93_spill] sm:$0xff] %v11998_v11  ;;  %v12005_v5 = vsel %vm630_vm1, %v16744_v25, %v16880_v2  ;;  %16883 = vst [vmem:[#allocation34_spill] sm:$0xff] %v12013_v17  ;;  %v3241_v32 = vmul.f32 %v11990_v48, %v16750_v28  ;;  %v3242_v14 = vmul.f32 %v11990_v48, %v16885_v33 }
 0x1e1   : > { %16881 = vst [vmem:[#allocation35_spill] sm:$0xff] %v12005_v5  ;;  %16884 = vst [vmem:[#allocation40_spill] sm:$0xff] %v12017_v10  ;;  %v3243_v12 = vmul.f32 %v11990_v48, %v16886_v63  ;;  %v3244_v24 = vmul.f32 %v11990_v48, %v16887_v57  ;;  %v3245_v56 = vmul.f32 %v11990_v48, %v16888_v53 }
 0x1e2   : > { %v3246_v45 = vmul.f32 %v11990_v48, %v16889_v22  ;;  %v3247_v34 = vmul.f32 %v11990_v48, %v16890_v3  ;;  %v3248_v4 = vmul.f32 %v11990_v48, %v16891_v54  ;;  %v3249_v16 = vmul.f32 %v11990_v48, %v16892_v58 }
 0x1e3   : > { %v3250_v38 = vmul.f32 %v11990_v48, %v16893_v59  ;;  %v3251_v43 = vmul.f32 %v11990_v48, %v16894_v8  ;;  %v3252_v0 = vmul.f32 %v11990_v48, %v16895_v9  ;;  %v3253_v2 = vmul.f32 %v11990_v48, %v12005_v5 }
 0x1e4   : > { %v3254_v13 = vmul.f32 %v11990_v48, %v11998_v11  ;;  %v3255_v7 = vadd.f32 %v3239_v62, %v3179_v46  ;;  %v3256_v52 = vadd.f32 %v3240_v26, %v3180_v49  ;;  %v3257_v19 = vadd.f32 %v3241_v32, %v3181_v42  ;;  %v16897_v46 = vld [vmem:[#allocation22_spill] sm:$0xff]  ;;  %v16907_v62 = vld [vmem:[#allocation128_spill] sm:$0xff]  ;;  %v16908_v26 = vld [vmem:[#allocation127_spill] sm:$0xff] }
 0x1e5   : > { %v3258_v54 = vadd.f32 %v3242_v14, %v3182_v35  ;;  %v3259_v58 = vadd.f32 %v3243_v12, %v3183_v27  ;;  %v3260_v3 = vadd.f32 %v3244_v24, %v3184_v40  ;;  %v3261_v22 = vadd.f32 %v3245_v56, %v3185_v55  ;;  %v16899_v40 = vld [vmem:[#allocation58_spill] sm:$0xff]  ;;  %v16905_v35 = vld [vmem:[#allocation109_spill] sm:$0xff]  ;;  %v16909_v14 = vld [vmem:[#allocation155_spill] sm:$0xff] }
 0x1e6   : > { %v3262_v59 = vadd.f32 %v3246_v45, %v3186_v37  ;;  %v3263_v53 = vadd.f32 %v3247_v34, %v3187_v31  ;;  %v3264_v57 = vadd.f32 %v3248_v4, %v3188_v30  ;;  %v3265_v8 = vadd.f32 %v3249_v16, %v3189_v41  ;;  %v16900_v31 = vld [vmem:[#allocation64_spill] sm:$0xff]  ;;  %v16904_v37 = vld [vmem:[#allocation62_spill] sm:$0xff]  ;;  %v16910_v24 = vld [vmem:[#allocation45_spill] sm:$0xff] }
 0x1e7   : > { %v3266_v63 = vadd.f32 %v3250_v38, %v3190_v47  ;;  %v3267_v33 = vadd.f32 %v3251_v43, %v3191_v51  ;;  %v3268_v9 = vadd.f32 %v3252_v0, %v3192_v6  ;;  %v3269_v28 = vadd.f32 %v3253_v2, %v3193_v50  ;;  %v16901_v47 = vld [vmem:[#allocation66_spill] sm:$0xff]  ;;  %v16902_v50 = vld [vmem:[#allocation65_spill] sm:$0xff]  ;;  %v16903_v6 = vld [vmem:[#allocation63_spill] sm:$0xff] }
 0x1e8   : > { %v3270_v25 = vadd.f32 %v3254_v13, %v3194_v20  ;;  %v12052_v5 = vsel %vm707_vm2, %v3292_v29, %v3293_v36  ;;  %v12057_v49 = vsel %vm707_vm2, %v16897_v46, %v3292_v29  ;;  %v3315_v55 = vmul.f32 %v12013_v17, %v16899_v40  ;;  %v16906_v29 = vld [vmem:[#allocation110_spill] sm:$0xff]  ;;  %v16911_v45 = vld [vmem:[#allocation47_spill] sm:$0xff] }
 0x1e9   : > { %16896 = vst [vmem:[#allocation39_spill] sm:$0xff] %v12052_v5  ;;  %16898 = vst [vmem:[#allocation164_spill] sm:$0xff] %v12057_v49  ;;  %v3316_v30 = vmul.f32 %v12013_v17, %v16900_v31  ;;  %v3317_v51 = vmul.f32 %v12013_v17, %v16901_v47  ;;  %v3318_v20 = vmul.f32 %v12013_v17, %v16902_v50  ;;  %v16912_v4 = vld [vmem:[#allocation50_spill] sm:$0xff] }
 0x1ea   : > { %v3319_v41 = vmul.f32 %v12013_v17, %v16903_v6  ;;  %v3320_v42 = vmul.f32 %v12013_v17, %v16904_v37  ;;  %v3321_v27 = vmul.f32 %v12013_v17, %v16905_v35  ;;  %v3322_v36 = vmul.f32 %v12013_v17, %v16906_v29 }
 0x1eb   : > { %v3323_v13 = vmul.f32 %v12013_v17, %v16907_v62  ;;  %v3324_v32 = vmul.f32 %v12013_v17, %v16908_v26  ;;  %v3325_v12 = vmul.f32 %v12013_v17, %v16909_v14  ;;  %v3326_v56 = vmul.f32 %v12013_v17, %v16910_v24 }
 0x1ec   : > { %v3327_v34 = vmul.f32 %v12013_v17, %v16911_v45  ;;  %v3328_v16 = vmul.f32 %v12013_v17, %v16912_v4  ;;  %v3329_v38 = vmul.f32 %v12013_v17, %v12057_v49  ;;  %v3330_v43 = vmul.f32 %v12013_v17, %v12052_v5 }
 0x1ed   : > { %v3331_v0 = vadd.f32 %v3315_v55, %v3255_v7  ;;  %v3332_v2 = vadd.f32 %v3316_v30, %v3256_v52  ;;  %v3333_v40 = vadd.f32 %v3317_v51, %v3257_v19  ;;  %v3334_v31 = vadd.f32 %v3318_v20, %v3258_v54  ;;  %v9485_v52 = vld [vmem:[%s9980_s19 + $0x20] sm:$0xff]  ;;  %v9486_v54 = vld [vmem:[%s9980_s19 + $0x28] sm:$0xff]  ;;  %v16919_v51 = vld [vmem:[#allocation131_spill] sm:$0xff] }
 0x1ee   : > { %v3335_v48 = vadd.f32 %v3319_v41, %v3259_v58  ;;  %v3336_v24 = vadd.f32 %v3320_v42, %v3260_v3  ;;  %v3337_v14 = vadd.f32 %v3321_v27, %v3261_v22  ;;  %v3338_v45 = vadd.f32 %v3322_v36, %v3262_v59  ;;  %v12096_v3 = vld [vmem:[%s9980_s19 + $0x30] sm:$0xff]  ;;  %v16917_v59 = vld [vmem:[#allocation59_spill] sm:$0xff]  ;;  %v16920_v41 = vld [vmem:[#allocation132_spill] sm:$0xff] }
 0x1ef   : > { %v3339_v26 = vadd.f32 %v3323_v13, %v3263_v53  ;;  %v3340_v4 = vadd.f32 %v3324_v32, %v3264_v57  ;;  %v3341_v62 = vadd.f32 %v3325_v12, %v3265_v8  ;;  %v3342_v49 = vadd.f32 %v3326_v56, %v3266_v63  ;;  %16913 = vst [vmem:[#allocation58_spill] sm:$0xff] %v12096_v3  ;;  %v12101_v53 = vld [vmem:[%s9980_s19 + $0x38] sm:$0xff]  ;;  %v12111_v63 = vld [vmem:[%s9980_s19 + $0x48] sm:$0xff]  ;;  %v12124_v27 = vld [vmem:[%s9980_s19 + $0x70] sm:$0xff] }
 0x1f0   : > { %v3343_v29 = vadd.f32 %v3327_v34, %v3267_v33  ;;  %v3344_v17 = vadd.f32 %v3328_v16, %v3268_v9  ;;  %v3345_v7 = vadd.f32 %v3329_v38, %v3269_v28  ;;  %v3346_v55 = vadd.f32 %v3330_v43, %v3270_v25  ;;  %16914 = vst [vmem:[#allocation64_spill] sm:$0xff] %v12101_v53  ;;  %v12106_v28 = vld [vmem:[%s9980_s19 + $0x40] sm:$0xff]  ;;  %v16918_v9 = vld [vmem:[#allocation61_spill] sm:$0xff]  ;;  %v12129_v13 = vld [vmem:[%s9980_s19 + $0x78] sm:$0xff] }
 0x1f1   : > { %v3351_v19 = vmul.f32 %v9485_v52, %v12017_v10  ;;  %v3352_v22 = vmul.f32 %v9486_v54, %v12017_v10  ;;  %v3353_v57 = vmul.f32 %v12096_v3, %v12017_v10  ;;  %v3354_v33 = vmul.f32 %v12101_v53, %v12017_v10  ;;  %16915 = vst [vmem:[#allocation165_spill] sm:$0xff] %v12106_v28  ;;  %v16923_v12 = vld [vmem:[#allocation70_spill] sm:$0xff] }
 0x1f2   : > { %v3355_v25 = vmul.f32 %v12106_v28, %v12017_v10  ;;  %16916 = vst [vmem:[#allocation166_spill] sm:$0xff] %v12111_v63  ;;  %v3356_v58 = vmul.f32 %v12111_v63, %v12017_v10  ;;  %v3357_v8 = vmul.f32 %v16917_v59, %v12017_v10  ;;  %v3358_v30 = vmul.f32 %v16918_v9, %v12017_v10  ;;  %v16924_v34 = vld [vmem:[#allocation74_spill] sm:$0xff] }
 0x1f3   : > { %v3359_v20 = vmul.f32 %v16919_v51, %v12017_v10  ;;  %v3360_v42 = vmul.f32 %v16920_v41, %v12017_v10  ;;  %16921 = vst [vmem:[#allocation59_spill] sm:$0xff] %v12124_v27  ;;  %v3361_v36 = vmul.f32 %v12124_v27, %v12017_v10  ;;  %16922 = vst [vmem:[#allocation61_spill] sm:$0xff] %v12129_v13  ;;  %v3405_v28 = vrot.slane %v11890_v21, 1 }
 0x1f4   : > { %v3362_v32 = vmul.f32 %v12129_v13, %v12017_v10  ;;  %v3363_v56 = vmul.f32 %v12017_v10, %v16923_v12  ;;  %v3364_v16 = vmul.f32 %v12017_v10, %v16924_v34  ;;  %v3365_v38 = vmul.f32 %v12017_v10, %v11887_v44  ;;  %v12141_v13 = vld [vmem:[#allocation7 + $0x28] sm:$0xff] }
 0x1f5   : > { %v3366_v43 = vmul.f32 %v12017_v10, %v11890_v21  ;;  %v3367_v52 = vadd.f32 %v3351_v19, %v3331_v0  ;;  %v3368_v54 = vadd.f32 %v3352_v22, %v3332_v2  ;;  %v3369_v59 = vadd.f32 %v3353_v57, %v3333_v40  ;;  %v16925_v34 = vld [vmem:[#allocation33_spill] sm:$0xff]  ;;  %v16936_v57 = vld [vmem:[#allocation71_spill] sm:$0xff] }
 0x1f6   : > { %v3370_v9 = vadd.f32 %v3354_v33, %v3334_v31  ;;  %v3371_v27 = vadd.f32 %v3355_v25, %v3335_v48  ;;  %v3372_v41 = vadd.f32 %v3356_v58, %v3336_v24  ;;  %v3373_v51 = vadd.f32 %v3357_v8, %v3337_v14  ;;  %v16927_v14 = vld [vmem:[#allocation23_spill] sm:$0xff]  ;;  %v16935_v19 = vld [vmem:[#allocation77_spill] sm:$0xff]  ;;  %v16937_v25 = vld [vmem:[#allocation76_spill] sm:$0xff] }
 0x1f7   : > { %v3374_v63 = vadd.f32 %v3358_v30, %v3338_v45  ;;  %v3375_v12 = vadd.f32 %v3359_v20, %v3339_v26  ;;  %v12146_v53 = vrot.slane %v11685_v15, %v16925_v34  ;;  %v3376_v3 = vadd.f32 %v3360_v42, %v3340_v4  ;;  %v16929_v45 = vld [vmem:[#allocation24_spill] sm:$0xff]  ;;  %v16938_v8 = vld [vmem:[#allocation75_spill] sm:$0xff] }
 0x1f8   : > { %v3377_v5 = vadd.f32 %v3361_v36, %v3341_v62  ;;  %v3378_v10 = vadd.f32 %v3362_v32, %v3342_v49  ;;  %v3379_v0 = vadd.f32 %v3363_v56, %v3343_v29  ;;  %v3380_v2 = vadd.f32 %v3364_v16, %v3344_v17  ;;  %v16933_v29 = vld [vmem:[#allocation72_spill] sm:$0xff]  ;;  %v16942_v16 = vld [vmem:[#allocation139_spill] sm:$0xff]  ;;  %v16945_v62 = vld [vmem:[#allocation134_spill] sm:$0xff] }
 0x1f9   : > { %16926 = vst [vmem:[#allocation70_spill] sm:$0xff] %v12146_v53  ;;  %v3381_v40 = vadd.f32 %v3365_v38, %v3345_v7  ;;  %v3382_v31 = vadd.f32 %v3366_v43, %v3346_v55  ;;  %v3480_v48 = vrot.slane %v11887_v44, 2  ;;  %v12152_v24 = vsel %vm820_vm3, %v3405_v28, %v16927_v14  ;;  %v16934_v7 = vld [vmem:[#allocation78_spill] sm:$0xff]  ;;  %v16940_v42 = vld [vmem:[#allocation112_spill] sm:$0xff] }
 0x1fa   : > { %16928 = vst [vmem:[#allocation74_spill] sm:$0xff] %v12152_v24  ;;  %v3481_v26 = vrot.slane %v11890_v21, 2  ;;  %v12157_v15 = vrot.slane %v12141_v13, %v16929_v45  ;;  %v16931_v49 = vrot.slane %v11887_v44, 1  ;;  %v3427_v4 = vmul.f32 %v12146_v53, %v16933_v29  ;;  %v16941_v32 = vld [vmem:[#allocation140_spill] sm:$0xff] }
 0x1fb   : > { %v3428_v55 = vmul.f32 %v12146_v53, %v16934_v7  ;;  %v3429_v22 = vmul.f32 %v12146_v53, %v16935_v19  ;;  %v3430_v33 = vmul.f32 %v12146_v53, %v16936_v57  ;;  %v3431_v58 = vmul.f32 %v12146_v53, %v16937_v25  ;;  %v16943_v43 = vld [vmem:[#allocation156_spill] sm:$0xff] }
 0x1fc   : > { %16930 = vst [vmem:[#allocation167_spill] sm:$0xff] %v12157_v15  ;;  %v12164_v17 = vsel %vm820_vm3, %v16931_v49, %v3405_v28  ;;  %v3432_v30 = vmul.f32 %v12146_v53, %v16938_v8  ;;  %v16939_v28 = vld [vmem:[#allocation113_spill] sm:$0xff]  ;;  %v3434_v36 = vmul.f32 %v12146_v53, %v16940_v42  ;;  %v3435_v56 = vmul.f32 %v12146_v53, %v16941_v32  ;;  %v16944_v29 = vld [vmem:[#allocation60_spill] sm:$0xff] }
 0x1fd   : > { %16932 = vst [vmem:[#allocation168_spill] sm:$0xff] %v12164_v17  ;;  %v3433_v20 = vmul.f32 %v12146_v53, %v16939_v28  ;;  %v3436_v38 = vmul.f32 %v12146_v53, %v16942_v16  ;;  %v3437_v49 = vmul.f32 %v12146_v53, %v16943_v43  ;;  %v3438_v7 = vmul.f32 %v12146_v53, %v16944_v29  ;;  %v16946_v8 = vld [vmem:[#allocation133_spill] sm:$0xff] }
 0x1fe   : > { %v3439_v45 = vmul.f32 %v12146_v53, %v16945_v62  ;;  %v3440_v28 = vmul.f32 %v12146_v53, %v16946_v8  ;;  %v3441_v42 = vmul.f32 %v12146_v53, %v12164_v17  ;;  %v3442_v32 = vmul.f32 %v12146_v53, %v12152_v24  ;;  %v16947_v17 = vld [vmem:[#allocation25_spill] sm:$0xff] }
 0x1ff   : > { %v3443_v25 = vadd.f32 %v3427_v4, %v3367_v52  ;;  %v3444_v16 = vadd.f32 %v3428_v55, %v3368_v54  ;;  %v3445_v14 = vadd.f32 %v3429_v22, %v3369_v59  ;;  %v3446_v34 = vadd.f32 %v3430_v33, %v3370_v9  ;;  %v16954_v59 = vld [vmem:[#allocation89_spill] sm:$0xff]  ;;  %v16960_v22 = vld [vmem:[#allocation159_spill] sm:$0xff] }
 0x200   : > { %v3447_v43 = vadd.f32 %v3431_v58, %v3371_v27  ;;  %v3448_v57 = vadd.f32 %v3432_v30, %v3372_v41  ;;  %v3449_v19 = vadd.f32 %v3433_v20, %v3373_v51  ;;  %v3450_v29 = vadd.f32 %v3434_v36, %v3374_v63  ;;  %v16950_v41 = vld [vmem:[#allocation85_spill] sm:$0xff]  ;;  %v16951_v51 = vld [vmem:[#allocation84_spill] sm:$0xff]  ;;  %v16953_v27 = vld [vmem:[#allocation83_spill] sm:$0xff] }
 0x201   : > { %v3451_v35 = vadd.f32 %v3435_v56, %v3375_v12  ;;  %v3452_v37 = vadd.f32 %v3436_v38, %v3376_v3  ;;  %v3453_v62 = vadd.f32 %v3437_v49, %v3377_v5  ;;  %v3454_v6 = vadd.f32 %v3438_v7, %v3378_v10  ;;  %v16952_v10 = vld [vmem:[#allocation88_spill] sm:$0xff]  ;;  %v16955_v12 = vld [vmem:[#allocation87_spill] sm:$0xff]  ;;  %v16959_v4 = vld [vmem:[#allocation141_spill] sm:$0xff] }
 0x202   : > { %v3455_v50 = vadd.f32 %v3439_v45, %v3379_v0  ;;  %v3456_v8 = vadd.f32 %v3440_v28, %v3380_v2  ;;  %v3457_v47 = vadd.f32 %v3441_v42, %v3381_v40  ;;  %v3458_v46 = vadd.f32 %v3442_v32, %v3382_v31  ;;  %v16956_v2 = vld [vmem:[#allocation116_spill] sm:$0xff]  ;;  %v16957_v31 = vld [vmem:[#allocation115_spill] sm:$0xff]  ;;  %v16961_v58 = vld [vmem:[#allocation157_spill] sm:$0xff] }
 0x203   : > { %v12201_v53 = vsel %vm897_vm4, %v3481_v26, %v16947_v17  ;;  %v12205_v52 = vsel %vm897_vm4, %v3480_v48, %v3481_v26  ;;  %v3503_v63 = vmul.f32 %v12157_v15, %v16950_v41  ;;  %v3504_v5 = vmul.f32 %v12157_v15, %v16951_v51  ;;  %v16958_v26 = vld [vmem:[#allocation142_spill] sm:$0xff]  ;;  %v16962_v28 = vld [vmem:[#allocation136_spill] sm:$0xff]  ;;  %v16963_v42 = vld [vmem:[#allocation135_spill] sm:$0xff] }
 0x204   : > { %16948 = vst [vmem:[#allocation72_spill] sm:$0xff] %v12201_v53  ;;  %16949 = vst [vmem:[#allocation78_spill] sm:$0xff] %v12205_v52  ;;  %v3505_v3 = vmul.f32 %v12157_v15, %v16952_v10  ;;  %v3506_v54 = vmul.f32 %v12157_v15, %v16953_v27  ;;  %v3507_v9 = vmul.f32 %v12157_v15, %v16954_v59 }
 0x205   : > { %v3508_v0 = vmul.f32 %v12157_v15, %v16955_v12  ;;  %v3509_v40 = vmul.f32 %v12157_v15, %v16956_v2  ;;  %v3510_v48 = vmul.f32 %v12157_v15, %v16957_v31  ;;  %v3511_v45 = vmul.f32 %v12157_v15, %v16958_v26  ;;  %v16964_v2 = vld [vmem:[#allocation27_spill] sm:$0xff] }
 0x206   : > { %v3512_v55 = vmul.f32 %v12157_v15, %v16959_v4  ;;  %v3513_v33 = vmul.f32 %v12157_v15, %v16960_v22  ;;  %v3514_v30 = vmul.f32 %v12157_v15, %v16961_v58  ;;  %v3515_v20 = vmul.f32 %v12157_v15, %v16962_v28  ;;  %v12240_v22 = vld [vmem:[%s9980_s19 + $0xa0] sm:$0xff]  ;;  %v12243_v58 = vld [vmem:[%s9980_s19 + $0xa8] sm:$0xff] }
 0x207   : > { %v3516_v36 = vmul.f32 %v12157_v15, %v16963_v42  ;;  %v3517_v32 = vmul.f32 %v12157_v15, %v12205_v52  ;;  %v3518_v56 = vmul.f32 %v12157_v15, %v12201_v53  ;;  %v3519_v38 = vadd.f32 %v3503_v63, %v3443_v25 }
 0x208   : > { %v3520_v49 = vadd.f32 %v3504_v5, %v3444_v16  ;;  %v3521_v7 = vadd.f32 %v3505_v3, %v3445_v14  ;;  %v3522_v41 = vadd.f32 %v3506_v54, %v3446_v34  ;;  %v3523_v51 = vadd.f32 %v3507_v9, %v3447_v43  ;;  %v16974_v5 = vld [vmem:[#allocation92_spill] sm:$0xff]  ;;  %v16975_v54 = vld [vmem:[#allocation99_spill] sm:$0xff] }
 0x209   : > { %v3524_v17 = vadd.f32 %v3508_v0, %v3448_v57  ;;  %v3525_v28 = vadd.f32 %v3509_v40, %v3449_v19  ;;  %v3526_v4 = vadd.f32 %v3510_v48, %v3450_v29  ;;  %v3527_v26 = vadd.f32 %v3511_v45, %v3451_v35  ;;  %v16966_v19 = vld [vmem:[#allocation28_spill] sm:$0xff]  ;;  %v16976_v0 = vld [vmem:[#allocation98_spill] sm:$0xff]  ;;  %v16977_v40 = vld [vmem:[#allocation97_spill] sm:$0xff] }
 0x20a   : > { %v3528_v42 = vadd.f32 %v3512_v55, %v3452_v37  ;;  %v3529_v31 = vadd.f32 %v3513_v33, %v3453_v62  ;;  %v3557_v52 = vrot.slane %v11890_v21, 3  ;;  %v12248_v15 = vrot.slane %v12141_v13, %v16964_v2  ;;  %v16968_v37 = vld [vmem:[#allocation26_spill] sm:$0xff]  ;;  %v16978_v45 = vld [vmem:[#allocation100_spill] sm:$0xff] }
 0x20b   : > { %v3530_v25 = vadd.f32 %v3514_v30, %v3454_v6  ;;  %v3531_v14 = vadd.f32 %v3515_v20, %v3455_v50  ;;  %v3532_v34 = vadd.f32 %v3516_v36, %v3456_v8  ;;  %v3533_v16 = vadd.f32 %v3517_v32, %v3457_v47  ;;  %v16970_v6 = vld [vmem:[#allocation29_spill] sm:$0xff]  ;;  %v16979_v33 = vld [vmem:[#allocation96_spill] sm:$0xff]  ;;  %v16981_v36 = vld [vmem:[#allocation118_spill] sm:$0xff] }
 0x20c   : > { %16965 = vst [vmem:[#allocation85_spill] sm:$0xff] %v12248_v15  ;;  %v3534_v43 = vadd.f32 %v3518_v56, %v3458_v46  ;;  %v3657_v63 = vrot.slane %v12240_v22, 5  ;;  %v3658_v57 = vrot.slane %v12243_v58, 5  ;;  %v12254_v35 = vrot.slane %v12141_v13, %v16966_v19  ;;  %v16982_v56 = vld [vmem:[#allocation147_spill] sm:$0xff]  ;;  %v16985_v29 = vld [vmem:[#allocation80_spill] sm:$0xff] }
 0x20d   : > { %v12259_v62 = vsel %vm974_vm5, %v3557_v52, %v16968_v37  ;;  %v12265_v46 = vrot.slane %v12141_v13, %v16970_v6  ;;  %v16972_v47 = vrot.slane %v11887_v44, 3  ;;  %v3579_v3 = vmul.f32 %v12248_v15, %v16974_v5  ;;  %v16983_v6 = vld [vmem:[#allocation146_spill] sm:$0xff]  ;;  %v16986_v37 = vld [vmem:[#allocation69_spill] sm:$0xff] }
 0x20e   : > { %16967 = vst [vmem:[#allocation84_spill] sm:$0xff] %v12254_v35  ;;  %16969 = vst [vmem:[#allocation27_spill] sm:$0xff] %v12259_v62  ;;  %v3580_v9 = vmul.f32 %v12248_v15, %v16975_v54  ;;  %v3581_v2 = vmul.f32 %v12248_v15, %v16976_v0  ;;  %v3582_v48 = vmul.f32 %v12248_v15, %v16977_v40  ;;  %v16984_v5 = vld [vmem:[#allocation82_spill] sm:$0xff] }
 0x20f   : > { %16971 = vst [vmem:[#allocation28_spill] sm:$0xff] %v12265_v46  ;;  %v12271_v8 = vsel %vm974_vm5, %v16972_v47, %v3557_v52  ;;  %v3583_v55 = vmul.f32 %v12248_v15, %v16978_v45  ;;  %v3584_v30 = vmul.f32 %v12248_v15, %v16979_v33  ;;  %v16980_v52 = vld [vmem:[#allocation119_spill] sm:$0xff]  ;;  %v3586_v32 = vmul.f32 %v12248_v15, %v16981_v36 }
 0x210   : > { %16973 = vst [vmem:[#allocation29_spill] sm:$0xff] %v12271_v8  ;;  %v3585_v20 = vmul.f32 %v12248_v15, %v16980_v52  ;;  %v3587_v19 = vmul.f32 %v12248_v15, %v16982_v56  ;;  %v3588_v47 = vmul.f32 %v12248_v15, %v16983_v6  ;;  %v3589_v54 = vmul.f32 %v12248_v15, %v16984_v5 }
 0x211   : > { %v3590_v50 = vmul.f32 %v12248_v15, %v16985_v29  ;;  %v3591_v53 = vmul.f32 %v12248_v15, %v16986_v37  ;;  %v3592_v52 = vmul.f32 %v12248_v15, %v11903_v39  ;;  %v3593_v36 = vmul.f32 %v12248_v15, %v12271_v8 }
 0x212   : > { %v3594_v56 = vmul.f32 %v12248_v15, %v12259_v62  ;;  %v3595_v33 = vadd.f32 %v3579_v3, %v3519_v38  ;;  %v3596_v6 = vadd.f32 %v3580_v9, %v3520_v49  ;;  %v3597_v45 = vadd.f32 %v3581_v2, %v3521_v7  ;;  %v16992_v7 = vld [vmem:[#allocation102_spill] sm:$0xff] }
 0x213   : > { %v3598_v40 = vadd.f32 %v3582_v48, %v3522_v41  ;;  %v3599_v5 = vadd.f32 %v3583_v55, %v3523_v51  ;;  %v3600_v12 = vadd.f32 %v3584_v30, %v3524_v17  ;;  %v3601_v0 = vadd.f32 %v3585_v20, %v3525_v28  ;;  %v16993_v51 = vld [vmem:[#allocation122_spill] sm:$0xff] }
 0x214   : > { %v3602_v29 = vadd.f32 %v3586_v32, %v3526_v4  ;;  %v3603_v24 = vadd.f32 %v3587_v19, %v3527_v26  ;;  %v3604_v59 = vadd.f32 %v3588_v47, %v3528_v42  ;;  %v3605_v37 = vadd.f32 %v3589_v54, %v3529_v31  ;;  %v16989_v26 = vld [vmem:[#allocation38_spill] sm:$0xff]  ;;  %v16991_v42 = vld [vmem:[#allocation103_spill] sm:$0xff] }
 0x215   : > { %v3606_v27 = vadd.f32 %v3590_v50, %v3530_v25  ;;  %v3607_v10 = vadd.f32 %v3591_v53, %v3531_v14  ;;  %v3608_v39 = vadd.f32 %v3592_v52, %v3532_v34  ;;  %v3609_v21 = vadd.f32 %v3593_v36, %v3533_v16  ;;  %v16990_v4 = vld [vmem:[#allocation42_spill] sm:$0xff]  ;;  %v16994_v14 = vld [vmem:[#allocation121_spill] sm:$0xff]  ;;  %v16998_v50 = vld [vmem:[#allocation95_spill] sm:$0xff] }
 0x216   : > { %v3610_v44 = vadd.f32 %v3594_v56, %v3534_v43  ;;  %v12307_v8 = vsel %vm553_vm0, %v3657_v63, %v3658_v57  ;;  %v12312_v38 = vsel %vm553_vm0, %v16860_v60, %v3657_v63  ;;  %v3680_v17 = vmul.f32 %v12254_v35, %v16864_v23  ;;  %v16995_v34 = vld [vmem:[#allocation150_spill] sm:$0xff]  ;;  %v16996_v16 = vld [vmem:[#allocation149_spill] sm:$0xff]  ;;  %v16997_v63 = vld [vmem:[#allocation160_spill] sm:$0xff] }
 0x217   : > { %16987 = vst [vmem:[#allocation92_spill] sm:$0xff] %v12307_v8  ;;  %16988 = vst [vmem:[#allocation99_spill] sm:$0xff] %v12312_v38  ;;  %v3681_v31 = vmul.f32 %v12254_v35, %v16865_v18  ;;  %v3682_v53 = vmul.f32 %v12254_v35, %v16989_v26  ;;  %v3683_v28 = vmul.f32 %v12254_v35, %v16990_v4  ;;  %v16999_v9 = vld [vmem:[#allocation86_spill] sm:$0xff] }
 0x218   : > { %v3684_v49 = vmul.f32 %v12254_v35, %v16991_v42  ;;  %v3685_v41 = vmul.f32 %v12254_v35, %v16992_v7  ;;  %v3686_v25 = vmul.f32 %v12254_v35, %v16993_v51  ;;  %v3687_v23 = vmul.f32 %v12254_v35, %v16994_v14 }
 0x219   : > { %v3688_v18 = vmul.f32 %v12254_v35, %v16995_v34  ;;  %v3689_v43 = vmul.f32 %v12254_v35, %v16996_v16  ;;  %v3690_v57 = vmul.f32 %v12254_v35, %v16997_v63  ;;  %v3691_v3 = vmul.f32 %v12254_v35, %v16998_v50 }
 0x21a   : > { %v3692_v2 = vmul.f32 %v12254_v35, %v16999_v9  ;;  %v3693_v48 = vmul.f32 %v12254_v35, %v11949_v61  ;;  %v3694_v55 = vmul.f32 %v12254_v35, %v12312_v38  ;;  %v3695_v30 = vmul.f32 %v12254_v35, %v12307_v8 }
 0x21b   : > { %v3696_v52 = vadd.f32 %v3680_v17, %v3595_v33  ;;  %v3697_v20 = vadd.f32 %v3681_v31, %v3596_v6  ;;  %v3698_v36 = vadd.f32 %v3682_v53, %v3597_v45  ;;  %v3699_v32 = vadd.f32 %v3683_v28, %v3598_v40  ;;  %v17011_v33 = vld [vmem:[#allocation105_spill] sm:$0xff]  ;;  %v17013_v17 = vld [vmem:[#allocation124_spill] sm:$0xff] }
 0x21c   : > { %v3700_v56 = vadd.f32 %v3684_v49, %v3599_v5  ;;  %v3701_v19 = vadd.f32 %v3685_v41, %v3600_v12  ;;  %v3702_v47 = vadd.f32 %v3686_v25, %v3601_v0  ;;  %v3703_v54 = vadd.f32 %v3687_v23, %v3602_v29  ;;  %v17004_v0 = vld [vmem:[#allocation21_spill] sm:$0xff]  ;;  %v17010_v29 = vld [vmem:[#allocation106_spill] sm:$0xff]  ;;  %v17014_v53 = vld [vmem:[#allocation152_spill] sm:$0xff] }
 0x21d   : > { %v3704_v26 = vadd.f32 %v3688_v18, %v3603_v24  ;;  %v3705_v4 = vadd.f32 %v3689_v43, %v3604_v59  ;;  %v3706_v15 = vadd.f32 %v3690_v57, %v3605_v37  ;;  %v3707_v9 = vadd.f32 %v3691_v3, %v3606_v27  ;;  %v17006_v27 = vld [vmem:[#allocation48_spill] sm:$0xff]  ;;  %v17009_v37 = vld [vmem:[#allocation54_spill] sm:$0xff]  ;;  %v17012_v5 = vld [vmem:[#allocation125_spill] sm:$0xff] }
 0x21e   : > { %v3708_v50 = vadd.f32 %v3692_v2, %v3607_v10  ;;  %v3709_v61 = vadd.f32 %v3693_v48, %v3608_v39  ;;  %v3710_v63 = vadd.f32 %v3694_v55, %v3609_v21  ;;  %v3711_v16 = vadd.f32 %v3695_v30, %v3610_v44  ;;  %v17007_v21 = vld [vmem:[#allocation46_spill] sm:$0xff]  ;;  %v17008_v10 = vld [vmem:[#allocation55_spill] sm:$0xff]  ;;  %v17016_v25 = vld [vmem:[#allocation161_spill] sm:$0xff] }
 0x21f   : > { %v17000_v38 = vrot.slane %v12243_v58, 6  ;;  %v17001_v35 = vrot.slane %v12240_v22, 6  ;;  %v3756_v39 = vmul.f32 %v12265_v46, %v17006_v27  ;;  %v3757_v44 = vmul.f32 %v12265_v46, %v17007_v21  ;;  %v17015_v49 = vld [vmem:[#allocation151_spill] sm:$0xff]  ;;  %v17017_v18 = vld [vmem:[#allocation36_spill] sm:$0xff] }
 0x220   : > { %v3758_v59 = vmul.f32 %v12265_v46, %v17008_v10  ;;  %v3760_v40 = vmul.f32 %v12265_v46, %v17010_v29  ;;  %v3761_v6 = vmul.f32 %v12265_v46, %v17011_v33  ;;  %v3763_v31 = vmul.f32 %v12265_v46, %v17013_v17  ;;  %v17018_v57 = vld [vmem:[#allocation35_spill] sm:$0xff] }
 0x221   : > { %v12352_v45 = vsel %vm630_vm1, %v17001_v35, %v17000_v38  ;;  %v17003_v12 = vmov %v17001_v35  ;;  %v3759_v35 = vmul.f32 %v12265_v46, %v17009_v37  ;;  %v3762_v38 = vmul.f32 %v12265_v46, %v17012_v5 }
 0x222   : > { %17002 = vst [vmem:[#allocation38_spill] sm:$0xff] %v12352_v45  ;;  %v12359_v24 = vsel %vm630_vm1, %v17004_v0, %v17003_v12  ;;  %v3764_v28 = vmul.f32 %v12265_v46, %v17014_v53  ;;  %v3765_v41 = vmul.f32 %v12265_v46, %v17015_v49  ;;  %v3766_v23 = vmul.f32 %v12265_v46, %v17016_v25  ;;  %v17019_v53 = vld [vmem:[#allocation30_spill] sm:$0xff] }
 0x223   : > { %17005 = vst [vmem:[#allocation42_spill] sm:$0xff] %v12359_v24  ;;  %v3767_v43 = vmul.f32 %v12265_v46, %v17017_v18  ;;  %v3768_v3 = vmul.f32 %v12265_v46, %v17018_v57  ;;  %v3769_v2 = vmul.f32 %v12265_v46, %v11998_v11  ;;  %v3770_v48 = vmul.f32 %v12265_v46, %v12359_v24 }
 0x224   : > { %v3771_v55 = vmul.f32 %v12265_v46, %v12352_v45  ;;  %v3772_v30 = vadd.f32 %v3756_v39, %v3696_v52  ;;  %v3773_v12 = vadd.f32 %v3757_v44, %v3697_v20  ;;  %v3774_v27 = vadd.f32 %v3758_v59, %v3698_v36  ;;  %v17030_v59 = vld [vmem:[#allocation63_spill] sm:$0xff] }
 0x225   : > { %v3775_v21 = vadd.f32 %v3759_v35, %v3699_v32  ;;  %v3776_v10 = vadd.f32 %v3760_v40, %v3700_v56  ;;  %v3777_v37 = vadd.f32 %v3761_v6, %v3701_v19  ;;  %v3810_v18 = vrot.slane %v12243_v58, 7  ;;  %v17022_v19 = vld [vmem:[#allocation31_spill] sm:$0xff]  ;;  %v17031_v40 = vld [vmem:[#allocation62_spill] sm:$0xff] }
 0x226   : > { %v3778_v25 = vadd.f32 %v3762_v38, %v3702_v47  ;;  %v3779_v49 = vadd.f32 %v3763_v31, %v3703_v54  ;;  %v3809_v57 = vrot.slane %v12240_v22, 7  ;;  %v12397_v11 = vrot.slane %v12141_v13, %v17019_v53  ;;  %v17032_v38 = vld [vmem:[#allocation109_spill] sm:$0xff]  ;;  %v17033_v53 = vld [vmem:[#allocation110_spill] sm:$0xff] }
 0x227   : > { %v3780_v24 = vadd.f32 %v3764_v28, %v3704_v26  ;;  %v3781_v17 = vadd.f32 %v3765_v41, %v3705_v4  ;;  %v3782_v5 = vadd.f32 %v3766_v23, %v3706_v15  ;;  %v3783_v46 = vadd.f32 %v3767_v43, %v3707_v9  ;;  %v17024_v26 = vld [vmem:[#allocation22_spill] sm:$0xff]  ;;  %v17029_v4 = vld [vmem:[#allocation65_spill] sm:$0xff]  ;;  %v17034_v41 = vld [vmem:[#allocation128_spill] sm:$0xff] }
 0x228   : > { %17020 = vst [vmem:[#allocation103_spill] sm:$0xff] %v12397_v11  ;;  %v3784_v52 = vadd.f32 %v3768_v3, %v3708_v50  ;;  %v3785_v20 = vadd.f32 %v3769_v2, %v3709_v61  ;;  %v3786_v36 = vadd.f32 %v3770_v48, %v3710_v63  ;;  %v3787_v32 = vadd.f32 %v3771_v55, %v3711_v16  ;;  %v17026_v61 = vld [vmem:[#allocation66_spill] sm:$0xff]  ;;  %v17027_v63 = vld [vmem:[#allocation32_spill] sm:$0xff]  ;;  %v17037_v2 = vld [vmem:[#allocation45_spill] sm:$0xff] }
 0x229   : > { %v12401_v56 = vsel %vm707_vm2, %v3809_v57, %v3810_v18  ;;  %v12405_v47 = vrot.slane %v12141_v13, %v17022_v19  ;;  %v12412_v15 = vsel %vm707_vm2, %v17024_v26, %v3809_v57  ;;  %v3832_v16 = vmul.f32 %v12397_v11, %v17026_v61  ;;  %v17035_v18 = vld [vmem:[#allocation127_spill] sm:$0xff]  ;;  %v17039_v61 = vld [vmem:[#allocation50_spill] sm:$0xff] }
 0x22a   : > { %17021 = vst [vmem:[#allocation102_spill] sm:$0xff] %v12401_v56  ;;  %17025 = vst [vmem:[#allocation46_spill] sm:$0xff] %v12412_v15  ;;  %v12418_v50 = vrot.slane %v12141_v13, %v17027_v63  ;;  %v3833_v44 = vmul.f32 %v12397_v11, %v17029_v4  ;;  %v3834_v35 = vmul.f32 %v12397_v11, %v17030_v59  ;;  %v17036_v57 = vld [vmem:[#allocation155_spill] sm:$0xff]  ;;  %v17040_v4 = vld [vmem:[#allocation164_spill] sm:$0xff] }
 0x22b   : > { %17023 = vst [vmem:[#allocation48_spill] sm:$0xff] %v12405_v47  ;;  %v3835_v6 = vmul.f32 %v12397_v11, %v17031_v40  ;;  %v3836_v31 = vmul.f32 %v12397_v11, %v17032_v38  ;;  %v3837_v28 = vmul.f32 %v12397_v11, %v17033_v53  ;;  %v3838_v23 = vmul.f32 %v12397_v11, %v17034_v41  ;;  %v17038_v55 = vld [vmem:[#allocation47_spill] sm:$0xff] }
 0x22c   : > { %17028 = vst [vmem:[#allocation55_spill] sm:$0xff] %v12418_v50  ;;  %v3839_v43 = vmul.f32 %v12397_v11, %v17035_v18  ;;  %v3840_v3 = vmul.f32 %v12397_v11, %v17036_v57  ;;  %v3841_v48 = vmul.f32 %v12397_v11, %v17037_v2  ;;  %v3842_v19 = vmul.f32 %v12397_v11, %v17038_v55  ;;  %v17041_v40 = vld [vmem:[#allocation39_spill] sm:$0xff] }
 0x22d   : > { %v3843_v63 = vmul.f32 %v12397_v11, %v17039_v61  ;;  %v3844_v59 = vmul.f32 %v12397_v11, %v17040_v4  ;;  %v3845_v9 = vmul.f32 %v12397_v11, %v17041_v40  ;;  %v3846_v54 = vmul.f32 %v12397_v11, %v12412_v15 }
 0x22e   : > { %v3847_v39 = vmul.f32 %v12397_v11, %v12401_v56  ;;  %v3848_v57 = vadd.f32 %v3832_v16, %v3772_v30  ;;  %v3849_v2 = vadd.f32 %v3833_v44, %v3773_v12  ;;  %v3850_v18 = vadd.f32 %v3834_v35, %v3774_v27  ;;  %v17042_v30 = vld [vmem:[#allocation58_spill] sm:$0xff]  ;;  %v17043_v27 = vld [vmem:[#allocation64_spill] sm:$0xff]  ;;  %v17051_v16 = vld [vmem:[#allocation61_spill] sm:$0xff] }
 0x22f   : > { %v3851_v41 = vadd.f32 %v3835_v6, %v3775_v21  ;;  %v3852_v55 = vadd.f32 %v3836_v31, %v3776_v10  ;;  %v3853_v26 = vadd.f32 %v3837_v28, %v3777_v37  ;;  %v3854_v61 = vadd.f32 %v3838_v23, %v3778_v25  ;;  %v17044_v25 = vld [vmem:[#allocation165_spill] sm:$0xff]  ;;  %v12478_v44 = vld [vmem:[%s9980_s19 + $0x80] sm:$0xff] }
 0x230   : > { %v3855_v53 = vadd.f32 %v3839_v43, %v3779_v49  ;;  %v3856_v4 = vadd.f32 %v3840_v3, %v3780_v24  ;;  %v3857_v38 = vadd.f32 %v3841_v48, %v3781_v17  ;;  %v3858_v45 = vadd.f32 %v3842_v19, %v3782_v5  ;;  %v17045_v24 = vld [vmem:[#allocation166_spill] sm:$0xff]  ;;  %v12465_v49 = vld [vmem:[%s9980_s19 + $0x58] sm:$0xff]  ;;  %17052 = vst [vmem:[#allocation30_spill] sm:$0xff] %v12478_v44  ;;  %v12483_v6 = vld [vmem:[%s9980_s19 + $0x88] sm:$0xff] }
 0x231   : > { %v3859_v40 = vadd.f32 %v3843_v63, %v3783_v46  ;;  %v3860_v33 = vadd.f32 %v3844_v59, %v3784_v52  ;;  %v3861_v15 = vadd.f32 %v3845_v9, %v3785_v20  ;;  %v3862_v0 = vadd.f32 %v3846_v54, %v3786_v36  ;;  %v12460_v5 = vld [vmem:[%s9980_s19 + $0x50] sm:$0xff]  ;;  %17047 = vst [vmem:[#allocation106_spill] sm:$0xff] %v12465_v49  ;;  %v17048_v52 = vld [vmem:[#allocation131_spill] sm:$0xff]  ;;  %v17049_v36 = vld [vmem:[#allocation132_spill] sm:$0xff] }
 0x232   : > { %v3863_v11 = vadd.f32 %v3847_v39, %v3787_v32  ;;  %v3868_v12 = vmul.f32 %v17042_v30, %v12405_v47  ;;  %v3869_v21 = vmul.f32 %v17043_v27, %v12405_v47  ;;  %v3870_v10 = vmul.f32 %v17044_v25, %v12405_v47  ;;  %17046 = vst [vmem:[#allocation54_spill] sm:$0xff] %v12460_v5  ;;  %v17050_v54 = vld [vmem:[#allocation59_spill] sm:$0xff]  ;;  %v17054_v28 = vld [vmem:[#allocation137_spill] sm:$0xff]  ;;  %v17055_v43 = vld [vmem:[#allocation138_spill] sm:$0xff] }
 0x233   : > { %v3871_v17 = vmul.f32 %v17045_v24, %v12405_v47  ;;  %v3872_v46 = vmul.f32 %v12460_v5, %v12405_v47  ;;  %v3873_v37 = vmul.f32 %v12465_v49, %v12405_v47  ;;  %v3874_v20 = vmul.f32 %v17048_v52, %v12405_v47  ;;  %17053 = vst [vmem:[#allocation31_spill] sm:$0xff] %v12483_v6  ;;  %v17058_v49 = vld [vmem:[#allocation33_spill] sm:$0xff] }
 0x234   : > { %v3875_v32 = vmul.f32 %v17049_v36, %v12405_v47  ;;  %v3876_v39 = vmul.f32 %v17050_v54, %v12405_v47  ;;  %v3877_v9 = vmul.f32 %v17051_v16, %v12405_v47  ;;  %v3878_v35 = vmul.f32 %v12478_v44, %v12405_v47 }
 0x235   : > { %v3879_v31 = vmul.f32 %v12483_v6, %v12405_v47  ;;  %v3880_v23 = vmul.f32 %v12405_v47, %v17054_v28  ;;  %v3881_v3 = vmul.f32 %v12405_v47, %v17055_v43  ;;  %v3882_v48 = vmul.f32 %v12405_v47, %v12240_v22  ;;  %v17056_v28 = vld [vmem:[#allocation77_spill] sm:$0xff]  ;;  %v17057_v43 = vld [vmem:[#allocation71_spill] sm:$0xff] }
 0x236   : > { %v3883_v19 = vmul.f32 %v12405_v47, %v12243_v58  ;;  %v3884_v63 = vadd.f32 %v3868_v12, %v3848_v57  ;;  %v3885_v59 = vadd.f32 %v3869_v21, %v3849_v2  ;;  %v3886_v30 = vadd.f32 %v3870_v10, %v3850_v18  ;;  %v17081_v47 = vld [vmem:[#allocation98_spill] sm:$0xff] }
 0x237   : > { %v3887_v27 = vadd.f32 %v3871_v17, %v3851_v41  ;;  %v3888_v25 = vadd.f32 %v3872_v46, %v3852_v55  ;;  %v3889_v24 = vadd.f32 %v3873_v37, %v3853_v26  ;;  %v3890_v52 = vadd.f32 %v3874_v20, %v3854_v61  ;;  %v17060_v61 = vld [vmem:[#allocation23_spill] sm:$0xff]  ;;  %v12526_v17 = vld [vmem:[#allocation7 + $0x30] ss:$0 sm:$0xff]  ;;  %v17070_v37 = vld [vmem:[#allocation88_spill] sm:$0xff] }
 0x238   : > { %v3891_v36 = vadd.f32 %v3875_v32, %v3855_v53  ;;  %v3892_v6 = vadd.f32 %v3876_v39, %v3856_v4  ;;  %v3893_v44 = vadd.f32 %v3877_v9, %v3857_v38  ;;  %v3944_v16 = vmul.f32 %v12418_v50, %v17056_v28  ;;  %v17063_v4 = vld [vmem:[#allocation76_spill] sm:$0xff]  ;;  %v17071_v32 = vld [vmem:[#allocation83_spill] sm:$0xff] }
 0x239   : > { %v3945_v54 = vmul.f32 %v12418_v50, %v17057_v43  ;;  %v12501_v5 = vrot.slane %v12141_v13, %v17058_v49  ;;  %v3894_v57 = vadd.f32 %v3878_v35, %v3858_v45  ;;  %v3895_v2 = vadd.f32 %v3879_v31, %v3859_v40  ;;  %v17069_v40 = vld [vmem:[#allocation112_spill] sm:$0xff]  ;;  %v17073_v31 = vld [vmem:[#allocation139_spill] sm:$0xff] }
 0x23a   : > { %v3896_v18 = vadd.f32 %v3880_v23, %v3860_v33  ;;  %v3897_v41 = vadd.f32 %v3881_v3, %v3861_v15  ;;  %v3898_v55 = vadd.f32 %v3882_v48, %v3862_v0  ;;  %v3899_v26 = vadd.f32 %v3883_v19, %v3863_v11  ;;  %v17067_v0 = vld [vmem:[#allocation75_spill] sm:$0xff]  ;;  %v17068_v33 = vld [vmem:[#allocation113_spill] sm:$0xff]  ;;  %v17072_v9 = vld [vmem:[#allocation140_spill] sm:$0xff] }
 0x23b   : > { %17059 = vst [vmem:[#allocation66_spill] sm:$0xff] %v12501_v5  ;;  %v17061_v53 = vrot.slane %v12243_v58, 1  ;;  %v3946_v12 = vmul.f32 %v12418_v50, %v17063_v4  ;;  %v17065_v13 = vrot.slane %v12240_v22, 1  ;;  %v3947_v11 = vmul.f32 %v12418_v50, %v17067_v0  ;;  %v17074_v3 = vld [vmem:[#allocation156_spill] sm:$0xff]  ;;  %v17080_v0 = vld [vmem:[#allocation74_spill] sm:$0xff] }
 0x23c   : > { %v3948_v15 = vmul.f32 %v12418_v50, %v17068_v33  ;;  %v3949_v10 = vmul.f32 %v12418_v50, %v17069_v40  ;;  %v3960_v46 = vadd.f32 %v3944_v16, %v3884_v63  ;;  %v3961_v49 = vadd.f32 %v3945_v54, %v3885_v59  ;;  %v17075_v19 = vld [vmem:[#allocation60_spill] sm:$0xff]  ;;  %v17076_v16 = vld [vmem:[#allocation134_spill] sm:$0xff]  ;;  %v17077_v63 = vld [vmem:[#allocation133_spill] sm:$0xff] }
 0x23d   : > { %v12508_v38 = vsel %vm820_vm3, %v17061_v53, %v17060_v61  ;;  %v17064_v21 = vmov %v17061_v53  ;;  %v4020_v20 = vmul.f32 %v12501_v5, %v17070_v37  ;;  %v4021_v39 = vmul.f32 %v12501_v5, %v17071_v32  ;;  %v17078_v53 = vld [vmem:[#allocation89_spill] sm:$0xff]  ;;  %v17085_v40 = vld [vmem:[#allocation100_spill] sm:$0xff] }
 0x23e   : > { %17062 = vst [vmem:[#allocation32_spill] sm:$0xff] %v12508_v38  ;;  %v12518_v45 = vsel %vm820_vm3, %v17065_v13, %v17064_v21  ;;  %v3950_v35 = vmul.f32 %v12418_v50, %v17072_v9  ;;  %v3951_v23 = vmul.f32 %v12418_v50, %v17073_v31  ;;  %v3952_v48 = vmul.f32 %v12418_v50, %v17074_v3  ;;  %v17079_v21 = vld [vmem:[#allocation168_spill] sm:$0xff]  ;;  %v17082_v3 = vld [vmem:[#allocation87_spill] sm:$0xff] }
 0x23f   : > { %17066 = vst [vmem:[#allocation65_spill] sm:$0xff] %v12518_v45  ;;  %v3953_v28 = vmul.f32 %v12418_v50, %v17075_v19  ;;  %v3954_v54 = vmul.f32 %v12418_v50, %v17076_v16  ;;  %v3955_v59 = vmul.f32 %v12418_v50, %v17077_v63  ;;  %v3962_v43 = vadd.f32 %v3946_v12, %v3886_v30  ;;  %v17083_v63 = vld [vmem:[#allocation97_spill] sm:$0xff]  ;;  %v17087_v33 = vld [vmem:[#allocation96_spill] sm:$0xff] }
 0x240   : > { %v4022_v4 = vmul.f32 %v12501_v5, %v17078_v53  ;;  %v3956_v13 = vmul.f32 %v12418_v50, %v17079_v21  ;;  %v3957_v37 = vmul.f32 %v12418_v50, %v17080_v0  ;;  %v3963_v32 = vadd.f32 %v3947_v11, %v3887_v27  ;;  %v17084_v11 = vld [vmem:[#allocation116_spill] sm:$0xff] }
 0x241   : > { %v4096_v19 = vmul.f32 %v12526_v17, %v17081_v47  ;;  %v4023_v16 = vmul.f32 %v12501_v5, %v17082_v3  ;;  %v4036_v61 = vadd.f32 %v4020_v20, %v3960_v46  ;;  %v4037_v31 = vadd.f32 %v4021_v39, %v3961_v49  ;;  %v17086_v3 = vld [vmem:[#allocation115_spill] sm:$0xff] }
 0x242   : > { %v4097_v30 = vmul.f32 %v12526_v17, %v17083_v63  ;;  %v3958_v12 = vmul.f32 %v12418_v50, %v12518_v45  ;;  %v3959_v53 = vmul.f32 %v12418_v50, %v12508_v38  ;;  %v3964_v21 = vadd.f32 %v3948_v15, %v3888_v25 }
 0x243   : > { %v3965_v0 = vadd.f32 %v3949_v10, %v3889_v24  ;;  %v3966_v27 = vadd.f32 %v3950_v35, %v3890_v52  ;;  %v4024_v47 = vmul.f32 %v12501_v5, %v17084_v11  ;;  %v4038_v9 = vadd.f32 %v4022_v4, %v3962_v43  ;;  %v17101_v4 = vld [vmem:[#allocation157_spill] sm:$0xff] }
 0x244   : > { %v4098_v46 = vmul.f32 %v12526_v17, %v17085_v40  ;;  %v3967_v49 = vadd.f32 %v3951_v23, %v3891_v36  ;;  %v3968_v20 = vadd.f32 %v3952_v48, %v3892_v6  ;;  %v3969_v39 = vadd.f32 %v3953_v28, %v3893_v44  ;;  %v17090_v40 = vld [vmem:[#allocation142_spill] sm:$0xff]  ;;  %v17091_v36 = vld [vmem:[#allocation119_spill] sm:$0xff] }
 0x245   : > { %v4025_v63 = vmul.f32 %v12501_v5, %v17086_v3  ;;  %v4039_v45 = vadd.f32 %v4023_v16, %v3963_v32  ;;  %v4099_v50 = vmul.f32 %v12526_v17, %v17087_v33  ;;  %v12568_v25 = vadd.f32 %v4096_v19, %v4036_v61  ;;  %v17093_v19 = vld [vmem:[#allocation141_spill] sm:$0xff]  ;;  %v17104_v32 = vld [vmem:[#allocation136_spill] sm:$0xff] }
 0x246   : > { %v12570_v24 = vadd.f32 %v4097_v30, %v4037_v31  ;;  %v3970_v52 = vadd.f32 %v3954_v54, %v3894_v57  ;;  %v3971_v15 = vadd.f32 %v3955_v59, %v3895_v2  ;;  %v3972_v10 = vadd.f32 %v3956_v13, %v3896_v18  ;;  %v17094_v2 = vld [vmem:[#allocation118_spill] sm:$0xff]  ;;  %v17096_v59 = vld [vmem:[#allocation25_spill] sm:$0xff] }
 0x247   : > { %17088 = vst [vmem:[#allocation63_spill] sm:$0xff] %v12568_v25  ;;  %v3998_v35 = vrot.slane %v12243_v58, 2  ;;  %v4026_v6 = vmul.f32 %v12501_v5, %v17090_v40  ;;  %v4040_v44 = vadd.f32 %v4024_v47, %v3964_v21  ;;  %v4100_v23 = vmul.f32 %v12526_v17, %v17091_v36  ;;  %v17102_v21 = vld [vmem:[#allocation147_spill] sm:$0xff]  ;;  %v17106_v47 = vld [vmem:[#allocation78_spill] sm:$0xff] }
 0x248   : > { %17089 = vst [vmem:[#allocation62_spill] sm:$0xff] %v12570_v24  ;;  %v12577_v48 = vadd.f32 %v4098_v46, %v4038_v9  ;;  %v3973_v28 = vadd.f32 %v3957_v37, %v3897_v41  ;;  %v3974_v33 = vadd.f32 %v3958_v12, %v3898_v55  ;;  %v3975_v61 = vadd.f32 %v3959_v53, %v3899_v26  ;;  %v17100_v26 = vld [vmem:[#allocation159_spill] sm:$0xff] }
 0x249   : > { %v4027_v31 = vmul.f32 %v12501_v5, %v17093_v19  ;;  %v4041_v57 = vadd.f32 %v4025_v63, %v3965_v0  ;;  %v4101_v18 = vmul.f32 %v12526_v17, %v17094_v2  ;;  %v12583_v16 = vadd.f32 %v4099_v50, %v4039_v45  ;;  %v17105_v12 = vld [vmem:[#allocation135_spill] sm:$0xff]  ;;  %v17107_v63 = vld [vmem:[#allocation72_spill] sm:$0xff] }
 0x24a   : > { %17092 = vst [vmem:[#allocation58_spill] sm:$0xff] %v12577_v48  ;;  %v4144_v54 = vadd.f32 %v12570_v24, %v12568_v25  ;;  %v12590_v9 = vsel %vm897_vm4, %v3998_v35, %v17096_v59  ;;  %v17098_v41 = vrot.slane %v12240_v22, 2  ;;  %v4028_v43 = vmul.f32 %v12501_v5, %v17100_v26 }
 0x24b   : > { %17095 = vst [vmem:[#allocation64_spill] sm:$0xff] %v12583_v16  ;;  %17097 = vst [vmem:[#allocation165_spill] sm:$0xff] %v12590_v9  ;;  %v4029_v50 = vmul.f32 %v12501_v5, %v17101_v4  ;;  %v4042_v45 = vadd.f32 %v4026_v6, %v3966_v27  ;;  %v4102_v13 = vmul.f32 %v12526_v17, %v17102_v21  ;;  %v17108_v6 = vld [vmem:[#allocation146_spill] sm:$0xff]  ;;  %v4073_v24 = vrot.slane %v12240_v22, 3 }
 0x24c   : > { %v12596_v55 = vsel %vm897_vm4, %v17098_v41, %v3998_v35  ;;  %v12604_v0 = vadd.f32 %v4100_v23, %v4040_v44  ;;  %v4145_v37 = vadd.f32 %v4144_v54, %v12577_v48  ;;  %v4030_v30 = vmul.f32 %v12501_v5, %v17104_v32 }
 0x24d   : > { %17099 = vst [vmem:[#allocation166_spill] sm:$0xff] %v12596_v55  ;;  %v4031_v53 = vmul.f32 %v12501_v5, %v17105_v12  ;;  %v4032_v46 = vmul.f32 %v12501_v5, %v17106_v47  ;;  %v4033_v35 = vmul.f32 %v12501_v5, %v17107_v63  ;;  %v4043_v27 = vadd.f32 %v4027_v31, %v3967_v49  ;;  %v17110_v49 = vld [vmem:[#allocation82_spill] sm:$0xff]  ;;  %v17157_v47 = vld [vmem:[#allocation56_spill] sm:$0xff] }
 0x24e   : > { %17103 = vst [vmem:[#allocation131_spill] sm:$0xff] %v12604_v0  ;;  %v4103_v41 = vmul.f32 %v12526_v17, %v17108_v6  ;;  %v12617_v44 = vadd.f32 %v4101_v18, %v4041_v57  ;;  %v4146_v23 = vadd.f32 %v4145_v37, %v12583_v16  ;;  %v4034_v54 = vmul.f32 %v12501_v5, %v12596_v55 }
 0x24f   : > { %v4035_v48 = vmul.f32 %v12501_v5, %v12590_v9  ;;  %v4074_v25 = vrot.slane %v12243_v58, 3  ;;  %v4044_v21 = vadd.f32 %v4028_v43, %v3968_v20  ;;  %v4104_v31 = vmul.f32 %v12526_v17, %v17110_v49  ;;  %v17112_v5 = vld [vmem:[#allocation80_spill] sm:$0xff]  ;;  %v12637_v43 = vld [vmem:[%s9980_s19 + $0xb0] sm:$0xff] }
 0x250   : > { %17109 = vst [vmem:[#allocation132_spill] sm:$0xff] %v12617_v44  ;;  %v12628_v57 = vadd.f32 %v4102_v13, %v4042_v45  ;;  %v4147_v18 = vadd.f32 %v4146_v23, %v12604_v0  ;;  %v4045_v37 = vadd.f32 %v4029_v50, %v3969_v39  ;;  %v4046_v16 = vadd.f32 %v4030_v30, %v3970_v52  ;;  %v17115_v45 = vld [vmem:[#allocation26_spill] sm:$0xff]  ;;  %v17118_v52 = vld [vmem:[#allocation69_spill] sm:$0xff]  ;;  %v12653_v50 = vld [vmem:[%s9980_s19 + $0xb8] sm:$0xff] }
 0x251   : > { %v4047_v6 = vadd.f32 %v4031_v53, %v3971_v15  ;;  %v4048_v2 = vadd.f32 %v4032_v46, %v3972_v10  ;;  %v4049_v36 = vadd.f32 %v4033_v35, %v3973_v28  ;;  %v4105_v9 = vmul.f32 %v12526_v17, %v17112_v5  ;;  %17114 = vst [vmem:[#allocation77_spill] sm:$0xff] %v12637_v43  ;;  %v17119_v10 = vld [vmem:[#allocation144_spill] sm:$0xff]  ;;  %v457_v30 = vld [vmem:[%s9980_s19 + $0xc8] sm:$0xff] }
 0x252   : > { %17111 = vst [vmem:[#allocation137_spill] sm:$0xff] %v12628_v57  ;;  %v12633_v55 = vadd.f32 %v4103_v41, %v4043_v27  ;;  %v4148_v20 = vadd.f32 %v4147_v18, %v12617_v44  ;;  %v12642_v13 = vsel %vm974_vm5, %v4074_v25, %v17115_v45  ;;  %v12646_v39 = vsel %vm974_vm5, %v4073_v24, %v4074_v25  ;;  %v17121_v53 = vld [vmem:[#allocation29_spill] sm:$0xff]  ;;  %v12668_v44 = vld [vmem:[%s9980_s19 + $0xc0] sm:$0xff] }
 0x253   : > { %17116 = vst [vmem:[#allocation71_spill] sm:$0xff] %v12642_v13  ;;  %17117 = vst [vmem:[#allocation33_spill] sm:$0xff] %v12646_v39  ;;  %v4106_v15 = vmul.f32 %v12526_v17, %v17118_v52  ;;  %v4107_v28 = vmul.f32 %v12526_v17, %v17119_v10  ;;  %v4108_v46 = vmul.f32 %v12526_v17, %v17121_v53  ;;  %v4356_v10 = vrot.slane %v12637_v43, 7 }
 0x254   : > { %17113 = vst [vmem:[#allocation138_spill] sm:$0xff] %v12633_v55  ;;  %17120 = vst [vmem:[#allocation76_spill] sm:$0xff] %v12653_v50  ;;  %v4109_v35 = vmul.f32 %v12526_v17, %v12259_v62  ;;  %v12660_v27 = vadd.f32 %v4104_v31, %v4044_v21  ;;  %v4149_v25 = vadd.f32 %v4148_v20, %v12628_v57  ;;  %v4212_v62 = vrot.slane %v12637_v43, 5 }
 0x255   : > { %v4050_v24 = vadd.f32 %v4034_v54, %v3974_v33  ;;  %v4051_v41 = vadd.f32 %v4035_v48, %v3975_v61  ;;  %v4110_v23 = vmul.f32 %v12526_v17, %v12646_v39  ;;  %v4111_v18 = vmul.f32 %v12526_v17, %v12642_v13  ;;  %17123 = vst [vmem:[#allocation88_spill] sm:$0xff] %v12668_v44 }
 0x256   : > { %17122 = vst [vmem:[#allocation75_spill] sm:$0xff] %v12660_v27  ;;  %v12670_v0 = vadd.f32 %v4105_v9, %v4045_v37  ;;  %v4150_v53 = vadd.f32 %v4149_v25, %v12633_v55  ;;  %v12674_v21 = vadd.f32 %v4106_v15, %v4046_v16  ;;  %v4213_v31 = vrot.slane %v12653_v50, 5  ;;  %v17131_v25 = vld [vmem:[#allocation41_spill] sm:$0xff]  ;;  %v17140_v55 = vld [vmem:[#allocation99_spill] sm:$0xff] }
 0x257   : > { %v4216_v33 = vrot.slane %v457_v30, 5  ;;  %v12677_v48 = vadd.f32 %v4107_v28, %v4047_v6  ;;  %v12679_v61 = vadd.f32 %v4108_v46, %v4048_v2  ;;  %v12681_v54 = vadd.f32 %v4109_v35, %v4049_v36  ;;  %v17135_v35 = vld [vmem:[#allocation149_spill] sm:$0xff] }
 0x258   : > { %17124 = vst [vmem:[#allocation83_spill] sm:$0xff] %v12670_v0  ;;  %17125 = vst [vmem:[#allocation89_spill] sm:$0xff] %v12674_v21  ;;  %v4151_v17 = vadd.f32 %v4150_v53, %v12660_v27  ;;  %v12684_v20 = vadd.f32 %v4110_v23, %v4050_v24  ;;  %v12686_v9 = vadd.f32 %v4111_v18, %v4051_v41  ;;  %v16034_v37 = vrot.slane %v12668_v44, 5  ;;  %v17136_v41 = vld [vmem:[#allocation160_spill] sm:$0xff] }
 0x259   : > { %17126 = vst [vmem:[#allocation98_spill] sm:$0xff] %v12677_v48  ;;  %17127 = vst [vmem:[#allocation87_spill] sm:$0xff] %v12679_v61  ;;  %v4234_v16 = vmul.f32 %v16991_v42, %v17131_v25  ;;  %v12695_v2 = vsel %vm553_vm0, %v16860_v60, %v4212_v62  ;;  %v4235_v36 = vmul.f32 %v16992_v7, %v17131_v25  ;;  %v4284_v18 = vrot.slane %v12637_v43, 6 }
 0x25a   : > { %17128 = vst [vmem:[#allocation97_spill] sm:$0xff] %v12681_v54  ;;  %17129 = vst [vmem:[#allocation116_spill] sm:$0xff] %v12684_v20  ;;  %v4152_v15 = vadd.f32 %v4151_v17, %v12670_v0  ;;  %v4236_v6 = vmul.f32 %v16993_v51, %v17131_v25  ;;  %v12705_v28 = vsel %vm553_vm0, %v16034_v37, %v4216_v33  ;;  %v17137_v33 = vld [vmem:[#allocation95_spill] sm:$0xff]  ;;  %v4285_v37 = vrot.slane %v12653_v50, 6  ;;  %v17155_v51 = vld [vmem:[#allocation42_spill] sm:$0xff] }
 0x25b   : > { %17130 = vst [vmem:[#allocation100_spill] sm:$0xff] %v12686_v9  ;;  %17132 = vst [vmem:[#allocation115_spill] sm:$0xff] %v12695_v2  ;;  %v12709_v42 = vsel %vm553_vm0, %v4212_v62, %v4213_v31  ;;  %v4237_v53 = vmul.f32 %v16994_v14, %v17131_v25  ;;  %v4238_v46 = vmul.f32 %v16995_v34, %v17131_v25  ;;  %v17138_v31 = vld [vmem:[#allocation86_spill] sm:$0xff]  ;;  %v4288_v0 = vrot.slane %v457_v30, 6  ;;  %v17141_v30 = vld [vmem:[#allocation51_spill] sm:$0xff] }
 0x25c   : > { %17133 = vst [vmem:[#allocation96_spill] sm:$0xff] %v12705_v28  ;;  %17134 = vst [vmem:[#allocation142_spill] sm:$0xff] %v12709_v42  ;;  %v4153_v7 = vadd.f32 %v4152_v15, %v12674_v21  ;;  %v4239_v24 = vmul.f32 %v17135_v35, %v17131_v25  ;;  %v4240_v23 = vmul.f32 %v17136_v41, %v17131_v25  ;;  %v17139_v15 = vld [vmem:[#allocation81_spill] sm:$0xff] }
 0x25d   : > { %v4241_v62 = vmul.f32 %v17137_v33, %v17131_v25  ;;  %v4242_v17 = vmul.f32 %v17138_v31, %v17131_v25  ;;  %v4243_v21 = vmul.f32 %v17139_v15, %v17131_v25  ;;  %v4244_v57 = vmul.f32 %v17140_v55, %v17131_v25  ;;  %v17142_v15 = vld [vmem:[#allocation21_spill] sm:$0xff] }
 0x25e   : > { %v4154_v27 = vadd.f32 %v4153_v7, %v12677_v48  ;;  %v4245_v60 = vmul.f32 %v12307_v8, %v17131_v25  ;;  %v4246_v28 = vmul.f32 %v12695_v2, %v17131_v25  ;;  %v4247_v31 = vmul.f32 %v12709_v42, %v17131_v25  ;;  %v17144_v8 = vld [vmem:[#allocation105_spill] sm:$0xff] }
 0x25f   : > { %v16062_v33 = vrot.slane %v12668_v44, 6  ;;  %v4306_v7 = vmul.f32 %v17010_v29, %v17141_v30  ;;  %v12744_v55 = vsel %vm630_vm1, %v17142_v15, %v4284_v18  ;;  %v4307_v41 = vmul.f32 %v17144_v8, %v17141_v30  ;;  %v17145_v2 = vld [vmem:[#allocation125_spill] sm:$0xff]  ;;  %v17149_v15 = vld [vmem:[#allocation152_spill] sm:$0xff] }
 0x260   : > { %v4155_v48 = vadd.f32 %v4154_v27, %v12679_v61  ;;  %17143 = vst [vmem:[#allocation141_spill] sm:$0xff] %v12744_v55  ;;  %v4308_v35 = vmul.f32 %v17145_v2, %v17141_v30  ;;  %v12758_v29 = vsel %vm630_vm1, %v4284_v18, %v4285_v37  ;;  %v17148_v27 = vld [vmem:[#allocation124_spill] sm:$0xff]  ;;  %v4310_v42 = vmul.f32 %v17149_v15, %v17141_v30  ;;  %v17150_v2 = vld [vmem:[#allocation151_spill] sm:$0xff]  ;;  %v17151_v44 = vld [vmem:[#allocation161_spill] sm:$0xff] }
 0x261   : > { %v12754_v25 = vsel %vm630_vm1, %v16062_v33, %v4288_v0  ;;  %17147 = vst [vmem:[#allocation157_spill] sm:$0xff] %v12758_v29  ;;  %v4309_v61 = vmul.f32 %v17148_v27, %v17141_v30  ;;  %v4311_v34 = vmul.f32 %v17150_v2, %v17141_v30  ;;  %v4312_v14 = vmul.f32 %v17151_v44, %v17141_v30  ;;  %v17152_v0 = vld [vmem:[#allocation36_spill] sm:$0xff]  ;;  %v17153_v37 = vld [vmem:[#allocation35_spill] sm:$0xff] }
 0x262   : > { %17146 = vst [vmem:[#allocation159_spill] sm:$0xff] %v12754_v25  ;;  %v4156_v8 = vadd.f32 %v4155_v48, %v12681_v54  ;;  %v4313_v33 = vmul.f32 %v17152_v0, %v17141_v30  ;;  %v4314_v18 = vmul.f32 %v17153_v37, %v17141_v30  ;;  %v17154_v25 = vld [vmem:[#allocation93_spill] sm:$0xff]  ;;  %v4316_v15 = vmul.f32 %v17155_v51, %v17141_v30  ;;  %v17156_v48 = vld [vmem:[#allocation38_spill] sm:$0xff] }
 0x263   : > { %v4315_v27 = vmul.f32 %v17154_v25, %v17141_v30  ;;  %v4317_v54 = vmul.f32 %v17156_v48, %v17141_v30  ;;  %v4318_v44 = vmul.f32 %v12744_v55, %v17141_v30  ;;  %v4319_v0 = vmul.f32 %v12758_v29, %v17141_v30  ;;  %v17158_v30 = vld [vmem:[#allocation109_spill] sm:$0xff] }
 0x264   : > { %v4157_v2 = vadd.f32 %v4156_v8, %v12684_v20  ;;  %v4322_v13 = vadd.f32 %v4306_v7, %v4234_v16  ;;  %v4323_v39 = vadd.f32 %v4307_v41, %v4235_v36  ;;  %v4324_v37 = vadd.f32 %v4308_v35, %v4236_v6  ;;  %v17159_v36 = vld [vmem:[#allocation110_spill] sm:$0xff]  ;;  %v17169_v41 = vld [vmem:[#allocation164_spill] sm:$0xff] }
 0x265   : > { %v4357_v25 = vrot.slane %v12653_v50, 7  ;;  %v4325_v52 = vadd.f32 %v4309_v61, %v4237_v53  ;;  %v4326_v5 = vadd.f32 %v4310_v42, %v4238_v46  ;;  %v4327_v48 = vadd.f32 %v4311_v34, %v4239_v24  ;;  %v17161_v61 = vld [vmem:[#allocation22_spill] sm:$0xff]  ;;  %v17163_v34 = vld [vmem:[#allocation128_spill] sm:$0xff] }
 0x266   : > { %v4158_v51 = vadd.f32 %v4157_v2, %v12686_v9  ;;  %v4328_v49 = vadd.f32 %v4312_v14, %v4240_v23  ;;  %v4329_v8 = vadd.f32 %v4313_v33, %v4241_v62  ;;  %v4330_v20 = vadd.f32 %v4314_v18, %v4242_v17  ;;  %v17168_v46 = vld [vmem:[#allocation50_spill] sm:$0xff]  ;;  %v17170_v33 = vld [vmem:[#allocation39_spill] sm:$0xff] }
 0x267   : > { %v4331_v45 = vadd.f32 %v4315_v27, %v4243_v21  ;;  %v4332_v55 = vadd.f32 %v4316_v15, %v4244_v57  ;;  %v4333_v63 = vadd.f32 %v4317_v54, %v4245_v60  ;;  %v4378_v16 = vmul.f32 %v17158_v30, %v17157_v47  ;;  %v17164_v60 = vld [vmem:[#allocation127_spill] sm:$0xff]  ;;  %v17171_v17 = vld [vmem:[#allocation46_spill] sm:$0xff] }
 0x268   : > { %v4379_v6 = vmul.f32 %v17159_v36, %v17157_v47  ;;  %4159 = vadd.xlane.f32.xlu0 %v4158_v51  ;;  %v12793_v35 = vsel %vm707_vm2, %v4356_v10, %v4357_v25  ;;  %v12798_v14 = vsel %vm707_vm2, %v17161_v61, %v4356_v10  ;;  %v4380_v57 = vmul.f32 %v17163_v34, %v17157_v47  ;;  %v17165_v54 = vld [vmem:[#allocation155_spill] sm:$0xff]  ;;  %v17166_v51 = vld [vmem:[#allocation45_spill] sm:$0xff] }
 0x269   : > { %17160 = vst [vmem:[#allocation136_spill] sm:$0xff] %v12793_v35  ;;  %17162 = vst [vmem:[#allocation105_spill] sm:$0xff] %v12798_v14  ;;  %v4381_v21 = vmul.f32 %v17164_v60, %v17157_v47  ;;  %v4382_v2 = vmul.f32 %v17165_v54, %v17157_v47  ;;  %v4383_v42 = vmul.f32 %v17166_v51, %v17157_v47  ;;  %v17167_v25 = vld [vmem:[#allocation47_spill] sm:$0xff]  ;;  %v17174_v51 = vld [vmem:[#allocation106_spill] sm:$0xff] }
 0x26a   : > { %v4384_v53 = vmul.f32 %v17167_v25, %v17157_v47  ;;  %v4385_v24 = vmul.f32 %v17168_v46, %v17157_v47  ;;  %v4334_v10 = vadd.f32 %v4318_v44, %v4246_v28  ;;  %v4386_v23 = vmul.f32 %v17169_v41, %v17157_v47  ;;  %v17172_v46 = vld [vmem:[#allocation67_spill] sm:$0xff]  ;;  %v17173_v25 = vld [vmem:[#allocation54_spill] sm:$0xff] }
 0x26b   : > { %v4387_v62 = vmul.f32 %v17170_v33, %v17157_v47  ;;  %v4388_v15 = vmul.f32 %v17171_v17, %v17157_v47  ;;  %v4335_v30 = vadd.f32 %v4319_v0, %v4247_v31  ;;  %v4389_v7 = vmul.f32 %v12401_v56, %v17157_v47 }
 0x26c   : > { %v4390_v27 = vmul.f32 %v12798_v14, %v17157_v47  ;;  %v4391_v44 = vmul.f32 %v12793_v35, %v17157_v47  ;;  %v4394_v28 = vadd.f32 %v4378_v16, %v4322_v13  ;;  %v4395_v18 = vadd.f32 %v4379_v6, %v4323_v39  ;;  %v12829_v35 = vld [vmem:[%s9980_s19 + $0x60] sm:$0xff]  ;;  %v12847_v16 = vld [vmem:[%s9980_s19 + $0x90] sm:$0xff] }
 0x26d   : > { %v4396_v36 = vadd.f32 %v4380_v57, %v4324_v37  ;;  %v4397_v9 = vadd.f32 %v4381_v21, %v4325_v52  ;;  %v4398_v61 = vadd.f32 %v4382_v2, %v4326_v5  ;;  %v4399_v33 = vadd.f32 %v4383_v42, %v4327_v48  ;;  %v12834_v5 = vld [vmem:[%s9980_s19 + $0x68] sm:$0xff]  ;;  %v17178_v48 = vld [vmem:[#allocation31_spill] sm:$0xff]  ;;  %17179 = vst [vmem:[#allocation109_spill] sm:$0xff] %v12847_v16 }
 0x26e   : > { %v4400_v17 = vadd.f32 %v4384_v53, %v4328_v49  ;;  %v4401_v31 = vadd.f32 %v4385_v24, %v4329_v8  ;;  %v4402_v0 = vadd.f32 %v4386_v23, %v4330_v20  ;;  %v4403_v41 = vadd.f32 %v4387_v62, %v4331_v45  ;;  %v17175_v45 = vld [vmem:[#allocation59_spill] sm:$0xff]  ;;  %v17177_v20 = vld [vmem:[#allocation30_spill] sm:$0xff] }
 0x26f   : > { %v4404_v56 = vadd.f32 %v4388_v15, %v4332_v55  ;;  %v4410_v14 = vmul.f32 %v17173_v25, %v17172_v46  ;;  %v4411_v47 = vmul.f32 %v17174_v51, %v17172_v46  ;;  %v4412_v13 = vmul.f32 %v12829_v35, %v17172_v46  ;;  %v17176_v55 = vld [vmem:[#allocation61_spill] sm:$0xff]  ;;  %v12854_v2 = vld [vmem:[%s9980_s19 + $0x98] sm:$0xff] }
 0x270   : > { %v4413_v49 = vmul.f32 %v12834_v5, %v17172_v46  ;;  %v4414_v39 = vmul.f32 %v17175_v45, %v17172_v46  ;;  %v4415_v52 = vmul.f32 %v17176_v55, %v17172_v46  ;;  %v4416_v37 = vmul.f32 %v17177_v20, %v17172_v46  ;;  %17181 = vst [vmem:[#allocation128_spill] sm:$0xff] %v12854_v2 }
 0x271   : > { %v4417_v8 = vmul.f32 %v17178_v48, %v17172_v46  ;;  %v4418_v6 = vmul.f32 %v12847_v16, %v17172_v46  ;;  %v4405_v57 = vadd.f32 %v4389_v7, %v4333_v63  ;;  %v12851_v21 = vadd.f32 %v4390_v27, %v4334_v10 }
 0x272   : > { %v4419_v51 = vmul.f32 %v12854_v2, %v17172_v46  ;;  %v4420_v42 = vmul.f32 %v17172_v46, %v12240_v22  ;;  %v4407_v25 = vadd.f32 %v4391_v44, %v4335_v30  ;;  %v4421_v53 = vmul.f32 %v17172_v46, %v12243_v58  ;;  %v17182_v44 = vld [vmem:[#allocation68_spill] sm:$0xff]  ;;  %v17183_v58 = vld [vmem:[#allocation113_spill] sm:$0xff] }
 0x273   : > { %17180 = vst [vmem:[#allocation110_spill] sm:$0xff] %v12851_v21  ;;  %v4423_v24 = vmul.f32 %v17172_v46, %v12653_v50  ;;  %v4426_v23 = vadd.f32 %v4410_v14, %v4394_v28  ;;  %v4427_v62 = vadd.f32 %v4411_v47, %v4395_v18  ;;  %v4428_v63 = vadd.f32 %v4412_v13, %v4396_v36  ;;  %v17184_v46 = vld [vmem:[#allocation112_spill] sm:$0xff] }
 0x274   : > { %v4429_v10 = vadd.f32 %v4413_v49, %v4397_v9  ;;  %v4430_v15 = vadd.f32 %v4414_v39, %v4398_v61  ;;  %v4431_v7 = vadd.f32 %v4415_v52, %v4399_v33  ;;  %v4432_v27 = vadd.f32 %v4416_v37, %v4400_v17  ;;  %v17185_v47 = vld [vmem:[#allocation140_spill] sm:$0xff]  ;;  %v17186_v61 = vld [vmem:[#allocation139_spill] sm:$0xff]  ;;  %v17192_v49 = vld [vmem:[#allocation133_spill] sm:$0xff] }
 0x275   : > { %v4433_v45 = vadd.f32 %v4417_v8, %v4401_v31  ;;  %v4434_v55 = vadd.f32 %v4418_v6, %v4402_v0  ;;  %v4435_v21 = vadd.f32 %v4419_v51, %v4403_v41  ;;  %v4436_v2 = vadd.f32 %v4420_v42, %v4404_v56  ;;  %v17187_v17 = vld [vmem:[#allocation23_spill] sm:$0xff]  ;;  %v17189_v41 = vld [vmem:[#allocation156_spill] sm:$0xff]  ;;  %v17191_v31 = vld [vmem:[#allocation134_spill] sm:$0xff] }
 0x276   : > { %v4460_v22 = vrot.slane %v12637_v43, 1  ;;  %v4461_v30 = vrot.slane %v12653_v50, 1  ;;  %v4482_v16 = vmul.f32 %v17183_v58, %v17182_v44  ;;  %v4483_v14 = vmul.f32 %v17184_v46, %v17182_v44  ;;  %v17190_v18 = vld [vmem:[#allocation60_spill] sm:$0xff]  ;;  %v17195_v6 = vld [vmem:[#allocation74_spill] sm:$0xff]  ;;  %v17196_v42 = vld [vmem:[#allocation65_spill] sm:$0xff] }
 0x277   : > { %v4484_v9 = vmul.f32 %v17185_v47, %v17182_v44  ;;  %v4485_v33 = vmul.f32 %v17186_v61, %v17182_v44  ;;  %v4486_v28 = vmul.f32 %v17189_v41, %v17182_v44  ;;  %v4487_v36 = vmul.f32 %v17190_v18, %v17182_v44  ;;  %v17193_v52 = vld [vmem:[#allocation168_spill] sm:$0xff]  ;;  %v17197_v61 = vld [vmem:[#allocation79_spill] sm:$0xff] }
 0x278   : > { %v12877_v56 = vsel %vm820_vm3, %v4461_v30, %v17187_v17  ;;  %v4488_v46 = vmul.f32 %v17191_v31, %v17182_v44  ;;  %v4437_v0 = vadd.f32 %v4421_v53, %v4405_v57  ;;  %v4439_v13 = vadd.f32 %v4423_v24, %v4407_v25 }
 0x279   : > { %17188 = vst [vmem:[#allocation127_spill] sm:$0xff] %v12877_v56  ;;  %v4489_v39 = vmul.f32 %v17192_v49, %v17182_v44  ;;  %v4490_v37 = vmul.f32 %v17193_v52, %v17182_v44  ;;  %v12891_v8 = vsel %vm820_vm3, %v4460_v22, %v4461_v30  ;;  %v4491_v51 = vmul.f32 %v17195_v6, %v17182_v44 }
 0x27a   : > { %17194 = vst [vmem:[#allocation155_spill] sm:$0xff] %v12891_v8  ;;  %v4492_v58 = vmul.f32 %v17196_v42, %v17182_v44  ;;  %v4493_v57 = vmul.f32 %v12508_v38, %v17182_v44  ;;  %v4495_v25 = vmul.f32 %v12877_v56, %v17182_v44  ;;  %v4498_v53 = vadd.f32 %v4482_v16, %v4426_v23  ;;  %v17204_v44 = vld [vmem:[#allocation90_spill] sm:$0xff] }
 0x27b   : > { %v4499_v24 = vadd.f32 %v4483_v14, %v4427_v62  ;;  %v4500_v17 = vadd.f32 %v4484_v9, %v4428_v63  ;;  %v4501_v52 = vadd.f32 %v4485_v33, %v4429_v10  ;;  %v4502_v49 = vadd.f32 %v4486_v28, %v4430_v15  ;;  %v17202_v9 = vld [vmem:[#allocation166_spill] sm:$0xff]  ;;  %v17203_v28 = vld [vmem:[#allocation165_spill] sm:$0xff] }
 0x27c   : > { %v4503_v31 = vadd.f32 %v4487_v36, %v4431_v7  ;;  %v4504_v22 = vadd.f32 %v4488_v46, %v4432_v27  ;;  %v4505_v30 = vadd.f32 %v4489_v39, %v4433_v45  ;;  %v4506_v8 = vadd.f32 %v4490_v37, %v4434_v55  ;;  %v17200_v27 = vld [vmem:[#allocation78_spill] sm:$0xff]  ;;  %v17201_v55 = vld [vmem:[#allocation72_spill] sm:$0xff] }
 0x27d   : > { %v4532_v6 = vrot.slane %v12637_v43, 2  ;;  %v4533_v18 = vrot.slane %v12653_v50, 2  ;;  %v4507_v42 = vadd.f32 %v4491_v51, %v4435_v21  ;;  %v4508_v41 = vadd.f32 %v4492_v58, %v4436_v2 }
 0x27e   : > { %v4554_v38 = vmul.f32 %v17084_v11, %v17197_v61  ;;  %v4555_v16 = vmul.f32 %v17086_v3, %v17197_v61  ;;  %v4556_v62 = vmul.f32 %v17090_v40, %v17197_v61  ;;  %v4557_v63 = vmul.f32 %v17093_v19, %v17197_v61 }
 0x27f   : > { %v12910_v23 = vsel %vm897_vm4, %v4533_v18, %v17096_v59  ;;  %v4558_v21 = vmul.f32 %v17100_v26, %v17197_v61  ;;  %v4509_v2 = vadd.f32 %v4493_v57, %v4437_v0  ;;  %v4559_v11 = vmul.f32 %v17101_v4, %v17197_v61 }
 0x280   : > { %17198 = vst [vmem:[#allocation54_spill] sm:$0xff] %v12910_v23  ;;  %v4560_v3 = vmul.f32 %v17104_v32, %v17197_v61  ;;  %v4561_v10 = vmul.f32 %v17105_v12, %v17197_v61  ;;  %v4511_v15 = vadd.f32 %v4495_v25, %v4439_v13  ;;  %v12926_v7 = vsel %vm897_vm4, %v4532_v6, %v4533_v18 }
 0x281   : > { %17199 = vst [vmem:[#allocation106_spill] sm:$0xff] %v12926_v7  ;;  %v4562_v45 = vmul.f32 %v17200_v27, %v17197_v61  ;;  %v4563_v14 = vmul.f32 %v17201_v55, %v17197_v61  ;;  %v4564_v33 = vmul.f32 %v17202_v9, %v17197_v61  ;;  %v4565_v36 = vmul.f32 %v17203_v28, %v17197_v61  ;;  %v17205_v7 = vld [vmem:[#allocation119_spill] sm:$0xff]  ;;  %v17206_v28 = vld [vmem:[#allocation118_spill] sm:$0xff] }
 0x282   : > { %v4567_v46 = vmul.f32 %v12910_v23, %v17197_v61  ;;  %v4570_v0 = vadd.f32 %v4554_v38, %v4498_v53  ;;  %v4571_v13 = vadd.f32 %v4555_v16, %v4499_v24  ;;  %v4572_v39 = vadd.f32 %v4556_v62, %v4500_v17  ;;  %v17207_v27 = vld [vmem:[#allocation26_spill] sm:$0xff]  ;;  %v17209_v17 = vld [vmem:[#allocation147_spill] sm:$0xff]  ;;  %v17212_v24 = vld [vmem:[#allocation80_spill] sm:$0xff] }
 0x283   : > { %v4573_v18 = vadd.f32 %v4557_v63, %v4501_v52  ;;  %v4574_v37 = vadd.f32 %v4558_v21, %v4502_v49  ;;  %v4575_v6 = vadd.f32 %v4559_v11, %v4503_v31  ;;  %v4576_v51 = vadd.f32 %v4560_v3, %v4504_v22  ;;  %v17210_v49 = vld [vmem:[#allocation146_spill] sm:$0xff]  ;;  %v17214_v62 = vld [vmem:[#allocation144_spill] sm:$0xff]  ;;  %v17216_v3 = vld [vmem:[#allocation29_spill] sm:$0xff] }
 0x284   : > { %v4577_v58 = vadd.f32 %v4561_v10, %v4505_v30  ;;  %v16096_v57 = vrot.slane %v12653_v50, 3  ;;  %v4578_v25 = vadd.f32 %v4562_v45, %v4506_v8  ;;  %v4579_v59 = vadd.f32 %v4563_v14, %v4507_v42  ;;  %v17211_v8 = vld [vmem:[#allocation82_spill] sm:$0xff]  ;;  %v17213_v30 = vld [vmem:[#allocation69_spill] sm:$0xff] }
 0x285   : > { %v4626_v9 = vmul.f32 %v17205_v7, %v17204_v44  ;;  %v4627_v55 = vmul.f32 %v17206_v28, %v17204_v44  ;;  %v4628_v31 = vmul.f32 %v17209_v17, %v17204_v44  ;;  %v4629_v52 = vmul.f32 %v17210_v49, %v17204_v44  ;;  %v17217_v7 = vld [vmem:[#allocation27_spill] sm:$0xff] }
 0x286   : > { %v12948_v38 = vsel %vm974_vm5, %v16096_v57, %v17207_v27  ;;  %v4630_v42 = vmul.f32 %v17211_v8, %v17204_v44  ;;  %v4580_v53 = vadd.f32 %v4564_v33, %v4508_v41  ;;  %v4631_v22 = vmul.f32 %v17212_v24, %v17204_v44  ;;  %v17218_v41 = vld [vmem:[#allocation33_spill] sm:$0xff]  ;;  %v17219_v33 = vld [vmem:[#allocation71_spill] sm:$0xff] }
 0x287   : > { %17208 = vst [vmem:[#allocation59_spill] sm:$0xff] %v12948_v38  ;;  %v4632_v16 = vmul.f32 %v17213_v30, %v17204_v44  ;;  %v4633_v63 = vmul.f32 %v17214_v62, %v17204_v44  ;;  %v4581_v21 = vadd.f32 %v4565_v36, %v4509_v2  ;;  %v12962_v11 = vadd.f32 %v4567_v46, %v4511_v15 }
 0x288   : > { %v4634_v10 = vmul.f32 %v17216_v3, %v17204_v44  ;;  %v4635_v45 = vmul.f32 %v17217_v7, %v17204_v44  ;;  %v4636_v14 = vmul.f32 %v17218_v41, %v17204_v44  ;;  %v4637_v28 = vmul.f32 %v17219_v33, %v17204_v44  ;;  %v17221_v3 = vld [vmem:[#allocation101_spill] sm:$0xff]  ;;  %v17222_v7 = vld [vmem:[#allocation122_spill] sm:$0xff] }
 0x289   : > { %17215 = vst [vmem:[#allocation61_spill] sm:$0xff] %v12962_v11  ;;  %v12974_v57 = vmul.f32 %v12948_v38, %v17204_v44  ;;  %v4642_v27 = vadd.f32 %v4626_v9, %v4570_v0  ;;  %v4643_v2 = vadd.f32 %v4627_v55, %v4571_v13  ;;  %v4644_v15 = vadd.f32 %v4628_v31, %v4572_v39  ;;  %v17223_v41 = vld [vmem:[#allocation121_spill] sm:$0xff]  ;;  %v17224_v33 = vld [vmem:[#allocation150_spill] sm:$0xff]  ;;  %v17226_v55 = vld [vmem:[#allocation160_spill] sm:$0xff] }
 0x28a   : > { %v4645_v36 = vadd.f32 %v4629_v52, %v4573_v18  ;;  %v4646_v46 = vadd.f32 %v4630_v42, %v4574_v37  ;;  %v4647_v11 = vadd.f32 %v4631_v22, %v4575_v6  ;;  %v4648_v61 = vadd.f32 %v4632_v16, %v4576_v51  ;;  %v17225_v44 = vld [vmem:[#allocation149_spill] sm:$0xff]  ;;  %v17227_v13 = vld [vmem:[#allocation95_spill] sm:$0xff]  ;;  %v17228_v18 = vld [vmem:[#allocation86_spill] sm:$0xff] }
 0x28b   : > { %17220 = vst [vmem:[#allocation30_spill] sm:$0xff] %v12974_v57  ;;  %v4649_v1 = vadd.f32 %v4633_v63, %v4577_v58  ;;  %v4723_v62 = vmul.f32 %v17222_v7, %v17221_v3  ;;  %v4724_v30 = vmul.f32 %v17223_v41, %v17221_v3  ;;  %v4725_v24 = vmul.f32 %v17224_v33, %v17221_v3  ;;  %v17229_v6 = vld [vmem:[#allocation81_spill] sm:$0xff]  ;;  %v17230_v42 = vld [vmem:[#allocation99_spill] sm:$0xff]  ;;  %v17231_v16 = vld [vmem:[#allocation92_spill] sm:$0xff] }
 0x28c   : > { %v4726_v57 = vmul.f32 %v17225_v44, %v17221_v3  ;;  %v4727_v9 = vmul.f32 %v17226_v55, %v17221_v3  ;;  %v4650_v0 = vadd.f32 %v4634_v10, %v4578_v25  ;;  %v4728_v39 = vmul.f32 %v17227_v13, %v17221_v3  ;;  %v17232_v25 = vld [vmem:[#allocation115_spill] sm:$0xff]  ;;  %v17233_v7 = vld [vmem:[#allocation142_spill] sm:$0xff]  ;;  %v17237_v33 = vld [vmem:[#allocation152_spill] sm:$0xff] }
 0x28d   : > { %v4729_v37 = vmul.f32 %v17228_v18, %v17221_v3  ;;  %v4730_v51 = vmul.f32 %v17229_v6, %v17221_v3  ;;  %v4651_v58 = vadd.f32 %v4635_v45, %v4579_v59  ;;  %v4652_v31 = vadd.f32 %v4636_v14, %v4580_v53  ;;  %v17234_v45 = vld [vmem:[#allocation104_spill] sm:$0xff]  ;;  %v17235_v14 = vld [vmem:[#allocation125_spill] sm:$0xff]  ;;  %v17238_v38 = vld [vmem:[#allocation151_spill] sm:$0xff] }
 0x28e   : > { %v4653_v52 = vadd.f32 %v4637_v28, %v4581_v21  ;;  %v4731_v22 = vmul.f32 %v17230_v42, %v17221_v3  ;;  %v4732_v63 = vmul.f32 %v17231_v16, %v17221_v3  ;;  %v4733_v10 = vmul.f32 %v17232_v25, %v17221_v3  ;;  %v17236_v42 = vld [vmem:[#allocation124_spill] sm:$0xff] }
 0x28f   : > { %v4734_v41 = vmul.f32 %v17233_v7, %v17221_v3  ;;  %v4739_v13 = vadd.f32 %v4723_v62, %v4642_v27  ;;  %v4740_v18 = vadd.f32 %v4724_v30, %v4643_v2  ;;  %v4741_v55 = vadd.f32 %v4725_v24, %v4644_v15  ;;  %v17239_v27 = vld [vmem:[#allocation161_spill] sm:$0xff]  ;;  %v17240_v30 = vld [vmem:[#allocation36_spill] sm:$0xff] }
 0x290   : > { %v4742_v44 = vadd.f32 %v4726_v57, %v4645_v36  ;;  %v4743_v6 = vadd.f32 %v4727_v9, %v4646_v46  ;;  %v4744_v59 = vadd.f32 %v4728_v39, %v4647_v11  ;;  %v4745_v53 = vadd.f32 %v4729_v37, %v4648_v61  ;;  %v17242_v11 = vld [vmem:[#allocation93_spill] sm:$0xff]  ;;  %v17243_v9 = vld [vmem:[#allocation42_spill] sm:$0xff] }
 0x291   : > { %v4746_v21 = vadd.f32 %v4730_v51, %v4649_v1  ;;  %v4795_v28 = vmul.f32 %v17235_v14, %v17234_v45  ;;  %v4796_v16 = vmul.f32 %v17236_v42, %v17234_v45  ;;  %v4797_v25 = vmul.f32 %v17237_v33, %v17234_v45  ;;  %v17241_v1 = vld [vmem:[#allocation35_spill] sm:$0xff]  ;;  %v17244_v37 = vld [vmem:[#allocation38_spill] sm:$0xff] }
 0x292   : > { %v4798_v3 = vmul.f32 %v17238_v38, %v17234_v45  ;;  %v4799_v24 = vmul.f32 %v17239_v27, %v17234_v45  ;;  %v4747_v57 = vadd.f32 %v4731_v22, %v4650_v0  ;;  %v4800_v61 = vmul.f32 %v17240_v30, %v17234_v45  ;;  %v17245_v0 = vld [vmem:[#allocation141_spill] sm:$0xff] }
 0x293   : > { %v4801_v62 = vmul.f32 %v17241_v1, %v17234_v45  ;;  %v4802_v2 = vmul.f32 %v17242_v11, %v17234_v45  ;;  %v4748_v15 = vadd.f32 %v4732_v63, %v4651_v58  ;;  %v4749_v36 = vadd.f32 %v4733_v10, %v4652_v31  ;;  %v17246_v63 = vld [vmem:[#allocation107_spill] sm:$0xff] }
 0x294   : > { %v4750_v46 = vadd.f32 %v4734_v41, %v4653_v52  ;;  %v4803_v39 = vmul.f32 %v17243_v9, %v17234_v45  ;;  %v4804_v51 = vmul.f32 %v17244_v37, %v17234_v45  ;;  %v4805_v42 = vmul.f32 %v17245_v0, %v17234_v45  ;;  %v17247_v37 = vld [vmem:[#allocation45_spill] sm:$0xff] }
 0x295   : > { %v4806_v22 = vmul.f32 %v12758_v29, %v17234_v45  ;;  %v4811_v14 = vadd.f32 %v4795_v28, %v4739_v13  ;;  %v4812_v1 = vadd.f32 %v4796_v16, %v4740_v18  ;;  %v4813_v30 = vadd.f32 %v4797_v25, %v4741_v55  ;;  %v17248_v13 = vld [vmem:[#allocation47_spill] sm:$0xff] }
 0x296   : > { %v4814_v27 = vadd.f32 %v4798_v3, %v4742_v44  ;;  %v4815_v11 = vadd.f32 %v4799_v24, %v4743_v6  ;;  %v4816_v58 = vadd.f32 %v4800_v61, %v4744_v59  ;;  %v4817_v31 = vadd.f32 %v4801_v62, %v4745_v53  ;;  %v17249_v3 = vld [vmem:[#allocation50_spill] sm:$0xff]  ;;  %v17250_v6 = vld [vmem:[#allocation164_spill] sm:$0xff]  ;;  %v17254_v61 = vld [vmem:[#allocation105_spill] sm:$0xff] }
 0x297   : > { %v4818_v52 = vadd.f32 %v4802_v2, %v4746_v21  ;;  %v4867_v10 = vmul.f32 %v17163_v34, %v17246_v63  ;;  %v4868_v41 = vmul.f32 %v17164_v60, %v17246_v63  ;;  %v4869_v0 = vmul.f32 %v17165_v54, %v17246_v63  ;;  %v17251_v34 = vld [vmem:[#allocation39_spill] sm:$0xff]  ;;  %v17252_v21 = vld [vmem:[#allocation46_spill] sm:$0xff]  ;;  %v17255_v2 = vld [vmem:[#allocation136_spill] sm:$0xff] }
 0x298   : > { %v4870_v45 = vmul.f32 %v17247_v37, %v17246_v63  ;;  %v4871_v55 = vmul.f32 %v17248_v13, %v17246_v63  ;;  %v4819_v44 = vadd.f32 %v4803_v39, %v4747_v57  ;;  %v4872_v18 = vmul.f32 %v17249_v3, %v17246_v63  ;;  %v17253_v24 = vld [vmem:[#allocation102_spill] sm:$0xff] }
 0x299   : > { %v4873_v16 = vmul.f32 %v17250_v6, %v17246_v63  ;;  %v4874_v25 = vmul.f32 %v17251_v34, %v17246_v63  ;;  %v4820_v60 = vadd.f32 %v4804_v51, %v4748_v15  ;;  %v4821_v59 = vadd.f32 %v4805_v42, %v4749_v36 }
 0x29a   : > { %v4822_v53 = vadd.f32 %v4806_v22, %v4750_v46  ;;  %v4875_v28 = vmul.f32 %v17252_v21, %v17246_v63  ;;  %v4876_v57 = vmul.f32 %v17253_v24, %v17246_v63  ;;  %v4877_v62 = vmul.f32 %v17254_v61, %v17246_v63  ;;  %v17256_v22 = vld [vmem:[#allocation108_spill] sm:$0xff]  ;;  %v13053_v61 = vld [vmem:[%s9980_s19 + $0x70] sm:$0xff] }
 0x29b   : > { %v4878_v39 = vmul.f32 %v17255_v2, %v17246_v63  ;;  %v4883_v6 = vadd.f32 %v4867_v10, %v4811_v14  ;;  %v4884_v29 = vadd.f32 %v4868_v41, %v4812_v1  ;;  %v4885_v34 = vadd.f32 %v4869_v0, %v4813_v30  ;;  %v13058_v1 = vld [vmem:[%s9980_s19 + $0x78] sm:$0xff]  ;;  %v17258_v0 = vld [vmem:[#allocation128_spill] sm:$0xff] }
 0x29c   : > { %v4886_v15 = vadd.f32 %v4870_v45, %v4814_v27  ;;  %v4887_v36 = vadd.f32 %v4871_v55, %v4815_v11  ;;  %v4888_v51 = vadd.f32 %v4872_v18, %v4816_v58  ;;  %v4889_v46 = vadd.f32 %v4873_v16, %v4817_v31  ;;  %v17257_v11 = vld [vmem:[#allocation109_spill] sm:$0xff]  ;;  %v13071_v41 = vld [vmem:[%s9980_s19 + $0xa0] sm:$0xff] }
 0x29d   : > { %v4890_v42 = vadd.f32 %v4874_v25, %v4818_v52  ;;  %v4899_v21 = vmul.f32 %v12829_v35, %v17256_v22  ;;  %v4900_v24 = vmul.f32 %v12834_v5, %v17256_v22  ;;  %v4901_v14 = vmul.f32 %v13053_v61, %v17256_v22  ;;  %17259 = vst [vmem:[#allocation31_spill] sm:$0xff] %v13071_v41  ;;  %v13076_v18 = vld [vmem:[%s9980_s19 + $0xa8] sm:$0xff]  ;;  %v17264_v2 = vld [vmem:[#allocation60_spill] sm:$0xff] }
 0x29e   : > { %v4902_v45 = vmul.f32 %v13058_v1, %v17256_v22  ;;  %v4903_v27 = vmul.f32 %v17177_v20, %v17256_v22  ;;  %v4891_v30 = vadd.f32 %v4875_v28, %v4819_v44  ;;  %v4904_v35 = vmul.f32 %v17178_v48, %v17256_v22  ;;  %17260 = vst [vmem:[#allocation113_spill] sm:$0xff] %v13076_v18 }
 0x29f   : > { %v4905_v5 = vmul.f32 %v17257_v11, %v17256_v22  ;;  %v4906_v58 = vmul.f32 %v17258_v0, %v17256_v22  ;;  %v4892_v31 = vadd.f32 %v4876_v57, %v4820_v60  ;;  %v4893_v52 = vadd.f32 %v4877_v62, %v4821_v59  ;;  %v17263_v11 = vld [vmem:[#allocation156_spill] sm:$0xff] }
 0x2a0   : > { %v4894_v10 = vadd.f32 %v4878_v39, %v4822_v53  ;;  %v4907_v55 = vmul.f32 %v13071_v41, %v17256_v22  ;;  %v4908_v20 = vmul.f32 %v13076_v18, %v17256_v22  ;;  %v4909_v48 = vmul.f32 %v17256_v22, %v12637_v43  ;;  %v17261_v39 = vld [vmem:[#allocation111_spill] sm:$0xff] }
 0x2a1   : > { %v4910_v44 = vmul.f32 %v17256_v22, %v12653_v50  ;;  %v4915_v16 = vadd.f32 %v4899_v21, %v4883_v6  ;;  %v4916_v25 = vadd.f32 %v4900_v24, %v4884_v29  ;;  %v4917_v60 = vadd.f32 %v4901_v14, %v4885_v34  ;;  %v17262_v41 = vld [vmem:[#allocation139_spill] sm:$0xff]  ;;  %v17265_v29 = vld [vmem:[#allocation134_spill] sm:$0xff]  ;;  %v17266_v21 = vld [vmem:[#allocation133_spill] sm:$0xff] }
 0x2a2   : > { %v4918_v59 = vadd.f32 %v4902_v45, %v4886_v15  ;;  %v4919_v53 = vadd.f32 %v4903_v27, %v4887_v36  ;;  %v4920_v28 = vadd.f32 %v4904_v35, %v4888_v51  ;;  %v4921_v57 = vadd.f32 %v4905_v5, %v4889_v46  ;;  %v17267_v15 = vld [vmem:[#allocation168_spill] sm:$0xff]  ;;  %v17269_v45 = vld [vmem:[#allocation65_spill] sm:$0xff] }
 0x2a3   : > { %v4922_v62 = vadd.f32 %v4906_v58, %v4890_v42  ;;  %v4971_v63 = vmul.f32 %v17185_v47, %v17261_v39  ;;  %v4972_v18 = vmul.f32 %v17262_v41, %v17261_v39  ;;  %v4973_v43 = vmul.f32 %v17263_v11, %v17261_v39  ;;  %v17268_v47 = vld [vmem:[#allocation74_spill] sm:$0xff]  ;;  %v17270_v35 = vld [vmem:[#allocation32_spill] sm:$0xff] }
 0x2a4   : > { %v4974_v22 = vmul.f32 %v17264_v2, %v17261_v39  ;;  %v4975_v6 = vmul.f32 %v17265_v29, %v17261_v39  ;;  %v4923_v34 = vadd.f32 %v4907_v55, %v4891_v30  ;;  %v4976_v24 = vmul.f32 %v17266_v21, %v17261_v39  ;;  %v17271_v30 = vld [vmem:[#allocation155_spill] sm:$0xff] }
 0x2a5   : > { %v4977_v36 = vmul.f32 %v17267_v15, %v17261_v39  ;;  %v4978_v51 = vmul.f32 %v17268_v47, %v17261_v39  ;;  %v4924_v46 = vadd.f32 %v4908_v20, %v4892_v31  ;;  %v4925_v42 = vadd.f32 %v4909_v48, %v4893_v52  ;;  %v17272_v20 = vld [vmem:[#allocation114_spill] sm:$0xff] }
 0x2a6   : > { %v4926_v14 = vadd.f32 %v4910_v44, %v4894_v10  ;;  %v4979_v27 = vmul.f32 %v17269_v45, %v17261_v39  ;;  %v4980_v5 = vmul.f32 %v17270_v35, %v17261_v39  ;;  %v4981_v58 = vmul.f32 %v17271_v30, %v17261_v39 }
 0x2a7   : > { %v4982_v41 = vmul.f32 %v12877_v56, %v17261_v39  ;;  %v4987_v55 = vadd.f32 %v4971_v63, %v4915_v16  ;;  %v4988_v50 = vadd.f32 %v4972_v18, %v4916_v25  ;;  %v4989_v15 = vadd.f32 %v4973_v43, %v4917_v60  ;;  %v17273_v16 = vld [vmem:[#allocation78_spill] sm:$0xff] }
 0x2a8   : > { %v4990_v21 = vadd.f32 %v4974_v22, %v4918_v59  ;;  %v4991_v47 = vadd.f32 %v4975_v6, %v4919_v53  ;;  %v4992_v31 = vadd.f32 %v4976_v24, %v4920_v28  ;;  %v4993_v52 = vadd.f32 %v4977_v36, %v4921_v57  ;;  %v17275_v53 = vld [vmem:[#allocation166_spill] sm:$0xff]  ;;  %v17276_v57 = vld [vmem:[#allocation165_spill] sm:$0xff] }
 0x2a9   : > { %v4994_v10 = vadd.f32 %v4978_v51, %v4922_v62  ;;  %v5043_v48 = vmul.f32 %v17090_v40, %v17272_v20  ;;  %v5044_v44 = vmul.f32 %v17093_v19, %v17272_v20  ;;  %v5045_v30 = vmul.f32 %v17100_v26, %v17272_v20  ;;  %v17274_v19 = vld [vmem:[#allocation72_spill] sm:$0xff]  ;;  %v17277_v6 = vld [vmem:[#allocation106_spill] sm:$0xff] }
 0x2aa   : > { %v5046_v39 = vmul.f32 %v17101_v4, %v17272_v20  ;;  %v5047_v43 = vmul.f32 %v17104_v32, %v17272_v20  ;;  %v4995_v63 = vadd.f32 %v4979_v27, %v4923_v34  ;;  %v4996_v22 = vadd.f32 %v4980_v5, %v4924_v46 }
 0x2ab   : > { %v5048_v18 = vmul.f32 %v17105_v12, %v17272_v20  ;;  %v5049_v40 = vmul.f32 %v17273_v16, %v17272_v20  ;;  %v4997_v25 = vadd.f32 %v4981_v58, %v4925_v42  ;;  %v4998_v60 = vadd.f32 %v4982_v41, %v4926_v14  ;;  %v17278_v58 = vld [vmem:[#allocation117_spill] sm:$0xff] }
 0x2ac   : > { %v5050_v59 = vmul.f32 %v17274_v19, %v17272_v20  ;;  %v5051_v28 = vmul.f32 %v17275_v53, %v17272_v20  ;;  %v5052_v62 = vmul.f32 %v17276_v57, %v17272_v20  ;;  %v5053_v34 = vmul.f32 %v17277_v6, %v17272_v20  ;;  %v17279_v6 = vld [vmem:[#allocation80_spill] sm:$0xff] }
 0x2ad   : > { %v5054_v24 = vmul.f32 %v12910_v23, %v17272_v20  ;;  %v5059_v36 = vadd.f32 %v5043_v48, %v4987_v55  ;;  %v5060_v51 = vadd.f32 %v5044_v44, %v4988_v50  ;;  %v5061_v46 = vadd.f32 %v5045_v30, %v4989_v15  ;;  %v17280_v55 = vld [vmem:[#allocation69_spill] sm:$0xff]  ;;  %v17287_v23 = vld [vmem:[#allocation59_spill] sm:$0xff] }
 0x2ae   : > { %v5062_v42 = vadd.f32 %v5046_v39, %v4990_v21  ;;  %v5063_v14 = vadd.f32 %v5047_v43, %v4991_v47  ;;  %v5064_v27 = vadd.f32 %v5048_v18, %v4992_v31  ;;  %v5065_v5 = vadd.f32 %v5049_v40, %v4993_v52  ;;  %v17281_v39 = vld [vmem:[#allocation144_spill] sm:$0xff]  ;;  %v17282_v30 = vld [vmem:[#allocation29_spill] sm:$0xff]  ;;  %v17283_v31 = vld [vmem:[#allocation27_spill] sm:$0xff] }
 0x2af   : > { %v5115_v41 = vmul.f32 %v17209_v17, %v17278_v58  ;;  %v5116_v53 = vmul.f32 %v17210_v49, %v17278_v58  ;;  %v5117_v57 = vmul.f32 %v17211_v8, %v17278_v58  ;;  %v5118_v56 = vmul.f32 %v17279_v6, %v17278_v58  ;;  %v17285_v44 = vld [vmem:[#allocation33_spill] sm:$0xff]  ;;  %v17286_v18 = vld [vmem:[#allocation71_spill] sm:$0xff] }
 0x2b0   : > { %v5119_v50 = vmul.f32 %v17280_v55, %v17278_v58  ;;  %v5120_v21 = vmul.f32 %v17281_v39, %v17278_v58  ;;  %v5066_v15 = vadd.f32 %v5050_v59, %v4994_v10  ;;  %v5067_v47 = vadd.f32 %v5051_v28, %v4995_v63 }
 0x2b1   : > { %v5121_v17 = vmul.f32 %v17282_v30, %v17278_v58  ;;  %v5122_v49 = vmul.f32 %v17283_v31, %v17278_v58  ;;  %v5068_v52 = vadd.f32 %v5052_v62, %v4996_v22  ;;  %v13148_v48 = vadd.f32 %v5053_v34, %v4997_v25  ;;  %v17288_v25 = vld [vmem:[#allocation120_spill] sm:$0xff]  ;;  %v17289_v62 = vld [vmem:[#allocation150_spill] sm:$0xff] }
 0x2b2   : > { %v5123_v43 = vmul.f32 %v17285_v44, %v17278_v58  ;;  %v5124_v40 = vmul.f32 %v17286_v18, %v17278_v58  ;;  %v5070_v20 = vadd.f32 %v5054_v24, %v4998_v60  ;;  %v5126_v10 = vmul.f32 %v17287_v23, %v17278_v58  ;;  %v17291_v60 = vld [vmem:[#allocation160_spill] sm:$0xff] }
 0x2b3   : > { %17284 = vst [vmem:[#allocation112_spill] sm:$0xff] %v13148_v48  ;;  %v5131_v63 = vadd.f32 %v5115_v41, %v5059_v36  ;;  %v5132_v59 = vadd.f32 %v5116_v53, %v5060_v51  ;;  %v5133_v28 = vadd.f32 %v5117_v57, %v5061_v46  ;;  %v5134_v35 = vadd.f32 %v5118_v56, %v5062_v42  ;;  %v17290_v48 = vld [vmem:[#allocation149_spill] sm:$0xff]  ;;  %v17292_v36 = vld [vmem:[#allocation95_spill] sm:$0xff]  ;;  %v17293_v56 = vld [vmem:[#allocation86_spill] sm:$0xff] }
 0x2b4   : > { %v5135_v45 = vadd.f32 %v5119_v50, %v5063_v14  ;;  %v5136_v30 = vadd.f32 %v5120_v21, %v5064_v27  ;;  %v5137_v16 = vadd.f32 %v5121_v17, %v5065_v5  ;;  %v5138_v22 = vadd.f32 %v5122_v49, %v5066_v15  ;;  %v17294_v46 = vld [vmem:[#allocation81_spill] sm:$0xff]  ;;  %v17295_v14 = vld [vmem:[#allocation99_spill] sm:$0xff]  ;;  %v17296_v5 = vld [vmem:[#allocation92_spill] sm:$0xff] }
 0x2b5   : > { %v5212_v34 = vmul.f32 %v17289_v62, %v17288_v25  ;;  %v5213_v44 = vmul.f32 %v17290_v48, %v17288_v25  ;;  %v5139_v31 = vadd.f32 %v5123_v43, %v5067_v47  ;;  %v5140_v18 = vadd.f32 %v5124_v40, %v5068_v52  ;;  %v17297_v50 = vld [vmem:[#allocation115_spill] sm:$0xff]  ;;  %v17300_v62 = vld [vmem:[#allocation161_spill] sm:$0xff] }
 0x2b6   : > { %v5214_v24 = vmul.f32 %v17291_v60, %v17288_v25  ;;  %v5215_v53 = vmul.f32 %v17292_v36, %v17288_v25  ;;  %v5142_v57 = vadd.f32 %v5126_v10, %v5070_v20  ;;  %v5216_v51 = vmul.f32 %v17293_v56, %v17288_v25  ;;  %v17298_v20 = vld [vmem:[#allocation96_spill] sm:$0xff]  ;;  %v17299_v52 = vld [vmem:[#allocation123_spill] sm:$0xff] }
 0x2b7   : > { %v5217_v42 = vmul.f32 %v17294_v46, %v17288_v25  ;;  %v5218_v27 = vmul.f32 %v17295_v14, %v17288_v25  ;;  %v5219_v41 = vmul.f32 %v17296_v5, %v17288_v25  ;;  %v5220_v21 = vmul.f32 %v17297_v50, %v17288_v25  ;;  %v17301_v50 = vld [vmem:[#allocation36_spill] sm:$0xff] }
 0x2b8   : > { %v5221_v15 = vmul.f32 %v17233_v7, %v17288_v25  ;;  %v5223_v47 = vmul.f32 %v17298_v20, %v17288_v25  ;;  %v5228_v17 = vadd.f32 %v5212_v34, %v5131_v63  ;;  %v5229_v49 = vadd.f32 %v5213_v44, %v5132_v59  ;;  %v17302_v63 = vld [vmem:[#allocation93_spill] sm:$0xff] }
 0x2b9   : > { %v5284_v48 = vmul.f32 %v17237_v33, %v17299_v52  ;;  %v5285_v43 = vmul.f32 %v17238_v38, %v17299_v52  ;;  %v5230_v40 = vadd.f32 %v5214_v24, %v5133_v28  ;;  %v5231_v10 = vadd.f32 %v5215_v53, %v5134_v35  ;;  %v17304_v35 = vld [vmem:[#allocation126_spill] sm:$0xff] }
 0x2ba   : > { %v5286_v58 = vmul.f32 %v17300_v62, %v17299_v52  ;;  %v5287_v23 = vmul.f32 %v17301_v50, %v17299_v52  ;;  %v5232_v7 = vadd.f32 %v5216_v51, %v5135_v45  ;;  %v5233_v14 = vadd.f32 %v5217_v42, %v5136_v30  ;;  %v17308_v51 = vld [vmem:[#allocation141_spill] sm:$0xff] }
 0x2bb   : > { %v5234_v5 = vadd.f32 %v5218_v27, %v5137_v16  ;;  %v5289_v44 = vmul.f32 %v17302_v63, %v17299_v52  ;;  %v5235_v59 = vadd.f32 %v5219_v41, %v5138_v22  ;;  %v5236_v34 = vadd.f32 %v5220_v21, %v5139_v31  ;;  %v17305_v31 = vld [vmem:[#allocation35_spill] sm:$0xff]  ;;  %v17309_v27 = vld [vmem:[#allocation157_spill] sm:$0xff] }
 0x2bc   : > { %v5237_v33 = vadd.f32 %v5221_v15, %v5140_v18  ;;  %v13188_v25 = vadd.f32 %v5223_v47, %v5142_v57  ;;  %v5300_v38 = vadd.f32 %v5284_v48, %v5228_v17  ;;  %v5301_v28 = vadd.f32 %v5285_v43, %v5229_v49  ;;  %v17306_v57 = vld [vmem:[#allocation39_spill] sm:$0xff]  ;;  %v17312_v49 = vld [vmem:[#allocation129_spill] sm:$0xff] }
 0x2bd   : > { %v5356_v24 = vmul.f32 %v17165_v54, %v17304_v35  ;;  %v5357_v53 = vmul.f32 %v17247_v37, %v17304_v35  ;;  %v5302_v20 = vadd.f32 %v5286_v58, %v5230_v40  ;;  %v5303_v45 = vadd.f32 %v5287_v23, %v5231_v10  ;;  %v17307_v23 = vld [vmem:[#allocation38_spill] sm:$0xff]  ;;  %v17310_v21 = vld [vmem:[#allocation159_spill] sm:$0xff]  ;;  %v13219_v10 = vld [vmem:[%s9980_s19 + $0x80] sm:$0xff] }
 0x2be   : > { %17303 = vst [vmem:[#allocation140_spill] sm:$0xff] %v13188_v25  ;;  %v5358_v16 = vmul.f32 %v17248_v13, %v17304_v35  ;;  %v5359_v30 = vmul.f32 %v17249_v3, %v17304_v35  ;;  %v5288_v18 = vmul.f32 %v17305_v31, %v17299_v52  ;;  %v5290_v22 = vmul.f32 %v17243_v9, %v17299_v52  ;;  %v13224_v25 = vld [vmem:[%s9980_s19 + $0x88] sm:$0xff] }
 0x2bf   : > { %v5305_v54 = vadd.f32 %v5289_v44, %v5233_v14  ;;  %v5361_v37 = vmul.f32 %v17306_v57, %v17304_v35  ;;  %v5291_v58 = vmul.f32 %v17307_v23, %v17299_v52  ;;  %v5292_v42 = vmul.f32 %v17308_v51, %v17299_v52 }
 0x2c0   : > { %v5293_v41 = vmul.f32 %v17309_v27, %v17299_v52  ;;  %v13212_v15 = vmul.f32 %v17310_v21, %v17299_v52  ;;  %v5372_v47 = vadd.f32 %v5356_v24, %v5300_v38  ;;  %v5373_v17 = vadd.f32 %v5357_v53, %v5301_v28  ;;  %v17314_v21 = vld [vmem:[#allocation130_spill] sm:$0xff] }
 0x2c1   : > { %v5388_v14 = vmul.f32 %v13053_v61, %v17312_v49  ;;  %v5389_v48 = vmul.f32 %v13058_v1, %v17312_v49  ;;  %v5374_v43 = vadd.f32 %v5358_v16, %v5302_v20  ;;  %v5375_v40 = vadd.f32 %v5359_v30, %v5303_v45  ;;  %v17313_v45 = vld [vmem:[#allocation164_spill] sm:$0xff] }
 0x2c2   : > { %17311 = vst [vmem:[#allocation119_spill] sm:$0xff] %v13212_v15  ;;  %v5390_v44 = vmul.f32 %v13219_v10, %v17312_v49  ;;  %v5391_v52 = vmul.f32 %v13224_v25, %v17312_v49  ;;  %v5304_v38 = vadd.f32 %v5288_v18, %v5232_v7  ;;  %v5306_v28 = vadd.f32 %v5290_v22, %v5234_v5 }
 0x2c3   : > { %v5377_v24 = vadd.f32 %v5361_v37, %v5305_v54  ;;  %v5393_v61 = vmul.f32 %v17258_v0, %v17312_v49  ;;  %v5307_v53 = vadd.f32 %v5291_v58, %v5235_v59  ;;  %v5308_v1 = vadd.f32 %v5292_v42, %v5236_v34  ;;  %v17315_v59 = vld [vmem:[#allocation133_spill] sm:$0xff]  ;;  %v17317_v54 = vld [vmem:[#allocation102_spill] sm:$0xff] }
 0x2c4   : > { %v5309_v20 = vadd.f32 %v5293_v41, %v5237_v33  ;;  %v5360_v16 = vmul.f32 %v17313_v45, %v17304_v35  ;;  %v5404_v30 = vadd.f32 %v5388_v14, %v5372_v47  ;;  %v5405_v15 = vadd.f32 %v5389_v48, %v5373_v17  ;;  %v17316_v33 = vld [vmem:[#allocation46_spill] sm:$0xff]  ;;  %v17321_v14 = vld [vmem:[#allocation109_spill] sm:$0xff] }
 0x2c5   : > { %v5460_v51 = vmul.f32 %v17263_v11, %v17314_v21  ;;  %v5461_v27 = vmul.f32 %v17264_v2, %v17314_v21  ;;  %v5406_v7 = vadd.f32 %v5390_v44, %v5374_v43  ;;  %v5407_v5 = vadd.f32 %v5391_v52, %v5375_v40  ;;  %v17318_v11 = vld [vmem:[#allocation74_spill] sm:$0xff]  ;;  %v17319_v2 = vld [vmem:[#allocation105_spill] sm:$0xff]  ;;  %v17320_v52 = vld [vmem:[#allocation136_spill] sm:$0xff] }
 0x2c6   : > { %v5462_v18 = vmul.f32 %v17265_v29, %v17314_v21  ;;  %v5463_v34 = vmul.f32 %v17315_v59, %v17314_v21  ;;  %v5362_v22 = vmul.f32 %v17316_v33, %v17304_v35  ;;  %v5363_v37 = vmul.f32 %v17317_v54, %v17304_v35  ;;  %v17322_v44 = vld [vmem:[#allocation57_spill] sm:$0xff] }
 0x2c7   : > { %v5409_v58 = vadd.f32 %v5393_v61, %v5377_v24  ;;  %v5465_v42 = vmul.f32 %v17318_v11, %v17314_v21  ;;  %v5364_v41 = vmul.f32 %v17319_v2, %v17304_v35  ;;  %v5365_v47 = vmul.f32 %v17320_v52, %v17304_v35 }
 0x2c8   : > { %v5376_v17 = vadd.f32 %v5360_v16, %v5304_v38  ;;  %v5392_v48 = vmul.f32 %v17321_v14, %v17312_v49  ;;  %v5476_v43 = vadd.f32 %v5460_v51, %v5404_v30  ;;  %v5477_v40 = vadd.f32 %v5461_v27, %v5405_v15  ;;  %v17323_v30 = vld [vmem:[#allocation168_spill] sm:$0xff] }
 0x2c9   : > { %v5532_v59 = vmul.f32 %v17100_v26, %v17322_v44  ;;  %v5533_v24 = vmul.f32 %v17101_v4, %v17322_v44  ;;  %v5478_v61 = vadd.f32 %v5462_v18, %v5406_v7  ;;  %v5479_v11 = vadd.f32 %v5463_v34, %v5407_v5  ;;  %v17324_v18 = vld [vmem:[#allocation145_spill] sm:$0xff] }
 0x2ca   : > { %v5534_v2 = vmul.f32 %v17104_v32, %v17322_v44  ;;  %v5535_v35 = vmul.f32 %v17105_v12, %v17322_v44  ;;  %v5378_v38 = vadd.f32 %v5362_v22, %v5306_v28  ;;  %v5379_v16 = vadd.f32 %v5363_v37, %v5307_v53 }
 0x2cb   : > { %v5481_v52 = vadd.f32 %v5465_v42, %v5409_v58  ;;  %v5537_v51 = vmul.f32 %v17274_v19, %v17322_v44  ;;  %v5380_v27 = vadd.f32 %v5364_v41, %v5308_v1  ;;  %v5381_v15 = vadd.f32 %v5365_v47, %v5309_v20  ;;  %v17325_v20 = vld [vmem:[#allocation31_spill] sm:$0xff]  ;;  %v17328_v47 = vld [vmem:[#allocation77_spill] sm:$0xff] }
 0x2cc   : > { %v5408_v26 = vadd.f32 %v5392_v48, %v5376_v17  ;;  %v5464_v4 = vmul.f32 %v17323_v30, %v17314_v21  ;;  %v5548_v7 = vadd.f32 %v5532_v59, %v5476_v43  ;;  %v5549_v5 = vadd.f32 %v5533_v24, %v5477_v40  ;;  %v17326_v59 = vld [vmem:[#allocation113_spill] sm:$0xff]  ;;  %v17330_v17 = vld [vmem:[#allocation78_spill] sm:$0xff]  ;;  %v17331_v24 = vld [vmem:[#allocation148_spill] sm:$0xff] }
 0x2cd   : > { %v5604_v34 = vmul.f32 %v17211_v8, %v17324_v18  ;;  %v5605_v12 = vmul.f32 %v17279_v6, %v17324_v18  ;;  %v5550_v28 = vadd.f32 %v5534_v2, %v5478_v61  ;;  %v5551_v53 = vadd.f32 %v5535_v35, %v5479_v11  ;;  %v17327_v8 = vld [vmem:[#allocation27_spill] sm:$0xff]  ;;  %v17329_v35 = vld [vmem:[#allocation76_spill] sm:$0xff] }
 0x2ce   : > { %v5606_v22 = vmul.f32 %v17280_v55, %v17324_v18  ;;  %v5607_v1 = vmul.f32 %v17281_v39, %v17324_v18  ;;  %v5394_v37 = vmul.f32 %v17325_v20, %v17312_v49  ;;  %v5395_v58 = vmul.f32 %v17326_v59, %v17312_v49  ;;  %v17333_v39 = vld [vmem:[#allocation29_spill] sm:$0xff] }
 0x2cf   : > { %v5553_v42 = vadd.f32 %v5537_v51, %v5481_v52  ;;  %v5609_v41 = vmul.f32 %v17327_v8, %v17324_v18  ;;  %v5396_v6 = vmul.f32 %v17312_v49, %v17328_v47  ;;  %v5397_v11 = vmul.f32 %v17312_v49, %v17329_v35 }
 0x2d0   : > { %v5480_v2 = vadd.f32 %v5464_v4, %v5408_v26  ;;  %v5536_v48 = vmul.f32 %v17330_v17, %v17322_v44  ;;  %v5620_v43 = vadd.f32 %v5604_v34, %v5548_v7  ;;  %v5621_v40 = vadd.f32 %v5605_v12, %v5549_v5  ;;  %v17332_v7 = vld [vmem:[#allocation92_spill] sm:$0xff] }
 0x2d1   : > { %v5701_v61 = vmul.f32 %v17291_v60, %v17331_v24  ;;  %v5702_v52 = vmul.f32 %v17292_v36, %v17331_v24  ;;  %v5622_v51 = vadd.f32 %v5606_v22, %v5550_v28  ;;  %v5623_v8 = vadd.f32 %v5607_v1, %v5551_v53  ;;  %v17334_v22 = vld [vmem:[#allocation43_spill] sm:$0xff] }
 0x2d2   : > { %v5703_v47 = vmul.f32 %v17293_v56, %v17331_v24  ;;  %v5704_v49 = vmul.f32 %v17294_v46, %v17331_v24  ;;  %v5410_v26 = vadd.f32 %v5394_v37, %v5378_v38  ;;  %v5411_v4 = vadd.f32 %v5395_v58, %v5379_v16 }
 0x2d3   : > { %v5625_v35 = vadd.f32 %v5609_v41, %v5553_v42  ;;  %v5706_v12 = vmul.f32 %v17332_v7, %v17331_v24  ;;  %v5412_v5 = vadd.f32 %v5396_v6, %v5380_v27  ;;  %v5413_v34 = vadd.f32 %v5397_v11, %v5381_v15  ;;  %v17335_v15 = vld [vmem:[#allocation65_spill] sm:$0xff]  ;;  %v17336_v42 = vld [vmem:[#allocation32_spill] sm:$0xff] }
 0x2d4   : > { %v5552_v60 = vadd.f32 %v5536_v48, %v5480_v2  ;;  %v5608_v36 = vmul.f32 %v17333_v39, %v17324_v18  ;;  %v5717_v28 = vadd.f32 %v5701_v61, %v5620_v43  ;;  %v5718_v53 = vadd.f32 %v5702_v52, %v5621_v40  ;;  %v17339_v48 = vld [vmem:[#allocation99_spill] sm:$0xff]  ;;  %v17340_v52 = vld [vmem:[#allocation153_spill] sm:$0xff] }
 0x2d5   : > { %v5773_v1 = vmul.f32 %v17300_v62, %v17334_v22  ;;  %v5774_v46 = vmul.f32 %v17301_v50, %v17334_v22  ;;  %v5719_v38 = vadd.f32 %v5703_v47, %v5622_v51  ;;  %v5720_v16 = vadd.f32 %v5704_v49, %v5623_v8  ;;  %v17337_v50 = vld [vmem:[#allocation155_spill] sm:$0xff] }
 0x2d6   : > { %v5775_v37 = vmul.f32 %v17305_v31, %v17334_v22  ;;  %v5776_v27 = vmul.f32 %v17302_v63, %v17334_v22  ;;  %v5466_v58 = vmul.f32 %v17335_v15, %v17314_v21  ;;  %v5467_v41 = vmul.f32 %v17336_v42, %v17314_v21  ;;  %v17338_v49 = vld [vmem:[#allocation127_spill] sm:$0xff] }
 0x2d7   : > { %v5722_v6 = vadd.f32 %v5706_v12, %v5625_v35  ;;  %v5778_v62 = vmul.f32 %v17307_v23, %v17334_v22  ;;  %v5468_v11 = vmul.f32 %v17337_v50, %v17314_v21  ;;  %v5469_v8 = vmul.f32 %v17338_v49, %v17314_v21 }
 0x2d8   : > { %v5624_v2 = vadd.f32 %v5608_v36, %v5552_v60  ;;  %v5705_v43 = vmul.f32 %v17339_v48, %v17331_v24  ;;  %v5789_v40 = vadd.f32 %v5773_v1, %v5717_v28  ;;  %v5790_v61 = vadd.f32 %v5774_v46, %v5718_v53 }
 0x2d9   : > { %v5845_v51 = vmul.f32 %v17248_v13, %v17340_v52  ;;  %v5846_v35 = vmul.f32 %v17249_v3, %v17340_v52  ;;  %v5791_v47 = vadd.f32 %v5775_v37, %v5719_v38  ;;  %v5792_v12 = vadd.f32 %v5776_v27, %v5720_v16  ;;  %v17342_v16 = vld [vmem:[#allocation154_spill] sm:$0xff] }
 0x2da   : > { %v5847_v50 = vmul.f32 %v17313_v45, %v17340_v52  ;;  %v5848_v21 = vmul.f32 %v17306_v57, %v17340_v52  ;;  %v5482_v60 = vadd.f32 %v5466_v58, %v5410_v26  ;;  %v5483_v36 = vadd.f32 %v5467_v41, %v5411_v4 }
 0x2db   : > { %v5794_v49 = vadd.f32 %v5778_v62, %v5722_v6  ;;  %v5850_v46 = vmul.f32 %v17317_v54, %v17340_v52  ;;  %v13326_v28 = vadd.f32 %v5468_v11, %v5412_v5  ;;  %v5485_v13 = vadd.f32 %v5469_v8, %v5413_v34  ;;  %v17343_v34 = vld [vmem:[#allocation166_spill] sm:$0xff]  ;;  %v17344_v6 = vld [vmem:[#allocation165_spill] sm:$0xff] }
 0x2dc   : > { %v5721_v53 = vadd.f32 %v5705_v43, %v5624_v2  ;;  %v5777_v3 = vmul.f32 %v17243_v9, %v17334_v22  ;;  %v5861_v1 = vadd.f32 %v5845_v51, %v5789_v40  ;;  %v5862_v38 = vadd.f32 %v5846_v35, %v5790_v61  ;;  %v17348_v40 = vld [vmem:[#allocation52_spill] sm:$0xff] }
 0x2dd   : > { %17341 = vst [vmem:[#allocation118_spill] sm:$0xff] %v13326_v28  ;;  %v5877_v37 = vmul.f32 %v13219_v10, %v17342_v16  ;;  %v5878_v26 = vmul.f32 %v13224_v25, %v17342_v16  ;;  %v5863_v4 = vadd.f32 %v5847_v50, %v5791_v47  ;;  %v5864_v27 = vadd.f32 %v5848_v21, %v5792_v12  ;;  %v17345_v25 = vld [vmem:[#allocation106_spill] sm:$0xff] }
 0x2de   : > { %v5879_v58 = vmul.f32 %v17321_v14, %v17342_v16  ;;  %v5880_v5 = vmul.f32 %v17258_v0, %v17342_v16  ;;  %v5538_v41 = vmul.f32 %v17343_v34, %v17322_v44  ;;  %v5539_v62 = vmul.f32 %v17344_v6, %v17322_v44  ;;  %v17347_v21 = vld [vmem:[#allocation54_spill] sm:$0xff] }
 0x2df   : > { %v5866_v11 = vadd.f32 %v5850_v46, %v5794_v49  ;;  %v5882_v10 = vmul.f32 %v17326_v59, %v17342_v16  ;;  %v13346_v50 = vmul.f32 %v17345_v25, %v17322_v44  ;;  %v5541_v14 = vmul.f32 %v17347_v21, %v17322_v44  ;;  %v17349_v49 = vld [vmem:[#allocation133_spill] sm:$0xff]  ;;  %v17350_v46 = vld [vmem:[#allocation74_spill] sm:$0xff]  ;;  %v17358_v25 = vld [vmem:[#allocation144_spill] sm:$0xff] }
 0x2e0   : > { %v5793_v8 = vadd.f32 %v5777_v3, %v5721_v53  ;;  %v5849_v0 = vmul.f32 %v17316_v33, %v17340_v52  ;;  %v5893_v2 = vadd.f32 %v5877_v37, %v5861_v1  ;;  %v5894_v43 = vadd.f32 %v5878_v26, %v5862_v38 }
 0x2e1   : > { %17346 = vst [vmem:[#allocation147_spill] sm:$0xff] %v13346_v50  ;;  %v5949_v61 = vmul.f32 %v17265_v29, %v17348_v40  ;;  %v5950_v51 = vmul.f32 %v17349_v49, %v17348_v40  ;;  %v5895_v35 = vadd.f32 %v5879_v58, %v5863_v4  ;;  %v5896_v47 = vadd.f32 %v5880_v5, %v5864_v27  ;;  %v17351_v29 = vld [vmem:[#allocation71_spill] sm:$0xff]  ;;  %v17352_v5 = vld [vmem:[#allocation44_spill] sm:$0xff] }
 0x2e2   : > { %v5951_v12 = vmul.f32 %v17323_v30, %v17348_v40  ;;  %v5952_v44 = vmul.f32 %v17350_v46, %v17348_v40  ;;  %v5554_v53 = vadd.f32 %v5538_v41, %v5482_v60  ;;  %v5555_v3 = vadd.f32 %v5539_v62, %v5483_v36  ;;  %v17353_v60 = vld [vmem:[#allocation135_spill] sm:$0xff] }
 0x2e3   : > { %v5898_v50 = vadd.f32 %v5882_v10, %v5866_v11  ;;  %v5954_v1 = vmul.f32 %v17336_v42, %v17348_v40  ;;  %v5557_v38 = vadd.f32 %v5541_v14, %v5485_v13  ;;  %v5611_v37 = vmul.f32 %v17351_v29, %v17324_v18  ;;  %v17354_v10 = vld [vmem:[#allocation33_spill] sm:$0xff] }
 0x2e4   : > { %v5865_v26 = vadd.f32 %v5849_v0, %v5793_v8  ;;  %v5881_v4 = vmul.f32 %v17325_v20, %v17342_v16  ;;  %v5965_v27 = vadd.f32 %v5949_v61, %v5893_v2  ;;  %v5966_v58 = vadd.f32 %v5950_v51, %v5894_v43  ;;  %v17355_v8 = vld [vmem:[#allocation59_spill] sm:$0xff]  ;;  %v17356_v61 = vld [vmem:[#allocation142_spill] sm:$0xff] }
 0x2e5   : > { %v6021_v49 = vmul.f32 %v17104_v32, %v17352_v5  ;;  %v6022_v36 = vmul.f32 %v17353_v60, %v17352_v5  ;;  %v5967_v41 = vadd.f32 %v5951_v12, %v5895_v35  ;;  %v5968_v62 = vadd.f32 %v5952_v44, %v5896_v47  ;;  %v17357_v60 = vld [vmem:[#allocation158_spill] sm:$0xff] }
 0x2e6   : > { %v6023_v13 = vmul.f32 %v17330_v17, %v17352_v5  ;;  %v6024_v11 = vmul.f32 %v17274_v19, %v17352_v5  ;;  %v5610_v14 = vmul.f32 %v17354_v10, %v17324_v18  ;;  %v5613_v0 = vmul.f32 %v17355_v8, %v17324_v18 }
 0x2e7   : > { %v5970_v2 = vadd.f32 %v5954_v1, %v5898_v50  ;;  %v6026_v32 = vmul.f32 %v17344_v6, %v17352_v5  ;;  %v5627_v43 = vadd.f32 %v5611_v37, %v5555_v3  ;;  %v5708_v44 = vmul.f32 %v17356_v61, %v17331_v24  ;;  %v17359_v37 = vld [vmem:[#allocation27_spill] sm:$0xff] }
 0x2e8   : > { %v5897_v51 = vadd.f32 %v5881_v4, %v5865_v26  ;;  %v5953_v35 = vmul.f32 %v17335_v15, %v17348_v40  ;;  %v6037_v47 = vadd.f32 %v6021_v49, %v5965_v27  ;;  %v6038_v12 = vadd.f32 %v6022_v36, %v5966_v58 }
 0x2e9   : > { %v6093_v28 = vmul.f32 %v17280_v55, %v17357_v60  ;;  %v6094_v18 = vmul.f32 %v17358_v25, %v17357_v60  ;;  %v6039_v50 = vadd.f32 %v6023_v13, %v5967_v41  ;;  %v6040_v1 = vadd.f32 %v6024_v11, %v5968_v62  ;;  %v17360_v55 = vld [vmem:[#allocation157_spill] sm:$0xff]  ;;  %v17361_v13 = vld [vmem:[#allocation91_spill] sm:$0xff] }
 0x2ea   : > { %v6095_v3 = vmul.f32 %v17333_v39, %v17357_v60  ;;  %v6096_v6 = vmul.f32 %v17359_v37, %v17357_v60  ;;  %v5626_v26 = vadd.f32 %v5610_v14, %v5554_v53  ;;  %v5629_v4 = vadd.f32 %v5613_v0, %v5557_v38  ;;  %v17362_v53 = vld [vmem:[#allocation81_spill] sm:$0xff] }
 0x2eb   : > { %v6042_v19 = vadd.f32 %v6026_v32, %v5970_v2  ;;  %v6098_v27 = vmul.f32 %v17351_v29, %v17357_v60  ;;  %v5724_v58 = vadd.f32 %v5708_v44, %v5627_v43  ;;  %v5780_v49 = vmul.f32 %v17360_v55, %v17334_v22  ;;  %v17363_v43 = vld [vmem:[#allocation115_spill] sm:$0xff] }
 0x2ec   : > { %v5969_v36 = vadd.f32 %v5953_v35, %v5897_v51  ;;  %v6025_v25 = vmul.f32 %v17343_v34, %v17352_v5  ;;  %v6109_v41 = vadd.f32 %v6093_v28, %v6037_v47  ;;  %v6110_v62 = vadd.f32 %v6094_v18, %v6038_v12  ;;  %v17364_v28 = vld [vmem:[#allocation96_spill] sm:$0xff] }
 0x2ed   : > { %v6190_v11 = vmul.f32 %v17293_v56, %v17361_v13  ;;  %v6191_v38 = vmul.f32 %v17362_v53, %v17361_v13  ;;  %v6111_v14 = vadd.f32 %v6095_v3, %v6039_v50  ;;  %v6112_v0 = vadd.f32 %v6096_v6, %v6040_v1  ;;  %v17365_v47 = vld [vmem:[#allocation136_spill] sm:$0xff]  ;;  %v17366_v53 = vld [vmem:[#allocation37_spill] sm:$0xff] }
 0x2ee   : > { %v6192_v2 = vmul.f32 %v17339_v48, %v17361_v13  ;;  %v6193_v32 = vmul.f32 %v17332_v7, %v17361_v13  ;;  %v5707_v44 = vmul.f32 %v17363_v43, %v17331_v24  ;;  %v5710_v18 = vmul.f32 %v17364_v28, %v17331_v24 }
 0x2ef   : > { %v6114_v51 = vadd.f32 %v6098_v27, %v6042_v19  ;;  %v6195_v56 = vmul.f32 %v17356_v61, %v17361_v13  ;;  %v5796_v35 = vadd.f32 %v5780_v49, %v5724_v58  ;;  %v5852_v6 = vmul.f32 %v17365_v47, %v17340_v52 }
 0x2f0   : > { %v6041_v12 = vadd.f32 %v6025_v25, %v5969_v36  ;;  %v6097_v50 = vmul.f32 %v17354_v10, %v17357_v60  ;;  %v6206_v1 = vadd.f32 %v6190_v11, %v6109_v41  ;;  %v6207_v3 = vadd.f32 %v6191_v38, %v6110_v62 }
 0x2f1   : > { %v6262_v7 = vmul.f32 %v17305_v31, %v17366_v53  ;;  %v6263_v19 = vmul.f32 %v17302_v63, %v17366_v53  ;;  %v6208_v27 = vadd.f32 %v6192_v2, %v6111_v14  ;;  %v6209_v24 = vadd.f32 %v6193_v32, %v6112_v0  ;;  %v13429_v31 = vld [vmem:[%s9980_s19 + $0xb8] sm:$0xff]  ;;  %v17367_v2 = vld [vmem:[#allocation53_spill] sm:$0xff] }
 0x2f2   : > { %v6264_v58 = vmul.f32 %v17243_v9, %v17366_v53  ;;  %v6265_v49 = vmul.f32 %v17307_v23, %v17366_v53  ;;  %v5723_v36 = vadd.f32 %v5707_v44, %v5626_v26  ;;  %v13424_v25 = vadd.f32 %v5710_v18, %v5629_v4 }
 0x2f3   : > { %v6211_v61 = vadd.f32 %v6195_v56, %v6114_v51  ;;  %v6267_v41 = vmul.f32 %v17360_v55, %v17366_v53  ;;  %v5868_v62 = vadd.f32 %v5852_v6, %v5796_v35  ;;  %v5884_v63 = vmul.f32 %v13429_v31, %v17342_v16  ;;  %v17368_v56 = vld [vmem:[#allocation141_spill] sm:$0xff]  ;;  %v17369_v35 = vld [vmem:[#allocation159_spill] sm:$0xff] }
 0x2f4   : > { %v6113_v11 = vadd.f32 %v6097_v50, %v6041_v12  ;;  %v6194_v38 = vmul.f32 %v17363_v43, %v17361_v13  ;;  %v6278_v14 = vadd.f32 %v6262_v7, %v6206_v1  ;;  %v6279_v0 = vadd.f32 %v6263_v19, %v6207_v3 }
 0x2f5   : > { %v6334_v26 = vmul.f32 %v17313_v45, %v17367_v2  ;;  %v6335_v4 = vmul.f32 %v17306_v57, %v17367_v2  ;;  %v6280_v32 = vadd.f32 %v6264_v58, %v6208_v27  ;;  %v6281_v44 = vadd.f32 %v6265_v49, %v6209_v24  ;;  %v17370_v24 = vld [vmem:[#allocation127_spill] sm:$0xff]  ;;  %v9508_v58 = vld [vmem:[%s9980_s19 + $0x90] sm:$0xff]  ;;  %v17371_v49 = vld [vmem:[#allocation49_spill] sm:$0xff] }
 0x2f6   : > { %v6336_v18 = vmul.f32 %v17316_v33, %v17367_v2  ;;  %v6337_v51 = vmul.f32 %v17317_v54, %v17367_v2  ;;  %v5779_v7 = vmul.f32 %v17368_v56, %v17334_v22  ;;  %v13447_v6 = vmul.f32 %v17369_v35, %v17334_v22  ;;  %v9509_v33 = vld [vmem:[%s9980_s19 + $0x98] sm:$0xff] }
 0x2f7   : > { %v6283_v45 = vadd.f32 %v6267_v41, %v6211_v61  ;;  %v6339_v57 = vmul.f32 %v17365_v47, %v17367_v2  ;;  %v5900_v12 = vadd.f32 %v5884_v63, %v5868_v62  ;;  %v5956_v50 = vmul.f32 %v17370_v24, %v17348_v40 }
 0x2f8   : > { %v6210_v1 = vadd.f32 %v6194_v38, %v6113_v11  ;;  %v6266_v3 = vmul.f32 %v17368_v56, %v17366_v53  ;;  %v6350_v19 = vadd.f32 %v6334_v26, %v6278_v14  ;;  %v6351_v27 = vadd.f32 %v6335_v4, %v6279_v0  ;;  %v17372_v38 = vld [vmem:[#allocation105_spill] sm:$0xff] }
 0x2f9   : > { %v6366_v54 = vmul.f32 %v9508_v58, %v17371_v49  ;;  %v6367_v22 = vmul.f32 %v9509_v33, %v17371_v49  ;;  %v6352_v61 = vadd.f32 %v6336_v18, %v6280_v32  ;;  %v6353_v41 = vadd.f32 %v6337_v51, %v6281_v44 }
 0x2fa   : > { %v6368_v62 = vmul.f32 %v17325_v20, %v17371_v49  ;;  %v6369_v63 = vmul.f32 %v17326_v59, %v17371_v49  ;;  %v5795_v11 = vadd.f32 %v5779_v7, %v5723_v36  ;;  %v5851_v47 = vmul.f32 %v17372_v38, %v17340_v52  ;;  %v17373_v59 = vld [vmem:[#allocation162_spill] sm:$0xff] }
 0x2fb   : > { %v6355_v14 = vadd.f32 %v6339_v57, %v6283_v45  ;;  %v6371_v0 = vmul.f32 %v13429_v31, %v17371_v49  ;;  %v5972_v26 = vadd.f32 %v5956_v50, %v5900_v12  ;;  %v6028_v33 = vmul.f32 %v17347_v21, %v17352_v5  ;;  %v13480_v50 = vld [vmem:[%s9980_s19 + $0xb0] sm:$0xff] }
 0x2fc   : > { %v6282_v4 = vadd.f32 %v6266_v3, %v6210_v1  ;;  %v6338_v20 = vmul.f32 %v17372_v38, %v17367_v2  ;;  %v6382_v32 = vadd.f32 %v6366_v54, %v6350_v19  ;;  %v6383_v44 = vadd.f32 %v6367_v22, %v6351_v27  ;;  %v17414_v2 = vld [vmem:[#allocation68_spill] sm:$0xff] }
 0x2fd   : > { %v6438_v36 = vmul.f32 %v17323_v30, %v17373_v59  ;;  %v6439_v18 = vmul.f32 %v17350_v46, %v17373_v59  ;;  %v6384_v51 = vadd.f32 %v6368_v62, %v6352_v61  ;;  %v6385_v7 = vadd.f32 %v6369_v63, %v6353_v41  ;;  %v17375_v41 = vld [vmem:[#allocation72_spill] sm:$0xff] }
 0x2fe   : > { %v6440_v45 = vmul.f32 %v17335_v15, %v17373_v59  ;;  %v6441_v57 = vmul.f32 %v17336_v42, %v17373_v59  ;;  %v5867_v12 = vadd.f32 %v5851_v47, %v5795_v11  ;;  %v5883_v54 = vmul.f32 %v13480_v50, %v17342_v16  ;;  %v17374_v47 = vld [vmem:[#allocation163_spill] sm:$0xff] }
 0x2ff   : > { %v6387_v22 = vadd.f32 %v6371_v0, %v6355_v14  ;;  %v6443_v30 = vmul.f32 %v17370_v24, %v17373_v59  ;;  %v6044_v1 = vadd.f32 %v6028_v33, %v5972_v26  ;;  %v6100_v46 = vmul.f32 %v17355_v8, %v17357_v60  ;;  %v17376_v0 = vld [vmem:[#allocation165_spill] sm:$0xff] }
 0x300   : > { %v6354_v3 = vadd.f32 %v6338_v20, %v6282_v4  ;;  %v6370_v19 = vmul.f32 %v13480_v50, %v17371_v49  ;;  %v6454_v27 = vadd.f32 %v6438_v36, %v6382_v32  ;;  %v6455_v58 = vadd.f32 %v6439_v18, %v6383_v44  ;;  %v17377_v4 = vld [vmem:[#allocation155_spill] sm:$0xff]  ;;  %v17411_v49 = vld [vmem:[#allocation46_spill] sm:$0xff] }
 0x301   : > { %v6510_v61 = vmul.f32 %v17330_v17, %v17374_v47  ;;  %v6511_v62 = vmul.f32 %v17375_v41, %v17374_v47  ;;  %v6456_v63 = vadd.f32 %v6440_v45, %v6384_v51  ;;  %v6457_v11 = vadd.f32 %v6441_v57, %v6385_v7  ;;  %v17378_v57 = vld [vmem:[#allocation143_spill] sm:$0xff] }
 0x302   : > { %v6512_v14 = vmul.f32 %v17343_v34, %v17374_v47  ;;  %v6513_v26 = vmul.f32 %v17376_v0, %v17374_v47  ;;  %v5899_v33 = vadd.f32 %v5883_v54, %v5867_v12  ;;  %v5955_v20 = vmul.f32 %v17377_v4, %v17348_v40  ;;  %v17417_v40 = vld [vmem:[#allocation25_spill] sm:$0xff] }
 0x303   : > { %v6459_v32 = vadd.f32 %v6443_v30, %v6387_v22  ;;  %v6515_v44 = vmul.f32 %v17347_v21, %v17374_v47  ;;  %v6116_v17 = vadd.f32 %v6100_v46, %v6044_v1  ;;  %v6197_v36 = vmul.f32 %v17364_v28, %v17361_v13  ;;  %v17415_v13 = vld [vmem:[#allocation23_spill] sm:$0xff]  ;;  %v17433_v21 = vld [vmem:[#allocation104_spill] sm:$0xff] }
 0x304   : > { %v6386_v18 = vadd.f32 %v6370_v19, %v6354_v3  ;;  %v6442_v51 = vmul.f32 %v17377_v4, %v17373_v59  ;;  %v6526_v7 = vadd.f32 %v6510_v61, %v6454_v27  ;;  %v6527_v45 = vadd.f32 %v6511_v62, %v6455_v58  ;;  %v17379_v19 = vld [vmem:[#allocation106_spill] sm:$0xff] }
 0x305   : > { %v6582_v12 = vmul.f32 %v17333_v39, %v17378_v57  ;;  %v6583_v54 = vmul.f32 %v17359_v37, %v17378_v57  ;;  %v6528_v22 = vadd.f32 %v6512_v14, %v6456_v63  ;;  %v6529_v30 = vadd.f32 %v6513_v26, %v6457_v11  ;;  %v17380_v14 = vld [vmem:[#allocation73_spill] sm:$0xff] }
 0x306   : > { %v6584_v1 = vmul.f32 %v17354_v10, %v17378_v57  ;;  %v6585_v46 = vmul.f32 %v17351_v29, %v17378_v57  ;;  %v5971_v3 = vadd.f32 %v5955_v20, %v5899_v33  ;;  %v6027_v41 = vmul.f32 %v17379_v19, %v17352_v5  ;;  %v17381_v33 = vld [vmem:[#allocation92_spill] sm:$0xff] }
 0x307   : > { %v6531_v27 = vadd.f32 %v6515_v44, %v6459_v32  ;;  %v6587_v58 = vmul.f32 %v17355_v8, %v17378_v57  ;;  %v6213_v39 = vadd.f32 %v6197_v36, %v6116_v17  ;;  %v6269_v37 = vmul.f32 %v17369_v35, %v17366_v53  ;;  %v17382_v36 = vld [vmem:[#allocation142_spill] sm:$0xff] }
 0x308   : > { %v6458_v61 = vadd.f32 %v6442_v51, %v6386_v18  ;;  %v6514_v62 = vmul.f32 %v17379_v19, %v17374_v47  ;;  %v6598_v63 = vadd.f32 %v6582_v12, %v6526_v7  ;;  %v6599_v11 = vadd.f32 %v6583_v54, %v6527_v45  ;;  %v17383_v18 = vld [vmem:[#allocation140_spill] sm:$0xff]  ;;  %v17384_v51 = vld [vmem:[#allocation119_spill] sm:$0xff]  ;;  %v17386_v7 = vld [vmem:[#allocation118_spill] sm:$0xff] }
 0x309   : > { %v6679_v26 = vmul.f32 %v17339_v48, %v17380_v14  ;;  %v6680_v20 = vmul.f32 %v17381_v33, %v17380_v14  ;;  %v6600_v32 = vadd.f32 %v6584_v1, %v6528_v22  ;;  %v6601_v44 = vadd.f32 %v6585_v46, %v6529_v30  ;;  %v17387_v45 = vld [vmem:[#allocation147_spill] sm:$0xff]  ;;  %v17408_v47 = vld [vmem:[#allocation22_spill] sm:$0xff] }
 0x30a   : > { %v6681_v17 = vmul.f32 %v17363_v43, %v17380_v14  ;;  %v6682_v8 = vmul.f32 %v17382_v36, %v17380_v14  ;;  %v13532_v57 = vadd.f32 %v17384_v51, %v17383_v18  ;;  %v13536_v12 = vadd.f32 %v17387_v45, %v17386_v7  ;;  %v17393_v51 = vld [vmem:[#allocation94_spill] sm:$0xff] }
 0x30b   : > { %v6603_v48 = vadd.f32 %v6587_v58, %v6531_v27  ;;  %v6684_v54 = vmul.f32 %v17364_v28, %v17380_v14  ;;  %v13542_v22 = vadd.f32 %v13447_v6, %v13424_v25  ;;  %v13544_v30 = vadd.f32 %v6027_v41, %v5971_v3  ;;  %v17394_v6 = vld [vmem:[#allocation88_spill] sm:$0xff] }
 0x30c   : > { %17385 = vst [vmem:[#allocation146_spill] sm:$0xff] %v13532_v57  ;;  %17388 = vst [vmem:[#allocation82_spill] sm:$0xff] %v13536_v12  ;;  %v13546_v1 = vadd.f32 %v6269_v37, %v6213_v39  ;;  %v13548_v46 = vadd.f32 %v6514_v62, %v6458_v61  ;;  %v6695_v33 = vadd.f32 %v6679_v26, %v6598_v63  ;;  %v17395_v3 = vrot.slane %v17394_v6, 5  ;;  %v17396_v41 = vld [vmem:[#allocation20_spill] sm:$0xff]  ;;  %v17399_v61 = vld [vmem:[#allocation41_spill] sm:$0xff] }
 0x30d   : > { %17389 = vst [vmem:[#allocation122_spill] sm:$0xff] %v13542_v22  ;;  %17390 = vst [vmem:[#allocation121_spill] sm:$0xff] %v13544_v30  ;;  %v6696_v18 = vadd.f32 %v6680_v20, %v6599_v11  ;;  %v6751_v27 = vmul.f32 %v17243_v9, %v17393_v51  ;;  %v6752_v58 = vmul.f32 %v17307_v23, %v17393_v51  ;;  %v17402_v11 = vld [vmem:[#allocation21_spill] sm:$0xff]  ;;  %v17404_v20 = vld [vmem:[#allocation51_spill] sm:$0xff] }
 0x30e   : > { %17391 = vst [vmem:[#allocation125_spill] sm:$0xff] %v13546_v1  ;;  %17392 = vst [vmem:[#allocation124_spill] sm:$0xff] %v13548_v46  ;;  %v13554_v7 = vadd.f32 %v6681_v17, %v6600_v32  ;;  %v13556_v25 = vadd.f32 %v6682_v8, %v6601_v44  ;;  %v13563_v37 = vsel %vm553_vm0, %v17396_v41, %v17395_v3  ;;  %v17401_v8 = vrot.slane %v17394_v6, 6  ;;  %v13587_v17 = vld [vmem:[%s9980_s19 + $0xc0] sm:$0xff] }
 0x30f   : > { %17398 = vst [vmem:[#allocation152_spill] sm:$0xff] %v13563_v37  ;;  %v4249_v62 = vmul.f32 %v17364_v28, %v17399_v61  ;;  %v13567_v63 = vadd.f32 %v6684_v54, %v6603_v48  ;;  %v13571_v9 = vmul.f32 %v17368_v56, %v17393_v51  ;;  %v4248_v23 = vmul.f32 %v13563_v37, %v17399_v61  ;;  %v13591_v48 = vld [vmem:[%s9980_s19 + $0xc8] sm:$0xff]  ;;  %v17425_v56 = vld [vmem:[#allocation30_spill] sm:$0xff] }
 0x310   : > { %v13580_v26 = vsel %vm630_vm1, %v17402_v11, %v17401_v8  ;;  %v4321_v44 = vmul.f32 %v17369_v35, %v17404_v20  ;;  %17405 = vst [vmem:[#allocation45_spill] sm:$0xff] %v13587_v17  ;;  %v4359_v45 = vrot.slane %v13587_v17, 7  ;;  %v4360_v54 = vrot.slane %v13591_v48, 7  ;;  %v17406_v8 = vld [vmem:[#allocation67_spill] sm:$0xff] }
 0x311   : > { %17400 = vst [vmem:[#allocation151_spill] sm:$0xff] %v13567_v63  ;;  %17403 = vst [vmem:[#allocation42_spill] sm:$0xff] %v13580_v26  ;;  %v4320_v32 = vmul.f32 %v13580_v26, %v17404_v20  ;;  %v13596_v6 = vmul.f32 %v17360_v55, %v17393_v51  ;;  %v13598_v3 = vadd.f32 %v6751_v27, %v6695_v33  ;;  %v17410_v51 = vld [vmem:[#allocation34_spill] sm:$0xff]  ;;  %v4607_v22 = vrot.slane %v13587_v17, 3 }
 0x312   : > { %v13600_v61 = vadd.f32 %v6752_v58, %v6696_v18  ;;  %v4422_v63 = vmul.f32 %v13480_v50, %v17406_v8  ;;  %v4337_v14 = vadd.f32 %v4321_v44, %v4249_v62  ;;  %v13606_v46 = vsel %vm707_vm2, %v4359_v45, %v4360_v54  ;;  %v17412_v18 = vld [vmem:[#allocation56_spill] sm:$0xff] }
 0x313   : > { %v4336_v20 = vadd.f32 %v4320_v32, %v4248_v23  ;;  %17407 = vst [vmem:[#allocation47_spill] sm:$0xff] %v13606_v46  ;;  %v13611_v59 = vsel %vm707_vm2, %v17408_v47, %v4359_v45  ;;  %v13615_v33 = vmul.f32 %v17411_v49, %v17410_v51  ;;  %v4393_v58 = vmul.f32 %v13606_v46, %v17412_v18  ;;  %v17413_v32 = vld [vmem:[#allocation110_spill] sm:$0xff] }
 0x314   : > { %17409 = vst [vmem:[#allocation50_spill] sm:$0xff] %v13611_v59  ;;  %v4392_v27 = vmul.f32 %v13611_v59, %v17412_v18  ;;  %v4424_v62 = vmul.f32 %v13587_v17, %v17406_v8  ;;  %v4425_v23 = vmul.f32 %v13591_v48, %v17406_v8  ;;  %v4438_v44 = vadd.f32 %v4422_v63, %v17413_v32 }
 0x315   : > { %v4463_v45 = vrot.slane %v13587_v17, 1  ;;  %v4464_v54 = vrot.slane %v13591_v48, 1  ;;  %v4409_v1 = vadd.f32 %v4393_v58, %v4337_v14  ;;  %v4494_v53 = vmul.f32 %v17377_v4, %v17414_v2 }
 0x316   : > { %v4408_v49 = vadd.f32 %v4392_v27, %v4336_v20  ;;  %v4535_v18 = vrot.slane %v13587_v17, 2  ;;  %v4536_v8 = vrot.slane %v13591_v48, 2  ;;  %v17416_v20 = vld [vmem:[#allocation79_spill] sm:$0xff] }
 0x317   : > { %v13634_v30 = vsel %vm820_vm3, %v4464_v54, %v17415_v13  ;;  %v13638_v63 = vsel %vm820_vm3, %v4463_v45, %v4464_v54  ;;  %v4566_v14 = vmul.f32 %v17379_v19, %v17416_v20  ;;  %v4441_v58 = vadd.f32 %v4425_v23, %v4409_v1  ;;  %v13661_v1 = vld [vmem:[%s9980_s19 + $0xd8] sm:$0xff] }
 0x318   : > { %v4440_v27 = vadd.f32 %v4424_v62, %v4408_v49  ;;  %v4496_v32 = vmul.f32 %v13638_v63, %v17414_v2  ;;  %v4497_v60 = vmul.f32 %v13634_v30, %v17414_v2  ;;  %v4510_v5 = vadd.f32 %v4494_v53, %v4438_v44  ;;  %v13658_v62 = vld [vmem:[%s9980_s19 + $0xd0] sm:$0xff] }
 0x319   : > { %v13650_v16 = vsel %vm897_vm4, %v4536_v8, %v17417_v40  ;;  %v13654_v45 = vsel %vm897_vm4, %v4535_v18, %v4536_v8  ;;  %v4604_v54 = vrot.slane %v13480_v50, 3  ;;  %v4608_v18 = vrot.slane %v13591_v48, 3  ;;  %v17420_v8 = vld [vmem:[#allocation76_spill] sm:$0xff] }
 0x31a   : > { %17418 = vst [vmem:[#allocation128_spill] sm:$0xff] %v13650_v16  ;;  %17419 = vst [vmem:[#allocation139_spill] sm:$0xff] %v13654_v45  ;;  %v4512_v23 = vadd.f32 %v4496_v32, %v4440_v27  ;;  %v4513_v49 = vadd.f32 %v4497_v60, %v4441_v58  ;;  %v4568_v53 = vmul.f32 %v13654_v45, %v17416_v20  ;;  %v17421_v52 = vrot.slane %v17420_v8, 3  ;;  %v17423_v60 = vld [vmem:[#allocation90_spill] sm:$0xff]  ;;  %v17424_v32 = vld [vmem:[#allocation61_spill] sm:$0xff] }
 0x31b   : > { %v4569_v2 = vmul.f32 %v13650_v16, %v17416_v20  ;;  %v4582_v44 = vadd.f32 %v4566_v14, %v4510_v5  ;;  %v4655_v57 = vadd.f32 %v17425_v56, %v17424_v32  ;;  %v17426_v20 = vld [vmem:[#allocation26_spill] sm:$0xff]  ;;  %v13686_v14 = vsel %vm974_vm5, %v4607_v22, %v4608_v18 }
 0x31c   : > { %v13673_v12 = vsel %vm974_vm5, %v4604_v54, %v17421_v52  ;;  %v4584_v55 = vadd.f32 %v4568_v53, %v4512_v23  ;;  %v13682_v5 = vsel %vm974_vm5, %v4608_v18, %v17426_v20  ;;  %17428 = vst [vmem:[#allocation134_spill] sm:$0xff] %v13686_v14  ;;  %v4704_v52 = vrot.slane %v13658_v62, 5  ;;  %v17429_v53 = vld [vmem:[#allocation101_spill] sm:$0xff] }
 0x31d   : > { %17422 = vst [vmem:[#allocation156_spill] sm:$0xff] %v13673_v12  ;;  %v4585_v27 = vadd.f32 %v4569_v2, %v4513_v49  ;;  %v4638_v58 = vmul.f32 %v13673_v12, %v17423_v60  ;;  %17427 = vst [vmem:[#allocation60_spill] sm:$0xff] %v13682_v5  ;;  %v4705_v54 = vrot.slane %v13661_v1, 5  ;;  %v4640_v23 = vmul.f32 %v13686_v14, %v17423_v60 }
 0x31e   : > { %v4641_v49 = vmul.f32 %v13682_v5, %v17423_v60  ;;  %v4735_v2 = vmul.f32 %v13563_v37, %v17429_v53  ;;  %v13703_v22 = vsel %vm553_vm0, %v17396_v41, %v4704_v52  ;;  %v4736_v18 = vmul.f32 %v17364_v28, %v17429_v53 }
 0x31f   : > { %v4654_v56 = vadd.f32 %v4638_v58, %v4582_v44  ;;  %v13698_v8 = vsel %vm553_vm0, %v4704_v52, %v4705_v54  ;;  %17431 = vst [vmem:[#allocation69_spill] sm:$0xff] %v13703_v22  ;;  %v4776_v32 = vrot.slane %v13658_v62, 6  ;;  %v4656_v36 = vadd.f32 %v4640_v23, %v4584_v55 }
 0x320   : > { %17430 = vst [vmem:[#allocation80_spill] sm:$0xff] %v13698_v8  ;;  %v4657_v60 = vadd.f32 %v4641_v49, %v4585_v27  ;;  %v4737_v44 = vmul.f32 %v13703_v22, %v17429_v53  ;;  %v4738_v58 = vmul.f32 %v13698_v8, %v17429_v53  ;;  %v4752_v43 = vadd.f32 %v4736_v18, %v4655_v57 }
 0x321   : > { %v4751_v54 = vadd.f32 %v4735_v2, %v4654_v56  ;;  %v4777_v29 = vrot.slane %v13661_v1, 6  ;;  %v13716_v52 = vsel %vm630_vm1, %v17402_v11, %v4776_v32  ;;  %v4807_v55 = vmul.f32 %v13580_v26, %v17433_v21  ;;  %v17435_v2 = vld [vmem:[#allocation102_spill] sm:$0xff] }
 0x322   : > { %17432 = vst [vmem:[#allocation150_spill] sm:$0xff] %v13716_v52  ;;  %v4753_v28 = vadd.f32 %v4737_v44, %v4656_v36  ;;  %v4754_v10 = vadd.f32 %v4738_v58, %v4657_v60  ;;  %v4808_v27 = vmul.f32 %v17369_v35, %v17433_v21  ;;  %v4809_v57 = vmul.f32 %v13716_v52, %v17433_v21  ;;  %v17436_v60 = vld [vmem:[#allocation136_spill] sm:$0xff] }
 0x323   : > { %v13724_v23 = vsel %vm630_vm1, %v4776_v32, %v4777_v29  ;;  %v4848_v49 = vrot.slane %v13658_v62, 7  ;;  %v4849_v56 = vrot.slane %v13661_v1, 7  ;;  %v6769_v36 = vadd.f32 %v13571_v9, %v13554_v7 }
 0x324   : > { %17434 = vst [vmem:[#allocation149_spill] sm:$0xff] %v13724_v23  ;;  %v6770_v53 = vadd.f32 %v13596_v6, %v13556_v25  ;;  %v6824_v18 = vmul.f32 %v17435_v2, %v17410_v51  ;;  %v4810_v29 = vmul.f32 %v13724_v23, %v17433_v21  ;;  %v6825_v32 = vmul.f32 %v17372_v38, %v17410_v51  ;;  %v17439_v6 = vld [vmem:[#allocation107_spill] sm:$0xff] }
 0x325   : > { %v6826_v44 = vmul.f32 %v17436_v60, %v17410_v51  ;;  %v13744_v58 = vsel %vm707_vm2, %v4848_v49, %v4849_v56  ;;  %v13749_v7 = vsel %vm707_vm2, %v17408_v47, %v4848_v49  ;;  %v4823_v25 = vadd.f32 %v4807_v55, %v4751_v54  ;;  %v17440_v55 = vld [vmem:[#allocation40_spill] sm:$0xff] }
 0x326   : > { %17437 = vst [vmem:[#allocation160_spill] sm:$0xff] %v13744_v58  ;;  %17438 = vst [vmem:[#allocation95_spill] sm:$0xff] %v13749_v7  ;;  %v4824_v9 = vadd.f32 %v4808_v27, %v4752_v43  ;;  %v4879_v21 = vmul.f32 %v13611_v59, %v17439_v6  ;;  %v4880_v2 = vmul.f32 %v13606_v46, %v17439_v6  ;;  %v9513_v43 = vld [vmem:[%s9980_s19 + $0xa0] sm:$0xff]  ;;  %v4952_v38 = vrot.slane %v13658_v62, 1 }
 0x327   : > { %v4825_v35 = vadd.f32 %v4809_v57, %v4753_v28  ;;  %v4826_v51 = vadd.f32 %v4810_v29, %v4754_v10  ;;  %v4881_v56 = vmul.f32 %v13749_v7, %v17439_v6  ;;  %v4882_v60 = vmul.f32 %v13744_v58, %v17439_v6  ;;  %v9514_v28 = vld [vmem:[%s9980_s19 + $0xa8] sm:$0xff] }
 0x328   : > { %v6839_v49 = vadd.f32 %v13615_v33, %v13598_v3  ;;  %v6840_v54 = vadd.f32 %v6824_v18, %v13600_v61  ;;  %v6855_v27 = vmul.f32 %v9513_v43, %v17440_v55  ;;  %v6841_v59 = vadd.f32 %v6825_v32, %v6769_v36  ;;  %v17441_v3 = vld [vmem:[#allocation108_spill] sm:$0xff] }
 0x329   : > { %v6842_v46 = vadd.f32 %v6826_v44, %v6770_v53  ;;  %v6856_v10 = vmul.f32 %v9514_v28, %v17440_v55  ;;  %v4953_v57 = vrot.slane %v13661_v1, 1  ;;  %v6857_v29 = vmul.f32 %v13480_v50, %v17440_v55 }
 0x32a   : > { %v4895_v6 = vadd.f32 %v4879_v21, %v4823_v25  ;;  %v4896_v58 = vadd.f32 %v4880_v2, %v4824_v9  ;;  %v4911_v61 = vmul.f32 %v13587_v17, %v17441_v3  ;;  %v4897_v33 = vadd.f32 %v4881_v56, %v4825_v35  ;;  %v17444_v9 = vld [vmem:[#allocation70_spill] sm:$0xff]  ;;  %v17445_v56 = vld [vmem:[#allocation111_spill] sm:$0xff] }
 0x32b   : > { %v4898_v18 = vadd.f32 %v4882_v60, %v4826_v51  ;;  %v4912_v43 = vmul.f32 %v13591_v48, %v17441_v3  ;;  %v4913_v36 = vmul.f32 %v17441_v3, %v13658_v62  ;;  %v4914_v53 = vmul.f32 %v17441_v3, %v13661_v1 }
 0x32c   : > { %v13780_v32 = vsel %vm820_vm3, %v4952_v38, %v4953_v57  ;;  %v5024_v50 = vrot.slane %v13658_v62, 2  ;;  %v5025_v44 = vrot.slane %v13661_v1, 2  ;;  %v6858_v35 = vmul.f32 %v13429_v31, %v17440_v55 }
 0x32d   : > { %17442 = vst [vmem:[#allocation86_spill] sm:$0xff] %v13780_v32  ;;  %v6871_v51 = vadd.f32 %v6855_v27, %v6839_v49  ;;  %v6872_v60 = vadd.f32 %v6856_v10, %v6840_v54  ;;  %v13789_v25 = vsel %vm820_vm3, %v4953_v57, %v17415_v13  ;;  %v6927_v21 = vmul.f32 %v17335_v15, %v17444_v9 }
 0x32e   : > { %17443 = vst [vmem:[#allocation161_spill] sm:$0xff] %v13789_v25  ;;  %v6928_v38 = vmul.f32 %v17336_v42, %v17444_v9  ;;  %v4927_v2 = vadd.f32 %v4911_v61, %v4895_v6  ;;  %v4983_v28 = vmul.f32 %v13638_v63, %v17445_v56  ;;  %v4928_v31 = vadd.f32 %v4912_v43, %v4896_v58  ;;  %v17448_v43 = vld [vmem:[#allocation114_spill] sm:$0xff] }
 0x32f   : > { %v4929_v49 = vadd.f32 %v4913_v36, %v4897_v33  ;;  %v4984_v54 = vmul.f32 %v13634_v30, %v17445_v56  ;;  %v4985_v27 = vmul.f32 %v13780_v32, %v17445_v56  ;;  %v6873_v10 = vadd.f32 %v6857_v29, %v6841_v59  ;;  %v13819_v33 = vld [vmem:[%s9980_s19 + $0xe0] sm:$0xff] }
 0x330   : > { %v4930_v57 = vadd.f32 %v4914_v53, %v4898_v18  ;;  %v4986_v15 = vmul.f32 %v13789_v25, %v17445_v56  ;;  %v13805_v42 = vsel %vm897_vm4, %v5024_v50, %v5025_v44  ;;  %v6874_v6 = vadd.f32 %v6858_v35, %v6842_v46  ;;  %v13822_v18 = vld [vmem:[%s9980_s19 + $0xe8] sm:$0xff] }
 0x331   : > { %17446 = vst [vmem:[#allocation36_spill] sm:$0xff] %v13805_v42  ;;  %v13810_v58 = vsel %vm897_vm4, %v5025_v44, %v17417_v40  ;;  %v5096_v3 = vrot.slane %v13658_v62, 3  ;;  %v5097_v61 = vrot.slane %v13661_v1, 3  ;;  %v6929_v59 = vmul.f32 %v17377_v4, %v17444_v9 }
 0x332   : > { %17447 = vst [vmem:[#allocation93_spill] sm:$0xff] %v13810_v58  ;;  %v6930_v29 = vmul.f32 %v17370_v24, %v17444_v9  ;;  %v4999_v46 = vadd.f32 %v4983_v28, %v4927_v2  ;;  %v5055_v36 = vmul.f32 %v13654_v45, %v17448_v43  ;;  %v5000_v53 = vadd.f32 %v4984_v54, %v4928_v31  ;;  %v17449_v9 = vld [vmem:[#allocation117_spill] sm:$0xff] }
 0x333   : > { %v5001_v50 = vadd.f32 %v4985_v27, %v4929_v49  ;;  %v5056_v44 = vmul.f32 %v13650_v16, %v17448_v43  ;;  %v5057_v35 = vmul.f32 %v13805_v42, %v17448_v43  ;;  %v6943_v56 = vadd.f32 %v6927_v21, %v6871_v51  ;;  %v17452_v49 = vld [vmem:[#allocation167_spill] sm:$0xff] }
 0x334   : > { %v5002_v4 = vadd.f32 %v4986_v15, %v4930_v57  ;;  %v5058_v24 = vmul.f32 %v13810_v58, %v17448_v43  ;;  %v5125_v55 = vmul.f32 %v13673_v12, %v17449_v9  ;;  %v13837_v2 = vsel %vm974_vm5, %v5097_v61, %v17426_v20 }
 0x335   : > { %17450 = vst [vmem:[#allocation35_spill] sm:$0xff] %v13837_v2  ;;  %v13841_v28 = vsel %vm974_vm5, %v5096_v3, %v5097_v61  ;;  %v5193_v31 = vrot.slane %v13819_v33, 5  ;;  %v5194_v51 = vrot.slane %v13822_v18, 5  ;;  %v6944_v21 = vadd.f32 %v6928_v38, %v6872_v60 }
 0x336   : > { %17451 = vst [vmem:[#allocation39_spill] sm:$0xff] %v13841_v28  ;;  %v6999_v54 = vmul.f32 %v17343_v34, %v17452_v49  ;;  %v7000_v27 = vmul.f32 %v17376_v0, %v17452_v49  ;;  %v5071_v57 = vadd.f32 %v5055_v36, %v4999_v46  ;;  %v5072_v15 = vadd.f32 %v5056_v44, %v5000_v53  ;;  %v17453_v34 = vld [vmem:[#allocation112_spill] sm:$0xff] }
 0x337   : > { %v5073_v43 = vadd.f32 %v5057_v35, %v5001_v50  ;;  %v5127_v20 = vmul.f32 %v13686_v14, %v17449_v9  ;;  %v5128_v3 = vmul.f32 %v13682_v5, %v17449_v9  ;;  %v5074_v61 = vadd.f32 %v5058_v24, %v5002_v4  ;;  %v17455_v36 = vld [vmem:[#allocation120_spill] sm:$0xff] }
 0x338   : > { %v5129_v12 = vmul.f32 %v13841_v28, %v17449_v9  ;;  %v5130_v60 = vmul.f32 %v13837_v2, %v17449_v9  ;;  %v5141_v38 = vadd.f32 %v5125_v55, %v17453_v34  ;;  %v13860_v0 = vsel %vm553_vm0, %v5193_v31, %v5194_v51 }
 0x339   : > { %v13865_v46 = vsel %vm553_vm0, %v17396_v41, %v5193_v31  ;;  %v5222_v24 = vmul.f32 %v13563_v37, %v17455_v36  ;;  %v5265_v4 = vrot.slane %v13819_v33, 6  ;;  %v6945_v53 = vadd.f32 %v6929_v59, %v6873_v10  ;;  %v17457_v59 = vld [vmem:[#allocation123_spill] sm:$0xff] }
 0x33a   : > { %17454 = vst [vmem:[#allocation38_spill] sm:$0xff] %v13865_v46  ;;  %v6946_v50 = vadd.f32 %v6930_v29, %v6874_v6  ;;  %v7001_v9 = vmul.f32 %v17379_v19, %v17452_v49  ;;  %v5266_v55 = vrot.slane %v13822_v18, 6  ;;  %v5143_v44 = vadd.f32 %v5127_v20, %v5071_v57 }
 0x33b   : > { %v5144_v35 = vadd.f32 %v5128_v3, %v5072_v15  ;;  %v5224_v51 = vmul.f32 %v13703_v22, %v17455_v36  ;;  %v5225_v31 = vmul.f32 %v13698_v8, %v17455_v36  ;;  %v5145_v34 = vadd.f32 %v5129_v12, %v5073_v43  ;;  %v17458_v12 = vld [vmem:[#allocation54_spill] sm:$0xff] }
 0x33c   : > { %v5146_v41 = vadd.f32 %v5130_v60, %v5074_v61  ;;  %v5226_v37 = vmul.f32 %v13865_v46, %v17455_v36  ;;  %v5227_v10 = vmul.f32 %v13860_v0, %v17455_v36  ;;  %v5238_v6 = vadd.f32 %v5222_v24, %v5141_v38 }
 0x33d   : > { %v13884_v20 = vsel %vm630_vm1, %v17402_v11, %v5265_v4  ;;  %v5294_v29 = vmul.f32 %v13580_v26, %v17457_v59  ;;  %v5337_v57 = vrot.slane %v13819_v33, 7  ;;  %v7002_v15 = vmul.f32 %v17458_v12, %v17452_v49 }
 0x33e   : > { %17456 = vst [vmem:[#allocation164_spill] sm:$0xff] %v13884_v20  ;;  %v7015_v43 = vadd.f32 %v6999_v54, %v6943_v56  ;;  %v13893_v3 = vsel %vm630_vm1, %v5265_v4, %v5266_v55  ;;  %v5338_v61 = vrot.slane %v13822_v18, 7  ;;  %v7016_v60 = vadd.f32 %v7000_v27, %v6944_v21  ;;  %v17461_v27 = vld [vmem:[#allocation126_spill] sm:$0xff] }
 0x33f   : > { %17459 = vst [vmem:[#allocation109_spill] sm:$0xff] %v13893_v3  ;;  %v5240_v38 = vadd.f32 %v5224_v51, %v5143_v44  ;;  %v5241_v36 = vadd.f32 %v5225_v31, %v5144_v35  ;;  %v5296_v24 = vmul.f32 %v13716_v52, %v17457_v59  ;;  %v5242_v19 = vadd.f32 %v5226_v37, %v5145_v34  ;;  %v17462_v55 = vld [vmem:[#allocation50_spill] sm:$0xff]  ;;  %v17465_v35 = vld [vmem:[#allocation33_spill] sm:$0xff]  ;;  %v17466_v31 = vld [vmem:[#allocation71_spill] sm:$0xff] }
 0x340   : > { %v5243_v11 = vadd.f32 %v5227_v10, %v5146_v41  ;;  %v5297_v26 = vmul.f32 %v13724_v23, %v17457_v59  ;;  %v5298_v56 = vmul.f32 %v13884_v20, %v17457_v59  ;;  %v5299_v54 = vmul.f32 %v13893_v3, %v17457_v59  ;;  %v17464_v41 = vld [vmem:[#allocation85_spill] sm:$0xff] }
 0x341   : > { %v5310_v4 = vadd.f32 %v5294_v29, %v5238_v6  ;;  %v13907_v21 = vsel %vm707_vm2, %v17408_v47, %v5337_v57  ;;  %v5366_v44 = vmul.f32 %v17462_v55, %v17461_v27  ;;  %v13911_v37 = vadd.f32 %v7001_v9, %v6945_v53  ;;  %v17469_v29 = vld [vmem:[#allocation47_spill] sm:$0xff] }
 0x342   : > { %17460 = vst [vmem:[#allocation168_spill] sm:$0xff] %v13907_v21  ;;  %v7071_v51 = vmul.f32 %v17465_v35, %v17464_v41  ;;  %v7072_v34 = vmul.f32 %v17466_v31, %v17464_v41  ;;  %v13919_v10 = vsel %vm707_vm2, %v5337_v57, %v5338_v61  ;;  %v13921_v6 = vadd.f32 %v7002_v15, %v6946_v50  ;;  %v17470_v35 = vld [vmem:[#allocation160_spill] sm:$0xff]  ;;  %v17471_v15 = vld [vmem:[#allocation129_spill] sm:$0xff] }
 0x343   : > { %17463 = vst [vmem:[#allocation31_spill] sm:$0xff] %v13911_v37  ;;  %17467 = vst [vmem:[#allocation113_spill] sm:$0xff] %v13919_v10  ;;  %v5312_v59 = vadd.f32 %v5296_v24, %v5240_v38  ;;  %v5367_v12 = vmul.f32 %v17469_v29, %v17461_v27  ;;  %v5368_v53 = vmul.f32 %v13749_v7, %v17461_v27  ;;  %v17472_v38 = vld [vmem:[#allocation84_spill] sm:$0xff]  ;;  %v17473_v24 = vld [vmem:[#allocation115_spill] sm:$0xff] }
 0x344   : > { %17468 = vst [vmem:[#allocation77_spill] sm:$0xff] %v13921_v6  ;;  %v5313_v9 = vadd.f32 %v5297_v26, %v5241_v36  ;;  %v5314_v37 = vadd.f32 %v5298_v56, %v5242_v19  ;;  %v5369_v49 = vmul.f32 %v17470_v35, %v17461_v27  ;;  %v5370_v31 = vmul.f32 %v13907_v21, %v17461_v27  ;;  %v17475_v19 = vld [vmem:[#allocation142_spill] sm:$0xff] }
 0x345   : > { %v5315_v41 = vadd.f32 %v5299_v54, %v5243_v11  ;;  %v5371_v50 = vmul.f32 %v13919_v10, %v17461_v27  ;;  %v5382_v57 = vadd.f32 %v5366_v44, %v5310_v4  ;;  %v5398_v61 = vmul.f32 %v13587_v17, %v17471_v15  ;;  %v17478_v54 = vld [vmem:[#allocation146_spill] sm:$0xff] }
 0x346   : > { %v13937_v6 = vmul.f32 %v17473_v24, %v17472_v38  ;;  %v13941_v26 = vmul.f32 %v17475_v19, %v17472_v38  ;;  %v5441_v36 = vrot.slane %v13819_v33, 1  ;;  %v5442_v56 = vrot.slane %v13822_v18, 1 }
 0x347   : > { %v13945_v11 = vadd.f32 %v7071_v51, %v7015_v43  ;;  %v5383_v27 = vadd.f32 %v5367_v12, %v17478_v54  ;;  %v5384_v4 = vadd.f32 %v5368_v53, %v5312_v59  ;;  %v5399_v44 = vmul.f32 %v13591_v48, %v17471_v15 }
 0x348   : > { %17474 = vst [vmem:[#allocation78_spill] sm:$0xff] %v13937_v6  ;;  %17476 = vst [vmem:[#allocation29_spill] sm:$0xff] %v13941_v26  ;;  %v5385_v17 = vadd.f32 %v5369_v49, %v5313_v9  ;;  %v5386_v10 = vadd.f32 %v5370_v31, %v5314_v37  ;;  %v5400_v24 = vmul.f32 %v17471_v15, %v13658_v62  ;;  %v17480_v49 = vld [vmem:[#allocation130_spill] sm:$0xff]  ;;  %v5513_v59 = vrot.slane %v13819_v33, 2  ;;  %v17483_v31 = vld [vmem:[#allocation141_spill] sm:$0xff] }
 0x349   : > { %17477 = vst [vmem:[#allocation65_spill] sm:$0xff] %v13945_v11  ;;  %v5401_v19 = vmul.f32 %v17471_v15, %v13661_v1  ;;  %v5387_v38 = vadd.f32 %v5371_v50, %v5315_v41  ;;  %v5402_v26 = vmul.f32 %v17471_v15, %v13819_v33  ;;  %v5403_v43 = vmul.f32 %v17471_v15, %v13822_v18  ;;  %v17482_v41 = vld [vmem:[#allocation28_spill] sm:$0xff] }
 0x34a   : > { %v5414_v12 = vadd.f32 %v5398_v61, %v5382_v57  ;;  %v13960_v51 = vsel %vm820_vm3, %v5441_v36, %v5442_v56  ;;  %v5470_v37 = vmul.f32 %v13638_v63, %v17480_v49  ;;  %v5514_v53 = vrot.slane %v13822_v18, 2 }
 0x34b   : > { %17479 = vst [vmem:[#allocation32_spill] sm:$0xff] %v13960_v51  ;;  %v13966_v9 = vadd.f32 %v7072_v34, %v7016_v60  ;;  %v13970_v50 = vmul.f32 %v17483_v31, %v17482_v41  ;;  %v5415_v54 = vadd.f32 %v5399_v44, %v5383_v27  ;;  %v13975_v57 = vsel %vm820_vm3, %v5442_v56, %v17415_v13 }
 0x34c   : > { %17485 = vst [vmem:[#allocation133_spill] sm:$0xff] %v13975_v57  ;;  %v5416_v15 = vadd.f32 %v5400_v24, %v5384_v4  ;;  %v5417_v61 = vadd.f32 %v5401_v19, %v5385_v17  ;;  %v5471_v36 = vmul.f32 %v13634_v30, %v17480_v49  ;;  %v5472_v60 = vmul.f32 %v13780_v32, %v17480_v49  ;;  %v17487_v24 = vld [vmem:[#allocation57_spill] sm:$0xff] }
 0x34d   : > { %17481 = vst [vmem:[#allocation99_spill] sm:$0xff] %v13966_v9  ;;  %17484 = vst [vmem:[#allocation166_spill] sm:$0xff] %v13970_v50  ;;  %v5418_v34 = vadd.f32 %v5402_v26, %v5386_v10  ;;  %v5419_v9 = vadd.f32 %v5403_v43, %v5387_v38  ;;  %v5473_v27 = vmul.f32 %v13789_v25, %v17480_v49  ;;  %v17488_v10 = vld [vmem:[#allocation157_spill] sm:$0xff]  ;;  %v5585_v43 = vrot.slane %v13819_v33, 3 }
 0x34e   : > { %v5474_v44 = vmul.f32 %v13960_v51, %v17480_v49  ;;  %v5475_v56 = vmul.f32 %v13975_v57, %v17480_v49  ;;  %v5486_v4 = vadd.f32 %v5470_v37, %v5414_v12  ;;  %v13989_v17 = vsel %vm897_vm4, %v5513_v59, %v5514_v53  ;;  %v14005_v49 = vld [vmem:[%s9980_s19 + $0xf0] sm:$0xff] }
 0x34f   : > { %17486 = vst [vmem:[#allocation74_spill] sm:$0xff] %v13989_v17  ;;  %v5542_v19 = vmul.f32 %v13654_v45, %v17487_v24  ;;  %v13995_v38 = vmul.f32 %v17488_v10, %v17482_v41  ;;  %v14000_v26 = vsel %vm897_vm4, %v5514_v53, %v17417_v40  ;;  %v5586_v12 = vrot.slane %v13822_v18, 3  ;;  %v14012_v41 = vld [vmem:[%s9980_s19 + $0xf8] sm:$0xff] }
 0x350   : > { %17490 = vst [vmem:[#allocation144_spill] sm:$0xff] %v14000_v26  ;;  %v5487_v37 = vadd.f32 %v5471_v36, %v5415_v54  ;;  %v5488_v59 = vadd.f32 %v5472_v60, %v5416_v15  ;;  %v5543_v31 = vmul.f32 %v13650_v16, %v17487_v24  ;;  %v5544_v10 = vmul.f32 %v13805_v42, %v17487_v24  ;;  %v17491_v36 = vld [vmem:[#allocation145_spill] sm:$0xff]  ;;  %v17492_v60 = vld [vmem:[#allocation156_spill] sm:$0xff]  ;;  %v17493_v16 = vld [vmem:[#allocation26_spill] sm:$0xff] }
 0x351   : > { %17489 = vst [vmem:[#allocation135_spill] sm:$0xff] %v13995_v38  ;;  %v5489_v38 = vadd.f32 %v5473_v27, %v5417_v61  ;;  %v5490_v50 = vadd.f32 %v5474_v44, %v5418_v34  ;;  %v5545_v53 = vmul.f32 %v13810_v58, %v17487_v24  ;;  %v5546_v6 = vmul.f32 %v13989_v17, %v17487_v24 }
 0x352   : > { %v5491_v11 = vadd.f32 %v5475_v56, %v5419_v9  ;;  %v5547_v54 = vmul.f32 %v14000_v26, %v17487_v24  ;;  %v5558_v15 = vadd.f32 %v5542_v19, %v5486_v4  ;;  %v5612_v40 = vmul.f32 %v17492_v60, %v17491_v36 }
 0x353   : > { %v14025_v42 = vsel %vm974_vm5, %v5586_v12, %v17493_v16  ;;  %v14029_v61 = vsel %vm974_vm5, %v5585_v43, %v5586_v12  ;;  %v5614_v34 = vmul.f32 %v13686_v14, %v17491_v36  ;;  %v5682_v9 = vrot.slane %v14005_v49, 5 }
 0x354   : > { %17494 = vst [vmem:[#allocation27_spill] sm:$0xff] %v14025_v42  ;;  %17495 = vst [vmem:[#allocation81_spill] sm:$0xff] %v14029_v61  ;;  %v5559_v27 = vadd.f32 %v5543_v31, %v5487_v37  ;;  %v5560_v44 = vadd.f32 %v5544_v10, %v5488_v59  ;;  %v5615_v56 = vmul.f32 %v13682_v5, %v17491_v36  ;;  %v5683_v4 = vrot.slane %v14012_v41, 5  ;;  %v17496_v59 = vld [vmem:[#allocation82_spill] sm:$0xff]  ;;  %v17497_v5 = vld [vmem:[#allocation20_spill] sm:$0xff] }
 0x355   : > { %v5561_v24 = vadd.f32 %v5545_v53, %v5489_v38  ;;  %v5562_v19 = vadd.f32 %v5546_v6, %v5490_v50  ;;  %v5616_v16 = vmul.f32 %v13841_v28, %v17491_v36  ;;  %v5617_v43 = vmul.f32 %v13837_v2, %v17491_v36  ;;  %v17499_v50 = vld [vmem:[#allocation148_spill] sm:$0xff] }
 0x356   : > { %v5563_v12 = vadd.f32 %v5547_v54, %v5491_v11  ;;  %v5618_v14 = vmul.f32 %v14029_v61, %v17491_v36  ;;  %v5619_v37 = vmul.f32 %v14025_v42, %v17491_v36  ;;  %v5628_v31 = vadd.f32 %v5612_v40, %v17496_v59  ;;  %v17500_v38 = vld [vmem:[#allocation152_spill] sm:$0xff] }
 0x357   : > { %v5630_v10 = vadd.f32 %v5614_v34, %v5558_v15  ;;  %v14049_v6 = vsel %vm553_vm0, %v17497_v5, %v5682_v9  ;;  %v5709_v53 = vmul.f32 %v17500_v38, %v17499_v50  ;;  %v5711_v11 = vmul.f32 %v13703_v22, %v17499_v50 }
 0x358   : > { %17498 = vst [vmem:[#allocation72_spill] sm:$0xff] %v14049_v6  ;;  %v5631_v54 = vadd.f32 %v5615_v56, %v5559_v27  ;;  %v14057_v61 = vsel %vm553_vm0, %v5682_v9, %v5683_v4  ;;  %v5754_v36 = vrot.slane %v14005_v49, 6  ;;  %v5755_v40 = vrot.slane %v14012_v41, 6 }
 0x359   : > { %17501 = vst [vmem:[#allocation165_spill] sm:$0xff] %v14057_v61  ;;  %v5632_v15 = vadd.f32 %v5616_v16, %v5560_v44  ;;  %v5633_v34 = vadd.f32 %v5617_v43, %v5561_v24  ;;  %v5712_v59 = vmul.f32 %v13698_v8, %v17499_v50  ;;  %v5713_v5 = vmul.f32 %v13865_v46, %v17499_v50  ;;  %v17502_v44 = vld [vmem:[#allocation43_spill] sm:$0xff]  ;;  %v17503_v24 = vld [vmem:[#allocation42_spill] sm:$0xff] }
 0x35a   : > { %v5634_v38 = vadd.f32 %v5618_v14, %v5562_v19  ;;  %v5635_v42 = vadd.f32 %v5619_v37, %v5563_v12  ;;  %v5714_v27 = vmul.f32 %v13860_v0, %v17499_v50  ;;  %v5715_v9 = vmul.f32 %v14049_v6, %v17499_v50  ;;  %v17505_v14 = vld [vmem:[#allocation21_spill] sm:$0xff] }
 0x35b   : > { %v5716_v56 = vmul.f32 %v14057_v61, %v17499_v50  ;;  %v5725_v4 = vadd.f32 %v5709_v53, %v5628_v31  ;;  %v5727_v16 = vadd.f32 %v5711_v11, %v5630_v10  ;;  %v5781_v43 = vmul.f32 %v17503_v24, %v17502_v44 }
 0x35c   : > { %v14075_v8 = vsel %vm630_vm1, %v5754_v36, %v5755_v40  ;;  %v14080_v19 = vsel %vm630_vm1, %v17505_v14, %v5754_v36  ;;  %v5826_v12 = vrot.slane %v14005_v49, 7  ;;  %v5827_v37 = vrot.slane %v14012_v41, 7 }
 0x35d   : > { %17504 = vst [vmem:[#allocation92_spill] sm:$0xff] %v14075_v8  ;;  %17506 = vst [vmem:[#allocation140_spill] sm:$0xff] %v14080_v19  ;;  %v5728_v6 = vadd.f32 %v5712_v59, %v5631_v54  ;;  %v5729_v50 = vadd.f32 %v5713_v5, %v5632_v15  ;;  %v5783_v31 = vmul.f32 %v13716_v52, %v17502_v44 }
 0x35e   : > { %v5784_v10 = vmul.f32 %v13724_v23, %v17502_v44  ;;  %v5730_v53 = vadd.f32 %v5714_v27, %v5633_v34  ;;  %v5731_v11 = vadd.f32 %v5715_v9, %v5634_v38  ;;  %v5785_v40 = vmul.f32 %v13884_v20, %v17502_v44  ;;  %v17509_v34 = vld [vmem:[#allocation153_spill] sm:$0xff] }
 0x35f   : > { %v5786_v36 = vmul.f32 %v13893_v3, %v17502_v44  ;;  %v5732_v14 = vadd.f32 %v5716_v56, %v5635_v42  ;;  %v5787_v24 = vmul.f32 %v14080_v19, %v17502_v44  ;;  %v5788_v5 = vmul.f32 %v14075_v8, %v17502_v44 }
 0x360   : > { %v5797_v54 = vadd.f32 %v5781_v43, %v5725_v4  ;;  %v14098_v15 = vsel %vm707_vm2, %v5826_v12, %v5827_v37  ;;  %v14103_v38 = vsel %vm707_vm2, %v17408_v47, %v5826_v12  ;;  %v5853_v59 = vmul.f32 %v17462_v55, %v17509_v34  ;;  %v17510_v37 = vld [vmem:[#allocation113_spill] sm:$0xff] }
 0x361   : > { %17507 = vst [vmem:[#allocation119_spill] sm:$0xff] %v14098_v15  ;;  %17508 = vst [vmem:[#allocation118_spill] sm:$0xff] %v14103_v38  ;;  %v5854_v42 = vmul.f32 %v17469_v29, %v17509_v34  ;;  %v5799_v27 = vadd.f32 %v5783_v31, %v5727_v16  ;;  %v5800_v9 = vadd.f32 %v5784_v10, %v5728_v6  ;;  %v17511_v31 = vld [vmem:[#allocation103_spill] sm:$0xff]  ;;  %v17512_v10 = vld [vmem:[#allocation105_spill] sm:$0xff] }
 0x362   : > { %v5855_v56 = vmul.f32 %v13749_v7, %v17509_v34  ;;  %v5856_v4 = vmul.f32 %v17470_v35, %v17509_v34  ;;  %v5801_v44 = vadd.f32 %v5785_v40, %v5729_v50  ;;  %v5802_v43 = vadd.f32 %v5786_v36, %v5730_v53  ;;  %v17514_v50 = vld [vmem:[#allocation136_spill] sm:$0xff]  ;;  %v17516_v36 = vld [vmem:[#allocation122_spill] sm:$0xff] }
 0x363   : > { %v5857_v12 = vmul.f32 %v13907_v21, %v17509_v34  ;;  %v5858_v47 = vmul.f32 %v17510_v37, %v17509_v34  ;;  %v5803_v55 = vadd.f32 %v5787_v24, %v5731_v11  ;;  %v5804_v8 = vadd.f32 %v5788_v5, %v5732_v14  ;;  %v17517_v14 = vld [vmem:[#allocation154_spill] sm:$0xff]  ;;  %v17518_v11 = vld [vmem:[#allocation45_spill] sm:$0xff] }
 0x364   : > { %v5859_v16 = vmul.f32 %v14103_v38, %v17509_v34  ;;  %v5860_v6 = vmul.f32 %v14098_v15, %v17509_v34  ;;  %v14123_v7 = vmul.f32 %v17512_v10, %v17511_v31  ;;  %v14127_v53 = vmul.f32 %v17514_v50, %v17511_v31 }
 0x365   : > { %v5869_v40 = vadd.f32 %v5853_v59, %v5797_v54  ;;  %v5870_v21 = vadd.f32 %v5854_v42, %v17516_v36  ;;  %v5871_v37 = vadd.f32 %v5855_v56, %v5799_v27  ;;  %v5872_v24 = vadd.f32 %v5856_v4, %v5800_v9 }
 0x366   : > { %17513 = vst [vmem:[#allocation147_spill] sm:$0xff] %v14123_v7  ;;  %17515 = vst [vmem:[#allocation88_spill] sm:$0xff] %v14127_v53  ;;  %v5885_v5 = vmul.f32 %v17518_v11, %v17517_v14  ;;  %v5886_v38 = vmul.f32 %v13591_v48, %v17517_v14  ;;  %v5873_v34 = vadd.f32 %v5857_v12, %v5801_v44  ;;  %v5930_v59 = vrot.slane %v14005_v49, 1 }
 0x367   : > { %v5874_v15 = vadd.f32 %v5858_v47, %v5802_v43  ;;  %v5887_v10 = vmul.f32 %v17517_v14, %v13658_v62  ;;  %v5888_v50 = vmul.f32 %v17517_v14, %v13661_v1  ;;  %v5875_v31 = vadd.f32 %v5859_v16, %v5803_v55  ;;  %v17519_v55 = vld [vmem:[#allocation52_spill] sm:$0xff] }
 0x368   : > { %v5876_v54 = vadd.f32 %v5860_v6, %v5804_v8  ;;  %v5931_v42 = vrot.slane %v14012_v41, 1  ;;  %v5889_v27 = vmul.f32 %v17517_v14, %v13819_v33  ;;  %v5890_v9 = vmul.f32 %v17517_v14, %v13822_v18 }
 0x369   : > { %v5891_v47 = vmul.f32 %v17517_v14, %v14005_v49  ;;  %v5892_v56 = vmul.f32 %v17517_v14, %v14012_v41  ;;  %v5901_v4 = vadd.f32 %v5885_v5, %v5869_v40  ;;  %v5902_v44 = vadd.f32 %v5886_v38, %v5870_v21 }
 0x36a   : > { %v5957_v8 = vmul.f32 %v13638_v63, %v17519_v55  ;;  %v5958_v43 = vmul.f32 %v13634_v30, %v17519_v55  ;;  %v5903_v12 = vadd.f32 %v5887_v10, %v5871_v37  ;;  %v5904_v16 = vadd.f32 %v5888_v50, %v5872_v24 }
 0x36b   : > { %v5959_v6 = vmul.f32 %v13780_v32, %v17519_v55  ;;  %v5960_v36 = vmul.f32 %v13789_v25, %v17519_v55  ;;  %v14159_v14 = vsel %vm820_vm3, %v5931_v42, %v17415_v13  ;;  %v14163_v21 = vsel %vm820_vm3, %v5930_v59, %v5931_v42 }
 0x36c   : > { %17520 = vst [vmem:[#allocation19_spill] sm:$0xff] %v14159_v14  ;;  %17521 = vst [vmem:[#allocation41_spill] sm:$0xff] %v14163_v21  ;;  %v6002_v38 = vrot.slane %v14005_v49, 2  ;;  %v6003_v37 = vrot.slane %v14012_v41, 2  ;;  %v5905_v40 = vadd.f32 %v5889_v27, %v5873_v34  ;;  %v5906_v24 = vadd.f32 %v5890_v9, %v5874_v15  ;;  %v17525_v9 = vld [vmem:[#allocation36_spill] sm:$0xff] }
 0x36d   : > { %v5907_v5 = vadd.f32 %v5891_v47, %v5875_v31  ;;  %v5908_v10 = vadd.f32 %v5892_v56, %v5876_v54  ;;  %v5961_v50 = vmul.f32 %v13960_v51, %v17519_v55  ;;  %v5962_v53 = vmul.f32 %v13975_v57, %v17519_v55  ;;  %v17523_v31 = vld [vmem:[#allocation44_spill] sm:$0xff]  ;;  %v17526_v56 = vld [vmem:[#allocation25_spill] sm:$0xff] }
 0x36e   : > { %v5973_v7 = vadd.f32 %v5957_v8, %v5901_v4  ;;  %v5974_v13 = vadd.f32 %v5958_v43, %v5902_v44  ;;  %v5963_v59 = vmul.f32 %v14163_v21, %v17519_v55  ;;  %v5964_v42 = vmul.f32 %v14159_v14, %v17519_v55  ;;  %v17524_v54 = vld [vmem:[#allocation128_spill] sm:$0xff]  ;;  %v17528_v43 = vld [vmem:[#allocation65_spill] sm:$0xff]  ;;  %v17530_v21 = vld [vmem:[#allocation158_spill] sm:$0xff] }
 0x36f   : > { %v5975_v25 = vadd.f32 %v5959_v6, %v5903_v12  ;;  %v5976_v32 = vadd.f32 %v5960_v36, %v5904_v16  ;;  %v14177_v15 = vsel %vm897_vm4, %v6002_v38, %v6003_v37  ;;  %v6029_v34 = vmul.f32 %v13654_v45, %v17523_v31  ;;  %v17529_v12 = vld [vmem:[#allocation78_spill] sm:$0xff] }
 0x370   : > { %17522 = vst [vmem:[#allocation51_spill] sm:$0xff] %v14177_v15  ;;  %v6030_v27 = vmul.f32 %v17524_v54, %v17523_v31  ;;  %v6031_v47 = vmul.f32 %v17525_v9, %v17523_v31  ;;  %v14188_v4 = vsel %vm897_vm4, %v6003_v37, %v17526_v56  ;;  %v6032_v44 = vmul.f32 %v13810_v58, %v17523_v31 }
 0x371   : > { %17527 = vst [vmem:[#allocation67_spill] sm:$0xff] %v14188_v4  ;;  %v6074_v55 = vrot.slane %v14005_v49, 3  ;;  %v6075_v8 = vrot.slane %v14012_v41, 3  ;;  %v7184_v16 = vadd.f32 %v17529_v12, %v17528_v43  ;;  %v5977_v6 = vadd.f32 %v5961_v50, %v5905_v40  ;;  %v17538_v12 = vld [vmem:[#allocation121_spill] sm:$0xff] }
 0x372   : > { %v5978_v36 = vadd.f32 %v5962_v53, %v5906_v24  ;;  %v6033_v38 = vmul.f32 %v13989_v17, %v17523_v31  ;;  %v5979_v9 = vadd.f32 %v5963_v59, %v5907_v5  ;;  %v5980_v54 = vadd.f32 %v5964_v42, %v5908_v10  ;;  %v17532_v10 = vld [vmem:[#allocation134_spill] sm:$0xff] }
 0x373   : > { %v6034_v37 = vmul.f32 %v14000_v26, %v17523_v31  ;;  %v6035_v56 = vmul.f32 %v14177_v15, %v17523_v31  ;;  %v6036_v58 = vmul.f32 %v14188_v4, %v17523_v31  ;;  %v6045_v45 = vadd.f32 %v6029_v34, %v5973_v7  ;;  %v17533_v42 = vld [vmem:[#allocation26_spill] sm:$0xff] }
 0x374   : > { %v6046_v14 = vadd.f32 %v6030_v27, %v5974_v13  ;;  %v6099_v40 = vmul.f32 %v17492_v60, %v17530_v21  ;;  %v6047_v53 = vadd.f32 %v6031_v47, %v5975_v25  ;;  %v6048_v24 = vadd.f32 %v6032_v44, %v5976_v32  ;;  %v17535_v13 = vld [vmem:[#allocation60_spill] sm:$0xff]  ;;  %v17536_v27 = vld [vmem:[#allocation81_spill] sm:$0xff] }
 0x375   : > { %v14208_v5 = vsel %vm974_vm5, %v6074_v55, %v6075_v8  ;;  %v6101_v50 = vmul.f32 %v17532_v10, %v17530_v21  ;;  %v6049_v59 = vadd.f32 %v6033_v38, %v5977_v6  ;;  %v14215_v43 = vsel %vm974_vm5, %v6075_v8, %v17533_v42  ;;  %v17537_v55 = vld [vmem:[#allocation27_spill] sm:$0xff] }
 0x376   : > { %17531 = vst [vmem:[#allocation46_spill] sm:$0xff] %v14208_v5  ;;  %17534 = vst [vmem:[#allocation56_spill] sm:$0xff] %v14215_v43  ;;  %v6102_v7 = vmul.f32 %v17535_v13, %v17530_v21  ;;  %v6103_v25 = vmul.f32 %v13841_v28, %v17530_v21  ;;  %v6050_v32 = vadd.f32 %v6034_v37, %v5978_v36 }
 0x377   : > { %v6051_v31 = vadd.f32 %v6035_v56, %v5979_v9  ;;  %v6104_v34 = vmul.f32 %v13837_v2, %v17530_v21  ;;  %v6105_v47 = vmul.f32 %v17536_v27, %v17530_v21  ;;  %v6052_v44 = vadd.f32 %v6036_v58, %v5980_v54  ;;  %v17539_v9 = vld [vmem:[#allocation91_spill] sm:$0xff]  ;;  %v17540_v56 = vld [vmem:[#allocation152_spill] sm:$0xff] }
 0x378   : > { %v6106_v39 = vmul.f32 %v17537_v55, %v17530_v21  ;;  %v6107_v8 = vmul.f32 %v14208_v5, %v17530_v21  ;;  %v6115_v6 = vadd.f32 %v6099_v40, %v17538_v12  ;;  %v6108_v38 = vmul.f32 %v14215_v43, %v17530_v21  ;;  %v17541_v54 = vld [vmem:[#allocation80_spill] sm:$0xff]  ;;  %v17542_v2 = vld [vmem:[#allocation99_spill] sm:$0xff]  ;;  %v17543_v40 = vld [vmem:[#allocation29_spill] sm:$0xff] }
 0x379   : > { %v6117_v36 = vadd.f32 %v6101_v50, %v6045_v45  ;;  %v6196_v37 = vmul.f32 %v17540_v56, %v17539_v9  ;;  %v6198_v42 = vmul.f32 %v13703_v22, %v17539_v9  ;;  %v6118_v27 = vadd.f32 %v6102_v7, %v6046_v14  ;;  %v17545_v14 = vld [vmem:[#allocation72_spill] sm:$0xff] }
 0x37a   : > { %v6119_v58 = vadd.f32 %v6103_v25, %v6047_v53  ;;  %v6199_v55 = vmul.f32 %v17541_v54, %v17539_v9  ;;  %v6200_v5 = vmul.f32 %v13865_v46, %v17539_v9  ;;  %v14242_v12 = vadd.f32 %v17543_v40, %v17542_v2  ;;  %v17546_v54 = vld [vmem:[#allocation20_spill] sm:$0xff] }
 0x37b   : > { %v6120_v21 = vadd.f32 %v6104_v34, %v6048_v24  ;;  %v6121_v45 = vadd.f32 %v6105_v47, %v6049_v59  ;;  %v6201_v50 = vmul.f32 %v13860_v0, %v17539_v9  ;;  %v6122_v56 = vadd.f32 %v6106_v39, %v6050_v32  ;;  %v17547_v59 = vld [vmem:[#allocation37_spill] sm:$0xff]  ;;  %v17548_v34 = vld [vmem:[#allocation42_spill] sm:$0xff] }
 0x37c   : > { %17544 = vst [vmem:[#allocation110_spill] sm:$0xff] %v14242_v12  ;;  %v6123_v43 = vadd.f32 %v6107_v8, %v6051_v31  ;;  %v6202_v53 = vmul.f32 %v17545_v14, %v17539_v9  ;;  %v6203_v7 = vmul.f32 %v14057_v61, %v17539_v9  ;;  %v6124_v25 = vadd.f32 %v6108_v38, %v6052_v44 }
 0x37d   : > { %v6204_v46 = vmul.f32 %v17539_v9, %v17546_v54  ;;  %v6212_v22 = vadd.f32 %v6196_v37, %v6115_v6  ;;  %v6214_v2 = vadd.f32 %v6198_v42, %v6117_v36  ;;  %v6215_v40 = vadd.f32 %v6199_v55, %v6118_v27  ;;  %v17549_v6 = vld [vmem:[#allocation166_spill] sm:$0xff]  ;;  %v17551_v9 = vld [vmem:[#allocation92_spill] sm:$0xff] }
 0x37e   : > { %v6216_v24 = vadd.f32 %v6200_v5, %v6119_v58  ;;  %v6268_v47 = vmul.f32 %v17548_v34, %v17547_v59  ;;  %v6270_v32 = vmul.f32 %v13716_v52, %v17547_v59  ;;  %v6217_v31 = vadd.f32 %v6201_v50, %v6120_v21  ;;  %v17552_v58 = vld [vmem:[#allocation21_spill] sm:$0xff] }
 0x37f   : > { %v6271_v39 = vmul.f32 %v13724_v23, %v17547_v59  ;;  %v6272_v44 = vmul.f32 %v13884_v20, %v17547_v59  ;;  %v6273_v8 = vmul.f32 %v13893_v3, %v17547_v59  ;;  %v14263_v42 = vadd.f32 %v17549_v6, %v7184_v16  ;;  %v17553_v20 = vld [vmem:[#allocation53_spill] sm:$0xff]  ;;  %v17554_v3 = vld [vmem:[#allocation50_spill] sm:$0xff] }
 0x380   : > { %v6218_v5 = vadd.f32 %v6202_v53, %v6121_v45  ;;  %v6219_v27 = vadd.f32 %v6203_v7, %v6122_v56  ;;  %v6274_v55 = vmul.f32 %v14080_v19, %v17547_v59  ;;  %v6220_v38 = vadd.f32 %v6204_v46, %v6123_v43  ;;  %v17555_v43 = vld [vmem:[#allocation95_spill] sm:$0xff] }
 0x381   : > { %17550 = vst [vmem:[#allocation68_spill] sm:$0xff] %v14263_v42  ;;  %v6221_v36 = vadd.f32 %v6204_v46, %v6124_v25  ;;  %v6275_v37 = vmul.f32 %v17551_v9, %v17547_v59  ;;  %v6276_v21 = vmul.f32 %v17547_v59, %v17552_v58  ;;  %v6284_v50 = vadd.f32 %v6268_v47, %v6212_v22  ;;  %v17556_v59 = vld [vmem:[#allocation168_spill] sm:$0xff] }
 0x382   : > { %v6286_v12 = vadd.f32 %v6270_v32, %v6214_v2  ;;  %v6340_v23 = vmul.f32 %v17554_v3, %v17553_v20  ;;  %v6341_v16 = vmul.f32 %v17469_v29, %v17553_v20  ;;  %v6287_v56 = vadd.f32 %v6271_v39, %v6215_v40  ;;  %v17557_v2 = vld [vmem:[#allocation113_spill] sm:$0xff]  ;;  %v17558_v40 = vld [vmem:[#allocation118_spill] sm:$0xff] }
 0x383   : > { %v6288_v45 = vadd.f32 %v6272_v44, %v6216_v24  ;;  %v6289_v53 = vadd.f32 %v6273_v8, %v6217_v31  ;;  %v6342_v46 = vmul.f32 %v17555_v43, %v17553_v20  ;;  %v6290_v7 = vadd.f32 %v6274_v55, %v6218_v5  ;;  %v17559_v31 = vld [vmem:[#allocation119_spill] sm:$0xff]  ;;  %v17560_v44 = vld [vmem:[#allocation22_spill] sm:$0xff]  ;;  %v17561_v55 = vld [vmem:[#allocation125_spill] sm:$0xff] }
 0x384   : > { %v6343_v25 = vmul.f32 %v17470_v35, %v17553_v20  ;;  %v6344_v22 = vmul.f32 %v17556_v59, %v17553_v20  ;;  %v6345_v47 = vmul.f32 %v17557_v2, %v17553_v20  ;;  %v6291_v32 = vadd.f32 %v6275_v37, %v6219_v27  ;;  %v17562_v59 = vld [vmem:[#allocation49_spill] sm:$0xff] }
 0x385   : > { %v6292_v6 = vadd.f32 %v6276_v21, %v6220_v38  ;;  %v6293_v42 = vadd.f32 %v6276_v21, %v6221_v36  ;;  %v6346_v24 = vmul.f32 %v17558_v40, %v17553_v20  ;;  %v6347_v39 = vmul.f32 %v17559_v31, %v17553_v20 }
 0x386   : > { %v6348_v8 = vmul.f32 %v17553_v20, %v17560_v44  ;;  %v6356_v5 = vadd.f32 %v6340_v23, %v6284_v50  ;;  %v6357_v35 = vadd.f32 %v6341_v16, %v17561_v55  ;;  %v6358_v43 = vadd.f32 %v6342_v46, %v6286_v12  ;;  %v17565_v55 = vld [vmem:[#allocation161_spill] sm:$0xff] }
 0x387   : > { %v6372_v29 = vmul.f32 %v17518_v11, %v17562_v59  ;;  %v6373_v27 = vmul.f32 %v13591_v48, %v17562_v59  ;;  %v6374_v38 = vmul.f32 %v17562_v59, %v13658_v62  ;;  %v6359_v36 = vadd.f32 %v6343_v25, %v6287_v56 }
 0x388   : > { %v6360_v37 = vadd.f32 %v6344_v22, %v6288_v45  ;;  %v6361_v21 = vadd.f32 %v6345_v47, %v6289_v53  ;;  %v6375_v31 = vmul.f32 %v17562_v59, %v13661_v1  ;;  %v6362_v20 = vadd.f32 %v6346_v24, %v6290_v7  ;;  %v17563_v7 = vld [vmem:[#allocation162_spill] sm:$0xff] }
 0x389   : > { %v6376_v23 = vmul.f32 %v17562_v59, %v13819_v33  ;;  %v6377_v12 = vmul.f32 %v17562_v59, %v13822_v18  ;;  %v6378_v11 = vmul.f32 %v17562_v59, %v14005_v49  ;;  %v6363_v48 = vadd.f32 %v6347_v39, %v6291_v32  ;;  %v17564_v47 = vld [vmem:[#allocation86_spill] sm:$0xff] }
 0x38a   : > { %v6364_v50 = vadd.f32 %v6348_v8, %v6292_v6  ;;  %v6379_v62 = vmul.f32 %v17562_v59, %v14012_v41  ;;  %v6380_v16 = vmul.f32 0.0, %v17562_v59  ;;  %v6365_v56 = vadd.f32 %v6348_v8, %v6293_v42  ;;  %v17566_v8 = vld [vmem:[#allocation41_spill] sm:$0xff] }
 0x38b   : > { %v6388_v45 = vadd.f32 %v6372_v29, %v6356_v5  ;;  %v6389_v1 = vadd.f32 %v6373_v27, %v6357_v35  ;;  %v6390_v53 = vadd.f32 %v6374_v38, %v6358_v43  ;;  %v6391_v46 = vadd.f32 %v6375_v31, %v6359_v36  ;;  %v17567_v27 = vld [vmem:[#allocation19_spill] sm:$0xff] }
 0x38c   : > { %v6444_v25 = vmul.f32 %v13638_v63, %v17563_v7  ;;  %v6445_v22 = vmul.f32 %v13634_v30, %v17563_v7  ;;  %v6446_v32 = vmul.f32 %v17564_v47, %v17563_v7  ;;  %v6392_v6 = vadd.f32 %v6376_v23, %v6360_v37  ;;  %v17568_v36 = vld [vmem:[#allocation23_spill] sm:$0xff] }
 0x38d   : > { %v6393_v24 = vadd.f32 %v6377_v12, %v6361_v21  ;;  %v6394_v39 = vadd.f32 %v6378_v11, %v6362_v20  ;;  %v6447_v59 = vmul.f32 %v17565_v55, %v17563_v7  ;;  %v6395_v42 = vadd.f32 %v6379_v62, %v6363_v48  ;;  %v17569_v12 = vld [vmem:[#allocation163_spill] sm:$0xff]  ;;  %v17571_v62 = vld [vmem:[#allocation128_spill] sm:$0xff] }
 0x38e   : > { %v6396_v29 = vadd.f32 %v6380_v16, %v6364_v50  ;;  %v6448_v35 = vmul.f32 %v13960_v51, %v17563_v7  ;;  %v6449_v43 = vmul.f32 %v13975_v57, %v17563_v7  ;;  %v6397_v31 = vadd.f32 %v6380_v16, %v6365_v56  ;;  %v17570_v11 = vld [vmem:[#allocation139_spill] sm:$0xff]  ;;  %v17572_v16 = vld [vmem:[#allocation36_spill] sm:$0xff] }
 0x38f   : > { %v6450_v5 = vmul.f32 %v17566_v8, %v17563_v7  ;;  %v6451_v38 = vmul.f32 %v17567_v27, %v17563_v7  ;;  %v6452_v37 = vmul.f32 %v17563_v7, %v17568_v36  ;;  %v6460_v21 = vadd.f32 %v6444_v25, %v6388_v45  ;;  %v17573_v8 = vld [vmem:[#allocation93_spill] sm:$0xff] }
 0x390   : > { %v6461_v20 = vadd.f32 %v6445_v22, %v6389_v1  ;;  %v6462_v23 = vadd.f32 %v6446_v32, %v6390_v53  ;;  %v6516_v48 = vmul.f32 %v17570_v11, %v17569_v12  ;;  %v6463_v50 = vadd.f32 %v6447_v59, %v6391_v46  ;;  %v17574_v59 = vld [vmem:[#allocation25_spill] sm:$0xff] }
 0x391   : > { %v6517_v57 = vmul.f32 %v17571_v62, %v17569_v12  ;;  %v6518_v56 = vmul.f32 %v17572_v16, %v17569_v12  ;;  %v6519_v51 = vmul.f32 %v17573_v8, %v17569_v12  ;;  %v6464_v27 = vadd.f32 %v6448_v35, %v6392_v6  ;;  %v17575_v8 = vld [vmem:[#allocation143_spill] sm:$0xff] }
 0x392   : > { %v6465_v55 = vadd.f32 %v6449_v43, %v6393_v24  ;;  %v6520_v45 = vmul.f32 %v13989_v17, %v17569_v12  ;;  %v6521_v1 = vmul.f32 %v14000_v26, %v17569_v12  ;;  %v6466_v53 = vadd.f32 %v6450_v5, %v6394_v39 }
 0x393   : > { %v6467_v7 = vadd.f32 %v6451_v38, %v6395_v42  ;;  %v6522_v46 = vmul.f32 %v14177_v15, %v17569_v12  ;;  %v6523_v25 = vmul.f32 %v14188_v4, %v17569_v12  ;;  %v6468_v22 = vadd.f32 %v6452_v37, %v6396_v29 }
 0x394   : > { %v6469_v32 = vadd.f32 %v6452_v37, %v6397_v31  ;;  %v6524_v6 = vmul.f32 %v17569_v12, %v17574_v59  ;;  %v6532_v24 = vadd.f32 %v6516_v48, %v6460_v21  ;;  %v6533_v35 = vadd.f32 %v6517_v57, %v6461_v20  ;;  %v17576_v57 = vld [vmem:[#allocation35_spill] sm:$0xff]  ;;  %v17577_v20 = vld [vmem:[#allocation81_spill] sm:$0xff]  ;;  %v17579_v12 = vld [vmem:[#allocation46_spill] sm:$0xff] }
 0x395   : > { %v6534_v43 = vadd.f32 %v6518_v56, %v6462_v23  ;;  %v6535_v17 = vadd.f32 %v6519_v51, %v6463_v50  ;;  %v6586_v26 = vmul.f32 %v17492_v60, %v17575_v8  ;;  %v6536_v39 = vadd.f32 %v6520_v45, %v6464_v27  ;;  %v17580_v56 = vld [vmem:[#allocation56_spill] sm:$0xff] }
 0x396   : > { %v6537_v42 = vadd.f32 %v6521_v1, %v6465_v55  ;;  %v6588_v5 = vmul.f32 %v17532_v10, %v17575_v8  ;;  %v6589_v38 = vmul.f32 %v17535_v13, %v17575_v8  ;;  %v6538_v29 = vadd.f32 %v6522_v46, %v6466_v53  ;;  %v17578_v55 = vld [vmem:[#allocation27_spill] sm:$0xff]  ;;  %v17581_v1 = vld [vmem:[#allocation26_spill] sm:$0xff]  ;;  %v17585_v13 = vld [vmem:[#allocation69_spill] sm:$0xff] }
 0x397   : > { %v6539_v31 = vadd.f32 %v6523_v25, %v6467_v7  ;;  %v6590_v37 = vmul.f32 %v13841_v28, %v17575_v8  ;;  %v6591_v21 = vmul.f32 %v17576_v57, %v17575_v8  ;;  %v6540_v51 = vadd.f32 %v6524_v6, %v6468_v22  ;;  %v17582_v7 = vld [vmem:[#allocation124_spill] sm:$0xff]  ;;  %v17583_v57 = vld [vmem:[#allocation73_spill] sm:$0xff] }
 0x398   : > { %v6592_v23 = vmul.f32 %v17577_v20, %v17575_v8  ;;  %v6593_v27 = vmul.f32 %v17578_v55, %v17575_v8  ;;  %v6594_v48 = vmul.f32 %v17579_v12, %v17575_v8  ;;  %v6541_v50 = vadd.f32 %v6524_v6, %v6469_v32  ;;  %v17584_v28 = vld [vmem:[#allocation152_spill] sm:$0xff] }
 0x399   : > { %v6595_v45 = vmul.f32 %v17580_v56, %v17575_v8  ;;  %v6596_v53 = vmul.f32 %v17575_v8, %v17581_v1  ;;  %v6602_v46 = vadd.f32 %v6586_v26, %v17582_v7  ;;  %v6604_v25 = vadd.f32 %v6588_v5, %v6532_v24  ;;  %v17586_v32 = vld [vmem:[#allocation80_spill] sm:$0xff]  ;;  %v17587_v56 = vld [vmem:[#allocation38_spill] sm:$0xff]  ;;  %v17590_v7 = vld [vmem:[#allocation149_spill] sm:$0xff] }
 0x39a   : > { %v6605_v22 = vadd.f32 %v6589_v38, %v6533_v35  ;;  %v6683_v20 = vmul.f32 %v17584_v28, %v17583_v57  ;;  %v6685_v55 = vmul.f32 %v17585_v13, %v17583_v57  ;;  %v6606_v10 = vadd.f32 %v6590_v37, %v6534_v43 }
 0x39b   : > { %v6607_v60 = vadd.f32 %v6591_v21, %v6535_v17  ;;  %v6686_v6 = vmul.f32 %v17586_v32, %v17583_v57  ;;  %v6687_v12 = vmul.f32 %v17587_v56, %v17583_v57  ;;  %v6608_v59 = vadd.f32 %v6592_v23, %v6536_v39 }
 0x39c   : > { %v6609_v8 = vadd.f32 %v6593_v27, %v6537_v42  ;;  %v6610_v1 = vadd.f32 %v6594_v48, %v6538_v29  ;;  %v6688_v26 = vmul.f32 %v13860_v0, %v17583_v57  ;;  %v6611_v24 = vadd.f32 %v6595_v45, %v6539_v31  ;;  %v17588_v29 = vld [vmem:[#allocation94_spill] sm:$0xff]  ;;  %v17589_v31 = vld [vmem:[#allocation159_spill] sm:$0xff] }
 0x39d   : > { %v6689_v35 = vmul.f32 %v17545_v14, %v17583_v57  ;;  %v6690_v43 = vmul.f32 %v14057_v61, %v17583_v57  ;;  %v6691_v17 = vmul.f32 %v17583_v57, %v17546_v54  ;;  %v6612_v5 = vadd.f32 %v6596_v53, %v6540_v51  ;;  %v17591_v57 = vld [vmem:[#allocation164_spill] sm:$0xff] }
 0x39e   : > { %v6613_v38 = vadd.f32 %v6596_v53, %v6541_v50  ;;  %v6699_v37 = vadd.f32 %v6683_v20, %v6602_v46  ;;  %v6701_v21 = vadd.f32 %v6685_v55, %v6604_v25  ;;  %v6702_v39 = vadd.f32 %v6686_v6, %v6605_v22 }
 0x39f   : > { %v6703_v42 = vadd.f32 %v6687_v12, %v6606_v10  ;;  %v6755_v23 = vmul.f32 %v17548_v34, %v17588_v29  ;;  %v6756_v27 = vmul.f32 %v17589_v31, %v17588_v29  ;;  %v6704_v48 = vadd.f32 %v6688_v26, %v6607_v60  ;;  %v17592_v12 = vld [vmem:[#allocation109_spill] sm:$0xff] }
 0x3a0   : > { %v6757_v45 = vmul.f32 %v13716_v52, %v17588_v29  ;;  %v6758_v61 = vmul.f32 %v17590_v7, %v17588_v29  ;;  %v6759_v51 = vmul.f32 %v17591_v57, %v17588_v29  ;;  %v6705_v20 = vadd.f32 %v6689_v35, %v6608_v59  ;;  %v17593_v57 = vld [vmem:[#allocation151_spill] sm:$0xff]  ;;  %v17594_v35 = vld [vmem:[#allocation34_spill] sm:$0xff]  ;;  %v17597_v52 = vld [vmem:[#allocation160_spill] sm:$0xff] }
 0x3a1   : > { %v6706_v55 = vadd.f32 %v6690_v43, %v6609_v8  ;;  %v6707_v50 = vadd.f32 %v6691_v17, %v6610_v1  ;;  %v6708_v10 = vadd.f32 %v6691_v17, %v6611_v24  ;;  %v6760_v53 = vmul.f32 %v17592_v12, %v17588_v29  ;;  %v17595_v12 = vld [vmem:[#allocation47_spill] sm:$0xff] }
 0x3a2   : > { %v6761_v46 = vmul.f32 %v14080_v19, %v17588_v29  ;;  %v6762_v60 = vmul.f32 %v17551_v9, %v17588_v29  ;;  %v6763_v25 = vmul.f32 %v17588_v29, %v17552_v58  ;;  %v6709_v22 = vadd.f32 %v6691_v17, %v6612_v5  ;;  %v17596_v7 = vld [vmem:[#allocation95_spill] sm:$0xff] }
 0x3a3   : > { %v6710_v6 = vadd.f32 %v6691_v17, %v6613_v38  ;;  %v6771_v26 = vadd.f32 %v6755_v23, %v6699_v37  ;;  %v6772_v59 = vadd.f32 %v6756_v27, %v17593_v57  ;;  %v6773_v8 = vadd.f32 %v6757_v45, %v6701_v21  ;;  %v17598_v17 = vld [vmem:[#allocation168_spill] sm:$0xff]  ;;  %v17599_v57 = vld [vmem:[#allocation119_spill] sm:$0xff] }
 0x3a4   : > { %v6774_v1 = vadd.f32 %v6758_v61, %v6702_v39  ;;  %v6775_v24 = vadd.f32 %v6759_v51, %v6703_v42  ;;  %v6827_v43 = vmul.f32 %v17554_v3, %v17594_v35  ;;  %v6828_v19 = vmul.f32 %v17595_v12, %v17594_v35 }
 0x3a5   : > { %v6829_v9 = vmul.f32 %v17596_v7, %v17594_v35  ;;  %v6830_v29 = vmul.f32 %v17597_v52, %v17594_v35  ;;  %v6831_v5 = vmul.f32 %v17598_v17, %v17594_v35  ;;  %v6776_v38 = vadd.f32 %v6760_v53, %v6704_v48 }
 0x3a6   : > { %v6777_v37 = vadd.f32 %v6761_v46, %v6705_v20  ;;  %v6778_v61 = vadd.f32 %v6762_v60, %v6706_v55  ;;  %v6779_v21 = vadd.f32 %v6763_v25, %v6707_v50  ;;  %v6780_v39 = vadd.f32 %v6763_v25, %v6708_v10  ;;  %v14418_v46 = vld [vmem:[%s9980_s19 + $0xc0] sm:$0xff] }
 0x3a7   : > { %v6781_v42 = vadd.f32 %v6763_v25, %v6709_v22  ;;  %v6832_v23 = vmul.f32 %v17557_v2, %v17594_v35  ;;  %v6833_v27 = vmul.f32 %v17558_v40, %v17594_v35  ;;  %v6782_v45 = vadd.f32 %v6763_v25, %v6710_v6  ;;  %17600 = vst [vmem:[#allocation79_spill] sm:$0xff] %v14418_v46  ;;  %v17601_v60 = vld [vmem:[#allocation40_spill] sm:$0xff]  ;;  %v14423_v2 = vld [vmem:[%s9980_s19 + $0xc8] sm:$0xff]  ;;  %v14428_v6 = vld [vmem:[%s9980_s19 + $0xd0] sm:$0xff] }
 0x3a8   : > { %v6834_v51 = vmul.f32 %v17599_v57, %v17594_v35  ;;  %v6835_v48 = vmul.f32 %v17594_v35, %v17560_v44  ;;  %v6843_v20 = vadd.f32 %v6827_v43, %v6771_v26  ;;  %v6844_v55 = vadd.f32 %v6828_v19, %v6772_v59  ;;  %17602 = vst [vmem:[#allocation76_spill] sm:$0xff] %v14423_v2  ;;  %v14433_v26 = vld [vmem:[%s9980_s19 + $0xd8] sm:$0xff] }
 0x3a9   : > { %v6845_v50 = vadd.f32 %v6829_v9, %v6773_v8  ;;  %v6846_v10 = vadd.f32 %v6830_v29, %v6774_v1  ;;  %v6847_v53 = vadd.f32 %v6831_v5, %v6775_v24  ;;  %v6859_v22 = vmul.f32 %v14418_v46, %v17601_v60  ;;  %17603 = vst [vmem:[#allocation90_spill] sm:$0xff] %v14428_v6 }
 0x3aa   : > { %v6860_v25 = vmul.f32 %v14423_v2, %v17601_v60  ;;  %v6861_v35 = vmul.f32 %v14428_v6, %v17601_v60  ;;  %17604 = vst [vmem:[#allocation61_spill] sm:$0xff] %v14433_v26  ;;  %v6862_v19 = vmul.f32 %v14433_v26, %v17601_v60  ;;  %v6848_v9 = vadd.f32 %v6832_v23, %v6776_v38 }
 0x3ab   : > { %v6849_v59 = vadd.f32 %v6833_v27, %v6777_v37  ;;  %v6863_v8 = vmul.f32 %v17601_v60, %v13819_v33  ;;  %v6864_v1 = vmul.f32 %v17601_v60, %v13822_v18  ;;  %v6850_v24 = vadd.f32 %v6834_v51, %v6778_v61  ;;  %v17605_v18 = vld [vmem:[#allocation70_spill] sm:$0xff]  ;;  %v17608_v51 = vld [vmem:[#allocation133_spill] sm:$0xff] }
 0x3ac   : > { %v6851_v43 = vadd.f32 %v6835_v48, %v6779_v21  ;;  %v6852_v29 = vadd.f32 %v6835_v48, %v6780_v39  ;;  %v6853_v5 = vadd.f32 %v6835_v48, %v6781_v42  ;;  %v6854_v2 = vadd.f32 %v6835_v48, %v6782_v45  ;;  %v17606_v39 = vld [vmem:[#allocation161_spill] sm:$0xff]  ;;  %v17607_v42 = vld [vmem:[#allocation32_spill] sm:$0xff] }
 0x3ad   : > { %v6865_v6 = vmul.f32 %v17601_v60, %v14005_v49  ;;  %v6866_v44 = vmul.f32 %v17601_v60, %v14012_v41  ;;  %v6867_v38 = vmul.f32 0.0, %v17601_v60  ;;  %v6875_v37 = vadd.f32 %v6859_v22, %v6843_v20  ;;  %v17609_v20 = vld [vmem:[#allocation110_spill] sm:$0xff] }
 0x3ae   : > { %v6876_v23 = vadd.f32 %v6860_v25, %v6844_v55  ;;  %v6877_v27 = vadd.f32 %v6861_v35, %v6845_v50  ;;  %v6878_v33 = vadd.f32 %v6862_v19, %v6846_v10  ;;  %v6879_v26 = vadd.f32 %v6863_v8, %v6847_v53  ;;  %v17610_v55 = vld [vmem:[#allocation135_spill] sm:$0xff]  ;;  %v17611_v19 = vld [vmem:[#allocation41_spill] sm:$0xff] }
 0x3af   : > { %v6880_v46 = vadd.f32 %v6864_v1, %v6848_v9  ;;  %v6931_v61 = vmul.f32 %v13638_v63, %v17605_v18  ;;  %v6932_v21 = vmul.f32 %v13634_v30, %v17605_v18  ;;  %v6933_v49 = vmul.f32 %v17564_v47, %v17605_v18  ;;  %v17612_v8 = vld [vmem:[#allocation19_spill] sm:$0xff] }
 0x3b0   : > { %v6934_v41 = vmul.f32 %v17606_v39, %v17605_v18  ;;  %v6935_v45 = vmul.f32 %v17607_v42, %v17605_v18  ;;  %v6936_v48 = vmul.f32 %v17608_v51, %v17605_v18  ;;  %v14460_v50 = vadd.f32 %v17610_v55, %v17609_v20 }
 0x3b1   : > { %v6881_v10 = vadd.f32 %v6865_v6, %v6849_v59  ;;  %v6882_v53 = vadd.f32 %v6866_v44, %v6850_v24  ;;  %v6883_v60 = vadd.f32 %v6867_v38, %v6851_v43  ;;  %v6884_v22 = vadd.f32 %v6867_v38, %v6852_v29  ;;  %v17613_v44 = vld [vmem:[#allocation167_spill] sm:$0xff]  ;;  %v17614_v43 = vld [vmem:[#allocation93_spill] sm:$0xff] }
 0x3b2   : > { %v6885_v25 = vadd.f32 %v6867_v38, %v6853_v5  ;;  %v6886_v35 = vadd.f32 %v6867_v38, %v6854_v2  ;;  %v6937_v9 = vmul.f32 %v17611_v19, %v17605_v18  ;;  %v6938_v1 = vmul.f32 %v17612_v8, %v17605_v18  ;;  %v17615_v38 = vld [vmem:[#allocation74_spill] sm:$0xff] }
 0x3b3   : > { %v6939_v42 = vmul.f32 %v17605_v18, %v17568_v36  ;;  %v6947_v51 = vadd.f32 %v6931_v61, %v6875_v37  ;;  %v6948_v39 = vadd.f32 %v6932_v21, %v6876_v23  ;;  %v6949_v47 = vadd.f32 %v6933_v49, %v6877_v27  ;;  %v17616_v23 = vld [vmem:[#allocation144_spill] sm:$0xff] }
 0x3b4   : > { %v6950_v20 = vadd.f32 %v6934_v41, %v6878_v33  ;;  %v6951_v55 = vadd.f32 %v6935_v45, %v6879_v26  ;;  %v6952_v6 = vadd.f32 %v6936_v48, %v6880_v46  ;;  %v7003_v59 = vmul.f32 %v17570_v11, %v17613_v44  ;;  %v17617_v27 = vld [vmem:[#allocation68_spill] sm:$0xff]  ;;  %v17618_v33 = vld [vmem:[#allocation147_spill] sm:$0xff] }
 0x3b5   : > { %v7004_v2 = vmul.f32 %v17571_v62, %v17613_v44  ;;  %v7005_v24 = vmul.f32 %v17572_v16, %v17613_v44  ;;  %v7006_v29 = vmul.f32 %v17614_v43, %v17613_v44  ;;  %v6953_v5 = vadd.f32 %v6937_v9, %v6881_v10  ;;  %v17619_v10 = vld [vmem:[#allocation25_spill] sm:$0xff] }
 0x3b6   : > { %v7007_v37 = vmul.f32 %v17615_v38, %v17613_v44  ;;  %v7008_v26 = vmul.f32 %v17616_v23, %v17613_v44  ;;  %v7009_v46 = vmul.f32 %v14177_v15, %v17613_v44  ;;  %v14484_v18 = vadd.f32 %v17618_v33, %v17617_v27  ;;  %v17620_v27 = vld [vmem:[#allocation85_spill] sm:$0xff]  ;;  %v17621_v33 = vld [vmem:[#allocation156_spill] sm:$0xff] }
 0x3b7   : > { %v6954_v61 = vadd.f32 %v6938_v1, %v6882_v53  ;;  %v6955_v21 = vadd.f32 %v6939_v42, %v6883_v60  ;;  %v6956_v49 = vadd.f32 %v6939_v42, %v6884_v22  ;;  %v6957_v41 = vadd.f32 %v6939_v42, %v6885_v25  ;;  %v17622_v60 = vld [vmem:[#allocation59_spill] sm:$0xff] }
 0x3b8   : > { %v6958_v45 = vadd.f32 %v6939_v42, %v6886_v35  ;;  %v7010_v48 = vmul.f32 %v14188_v4, %v17613_v44  ;;  %v7011_v9 = vmul.f32 %v17613_v44, %v17619_v10  ;;  %v7019_v36 = vadd.f32 %v7003_v59, %v6947_v51  ;;  %v17623_v42 = vld [vmem:[#allocation134_spill] sm:$0xff]  ;;  %v17624_v35 = vld [vmem:[#allocation60_spill] sm:$0xff]  ;;  %v17625_v51 = vld [vmem:[#allocation39_spill] sm:$0xff] }
 0x3b9   : > { %v7020_v23 = vadd.f32 %v7004_v2, %v6948_v39  ;;  %v7021_v8 = vadd.f32 %v7005_v24, %v6949_v47  ;;  %v7022_v38 = vadd.f32 %v7006_v29, %v6950_v20  ;;  %v7023_v15 = vadd.f32 %v7007_v37, %v6951_v55  ;;  %v17626_v55 = vld [vmem:[#allocation35_spill] sm:$0xff]  ;;  %v17627_v44 = vld [vmem:[#allocation81_spill] sm:$0xff]  ;;  %v17630_v10 = vld [vmem:[#allocation56_spill] sm:$0xff] }
 0x3ba   : > { %v7024_v19 = vadd.f32 %v7008_v26, %v6952_v6  ;;  %v7025_v43 = vadd.f32 %v7009_v46, %v6953_v5  ;;  %v7073_v53 = vmul.f32 %v17621_v33, %v17620_v27  ;;  %v7074_v22 = vmul.f32 %v17622_v60, %v17620_v27  ;;  %v17628_v5 = vld [vmem:[#allocation27_spill] sm:$0xff]  ;;  %v17629_v26 = vld [vmem:[#allocation46_spill] sm:$0xff] }
 0x3bb   : > { %v7075_v25 = vmul.f32 %v17623_v42, %v17620_v27  ;;  %v7076_v1 = vmul.f32 %v17624_v35, %v17620_v27  ;;  %v7077_v39 = vmul.f32 %v17625_v51, %v17620_v27  ;;  %v7026_v47 = vadd.f32 %v7010_v48, %v6954_v61  ;;  %v17631_v61 = vld [vmem:[#allocation26_spill] sm:$0xff]  ;;  %v17632_v48 = vld [vmem:[#allocation31_spill] sm:$0xff]  ;;  %v17633_v51 = vld [vmem:[#allocation77_spill] sm:$0xff] }
 0x3bc   : > { %v7027_v20 = vadd.f32 %v7011_v9, %v6955_v21  ;;  %v7078_v6 = vmul.f32 %v17626_v55, %v17620_v27  ;;  %v7079_v59 = vmul.f32 %v17627_v44, %v17620_v27  ;;  %v7028_v2 = vadd.f32 %v7011_v9, %v6956_v49  ;;  %v17634_v42 = vld [vmem:[#allocation84_spill] sm:$0xff] }
 0x3bd   : > { %v7029_v24 = vadd.f32 %v7011_v9, %v6957_v41  ;;  %v7030_v29 = vadd.f32 %v7011_v9, %v6958_v45  ;;  %v7080_v37 = vmul.f32 %v17628_v5, %v17620_v27  ;;  %v7081_v46 = vmul.f32 %v17629_v26, %v17620_v27  ;;  %v17635_v26 = vld [vmem:[#allocation96_spill] sm:$0xff] }
 0x3be   : > { %v7082_v4 = vmul.f32 %v17630_v10, %v17620_v27  ;;  %v7083_v21 = vmul.f32 %v17620_v27, %v17631_v61  ;;  %v7089_v55 = vadd.f32 %v7073_v53, %v17632_v48  ;;  %v7090_v35 = vadd.f32 %v7074_v22, %v17633_v51 }
 0x3bf   : > { %v7091_v44 = vadd.f32 %v7075_v25, %v7019_v36  ;;  %v7092_v49 = vadd.f32 %v7076_v1, %v7020_v23  ;;  %v7093_v41 = vadd.f32 %v7077_v39, %v7021_v8  ;;  %v7094_v45 = vadd.f32 %v7078_v6, %v7022_v38  ;;  %v17636_v38 = vld [vmem:[#allocation165_spill] sm:$0xff] }
 0x3c0   : > { %v7095_v9 = vadd.f32 %v7079_v59, %v7023_v15  ;;  %v7170_v5 = vmul.f32 %v17584_v28, %v17634_v42  ;;  %v7171_v60 = vmul.f32 %v17635_v26, %v17634_v42  ;;  %v7172_v10 = vmul.f32 %v17585_v13, %v17634_v42 }
 0x3c1   : > { %v7173_v27 = vmul.f32 %v17586_v32, %v17634_v42  ;;  %v7174_v53 = vmul.f32 %v17587_v56, %v17634_v42  ;;  %v7175_v36 = vmul.f32 %v13860_v0, %v17634_v42  ;;  %v7096_v8 = vadd.f32 %v7080_v37, %v7024_v19 }
 0x3c2   : > { %v7097_v15 = vadd.f32 %v7081_v46, %v7025_v43  ;;  %v7176_v28 = vmul.f32 %v17545_v14, %v17634_v42  ;;  %v7177_v23 = vmul.f32 %v17636_v38, %v17634_v42  ;;  %v7098_v22 = vadd.f32 %v7082_v4, %v7026_v47  ;;  %v17637_v14 = vld [vmem:[#allocation28_spill] sm:$0xff]  ;;  %v17638_v47 = vld [vmem:[#allocation150_spill] sm:$0xff] }
 0x3c3   : > { %v7099_v25 = vadd.f32 %v7083_v21, %v7027_v20  ;;  %v7100_v13 = vadd.f32 %v7083_v21, %v7028_v2  ;;  %v7101_v1 = vadd.f32 %v7083_v21, %v7029_v24  ;;  %v7102_v51 = vadd.f32 %v7083_v21, %v7030_v29  ;;  %v17639_v2 = vld [vmem:[#allocation149_spill] sm:$0xff] }
 0x3c4   : > { %v7178_v32 = vmul.f32 %v17634_v42, %v17546_v54  ;;  %v7186_v56 = vadd.f32 %v7170_v5, %v7089_v55  ;;  %v7187_v39 = vadd.f32 %v7171_v60, %v7090_v35  ;;  %v7188_v6 = vadd.f32 %v7172_v10, %v7091_v44  ;;  %v17640_v60 = vld [vmem:[#allocation164_spill] sm:$0xff]  ;;  %v17641_v42 = vld [vmem:[#allocation109_spill] sm:$0xff] }
 0x3c5   : > { %v7189_v0 = vadd.f32 %v7173_v27, %v7092_v49  ;;  %v7190_v19 = vadd.f32 %v7174_v53, %v7093_v41  ;;  %v7191_v43 = vadd.f32 %v7175_v36, %v7094_v45  ;;  %v7192_v59 = vadd.f32 %v7176_v28, %v7095_v9  ;;  %v17642_v44 = vld [vmem:[#allocation140_spill] sm:$0xff] }
 0x3c6   : > { %v7193_v37 = vadd.f32 %v7177_v23, %v7096_v8  ;;  %v7242_v26 = vmul.f32 %v17548_v34, %v17637_v14  ;;  %v7243_v4 = vmul.f32 %v17589_v31, %v17637_v14  ;;  %v7244_v20 = vmul.f32 %v17638_v47, %v17637_v14  ;;  %v17643_v34 = vld [vmem:[#allocation92_spill] sm:$0xff] }
 0x3c7   : > { %v7245_v54 = vmul.f32 %v17639_v2, %v17637_v14  ;;  %v7246_v10 = vmul.f32 %v17640_v60, %v17637_v14  ;;  %v7247_v35 = vmul.f32 %v17641_v42, %v17637_v14  ;;  %v7194_v55 = vadd.f32 %v7178_v32, %v7097_v15  ;;  %v17644_v5 = vld [vmem:[#allocation88_spill] sm:$0xff] }
 0x3c8   : > { %v7248_v24 = vmul.f32 %v17642_v44, %v17637_v14  ;;  %v7249_v29 = vmul.f32 %v17643_v34, %v17637_v14  ;;  %v7250_v31 = vmul.f32 %v17637_v14, %v17552_v58  ;;  %v7329_v46 = vadd.f32 %v17644_v5, %v14460_v50  ;;  %v17645_v58 = vld [vmem:[#allocation103_spill] sm:$0xff] }
 0x3c9   : > { %v7195_v21 = vadd.f32 %v7178_v32, %v7098_v22  ;;  %v7196_v48 = vadd.f32 %v7178_v32, %v7099_v25  ;;  %v7197_v49 = vadd.f32 %v7178_v32, %v7100_v13  ;;  %v7198_v41 = vadd.f32 %v7178_v32, %v7101_v1 }
 0x3ca   : > { %v7199_v45 = vadd.f32 %v7178_v32, %v7102_v51  ;;  %v7258_v9 = vadd.f32 %v7242_v26, %v7186_v56  ;;  %v7259_v27 = vadd.f32 %v7243_v4, %v7187_v39  ;;  %v7260_v53 = vadd.f32 %v7244_v20, %v7188_v6  ;;  %v9519_v32 = vld [vmem:[%s9980_s19 + $0xb0] sm:$0xff]  ;;  %v17646_v56 = vld [vmem:[#allocation48_spill] sm:$0xff]  ;;  %v9520_v6 = vld [vmem:[%s9980_s19 + $0xb8] sm:$0xff] }
 0x3cb   : > { %v7261_v36 = vadd.f32 %v7245_v54, %v7189_v0  ;;  %v7262_v8 = vadd.f32 %v7246_v10, %v7190_v19  ;;  %v7263_v15 = vadd.f32 %v7247_v35, %v7191_v43  ;;  %v7264_v28 = vadd.f32 %v7248_v24, %v7192_v59  ;;  %v17648_v4 = vld [vmem:[#allocation79_spill] sm:$0xff]  ;;  %v17649_v20 = vld [vmem:[#allocation22_spill] sm:$0xff] }
 0x3cc   : > { %v7265_v38 = vadd.f32 %v7249_v29, %v7193_v37  ;;  %v7266_v23 = vadd.f32 %v7250_v31, %v7194_v55  ;;  %v7314_v14 = vmul.f32 %v17554_v3, %v17645_v58  ;;  %v7267_v50 = vadd.f32 %v7250_v31, %v7195_v21  ;;  %v17652_v35 = vld [vmem:[#allocation155_spill] sm:$0xff] }
 0x3cd   : > { %v7268_v22 = vadd.f32 %v7250_v31, %v7196_v48  ;;  %v7315_v25 = vmul.f32 %v17595_v12, %v17645_v58  ;;  %v7316_v13 = vmul.f32 %v17596_v7, %v17645_v58  ;;  %v14558_v1 = vadd.f32 %v7250_v31, %v7197_v49  ;;  %v17647_v7 = vld [vmem:[#allocation113_spill] sm:$0xff] }
 0x3ce   : > { %v14560_v51 = vadd.f32 %v7250_v31, %v7198_v41  ;;  %v7344_v39 = vmul.f32 %v9519_v32, %v17646_v56  ;;  %v7345_v0 = vmul.f32 %v9520_v6, %v17646_v56  ;;  %v14566_v19 = vadd.f32 %v7250_v31, %v7199_v45  ;;  %v17654_v31 = vld [vmem:[#allocation90_spill] sm:$0xff]  ;;  %v17655_v41 = vld [vmem:[#allocation61_spill] sm:$0xff] }
 0x3cf   : > { %v7317_v3 = vmul.f32 %v17597_v52, %v17645_v58  ;;  %v7318_v12 = vmul.f32 %v17598_v17, %v17645_v58  ;;  %v7319_v43 = vmul.f32 %v17647_v7, %v17645_v58  ;;  %v7320_v59 = vmul.f32 %v17558_v40, %v17645_v58  ;;  %v17650_v17 = vld [vmem:[#allocation76_spill] sm:$0xff]  ;;  %v17651_v40 = vld [vmem:[#allocation55_spill] sm:$0xff] }
 0x3d0   : > { %v7321_v37 = vmul.f32 %v17599_v57, %v17645_v58  ;;  %v7330_v26 = vadd.f32 %v7314_v14, %v7258_v9  ;;  %v7346_v47 = vmul.f32 %v17648_v4, %v17646_v56  ;;  %v14582_v2 = vmul.f32 %v17645_v58, %v17649_v20  ;;  %v17653_v57 = vld [vmem:[#allocation127_spill] sm:$0xff] }
 0x3d1   : > { %v7331_v52 = vadd.f32 %v7315_v25, %v7259_v27  ;;  %v7332_v54 = vadd.f32 %v7316_v13, %v7260_v53  ;;  %v7347_v60 = vmul.f32 %v17650_v17, %v17646_v56  ;;  %v7360_v10 = vadd.f32 %v7344_v39, %v14484_v18  ;;  %v17659_v13 = vld [vmem:[#allocation86_spill] sm:$0xff]  ;;  %v9522_v39 = vld [vmem:[%s9980_s19 + $0xe8] sm:$0xff]  ;;  %v9524_v7 = vld [vmem:[%s9980_s19 + $0xf8] sm:$0xff] }
 0x3d2   : > { %v7361_v42 = vadd.f32 %v7345_v0, %v7329_v46  ;;  %v7416_v55 = vmul.f32 %v17652_v35, %v17651_v40  ;;  %v7417_v44 = vmul.f32 %v17653_v57, %v17651_v40  ;;  %v7333_v24 = vadd.f32 %v7317_v3, %v7261_v36 }
 0x3d3   : > { %v7334_v34 = vadd.f32 %v7318_v12, %v7262_v8  ;;  %v7335_v29 = vadd.f32 %v7319_v43, %v7263_v15  ;;  %v7348_v5 = vmul.f32 %v17654_v31, %v17646_v56  ;;  %v7336_v21 = vadd.f32 %v7320_v59, %v7264_v28  ;;  %v17656_v8 = vld [vmem:[#allocation66_spill] sm:$0xff] }
 0x3d4   : > { %v7337_v48 = vadd.f32 %v7321_v37, %v7265_v38  ;;  %v7362_v49 = vadd.f32 %v7346_v47, %v7330_v26  ;;  %v7418_v18 = vmul.f32 %v13638_v63, %v17651_v40  ;;  %v7338_v46 = vadd.f32 %v14582_v2, %v7266_v23  ;;  %v17657_v15 = vld [vmem:[#allocation106_spill] sm:$0xff]  ;;  %v9521_v23 = vld [vmem:[%s9980_s19 + $0xe0] sm:$0xff]  ;;  %v17660_v37 = vld [vmem:[#allocation161_spill] sm:$0xff] }
 0x3d5   : > { %v7349_v45 = vmul.f32 %v17655_v41, %v17646_v56  ;;  %v7363_v9 = vadd.f32 %v7347_v60, %v7331_v52  ;;  %v7419_v27 = vmul.f32 %v13634_v30, %v17651_v40  ;;  %v7432_v53 = vadd.f32 %v7416_v55, %v7360_v10  ;;  %v17658_v38 = vld [vmem:[#allocation54_spill] sm:$0xff]  ;;  %v17662_v55 = vld [vmem:[#allocation59_spill] sm:$0xff] }
 0x3d6   : > { %v7433_v36 = vadd.f32 %v7417_v44, %v7361_v42  ;;  %v7488_v28 = vmul.f32 %v17657_v15, %v17656_v8  ;;  %v7489_v58 = vmul.f32 %v17658_v38, %v17656_v8  ;;  %v7339_v63 = vadd.f32 %v14582_v2, %v7267_v50  ;;  %v9523_v12 = vld [vmem:[%s9980_s19 + $0xf0] sm:$0xff] }
 0x3d7   : > { %v7350_v14 = vmul.f32 %v9521_v23, %v17646_v56  ;;  %v7364_v25 = vadd.f32 %v7348_v5, %v7332_v54  ;;  %v7420_v32 = vmul.f32 %v17659_v13, %v17651_v40  ;;  %v14610_v30 = vadd.f32 %v14582_v2, %v7268_v22  ;;  %v17661_v54 = vld [vmem:[#allocation32_spill] sm:$0xff]  ;;  %v14626_v60 = vld [vmem:[#allocation7 + $0x30] ss:$0 sm:$0xff]  ;;  %v17669_v23 = vld [vmem:[#allocation39_spill] sm:$0xff] }
 0x3d8   : > { %v7351_v6 = vmul.f32 %v9522_v39, %v17646_v56  ;;  %v7434_v0 = vadd.f32 %v7418_v18, %v7362_v49  ;;  %v7490_v3 = vmul.f32 %v17570_v11, %v17656_v8  ;;  %v7352_v50 = vmul.f32 %v9523_v12, %v17646_v56  ;;  %v17665_v49 = vld [vmem:[#allocation93_spill] sm:$0xff] }
 0x3d9   : > { %v7353_v43 = vmul.f32 %v9524_v7, %v17646_v56  ;;  %v7365_v59 = vadd.f32 %v7349_v45, %v7333_v24  ;;  %v7421_v26 = vmul.f32 %v17660_v37, %v17651_v40  ;;  %v7435_v4 = vadd.f32 %v7419_v27, %v7363_v9  ;;  %v17673_v37 = vld [vmem:[#allocation23_spill] sm:$0xff] }
 0x3da   : > { %v7491_v22 = vmul.f32 %v17571_v62, %v17656_v8  ;;  %v7504_v47 = vadd.f32 %v7488_v28, %v7432_v53  ;;  %v7505_v20 = vadd.f32 %v7489_v58, %v7433_v36  ;;  %v7366_v52 = vadd.f32 %v7350_v14, %v7334_v34  ;;  %v17663_v62 = vld [vmem:[#allocation134_spill] sm:$0xff]  ;;  %v17664_v34 = vld [vmem:[#allocation133_spill] sm:$0xff] }
 0x3db   : > { %v7422_v11 = vmul.f32 %v17661_v54, %v17651_v40  ;;  %v7436_v17 = vadd.f32 %v7420_v32, %v7364_v25  ;;  %v7560_v10 = vmul.f32 %v14626_v60, %v17621_v33  ;;  %v7492_v42 = vmul.f32 %v17572_v16, %v17656_v8  ;;  %v17666_v33 = vld [vmem:[#allocation60_spill] sm:$0xff]  ;;  %v17668_v28 = vld [vmem:[#allocation74_spill] sm:$0xff]  ;;  %v17670_v32 = vld [vmem:[#allocation19_spill] sm:$0xff] }
 0x3dc   : > { %v7506_v35 = vadd.f32 %v7490_v3, %v7434_v0  ;;  %v7561_v57 = vmul.f32 %v14626_v60, %v17662_v55  ;;  %v7562_v44 = vmul.f32 %v14626_v60, %v17663_v62  ;;  %v7367_v24 = vadd.f32 %v7351_v6, %v7335_v29  ;;  %v17667_v29 = vld [vmem:[#allocation41_spill] sm:$0xff]  ;;  %v17672_v3 = vld [vmem:[#allocation35_spill] sm:$0xff] }
 0x3dd   : > { %v7423_v31 = vmul.f32 %v17664_v34, %v17651_v40  ;;  %v7437_v5 = vadd.f32 %v7421_v26, %v7365_v59  ;;  %v7493_v18 = vmul.f32 %v17665_v49, %v17656_v8  ;;  %v7507_v41 = vadd.f32 %v7491_v22, %v7435_v4  ;;  %v17674_v26 = vld [vmem:[#allocation51_spill] sm:$0xff] }
 0x3de   : > { %v7563_v45 = vmul.f32 %v14626_v60, %v17666_v33  ;;  %v14642_v16 = vadd.f32 %v7560_v10, %v7504_v47  ;;  %v14644_v9 = vadd.f32 %v7561_v57, %v7505_v20  ;;  %v7354_v27 = vmul.f32 0.0, %v17646_v56  ;;  %v17671_v56 = vld [vmem:[#allocation144_spill] sm:$0xff]  ;;  %v17675_v47 = vld [vmem:[#allocation81_spill] sm:$0xff]  ;;  %v17676_v10 = vld [vmem:[#allocation67_spill] sm:$0xff] }
 0x3df   : > { %v7368_v53 = vadd.f32 %v7352_v50, %v7336_v21  ;;  %v7424_v36 = vmul.f32 %v17667_v29, %v17651_v40  ;;  %v7438_v15 = vadd.f32 %v7422_v11, %v7366_v52  ;;  %v7494_v38 = vmul.f32 %v17668_v28, %v17656_v8  ;;  %v17680_v29 = vld [vmem:[#allocation56_spill] sm:$0xff] }
 0x3e0   : > { %v7508_v58 = vadd.f32 %v7492_v42, %v7436_v17  ;;  %v7564_v14 = vmul.f32 %v14626_v60, %v17669_v23  ;;  %v14653_v25 = vadd.f32 %v7562_v44, %v7506_v35  ;;  %v7369_v13 = vadd.f32 %v7353_v43, %v7337_v48  ;;  %v17677_v35 = vld [vmem:[#allocation27_spill] sm:$0xff] }
 0x3e1   : > { %v7425_v39 = vmul.f32 %v17670_v32, %v17651_v40  ;;  %v7439_v6 = vadd.f32 %v7423_v31, %v7367_v24  ;;  %v7495_v21 = vmul.f32 %v17671_v56, %v17656_v8  ;;  %v7509_v0 = vadd.f32 %v7493_v18, %v7437_v5  ;;  %v17679_v5 = vld [vmem:[#allocation46_spill] sm:$0xff] }
 0x3e2   : > { %v7565_v12 = vmul.f32 %v14626_v60, %v17672_v3  ;;  %v14661_v50 = vadd.f32 %v7563_v45, %v7507_v41  ;;  %v7608_v7 = vadd.f32 %v14644_v9, %v14642_v16  ;;  %v7370_v59 = vadd.f32 %v7354_v27, %v7338_v46 }
 0x3e3   : > { %v7426_v48 = vmul.f32 %v17651_v40, %v17673_v37  ;;  %v7440_v43 = vadd.f32 %v7424_v36, %v7368_v53  ;;  %v7496_v4 = vmul.f32 %v17674_v26, %v17656_v8  ;;  %v7510_v22 = vadd.f32 %v7494_v38, %v7438_v15 }
 0x3e4   : > { %v7566_v20 = vmul.f32 %v14626_v60, %v17675_v47  ;;  %v14671_v52 = vadd.f32 %v7564_v14, %v7508_v58  ;;  %v7609_v54 = vadd.f32 %v7608_v7, %v14653_v25  ;;  %v7341_v11 = vadd.f32 %v14582_v2, %v14558_v1  ;;  %v17678_v1 = vld [vmem:[#allocation25_spill] sm:$0xff] }
 0x3e5   : > { %v7371_v17 = vadd.f32 %v7354_v27, %v7339_v63  ;;  %v7441_v46 = vadd.f32 %v7425_v39, %v7369_v13  ;;  %v7497_v40 = vmul.f32 %v17676_v10, %v17656_v8  ;;  %v7511_v42 = vadd.f32 %v7495_v21, %v7439_v6 }
 0x3e6   : > { %v7567_v55 = vmul.f32 %v14626_v60, %v17677_v35  ;;  %v14680_v57 = vadd.f32 %v7565_v12, %v7509_v0  ;;  %v7610_v62 = vadd.f32 %v7609_v54, %v14661_v50  ;;  %v7342_v44 = vadd.f32 %v14582_v2, %v14560_v51 }
 0x3e7   : > { %v7372_v24 = vadd.f32 %v7354_v27, %v14610_v30  ;;  %v7442_v34 = vadd.f32 %v7426_v48, %v7370_v59  ;;  %v7498_v63 = vmul.f32 %v17656_v8, %v17678_v1  ;;  %v7512_v31 = vadd.f32 %v7496_v4, %v7440_v43 }
 0x3e8   : > { %v7568_v49 = vmul.f32 %v14626_v60, %v17679_v5  ;;  %v14690_v18 = vadd.f32 %v7566_v20, %v7510_v22  ;;  %v7611_v41 = vadd.f32 %v7610_v62, %v14671_v52  ;;  %v7343_v33 = vadd.f32 %v14582_v2, %v14566_v19 }
 0x3e9   : > { %v7373_v45 = vadd.f32 %v7354_v27, %v7341_v11  ;;  %v7443_v53 = vadd.f32 %v7426_v48, %v7371_v17  ;;  %v7513_v51 = vadd.f32 %v7497_v40, %v7441_v46  ;;  %v7569_v30 = vmul.f32 %v14626_v60, %v17680_v29  ;;  %v4160_v11 = vpop.xlane.xlu0 %4159 }
 0x3ea   : > { %v14697_v36 = vadd.f32 %v7567_v55, %v7511_v42  ;;  %v7612_v8 = vadd.f32 %v7611_v41, %v14680_v57  ;;  %v7374_v15 = vadd.f32 %v7354_v27, %v7342_v44  ;;  %v7444_v28 = vadd.f32 %v7426_v48, %v7372_v24  ;;  %v17682_v41 = vld [vmem:[#allocation63_spill] sm:$0xff] }
 0x3eb   : > { %v7514_v38 = vadd.f32 %v7498_v63, %v7442_v34  ;;  %v7570_v58 = vmul.f32 %v14626_v60, %v17631_v61  ;;  %v14702_v23 = vadd.f32 %v7568_v49, %v7512_v31  ;;  %v7375_v2 = vadd.f32 %v7354_v27, %v7343_v33 }
 0x3ec   : > { %v7613_v19 = vadd.f32 %v7612_v8, %v14690_v18  ;;  %v7445_v14 = vadd.f32 %v7426_v48, %v7373_v45  ;;  %v7515_v13 = vadd.f32 %v7498_v63, %v7443_v53  ;;  %v14705_v32 = vadd.f32 %v7569_v30, %v7513_v51  ;;  %v17683_v45 = vld [vmem:[#allocation62_spill] sm:$0xff] }
 0x3ed   : > { %v7446_v6 = vadd.f32 %v7426_v48, %v7374_v15  ;;  %v7516_v56 = vadd.f32 %v7498_v63, %v7444_v28  ;;  %v14708_v21 = vadd.f32 %v7570_v58, %v7514_v38  ;;  %v7447_v3 = vadd.f32 %v7426_v48, %v7375_v2  ;;  %v17685_v30 = vld [vmem:[#allocation58_spill] sm:$0xff]  ;;  %v17686_v38 = vld [vmem:[#allocation64_spill] sm:$0xff] }
 0x3ee   : > { %v7614_v39 = vadd.f32 %v7613_v19, %v14697_v36  ;;  %v7517_v12 = vadd.f32 %v7498_v63, %v7445_v14  ;;  %v14711_v61 = vadd.f32 %v7570_v58, %v7515_v13  ;;  %v4161_v17 = vrot.slane %v4160_v11, 4  ;;  %v17687_v19 = vld [vmem:[#allocation131_spill] sm:$0xff] }
 0x3ef   : > { %v7518_v7 = vadd.f32 %v7498_v63, %v7446_v6  ;;  %v14714_v27 = vadd.f32 %v7570_v58, %v7516_v56  ;;  %v7519_v37 = vadd.f32 %v7498_v63, %v7447_v3  ;;  %v17681_v31 = vlaneseq  ;;  %v17688_v6 = vld [vmem:[#allocation132_spill] sm:$0xff]  ;;  %v17689_v3 = vld [vmem:[#allocation137_spill] sm:$0xff] }
 0x3f0   : > { %v7615_v0 = vadd.f32 %v7614_v39, %v14702_v23  ;;  %v14717_v43 = vadd.f32 %v7570_v58, %v7517_v12  ;;  %v4162_v46 = vadd.f32 %v4161_v17, %v4160_v11  ;;  %v17684_v51 = vmov 0.0   ;;  %v17691_v17 = vld [vmem:[#allocation75_spill] sm:$0xff] }
 0x3f1   : > { %v14720_v4 = vadd.f32 %v7570_v58, %v7518_v7  ;;  %v14723_v48 = vadd.f32 %v7570_v58, %v7519_v37  ;;  %v7637_v5 = vand.u32 127, %v17681_v31 }
 0x3f2   : > { %v7616_v60 = vadd.f32 %v7615_v0, %v14705_v32  ;;  %v4163_v10 = vrot.slane %v4162_v46, 2 }
 0x3f3   : > { %vm7638_vm6 = vcmp.lt.s32.totalorder %v7637_v5, 4  ;;  %v17693_v5 = vld [vmem:[#allocation89_spill] sm:$0xff] }
 0x3f4   : > { %v7617_v59 = vadd.f32 %v7616_v60, %v14708_v21  ;;  %v4164_v40 = vadd.f32 %v4163_v10, %v4162_v46  ;;  %v14736_v29 = vsel %vm7638_vm6, 1.0, %v17684_v51 }
 0x3f6   : > { %v7618_v26 = vadd.f32 %v7617_v59, %v14711_v61  ;;  %v4165_v42 = vrot.slane %v4164_v40, 1 }
 0x3f8   : > { %v7619_v22 = vadd.f32 %v7618_v26, %v14714_v27  ;;  %v4166_v35 = vadd.f32 %v4165_v42, %v4164_v40 }
 0x3fa   : > { %v7620_v47 = vadd.f32 %v7619_v22, %v14717_v43  ;;  %9295 = vpush %v4166_v35  ;;  %v17690_v22 = vld [vmem:[#allocation138_spill] sm:$0xff] }
 0x3fc   : > { %v7621_v20 = vadd.f32 %v7620_v47, %v14720_v4 }
 0x3fe   : > { %v7622_v54 = vadd.f32 %v7621_v20, %v14723_v48 }
 0x400   : > { %7623 = vadd.xlane.f32.xlu0 %v7622_v54 }
 0x42b   : > { %s9296_s15 = spop %9295 }
 0x48d   : > { %v7624_v55 = vpop.xlane.xlu0 %7623 }
 0x48e   : > { %v7625_v62 = vrot.slane %v7624_v55, 4 }
 0x490   : > { %v7626_v44 = vadd.f32 %v7625_v62, %v7624_v55 }
 0x492   : > { %v7627_v24 = vrot.slane %v7626_v44, 2 }
 0x494   : > { %v7628_v34 = vadd.f32 %v7627_v24, %v7626_v44  ;;  %v17692_v44 = vld [vmem:[#allocation83_spill] sm:$0xff] }
 0x496   : > { %v7629_v1 = vrot.slane %v7628_v34, 1 }
 0x498   : > { %v7630_v63 = vadd.f32 %v7629_v1, %v7628_v34 }
 0x49a   : > { %9297 = vpush %v7630_v63 }
 0x4cb   : > { %s9298_s17 = spop %9297 }
 0x4cc   : > { %s7632_s24 = sadd.f32 %s9298_s17, %s9296_s15  ;;  %s9725_s15 = smov [#allocation12]  }
 0x4cd   : > { %s9644_s17 = sshll.u32 %s9725_s15, 4  ;;  %s9645_s17 = int_to_ptr.vmem [resolvable:$false] %s9644_s17 }
 0x4ce   : > { %s7635_s27 = smul.f32 0.0009765625, %s7632_s24  ;;  %s9646_s24 = scalar_lea.vmem %s9645_s17, 8192 }
 0x4d0   : > { %v14729_v49 = vstv %s7635_s27 }
 0x4d1   : > { %v7658_v33 = vsub.f32 %v17682_v41, %v14729_v49  ;;  %v7659_v53 = vsub.f32 %v17683_v45, %v14729_v49  ;;  %v7660_v8 = vsub.f32 %v17685_v30, %v14729_v49  ;;  %v7661_v58 = vsub.f32 %v17686_v38, %v14729_v49 }
 0x4d2   : > { %v7662_v2 = vsub.f32 %v17687_v19, %v14729_v49  ;;  %v7663_v56 = vsub.f32 %v17688_v6, %v14729_v49  ;;  %v7664_v12 = vsub.f32 %v17689_v3, %v14729_v49  ;;  %v7747_v37 = vsub.f32 %v14642_v16, %v14729_v49 }
 0x4d3   : > { %v7674_v15 = vmul.f32 %v14736_v29, %v7658_v33  ;;  %v7675_v28 = vmul.f32 %v14736_v29, %v7659_v53  ;;  %v7676_v14 = vmul.f32 %v14736_v29, %v7660_v8  ;;  %v7677_v0 = vmul.f32 %v14736_v29, %v7661_v58 }
 0x4d4   : > { %v7678_v60 = vmul.f32 %v14736_v29, %v7662_v2  ;;  %v7748_v26 = vsub.f32 %v14644_v9, %v14729_v49  ;;  %v7665_v47 = vsub.f32 %v17690_v22, %v14729_v49  ;;  %v7679_v20 = vmul.f32 %v14736_v29, %v7663_v56 }
 0x4d5   : > { %v7690_v13 = vmul.f32 %v7674_v15, %v7674_v15  ;;  %v7691_v39 = vmul.f32 %v7675_v28, %v7675_v28  ;;  %v7692_v7 = vmul.f32 %v7676_v14, %v7676_v14  ;;  %v7693_v54 = vmul.f32 %v7677_v0, %v7677_v0  ;;  %v17694_v14 = vld [vmem:[#allocation98_spill] sm:$0xff] }
 0x4d6   : > { %v7666_v46 = vsub.f32 %v17691_v17, %v14729_v49  ;;  %v7680_v10 = vmul.f32 %v14736_v29, %v7664_v12  ;;  %v7694_v40 = vmul.f32 %v7678_v60, %v7678_v60  ;;  %v7749_v35 = vsub.f32 %v14653_v25, %v14729_v49 }
 0x4d7   : > { %v7706_v59 = vadd.f32 %v7691_v39, %v7690_v13  ;;  %v7763_v55 = vmul.f32 %v14736_v29, %v7747_v37  ;;  %v7764_v62 = vmul.f32 %v14736_v29, %v7748_v26  ;;  %v7667_v24 = vsub.f32 %v17692_v44, %v14729_v49 }
 0x4d8   : > { %v7681_v34 = vmul.f32 %v14736_v29, %v7665_v47  ;;  %v7695_v1 = vmul.f32 %v7679_v20, %v7679_v20  ;;  %v7750_v31 = vsub.f32 %v14661_v50, %v14729_v49  ;;  %v7668_v33 = vsub.f32 %v17693_v5, %v14729_v49 }
 0x4d9   : > { %v7707_v11 = vadd.f32 %v7706_v59, %v7692_v7  ;;  %v7682_v53 = vmul.f32 %v14736_v29, %v7666_v46  ;;  %v7696_v51 = vmul.f32 %v7680_v10, %v7680_v10  ;;  %v7751_v15 = vsub.f32 %v14671_v52, %v14729_v49  ;;  %v17695_v7 = vld [vmem:[#allocation87_spill] sm:$0xff]  ;;  %v17696_v10 = vld [vmem:[#allocation97_spill] sm:$0xff] }
 0x4da   : > { %v7765_v28 = vmul.f32 %v14736_v29, %v7749_v35  ;;  %v7779_v58 = vmul.f32 %v7763_v55, %v7763_v55  ;;  %v7780_v2 = vmul.f32 %v7764_v62, %v7764_v62  ;;  %v7669_v13 = vsub.f32 %v17694_v14, %v14729_v49 }
 0x4db   : > { %v7708_v42 = vadd.f32 %v7707_v11, %v7693_v54  ;;  %v7683_v39 = vmul.f32 %v14736_v29, %v7667_v24  ;;  %v7697_v56 = vmul.f32 %v7681_v34, %v7681_v34  ;;  %v7752_v12 = vsub.f32 %v14680_v57, %v14729_v49 }
 0x4dc   : > { %v7766_v60 = vmul.f32 %v14736_v29, %v7750_v31  ;;  %v7670_v59 = vsub.f32 %v17695_v7, %v14729_v49  ;;  %v7684_v37 = vmul.f32 %v14736_v29, %v7668_v33  ;;  %v7698_v26 = vmul.f32 %v7682_v53, %v7682_v53 }
 0x4dd   : > { %v7709_v63 = vadd.f32 %v7708_v42, %v7694_v40  ;;  %v7753_v20 = vsub.f32 %v14690_v18, %v14729_v49  ;;  %v7767_v54 = vmul.f32 %v14736_v29, %v7751_v15  ;;  %v7781_v11 = vmul.f32 %v7765_v28, %v7765_v28 }
 0x4de   : > { %v7795_v46 = vadd.f32 %v7780_v2, %v7779_v58  ;;  %v7671_v40 = vsub.f32 %v17696_v10, %v14729_v49  ;;  %v7685_v42 = vmul.f32 %v14736_v29, %v7669_v13  ;;  %v7699_v35 = vmul.f32 %v7683_v39, %v7683_v39  ;;  %v17698_v2 = vld [vmem:[#allocation100_spill] sm:$0xff] }
 0x4df   : > { %v7710_v8 = vadd.f32 %v7709_v63, %v7695_v1  ;;  %v7754_v62 = vsub.f32 %v14697_v36, %v14729_v49  ;;  %v7768_v24 = vmul.f32 %v14736_v29, %v7752_v12  ;;  %v7782_v34 = vmul.f32 %v7766_v60, %v7766_v60  ;;  %v17697_v63 = vld [vmem:[#allocation116_spill] sm:$0xff] }
 0x4e0   : > { %v7796_v1 = vadd.f32 %v7795_v46, %v7781_v11  ;;  %v7672_v31 = vsub.f32 %v17697_v63, %v14729_v49  ;;  %v7686_v33 = vmul.f32 %v14736_v29, %v7670_v59  ;;  %v7700_v53 = vmul.f32 %v7684_v37, %v7684_v37 }
 0x4e1   : > { %v7711_v0 = vadd.f32 %v7710_v8, %v7696_v51  ;;  %v7755_v8 = vsub.f32 %v14702_v23, %v14729_v49  ;;  %v7769_v15 = vmul.f32 %v14736_v29, %v7753_v20  ;;  %v7783_v28 = vmul.f32 %v7767_v54, %v7767_v54 }
 0x4e2   : > { %v7797_v58 = vadd.f32 %v7796_v1, %v7782_v34  ;;  %v7673_v13 = vsub.f32 %v17698_v2, %v14729_v49  ;;  %v7687_v39 = vmul.f32 %v14736_v29, %v7671_v40  ;;  %v7756_v12 = vsub.f32 %v14705_v32, %v14729_v49 }
 0x4e3   : > { %v7712_v47 = vadd.f32 %v7711_v0, %v7697_v56  ;;  %v7701_v56 = vmul.f32 %v7685_v42, %v7685_v42  ;;  %v7770_v60 = vmul.f32 %v14736_v29, %v7754_v62  ;;  %v7784_v59 = vmul.f32 %v7768_v24, %v7768_v24 }
 0x4e4   : > { %v7798_v37 = vadd.f32 %v7797_v58, %v7783_v28  ;;  %v7757_v54 = vsub.f32 %v14708_v21, %v14729_v49  ;;  %v7771_v11 = vmul.f32 %v14736_v29, %v7755_v8  ;;  %v7785_v46 = vmul.f32 %v7769_v15, %v7769_v15 }
 0x4e5   : > { %v7713_v55 = vadd.f32 %v7712_v47, %v7698_v26  ;;  %v7688_v26 = vmul.f32 %v14736_v29, %v7672_v31  ;;  %v7702_v47 = vmul.f32 %v7686_v33, %v7686_v33  ;;  %v7689_v42 = vmul.f32 %v14736_v29, %v7673_v13 }
 0x4e6   : > { %v7799_v40 = vadd.f32 %v7798_v37, %v7784_v59  ;;  %v7758_v62 = vsub.f32 %v14711_v61, %v14729_v49  ;;  %v7772_v24 = vmul.f32 %v14736_v29, %v7756_v12  ;;  %v7786_v34 = vmul.f32 %v7770_v60, %v7770_v60 }
 0x4e7   : > { %v7714_v51 = vadd.f32 %v7713_v55, %v7699_v35  ;;  %v7703_v35 = vmul.f32 %v7687_v39, %v7687_v39  ;;  %v7704_v31 = vmul.f32 %v7688_v26, %v7688_v26  ;;  %v7787_v8 = vmul.f32 %v7771_v11, %v7771_v11 }
 0x4e8   : > { %v7800_v1 = vadd.f32 %v7799_v40, %v7785_v46  ;;  %v7705_v28 = vmul.f32 %v7689_v42, %v7689_v42  ;;  %v7760_v13 = vsub.f32 %v14717_v43, %v14729_v49  ;;  %v7774_v39 = vmul.f32 %v14736_v29, %v7758_v62 }
 0x4e9   : > { %v7715_v0 = vadd.f32 %v7714_v51, %v7700_v53  ;;  %v7759_v53 = vsub.f32 %v14714_v27, %v14729_v49  ;;  %v7773_v51 = vmul.f32 %v14736_v29, %v7757_v54  ;;  %v7761_v60 = vsub.f32 %v14720_v4, %v14729_v49 }
 0x4ea   : > { %v7801_v15 = vadd.f32 %v7800_v1, %v7786_v34  ;;  %v7790_v54 = vmul.f32 %v7774_v39, %v7774_v39 }
 0x4eb   : > { %v7716_v20 = vadd.f32 %v7715_v0, %v7701_v56  ;;  %v7788_v56 = vmul.f32 %v7772_v24, %v7772_v24  ;;  %v7775_v59 = vmul.f32 %v14736_v29, %v7759_v53  ;;  %v7789_v37 = vmul.f32 %v7773_v51, %v7773_v51  ;;  %v14830_v53 = vld [vmem:[#allocation9] sm:$0xff]   ;;  %v14832_v51 = vld [vmem:[#allocation9 + $0x8] sm:$0xff]  }
 0x4ec   : > { %v7802_v0 = vadd.f32 %v7801_v15, %v7787_v8  ;;  %v7777_v46 = vmul.f32 %v14736_v29, %v7761_v60  ;;  %9167 = vmatprep.subr.bf16.mxu0 %v14830_v53  ;;  %v14837_v8 = vld [vmem:[#allocation9 + $0x10] sm:$0xff]   ;;  %v14845_v15 = vld [vmem:[#allocation9 + $0x20] sm:$0xff]  }
 0x4ed   : > { %v7717_v55 = vadd.f32 %v7716_v20, %v7702_v47  ;;  %v7762_v47 = vsub.f32 %v14723_v48, %v14729_v49  ;;  %v7776_v20 = vmul.f32 %v14736_v29, %v7760_v13  ;;  %v7791_v40 = vmul.f32 %v7775_v59, %v7775_v59  ;;  %9168 = vmatpush3.bf16.msra.mxu0 %v14830_v53 }
 0x4ee   : > { %v7803_v26 = vadd.f32 %v7802_v0, %v7788_v56  ;;  %v7793_v24 = vmul.f32 %v7777_v46, %v7777_v46  ;;  %9169 = vmatprep.subr.bf16.mxu0 %v14832_v51 }
 0x4ef   : > { %v7718_v33 = vadd.f32 %v7717_v55, %v7703_v35  ;;  %v7778_v35 = vmul.f32 %v14736_v29, %v7762_v47  ;;  %v7792_v55 = vmul.f32 %v7776_v20, %v7776_v20  ;;  %v14841_v29 = vld [vmem:[#allocation9 + $0x18] sm:$0xff]  }
 0x4f0   : > { %v7804_v11 = vadd.f32 %v7803_v26, %v7789_v37 }
 0x4f1   : > { %v7719_v58 = vadd.f32 %v7718_v33, %v7704_v31  ;;  %v7794_v1 = vmul.f32 %v7778_v35, %v7778_v35  ;;  %9170 = vmatpush3.bf16.msra.mxu0 %v14832_v51 }
 0x4f2   : > { %v7805_v42 = vadd.f32 %v7804_v11, %v7790_v54  ;;  %9171 = vmatprep.subr.bf16.mxu0 %v14837_v8  ;;  %v14850_v54 = vld [vmem:[#allocation9 + $0x28] sm:$0xff]   ;;  %v14852_v11 = vld [vmem:[#allocation9 + $0x30] sm:$0xff]  }
 0x4f3   : > { %v7720_v12 = vadd.f32 %v7719_v58, %v7705_v28 }
 0x4f4   : > { %v7806_v62 = vadd.f32 %v7805_v42, %v7791_v40  ;;  %v14857_v40 = vld [vmem:[#allocation9 + $0x38] sm:$0xff]  }
 0x4f5   : > { %7721 = vadd.xlane.f32.xlu1 %v7720_v12  ;;  %9172 = vmatpush3.bf16.msra.mxu0 %v14837_v8 }
 0x4f6   : > { %v7807_v34 = vadd.f32 %v7806_v62, %v7792_v55  ;;  %9173 = vmatprep.subr.bf16.mxu0 %v14841_v29  ;;  %v7827_v55 = vld [vmem:[%s15557_s2] sm:$0x1] }
 0x4f8   : > { %v7808_v31 = vadd.f32 %v7807_v34, %v7793_v24  ;;  %v7830_v34 = vld [vmem:[%s15558_s3] sm:$0x1] }
 0x4f9   : > { %9174 = vmatpush3.bf16.msra.mxu0 %v14841_v29 }
 0x4fa   : > { %v7809_v33 = vadd.f32 %v7808_v31, %v7794_v1  ;;  %9175 = vmatprep.subr.bf16.mxu0 %v14845_v15  ;;  %v17699_v31 = vld [vmem:[#allocation24_spill] sm:$0xff] }
 0x4fc   : > { %7810 = vadd.xlane.f32.xlu1 %v7809_v33 }
 0x4fd   : > { %9176 = vmatpush3.bf16.msra.mxu0 %v14845_v15 }
 0x4fe   : > { %9177 = vmatprep.subr.bf16.mxu0 %v14850_v54 }
 0x501   : > { %9178 = vmatpush3.bf16.msra.mxu0 %v14850_v54 }
 0x502   : > { %9179 = vmatprep.subr.bf16.mxu0 %v14852_v11 }
 0x505   : > { %9180 = vmatpush3.bf16.msra.mxu0 %v14852_v11 }
 0x506   : > { %9181 = vmatprep.subr.bf16.mxu0 %v14857_v40 }
 0x509   : > { %9182 = vmatpush3.bf16.msra.mxu0 %v14857_v40 }
 0x50a   : > { %9231 = vmatprep.subr.bf16.mxu0 %v14830_v53 }
 0x582   : > { %v7722_v28 = vpop.xlane.xlu1 %7721 }
 0x583   : > { %v7723_v58 = vrot.slane %v7722_v28, 4 }
 0x585   : > { %v7724_v13 = vadd.f32 %v7723_v58, %v7722_v28 }
 0x587   : > { %v7725_v39 = vrot.slane %v7724_v13, 2 }
 0x589   : > { %v7726_v56 = vadd.f32 %v7725_v39, %v7724_v13  ;;  %v7811_v60 = vpop.xlane.xlu1 %7810 }
 0x58a   : > { %v7812_v59 = vrot.slane %v7811_v60, 4 }
 0x58b   : > { %v7727_v0 = vrot.slane %v7726_v56, 1 }
 0x58c   : > { %v7813_v37 = vadd.f32 %v7812_v59, %v7811_v60 }
 0x58d   : > { %v7728_v12 = vadd.f32 %v7727_v0, %v7726_v56 }
 0x58e   : > { %v7814_v26 = vrot.slane %v7813_v37, 2 }
 0x58f   : > { %9299 = vpush %v7728_v12 }
 0x590   : > { %v7815_v47 = vadd.f32 %v7814_v26, %v7813_v37 }
 0x592   : > { %v7816_v20 = vrot.slane %v7815_v47, 1 }
 0x594   : > { %v7817_v46 = vadd.f32 %v7816_v20, %v7815_v47 }
 0x596   : > { %9301 = vpush %v7817_v46 }
 0x5c0   : > { %s9300_s22 = spop %9299 }
 0x5c7   : > { %s9302_s26 = spop %9301 }
 0x5c8   : > { %s7819_s16 = sadd.f32 %s9302_s26, %s9300_s22 }
 0x5ca   : > { %s7822_s14 = smul.f32 0.0009765625, %s7819_s16 }
 0x5cc   : > { %s7823_s18 = sadd.f32 1e-05, %s7822_s14  ;;  %s15386_s14 = scalar_lea.vmem [#allocation12], %s9038_s9 }
 0x5cd   : > { %s9102_s9 = sshll.u32 %s9799_s13, 12  ;;  %s8913_s13 = scalar_lea.sflag [#allocation6], %s9974_s1 }
 0x5ce   : > { %v7824_v42 = vstv %s7823_s18  ;;  %s8926_s18 = sshll.u32 %s15386_s14, 4  ;;  %s15508_s18 = int_to_ptr.vmem [resolvable:$true] %s8926_s18 }
 0x5cf   : > { %9405 = vrsqrt.f32 %v7824_v42  ;;  %p9647_p12 = scmp.lt.s32.totalorder %s15508_s18, %s9645_s17 }
 0x5d9   : > { %v9406_v35 = vpop.eup %9405 }
 0x5da   : > { %9303 = vpush %v9406_v35 }
 0x60b   : > { %s9304_s23 = spop %9303 }
 0x60c   : > { %v7828_v62 = vstv %s9304_s23  ;;  %s17700_s23 = sld [smem:[#allocation170_spill]] }
 0x60d   : > { %v7829_v24 = vmul.f32 %v7828_v62, %v7827_v55 }
 0x60f   : > { %v7831_v1 = vmul.f32 %v7829_v24, %v14729_v49  ;;  %v14871_v33 = vrot.slane %v7829_v24, %v17699_v31 }
 0x611   : > { %v7832_v28 = vsub.f32 %v7830_v34, %v7831_v1  ;;  %v7874_v58 = vmul.f32 %v14871_v33, %v17682_v41  ;;  %v7875_v39 = vmul.f32 %v14871_v33, %v17683_v45  ;;  %v7876_v56 = vmul.f32 %v14871_v33, %v17685_v30 }
 0x612   : > { %v7877_v0 = vmul.f32 %v14871_v33, %v17686_v38  ;;  %v7878_v49 = vmul.f32 %v14871_v33, %v17687_v19  ;;  %v7879_v12 = vmul.f32 %v14871_v33, %v17688_v6  ;;  %v7880_v19 = vmul.f32 %v14871_v33, %v17689_v3  ;;  %s15506_s25 = scalar_lea.hbm %s17700_s23, %s9102_s9 }
 0x613   : > { %v14876_v13 = vrot.slane %v7832_v28, %v17699_v31  ;;  %v7881_v6 = vmul.f32 %v14871_v33, %v17690_v22  ;;  %v7882_v20 = vmul.f32 %v14871_v33, %v17691_v17  ;;  %v7883_v46 = vmul.f32 %v14871_v33, %v17692_v44 }
 0x614   : > { %v7884_v17 = vmul.f32 %v14871_v33, %v17693_v5  ;;  %v7885_v44 = vmul.f32 %v14871_v33, %v17694_v14  ;;  %v7886_v62 = vmul.f32 %v14871_v33, %v17695_v7  ;;  %v7888_v7 = vmul.f32 %v14871_v33, %v17697_v63 }
 0x615   : > { %v7896_v41 = vadd.f32 %v14876_v13, %v7874_v58  ;;  %v7897_v60 = vadd.f32 %v14876_v13, %v7875_v39  ;;  %v7898_v59 = vadd.f32 %v14876_v13, %v7876_v56  ;;  %v7899_v45 = vadd.f32 %v14876_v13, %v7877_v0 }
 0x616   : > { %v7900_v37 = vadd.f32 %v14876_v13, %v7878_v49  ;;  %v7901_v30 = vadd.f32 %v14876_v13, %v7879_v12  ;;  %v7902_v42 = vadd.f32 %v14876_v13, %v7880_v19  ;;  %v7903_v35 = vadd.f32 %v14876_v13, %v7881_v6 }
 0x617   : > { %v7912_v26 = vpack.c.bf16 %v7897_v60, %v7896_v41  ;;  %v7913_v38 = vpack.c.bf16 %v7899_v45, %v7898_v59  ;;  %v7904_v3 = vadd.f32 %v14876_v13, %v7882_v20  ;;  %v7905_v55 = vadd.f32 %v14876_v13, %v7883_v46 }
 0x618   : > { %v7914_v47 = vpack.c.bf16 %v7901_v30, %v7900_v37  ;;  %v7915_v22 = vpack.c.bf16 %v7903_v35, %v7902_v42  ;;  %v7906_v24 = vadd.f32 %v14876_v13, %v7884_v17  ;;  %v7907_v34 = vadd.f32 %v14876_v13, %v7885_v44  ;;  %v14987_v35 = vld [vmem:[#allocation10] sm:$0xff]  }
 0x619   : > { %9183 = vmatprep.mubr.bf16.mxu0 %v7912_v26  ;;  %v7908_v5 = vadd.f32 %v14876_v13, %v7886_v62  ;;  %v8460_v31 = vmul.f32 %v14871_v33, %v14642_v16  ;;  %v7910_v28 = vadd.f32 %v14876_v13, %v7888_v7  ;;  %v8462_v16 = vmul.f32 %v14871_v33, %v14653_v25 }
 0x61a   : > { %9184 = vmatmul.mubr.bf16.vlgmr.msra.gmra.mrb[0].mxu0 %v7913_v38  ;;  %v7917_v14 = vpack.c.bf16 %v7907_v34, %v7906_v24  ;;  %v8464_v56 = vmul.f32 %v14871_v33, %v14671_v52  ;;  %v8466_v52 = vmul.f32 %v14871_v33, %v14690_v18  ;;  %v8468_v41 = vmul.f32 %v14871_v33, %v14702_v23 }
 0x61b   : > { %9232 = vmatpush3.bf16.msra.mxu0 %v14830_v53  ;;  %9187 = vmatprep.mubr.bf16.mxu0 %v7914_v47  ;;  %v7916_v53 = vpack.c.bf16 %v7905_v55, %v7904_v3  ;;  %v8476_v63 = vadd.f32 %v8460_v31, %v14876_v13  ;;  %v8478_v0 = vadd.f32 %v8462_v16, %v14876_v13  ;;  %v14989_v3 = vld [vmem:[#allocation10 + $0x8] sm:$0xff]   ;;  %v15011_v55 = vld [vmem:[#allocation10 + $0x30] sm:$0xff]  }
 0x61c   : > { %9233 = vmatprep.subr.bf16.mxu0 %v14832_v51  ;;  %v8480_v25 = vadd.f32 %v8464_v56, %v14876_v13  ;;  %v8469_v60 = vmul.f32 %v14871_v33, %v14705_v32  ;;  %v8482_v59 = vadd.f32 %v8466_v52, %v14876_v13  ;;  %v8484_v45 = vadd.f32 %v8468_v41, %v14876_v13 }
 0x61d   : > { %v8471_v23 = vmul.f32 %v14871_v33, %v14711_v61  ;;  %v8472_v32 = vmul.f32 %v14871_v33, %v14714_v27  ;;  %v8473_v26 = vmul.f32 %v14871_v33, %v14717_v43  ;;  %v8474_v61 = vmul.f32 %v14871_v33, %v14720_v4  ;;  %9199 = vmatprep.subr.bf16.mxu1 %v14987_v35  ;;  %v14995_v4 = vld [vmem:[#allocation10 + $0x10] sm:$0xff]  }
 0x61e   : > { %v8485_v37 = vadd.f32 %v8469_v60, %v14876_v13  ;;  %v8475_v27 = vmul.f32 %v14871_v33, %v14723_v48  ;;  %9200 = vmatpush3.bf16.msra.mxu1 %v14987_v35  ;;  %v14997_v48 = vld [vmem:[#allocation10 + $0x18] sm:$0xff]  }
 0x61f   : > { %9234 = vmatpush3.bf16.msra.mxu0 %v14832_v51  ;;  %v7887_v51 = vmul.f32 %v14871_v33, %v17696_v10  ;;  %v7889_v10 = vmul.f32 %v14871_v33, %v17698_v2  ;;  %v8487_v47 = vadd.f32 %v8471_v23, %v14876_v13  ;;  %v8488_v19 = vadd.f32 %v8472_v32, %v14876_v13 }
 0x620   : > { %9235 = vmatprep.subr.bf16.mxu0 %v14837_v8  ;;  %v8496_v18 = vpack.c.bf16 %v8485_v37, %v8484_v45  ;;  %v8489_v6 = vadd.f32 %v8473_v26, %v14876_v13  ;;  %v8490_v43 = vadd.f32 %v8474_v61, %v14876_v13  ;;  %v8491_v46 = vadd.f32 %v8475_v27, %v14876_v13 }
 0x621   : > { %v7909_v1 = vadd.f32 %v14876_v13, %v7887_v51  ;;  %v7911_v58 = vadd.f32 %v14876_v13, %v7889_v10  ;;  %9201 = vmatprep.subr.bf16.mxu1 %v14989_v3 }
 0x622   : > { %9188 = vmatmul.mubr.bf16.gmra.mrb[4].mxu0 %v7915_v22  ;;  %v8499_v42 = vpack.c.bf16 %v8491_v46, %v8490_v43  ;;  %9202 = vmatpush3.bf16.msra.mxu1 %v14989_v3  ;;  %v15013_v22 = vld [vmem:[#allocation10 + $0x38] sm:$0xff]  }
 0x623   : > { %9236 = vmatpush3.bf16.msra.mxu0 %v14837_v8  ;;  %9191 = vmatprep.mubr.bf16.mxu0 %v7916_v53  ;;  %v7918_v8 = vpack.c.bf16 %v7909_v1, %v7908_v5  ;;  %v7919_v2 = vpack.c.bf16 %v7911_v58, %v7910_v28  ;;  %v15023_v53 = vld [vmem:[%s15560_s5] ss:$0 sm:$0xff] }
 0x624   : > { %9237 = vmatprep.subr.bf16.mxu0 %v14841_v29  ;;  %9203 = vmatprep.subr.bf16.mxu1 %v14995_v4 }
 0x626   : > { %9204 = vmatpush3.bf16.msra.mxu1 %v14995_v4 }
 0x627   : > { %9238 = vmatpush3.bf16.msra.mxu0 %v14841_v29  ;;  %v8461_v29 = vmul.f32 %v14871_v33, %v14644_v9  ;;  %v8463_v9 = vmul.f32 %v14871_v33, %v14661_v50  ;;  %9205 = vmatprep.subr.bf16.mxu1 %v14997_v48 }
 0x628   : > { %9239 = vmatprep.subr.bf16.mxu0 %v14845_v15 }
 0x629   : > { %v8477_v39 = vadd.f32 %v8461_v29, %v14876_v13  ;;  %v8479_v49 = vadd.f32 %v8463_v9, %v14876_v13 }
 0x62a   : > { %9192 = vmatmul.mubr.bf16.gmra.mrb[8].mxu0 %v7917_v14  ;;  %9206 = vmatpush3.bf16.msra.mxu1 %v14997_v48 }
 0x62b   : > { %9240 = vmatpush3.bf16.msra.mxu0 %v14845_v15  ;;  %9195 = vmatprep.mubr.bf16.mxu0 %v7918_v8  ;;  %v8492_v15 = vpack.c.bf16 %v8477_v39, %v8476_v63  ;;  %v8493_v50 = vpack.c.bf16 %v8479_v49, %v8478_v0 }
 0x62c   : > { %9241 = vmatprep.subr.bf16.mxu0 %v14850_v54 }
 0x62f   : > { %9242 = vmatpush3.bf16.msra.mxu0 %v14850_v54  ;;  %v8465_v54 = vmul.f32 %v14871_v33, %v14680_v57  ;;  %v8467_v57 = vmul.f32 %v14871_v33, %v14697_v36  ;;  %v8470_v36 = vmul.f32 %v14871_v33, %v14708_v21  ;;  %v8498_v21 = vpack.c.bf16 %v8489_v6, %v8488_v19  ;;  %v15003_v33 = vld [vmem:[#allocation10 + $0x20] sm:$0xff]  }
 0x630   : > { %9243 = vmatprep.subr.bf16.mxu0 %v14852_v11  ;;  %9207 = vmatprep.subr.bf16.mxu1 %v15003_v33 }
 0x631   : > { %v8481_v12 = vadd.f32 %v8465_v54, %v14876_v13  ;;  %v8486_v38 = vadd.f32 %v8470_v36, %v14876_v13  ;;  %9208 = vmatpush3.bf16.msra.mxu1 %v15003_v33 }
 0x632   : > { %9196 = vmatmul.mubr.bf16.gmra.mrb[12].mxu0 %v7919_v2 }
 0x633   : > { %9244 = vmatpush3.bf16.msra.mxu0 %v14852_v11  ;;  %9247 = vmatprep.mubr.bf16.mxu0 %v8492_v15  ;;  %v8494_v11 = vpack.c.bf16 %v8481_v12, %v8480_v25  ;;  %v8497_v20 = vpack.c.bf16 %v8487_v47, %v8486_v38 }
 0x634   : > { %9245 = vmatprep.subr.bf16.mxu0 %v14857_v40 }
 0x637   : > { %9246 = vmatpush3.bf16.msra.mxu0 %v14857_v40  ;;  %v8483_v40 = vadd.f32 %v8467_v57, %v14876_v13  ;;  %v15005_v13 = vld [vmem:[#allocation10 + $0x28] sm:$0xff]  }
 0x638   : > { %9209 = vmatprep.subr.bf16.mxu1 %v15005_v13 }
 0x639   : > { %v8495_v30 = vpack.c.bf16 %v8483_v40, %v8482_v59  ;;  %9210 = vmatpush3.bf16.msra.mxu1 %v15005_v13 }
 0x63a   : > { %9248 = vmatmul.mubr.bf16.vlgmr.msra.gmra.mrb[16].mxu0 %v8493_v50  ;;  %9211 = vmatprep.subr.bf16.mxu1 %v15011_v55 }
 0x63b   : > { %9251 = vmatprep.mubr.bf16.mxu0 %v8494_v11 }
 0x63d   : > { %9212 = vmatpush3.bf16.msra.mxu1 %v15011_v55 }
 0x63e   : > { %9213 = vmatprep.subr.bf16.mxu1 %v15013_v22 }
 0x641   : > { %9214 = vmatpush3.bf16.msra.mxu1 %v15013_v22 }
 0x642   : > { %9252 = vmatmul.mubr.bf16.gmra.mrb[20].mxu0 %v8495_v30  ;;  %9263 = vmatprep.subr.bf16.mxu1 %v14987_v35 }
 0x643   : > { %9255 = vmatprep.mubr.bf16.mxu0 %v8496_v18 }
 0x64a   : > { %9256 = vmatmul.mubr.bf16.gmra.mrb[24].mxu0 %v8497_v20 }
 0x64b   : > { %9259 = vmatprep.mubr.bf16.mxu0 %v8498_v21 }
 0x652   : > { %9260 = vmatmul.mubr.bf16.gmra.mrb[28].mxu0 %v8499_v42 }
 0x6ed   : > { %v9185_v17 = vpop.f32.mrb[0].mxu0 }
 0x6ee   : > { %v15026_v44 = vadd.f32 %v9185_v17, %v15023_v53  ;;  %v8008_v62 = vpop.f32.mrb[1].mxu0 }
 0x6ef   : > { %v15029_v51 = vadd.f32 %v15023_v53, %v8008_v62  ;;  %v9186_v24 = vpop.f32.mrb[2].mxu0 }
 0x6f0   : > { %v8073_v34 = vmul.f32 %v15026_v44, %v15026_v44  ;;  %v15034_v5 = vadd.f32 %v9186_v24, %v15023_v53  ;;  %v8011_v1 = vpop.f32.mrb[3].mxu0 }
 0x6f1   : > { %v8071_v14 = vmul.f32 %v15029_v51, %v15029_v51  ;;  %v15039_v8 = vadd.f32 %v15023_v53, %v8011_v1 }
 0x6f2   : > { %v8089_v7 = vmul.f32 %v8073_v34, %v15026_v44  ;;  %v8074_v10 = vmul.f32 %v15034_v5, %v15034_v5 }
 0x6f3   : > { %v8087_v31 = vmul.f32 %v8071_v14, %v15029_v51  ;;  %v8072_v29 = vmul.f32 %v15039_v8, %v15039_v8 }
 0x6f4   : > { %v8105_v28 = vmul.f32 0.044715, %v8089_v7  ;;  %v8090_v58 = vmul.f32 %v8074_v10, %v15034_v5 }
 0x6f5   : > { %v8103_v63 = vmul.f32 0.044715, %v8087_v31  ;;  %v8088_v39 = vmul.f32 %v8072_v29, %v15039_v8  ;;  %v9189_v2 = vpop.f32.mrb[4].mxu0 }
 0x6f6   : > { %v8121_v15 = vadd.f32 %v8105_v28, %v15026_v44  ;;  %v8106_v16 = vmul.f32 0.044715, %v8090_v58  ;;  %v15051_v9 = vadd.f32 %v9189_v2, %v15023_v53  ;;  %v8024_v56 = vpop.f32.mrb[5].mxu0 }
 0x6f7   : > { %v8104_v54 = vmul.f32 0.044715, %v8088_v39  ;;  %v15054_v0 = vadd.f32 %v15023_v53, %v8024_v56  ;;  %v9190_v49 = vpop.f32.mrb[6].mxu0  ;;  %v8119_v25 = vadd.f32 %v8103_v63, %v15029_v51 }
 0x6f8   : > { %v8137_v12 = vmul.f32 0.7978846, %v8121_v15  ;;  %v8122_v50 = vadd.f32 %v8106_v16, %v15034_v5  ;;  %v8077_v11 = vmul.f32 %v15051_v9, %v15051_v9  ;;  %v15061_v52 = vadd.f32 %v9190_v49, %v15023_v53  ;;  %v8027_v57 = vpop.f32.mrb[7].mxu0 }
 0x6f9   : > { %v8075_v41 = vmul.f32 %v15054_v0, %v15054_v0  ;;  %v15066_v60 = vadd.f32 %v15023_v53, %v8027_v57  ;;  %v8120_v59 = vadd.f32 %v8104_v54, %v15039_v8  ;;  %v8135_v40 = vmul.f32 0.7978846, %v8119_v25 }
 0x6fa   : > { %9407 = vtanh.f32 %v8137_v12  ;;  %v8138_v45 = vmul.f32 0.7978846, %v8122_v50  ;;  %v8093_v37 = vmul.f32 %v8077_v11, %v15051_v9  ;;  %v8078_v30 = vmul.f32 %v15061_v52, %v15061_v52 }
 0x6fb   : > { %v8091_v18 = vmul.f32 %v8075_v41, %v15054_v0  ;;  %v8076_v36 = vmul.f32 %v15066_v60, %v15066_v60  ;;  %v8136_v23 = vmul.f32 0.7978846, %v8120_v59  ;;  %9409 = vtanh.f32 %v8135_v40 }
 0x6fc   : > { %9411 = vtanh.f32 %v8138_v45  ;;  %v8109_v32 = vmul.f32 0.044715, %v8093_v37  ;;  %v8094_v26 = vmul.f32 %v8078_v30, %v15061_v52 }
 0x6fd   : > { %v8107_v38 = vmul.f32 0.044715, %v8091_v18  ;;  %v8092_v47 = vmul.f32 %v8076_v36, %v15066_v60  ;;  %v9193_v19 = vpop.f32.mrb[8].mxu0  ;;  %9413 = vtanh.f32 %v8136_v23 }
 0x6fe   : > { %v8125_v6 = vadd.f32 %v8109_v32, %v15051_v9  ;;  %v8110_v20 = vmul.f32 0.044715, %v8094_v26  ;;  %v15079_v21 = vadd.f32 %v9193_v19, %v15023_v53  ;;  %v8040_v61 = vpop.f32.mrb[9].mxu0 }
 0x6ff   : > { %v8123_v27 = vadd.f32 %v8107_v38, %v15054_v0  ;;  %v8108_v43 = vmul.f32 0.044715, %v8092_v47  ;;  %v15083_v46 = vadd.f32 %v15023_v53, %v8040_v61  ;;  %v9194_v42 = vpop.f32.mrb[10].mxu0 }
 0x700   : > { %v8141_v17 = vmul.f32 0.7978846, %v8125_v6  ;;  %v8126_v62 = vadd.f32 %v8110_v20, %v15061_v52  ;;  %v8081_v24 = vmul.f32 %v15079_v21, %v15079_v21  ;;  %v15089_v34 = vadd.f32 %v9194_v42, %v15023_v53  ;;  %v8043_v1 = vpop.f32.mrb[11].mxu0 }
 0x701   : > { %v8139_v14 = vmul.f32 0.7978846, %v8123_v27  ;;  %v8124_v7 = vadd.f32 %v8108_v43, %v15066_v60  ;;  %v8079_v10 = vmul.f32 %v15083_v46, %v15083_v46  ;;  %v15095_v31 = vadd.f32 %v15023_v53, %v8043_v1 }
 0x702   : > { %9415 = vtanh.f32 %v8141_v17  ;;  %v8142_v29 = vmul.f32 0.7978846, %v8126_v62  ;;  %v8097_v28 = vmul.f32 %v8081_v24, %v15079_v21  ;;  %v8082_v58 = vmul.f32 %v15089_v34, %v15089_v34 }
 0x703   : > { %9417 = vtanh.f32 %v8139_v14  ;;  %v8140_v63 = vmul.f32 0.7978846, %v8124_v7  ;;  %v8095_v39 = vmul.f32 %v8079_v10, %v15083_v46  ;;  %v8080_v2 = vmul.f32 %v15095_v31, %v15095_v31 }
 0x704   : > { %v9408_v15 = vpop.eup %9407  ;;  %9419 = vtanh.f32 %v8142_v29  ;;  %v8113_v16 = vmul.f32 0.044715, %v8097_v28  ;;  %v8098_v56 = vmul.f32 %v8082_v58, %v15089_v34 }
 0x705   : > { %v9410_v54 = vpop.eup %9409  ;;  %9421 = vtanh.f32 %v8140_v63  ;;  %v8111_v49 = vmul.f32 0.044715, %v8095_v39  ;;  %v8096_v25 = vmul.f32 %v8080_v2, %v15095_v31  ;;  %v9197_v12 = vpop.f32.mrb[12].mxu0  ;;  %v15105_v50 = vadd.f32 1.0, %v9408_v15 }
 0x706   : > { %v9412_v11 = vpop.eup %9411  ;;  %v8129_v57 = vadd.f32 %v8113_v16, %v15079_v21  ;;  %v8114_v41 = vmul.f32 0.044715, %v8098_v56  ;;  %v15109_v59 = vadd.f32 %v9197_v12, %v15023_v53  ;;  %v8056_v40 = vpop.f32.mrb[13].mxu0  ;;  %v8167_v45 = vadd.f32 1.0, %v9410_v54 }
 0x707   : > { %v8127_v37 = vadd.f32 %v8111_v49, %v15083_v46  ;;  %v8112_v30 = vmul.f32 0.044715, %v8096_v25  ;;  %v15113_v18 = vadd.f32 %v15023_v53, %v8056_v40  ;;  %v9198_v36 = vpop.f32.mrb[14].mxu0  ;;  %v15115_v23 = vadd.f32 1.0, %v9412_v11  ;;  %v9414_v6 = vpop.eup %9413 }
 0x708   : > { %v8145_v32 = vmul.f32 0.7978846, %v8129_v57  ;;  %v8130_v26 = vadd.f32 %v8114_v41, %v15089_v34  ;;  %v8085_v38 = vmul.f32 %v15109_v59, %v15109_v59  ;;  %v15121_v47 = vadd.f32 %v9198_v36, %v15023_v53  ;;  %v8059_v19 = vpop.f32.mrb[15].mxu0 }
 0x709   : > { %v8143_v20 = vmul.f32 0.7978846, %v8127_v37  ;;  %v8128_v61 = vadd.f32 %v8112_v30, %v15095_v31  ;;  %v8083_v27 = vmul.f32 %v15113_v18, %v15113_v18  ;;  %v15127_v43 = vadd.f32 %v15023_v53, %v8059_v19 }
 0x70a   : > { %9423 = vtanh.f32 %v8145_v32  ;;  %v8146_v42 = vmul.f32 0.7978846, %v8130_v26  ;;  %v8101_v17 = vmul.f32 %v8085_v38, %v15109_v59  ;;  %v8086_v62 = vmul.f32 %v15121_v47, %v15121_v47 }
 0x70b   : > { %9425 = vtanh.f32 %v8143_v20  ;;  %v8144_v24 = vmul.f32 0.7978846, %v8128_v61  ;;  %v8099_v1 = vmul.f32 %v8083_v27, %v15113_v18  ;;  %v8084_v14 = vmul.f32 %v15127_v43, %v15127_v43 }
 0x70c   : > { %v15135_v7 = vpop.eup %9415  ;;  %9427 = vtanh.f32 %v8146_v42  ;;  %v8117_v10 = vmul.f32 0.044715, %v8101_v17  ;;  %v8102_v29 = vmul.f32 %v8086_v62, %v15121_v47  ;;  %v8168_v28 = vadd.f32 1.0, %v9414_v6 }
 0x70d   : > { %v15138_v58 = vpop.eup %9417  ;;  %9429 = vtanh.f32 %v8144_v24  ;;  %v8115_v63 = vmul.f32 0.044715, %v8099_v1  ;;  %v8100_v39 = vmul.f32 %v8084_v14, %v15127_v43  ;;  %v9249_v2 = vpop.f32.mrb[16].mxu0  ;;  %v8183_v15 = vmul.f32 0.5, %v8167_v45 }
 0x70e   : > { %v15141_v16 = vpop.eup %9419  ;;  %v8133_v56 = vadd.f32 %v8117_v10, %v15109_v59  ;;  %v8118_v54 = vmul.f32 0.044715, %v8102_v29  ;;  %v15145_v49 = vadd.f32 %v9249_v2, %v15023_v53  ;;  %v8534_v25 = vpop.f32.mrb[17].mxu0  ;;  %v8184_v12 = vmul.f32 0.5, %v8168_v28 }
 0x70f   : > { %v15147_v11 = vpop.eup %9421  ;;  %v8131_v57 = vadd.f32 %v8115_v63, %v15113_v18  ;;  %v8116_v41 = vmul.f32 0.044715, %v8100_v39  ;;  %v15151_v40 = vadd.f32 %v15023_v53, %v8534_v25  ;;  %v9250_v37 = vpop.f32.mrb[18].mxu0  ;;  %v8199_v45 = vmul.f32 %v8183_v15, %v15029_v51 }
 0x710   : > { %v8149_v30 = vmul.f32 0.7978846, %v8133_v56  ;;  %v8134_v36 = vadd.f32 %v8118_v54, %v15121_v47  ;;  %v8599_v32 = vmul.f32 %v15145_v49, %v15145_v49  ;;  %v15158_v26 = vadd.f32 %v9250_v37, %v15023_v53  ;;  %v8537_v38 = vpop.f32.mrb[19].mxu0 }
 0x711   : > { %v8147_v19 = vmul.f32 0.7978846, %v8131_v57  ;;  %v8132_v6 = vadd.f32 %v8116_v41, %v15127_v43  ;;  %v8597_v20 = vmul.f32 %v15151_v40, %v15151_v40  ;;  %v8200_v61 = vmul.f32 %v8184_v12, %v15039_v8 }
 0x712   : > { %9431 = vtanh.f32 %v8149_v30  ;;  %v8150_v51 = vmul.f32 0.7978846, %v8134_v36  ;;  %v8615_v27 = vmul.f32 %v8599_v32, %v15145_v49  ;;  %v8600_v42 = vmul.f32 %v15158_v26, %v15158_v26 }
 0x713   : > { %9433 = vtanh.f32 %v8147_v19  ;;  %v8148_v17 = vmul.f32 0.7978846, %v8132_v6  ;;  %v8613_v62 = vmul.f32 %v8597_v20, %v15151_v40  ;;  %v8215_v24 = vpack.c.bf16 %v8200_v61, %v8199_v45 }
 0x714   : > { %v15168_v1 = vpop.eup %9423  ;;  %9435 = vtanh.f32 %v8150_v51  ;;  %v8631_v14 = vmul.f32 0.044715, %v8615_v27  ;;  %v8616_v10 = vmul.f32 %v8600_v42, %v15158_v26  ;;  %v15172_v8 = vadd.f32 %v15023_v53, %v8537_v38 }
 0x715   : > { %v15174_v29 = vpop.eup %9425  ;;  %9437 = vtanh.f32 %v8148_v17  ;;  %v8629_v28 = vmul.f32 0.044715, %v8613_v62  ;;  %9215 = vmatprep.mubr.bf16.mxu1 %v8215_v24  ;;  %v8185_v63 = vmul.f32 0.5, %v15105_v50  ;;  %v8186_v39 = vmul.f32 0.5, %v15115_v23  ;;  %v9253_v2 = vpop.f32.mrb[20].mxu0 }
 0x716   : > { %v15178_v15 = vpop.eup %9427  ;;  %v8647_v56 = vadd.f32 %v8631_v14, %v15145_v49  ;;  %v8632_v54 = vmul.f32 0.044715, %v8616_v10  ;;  %v8598_v25 = vmul.f32 %v15172_v8, %v15172_v8  ;;  %v15184_v12 = vadd.f32 %v9253_v2, %v15023_v53  ;;  %v8550_v57 = vpop.f32.mrb[21].mxu0 }
 0x717   : > { %v15186_v41 = vpop.eup %9429  ;;  %v8645_v37 = vadd.f32 %v8629_v28, %v15151_v40  ;;  %v8201_v50 = vmul.f32 %v8185_v63, %v15026_v44  ;;  %v8202_v23 = vmul.f32 %v8186_v39, %v15034_v5  ;;  %v15192_v45 = vadd.f32 %v15023_v53, %v8550_v57  ;;  %v9254_v30 = vpop.f32.mrb[22].mxu0 }
 0x718   : > { %v8663_v36 = vmul.f32 0.7978846, %v8647_v56  ;;  %v8648_v32 = vadd.f32 %v8632_v54, %v15158_v26  ;;  %v8614_v38 = vmul.f32 %v8598_v25, %v15172_v8  ;;  %v8603_v19 = vmul.f32 %v15184_v12, %v15184_v12  ;;  %v8553_v6 = vpop.f32.mrb[23].mxu0 }
 0x719   : > { %v8661_v20 = vmul.f32 0.7978846, %v8645_v37  ;;  %v8216_v61 = vpack.c.bf16 %v8202_v23, %v8201_v50  ;;  %v8601_v44 = vmul.f32 %v15192_v45, %v15192_v45  ;;  %v15201_v5 = vadd.f32 %v9254_v30, %v15023_v53 }
 0x71a   : > { %9439 = vtanh.f32 %v8663_v36  ;;  %v8664_v51 = vmul.f32 0.7978846, %v8648_v32  ;;  %v8630_v27 = vmul.f32 0.044715, %v8614_v38  ;;  %v8619_v42 = vmul.f32 %v8603_v19, %v15184_v12 }
 0x71b   : > { %9441 = vtanh.f32 %v8661_v20  ;;  %9216 = vmatmul.mubr.bf16.vlgmr.msra.gmra.mrb[0].mxu1 %v8216_v61  ;;  %v8617_v17 = vmul.f32 %v8601_v44, %v15192_v45  ;;  %v8604_v62 = vmul.f32 %v15201_v5, %v15201_v5  ;;  %v8171_v24 = vadd.f32 1.0, %v15138_v58 }
 0x71c   : > { %v15208_v14 = vpop.eup %9431  ;;  %9443 = vtanh.f32 %v8664_v51  ;;  %v8646_v10 = vadd.f32 %v8630_v27, %v15172_v8  ;;  %9264 = vmatpush3.bf16.msra.mxu1 %v14987_v35  ;;  %v8635_v28 = vmul.f32 0.044715, %v8619_v42  ;;  %v8172_v63 = vadd.f32 1.0, %v15147_v11 }
 0x71d   : > { %v15213_v39 = vpop.eup %9433  ;;  %9265 = vmatprep.subr.bf16.mxu1 %v14989_v3  ;;  %v8633_v2 = vmul.f32 0.044715, %v8617_v17  ;;  %v8620_v56 = vmul.f32 %v8604_v62, %v15201_v5  ;;  %v8187_v54 = vmul.f32 0.5, %v8171_v24  ;;  %v15218_v58 = vadd.f32 %v15023_v53, %v8553_v6  ;;  %v9257_v25 = vpop.f32.mrb[24].mxu0 }
 0x71e   : > { %v15220_v57 = vpop.eup %9435  ;;  %v8662_v37 = vmul.f32 0.7978846, %v8646_v10  ;;  %v8651_v35 = vadd.f32 %v8635_v28, %v15184_v12  ;;  %v8188_v50 = vmul.f32 0.5, %v8172_v63  ;;  %v8173_v11 = vadd.f32 1.0, %v15135_v7  ;;  %v8566_v23 = vpop.f32.mrb[25].mxu0 }
 0x71f   : > { %v15224_v30 = vpop.eup %9437  ;;  %v8649_v36 = vadd.f32 %v8633_v2, %v15192_v45  ;;  %v8636_v32 = vmul.f32 0.044715, %v8620_v56  ;;  %v8203_v38 = vmul.f32 %v8187_v54, %v15054_v0  ;;  %v8602_v19 = vmul.f32 %v15218_v58, %v15218_v58  ;;  %v9258_v6 = vpop.f32.mrb[26].mxu0 }
 0x720   : > { %9445 = vtanh.f32 %v8662_v37  ;;  %v8667_v20 = vmul.f32 0.7978846, %v8651_v35  ;;  %9266 = vmatpush3.bf16.msra.mxu1 %v14989_v3  ;;  %v8204_v61 = vmul.f32 %v8188_v50, %v15066_v60  ;;  %v8174_v7 = vadd.f32 1.0, %v15141_v16  ;;  %v8569_v44 = vpop.f32.mrb[27].mxu0 }
 0x721   : > { %v8665_v51 = vmul.f32 0.7978846, %v8649_v36  ;;  %v8652_v27 = vadd.f32 %v8636_v32, %v15201_v5  ;;  %v8618_v42 = vmul.f32 %v8602_v19, %v15218_v58  ;;  %9267 = vmatprep.subr.bf16.mxu1 %v14995_v4  ;;  %v8189_v0 = vmul.f32 0.5, %v8173_v11 }
 0x722   : > { %9447 = vtanh.f32 %v8667_v20  ;;  %v8217_v17 = vpack.c.bf16 %v8204_v61, %v8203_v38  ;;  %v8190_v62 = vmul.f32 0.5, %v8174_v7  ;;  %v15237_v24 = vadd.f32 %v9257_v25, %v15023_v53 }
 0x723   : > { %9449 = vtanh.f32 %v8665_v51  ;;  %v8668_v3 = vmul.f32 0.7978846, %v8652_v27  ;;  %v8634_v60 = vmul.f32 0.044715, %v8618_v42  ;;  %v8205_v16 = vmul.f32 %v8189_v0, %v15051_v9 }
 0x724   : > { %v9440_v10 = vpop.eup %9439  ;;  %9219 = vmatprep.mubr.bf16.mxu1 %v8217_v17  ;;  %v8206_v28 = vmul.f32 %v8190_v62, %v15061_v52  ;;  %9268 = vmatpush3.bf16.msra.mxu1 %v14995_v4  ;;  %v8607_v63 = vmul.f32 %v15237_v24, %v15237_v24  ;;  %v15245_v2 = vadd.f32 %v15023_v53, %v8566_v23  ;;  %v8175_v56 = vadd.f32 1.0, %v15174_v29 }
 0x725   : > { %v15248_v54 = vpop.eup %9441  ;;  %v8695_v25 = vadd.f32 1.0, %v9440_v10  ;;  %9451 = vtanh.f32 %v8668_v3  ;;  %v8650_v9 = vadd.f32 %v8634_v60, %v15218_v58  ;;  %9269 = vmatprep.subr.bf16.mxu1 %v14997_v48  ;;  %v15253_v52 = vadd.f32 %v9258_v6, %v15023_v53  ;;  %v9261_v4 = vpop.f32.mrb[28].mxu0 }
 0x726   : > { %v9444_v37 = vpop.eup %9443  ;;  %v8218_v35 = vpack.c.bf16 %v8206_v28, %v8205_v16  ;;  %v8623_v50 = vmul.f32 %v8607_v63, %v15237_v24  ;;  %v8605_v11 = vmul.f32 %v15245_v2, %v15245_v2  ;;  %v8176_v29 = vadd.f32 1.0, %v15186_v41  ;;  %v8582_v23 = vpop.f32.mrb[29].mxu0 }
 0x727   : > { %v8711_v36 = vmul.f32 0.5, %v8695_v25  ;;  %v8696_v32 = vadd.f32 1.0, %v9444_v37  ;;  %v8666_v38 = vmul.f32 0.7978846, %v8650_v9  ;;  %v8608_v19 = vmul.f32 %v15253_v52, %v15253_v52  ;;  %v9262_v20 = vpop.f32.mrb[30].mxu0 }
 0x728   : > { %9220 = vmatmul.mubr.bf16.gmra.mrb[4].mxu1 %v8218_v35  ;;  %v8639_v6 = vmul.f32 0.044715, %v8623_v50  ;;  %v8621_v61 = vmul.f32 %v8605_v11, %v15245_v2  ;;  %v8191_v7 = vmul.f32 0.5, %v8175_v56  ;;  %v8192_v51 = vmul.f32 0.5, %v8176_v29  ;;  %v8585_v27 = vpop.f32.mrb[31].mxu0 }
 0x729   : > { %v15263_v42 = vmul.f32 %v8711_v36, %v15145_v49  ;;  %v8712_v0 = vmul.f32 0.5, %v8696_v32  ;;  %9453 = vtanh.f32 %v8666_v38  ;;  %9270 = vmatpush3.bf16.msra.mxu1 %v14997_v48  ;;  %v8624_v41 = vmul.f32 %v8608_v19, %v15253_v52 }
 0x72a   : > { %v15267_v17 = vpop.eup %9445  ;;  %v8655_v62 = vadd.f32 %v8639_v6, %v15237_v24  ;;  %v8637_v3 = vmul.f32 0.044715, %v8621_v61  ;;  %v8207_v60 = vmul.f32 %v8191_v7, %v15083_v46  ;;  %v8208_v16 = vmul.f32 %v8192_v51, %v15095_v31  ;;  %9271 = vmatprep.subr.bf16.mxu1 %v15003_v33 }
 0x72b   : > { %v15274_v49 = vmul.f32 %v8712_v0, %v15158_v26  ;;  %v8640_v10 = vmul.f32 0.044715, %v8624_v41  ;;  %v15277_v28 = vadd.f32 %v15023_v53, %v8569_v44  ;;  %v8177_v48 = vadd.f32 1.0, %v15168_v1 }
 0x72c   : > { %v15280_v63 = vpop.eup %9447  ;;  %v8671_v56 = vmul.f32 0.7978846, %v8655_v62  ;;  %v8653_v25 = vadd.f32 %v8637_v3, %v15245_v2  ;;  %v8219_v9 = vpack.c.bf16 %v8208_v16, %v8207_v60  ;;  %v8178_v46 = vadd.f32 1.0, %v15178_v15 }
 0x72d   : > { %v15284_v31 = vpop.eup %9449  ;;  %v8742_v26 = vpack.c.bf16 %v15274_v49, %v15263_v42  ;;  %v8656_v37 = vadd.f32 %v8640_v10, %v15253_v52  ;;  %v8606_v44 = vmul.f32 %v15277_v28, %v15277_v28  ;;  %v8193_v35 = vmul.f32 0.5, %v8177_v48  ;;  %9272 = vmatpush3.bf16.msra.mxu1 %v15003_v33 }
 0x72e   : > { %9455 = vtanh.f32 %v8671_v56  ;;  %v8669_v1 = vmul.f32 0.7978846, %v8653_v25  ;;  %9223 = vmatprep.mubr.bf16.mxu1 %v8219_v9  ;;  %v8194_v50 = vmul.f32 0.5, %v8178_v46  ;;  %9273 = vmatprep.subr.bf16.mxu1 %v15005_v13  ;;  %v15294_v15 = vadd.f32 %v9261_v4, %v15023_v53 }
 0x72f   : > { %v15296_v11 = vpop.eup %9451  ;;  %v8672_v29 = vmul.f32 0.7978846, %v8656_v37  ;;  %v8622_v36 = vmul.f32 %v8606_v44, %v15277_v28  ;;  %v8209_v32 = vmul.f32 %v8193_v35, %v15079_v21  ;;  %v15301_v38 = vadd.f32 %v15023_v53, %v8582_v23 }
 0x730   : > { %9457 = vtanh.f32 %v8669_v1  ;;  %v8210_v33 = vmul.f32 %v8194_v50, %v15089_v34  ;;  %v8611_v19 = vmul.f32 %v15294_v15, %v15294_v15  ;;  %v15307_v6 = vadd.f32 %v9262_v20, %v15023_v53 }
 0x731   : > { %9459 = vtanh.f32 %v8672_v29  ;;  %v8638_v4 = vmul.f32 0.044715, %v8622_v36  ;;  %9274 = vmatpush3.bf16.msra.mxu1 %v15005_v13  ;;  %v8609_v61 = vmul.f32 %v15301_v38, %v15301_v38  ;;  %v8179_v21 = vadd.f32 1.0, %v15213_v39 }
 0x732   : > { %v8220_v23 = vpack.c.bf16 %v8210_v33, %v8209_v32  ;;  %v8627_v7 = vmul.f32 %v8611_v19, %v15294_v15  ;;  %v8612_v34 = vmul.f32 %v15307_v6, %v15307_v6  ;;  %v8180_v51 = vadd.f32 1.0, %v15224_v30  ;;  %9275 = vmatprep.subr.bf16.mxu1 %v15011_v55 }
 0x733   : > { %v9454_v20 = vpop.eup %9453  ;;  %v8654_v0 = vadd.f32 %v8638_v4, %v15277_v28  ;;  %v8625_v13 = vmul.f32 %v8609_v61, %v15301_v38  ;;  %v8195_v41 = vmul.f32 0.5, %v8179_v21  ;;  %v15321_v62 = vadd.f32 %v15023_v53, %v8585_v27 }
 0x734   : > { %9224 = vmatmul.mubr.bf16.gmra.mrb[8].mxu1 %v8220_v23  ;;  %v8643_v39 = vmul.f32 0.044715, %v8627_v7  ;;  %v8628_v3 = vmul.f32 %v8612_v34, %v15307_v6  ;;  %v8196_v60 = vmul.f32 0.5, %v8180_v51  ;;  %v8181_v16 = vadd.f32 1.0, %v15208_v14 }
 0x735   : > { %v8670_v10 = vmul.f32 0.7978846, %v8654_v0  ;;  %v8641_v30 = vmul.f32 0.044715, %v8625_v13  ;;  %v8211_v48 = vmul.f32 %v8195_v41, %v15113_v18  ;;  %v8610_v56 = vmul.f32 %v15321_v62, %v15321_v62  ;;  %9276 = vmatpush3.bf16.msra.mxu1 %v15011_v55 }
 0x736   : > { %v8659_v25 = vadd.f32 %v8643_v39, %v15294_v15  ;;  %v8644_v53 = vmul.f32 0.044715, %v8628_v3  ;;  %v8212_v27 = vmul.f32 %v8196_v60, %v15127_v43  ;;  %v8182_v9 = vadd.f32 1.0, %v15220_v57  ;;  %9277 = vmatprep.subr.bf16.mxu1 %v15013_v22 }
 0x737   : > { %9461 = vtanh.f32 %v8670_v10  ;;  %v8657_v14 = vadd.f32 %v8641_v30, %v15301_v38  ;;  %v8626_v46 = vmul.f32 %v8610_v56, %v15321_v62  ;;  %v8197_v18 = vmul.f32 0.5, %v8181_v16 }
 0x738   : > { %v9456_v37 = vpop.eup %9455  ;;  %v8675_v44 = vmul.f32 0.7978846, %v8659_v25  ;;  %v8660_v35 = vadd.f32 %v8644_v53, %v15307_v6  ;;  %v8221_v55 = vpack.c.bf16 %v8212_v27, %v8211_v48  ;;  %v8198_v1 = vmul.f32 0.5, %v8182_v9 }
 0x739   : > { %v8673_v50 = vmul.f32 0.7978846, %v8657_v14  ;;  %v8642_v29 = vmul.f32 0.044715, %v8626_v46  ;;  %v8213_v43 = vmul.f32 %v8197_v18, %v15109_v59  ;;  %9278 = vmatpush3.bf16.msra.mxu1 %v15013_v22  ;;  %v8693_v57 = vadd.f32 1.0, %v15248_v54 }
 0x73a   : > { %v9458_v36 = vpop.eup %9457  ;;  %9463 = vtanh.f32 %v8675_v44  ;;  %v8676_v32 = vmul.f32 0.7978846, %v8660_v35  ;;  %9227 = vmatprep.mubr.bf16.mxu1 %v8221_v55  ;;  %v8214_v33 = vmul.f32 %v8198_v1, %v15121_v47  ;;  %v8694_v19 = vadd.f32 1.0, %v15267_v17 }
 0x73b   : > { %v9460_v4 = vpop.eup %9459  ;;  %9465 = vtanh.f32 %v8673_v50  ;;  %v8658_v61 = vadd.f32 %v8642_v29, %v15321_v62  ;;  %v8709_v21 = vmul.f32 0.5, %v8693_v57  ;;  %v8697_v23 = vadd.f32 1.0, %v15284_v31 }
 0x73c   : > { %9467 = vtanh.f32 %v8676_v32  ;;  %v8222_v59 = vpack.c.bf16 %v8214_v33, %v8213_v43  ;;  %v8710_v22 = vmul.f32 0.5, %v8694_v19  ;;  %v8698_v7 = vadd.f32 1.0, %v9454_v20  ;;  %v8376_v32 = vld [vmem:[%s9980_s19 + $0x10] sm:$0xff] }
 0x73d   : > { %v8674_v54 = vmul.f32 0.7978846, %v8658_v61  ;;  %v8725_v34 = vmul.f32 %v8709_v21, %v15151_v40  ;;  %v8713_v51 = vmul.f32 0.5, %v8697_v23  ;;  %v8699_v0 = vadd.f32 1.0, %v15280_v63  ;;  %v8374_v61 = vld [vmem:[%s9980_s19] sm:$0xff] }
 0x73e   : > { %9228 = vmatmul.mubr.bf16.gmra.mrb[12].mxu1 %v8222_v59  ;;  %v8726_v47 = vmul.f32 %v8710_v22, %v15172_v8  ;;  %v8714_v17 = vmul.f32 0.5, %v8698_v7  ;;  %v8700_v13 = vadd.f32 1.0, %v15296_v11  ;;  %v8701_v41 = vadd.f32 1.0, %v9458_v36  ;;  %v8377_v22 = vld [vmem:[%s9980_s19 + $0x18] sm:$0xff] }
 0x73f   : > { %9469 = vtanh.f32 %v8674_v54  ;;  %v8715_v39 = vmul.f32 0.5, %v8699_v0  ;;  %v8703_v31 = vadd.f32 1.0, %v9456_v37  ;;  %v8729_v60 = vmul.f32 %v8713_v51, %v15192_v45  ;;  %v8375_v51 = vld [vmem:[%s9980_s19 + $0x8] sm:$0xff] }
 0x740   : > { %v8741_v3 = vpack.c.bf16 %v8726_v47, %v8725_v34  ;;  %v8730_v20 = vmul.f32 %v8714_v17, %v15218_v58  ;;  %v8716_v16 = vmul.f32 0.5, %v8700_v13  ;;  %v8717_v10 = vmul.f32 0.5, %v8701_v41 }
 0x741   : > { %v9462_v40 = vpop.eup %9461  ;;  %v8704_v30 = vadd.f32 1.0, %v9460_v4  ;;  %v8719_v63 = vmul.f32 0.5, %v8703_v31  ;;  %v8731_v8 = vmul.f32 %v8715_v39, %v15184_v12 }
 0x742   : > { %9279 = vmatprep.mubr.bf16.mxu1 %v8741_v3  ;;  %v8743_v48 = vpack.c.bf16 %v8730_v20, %v8729_v60  ;;  %v8732_v11 = vmul.f32 %v8716_v16, %v15201_v5  ;;  %v8702_v56 = vadd.f32 1.0, %v9462_v40  ;;  %v8733_v12 = vmul.f32 %v8717_v10, %v15245_v2  ;;  %v8380_v3 = vld [vmem:[%s9980_s19 + $0x30] sm:$0xff]  ;;  %v8378_v40 = vld [vmem:[%s9980_s19 + $0x20] sm:$0xff] }
 0x743   : > { %v8720_v25 = vmul.f32 0.5, %v8704_v30  ;;  %v8735_v45 = vmul.f32 %v8719_v63, %v15237_v24 }
 0x744   : > { %v9464_v53 = vpop.eup %9463  ;;  %v8744_v27 = vpack.c.bf16 %v8732_v11, %v8731_v8  ;;  %v8718_v9 = vmul.f32 0.5, %v8702_v56 }
 0x745   : > { %v9466_v14 = vpop.eup %9465  ;;  %v8736_v58 = vmul.f32 %v8720_v25, %v15253_v52  ;;  %v8707_v46 = vadd.f32 1.0, %v9464_v53  ;;  %v8379_v25 = vld [vmem:[%s9980_s19 + $0x28] sm:$0xff] }
 0x746   : > { %v9468_v18 = vpop.eup %9467  ;;  %9280 = vmatmul.mubr.bf16.vlgmr.msra.gmra.mrb[16].mxu1 %v8742_v26  ;;  %v8734_v5 = vmul.f32 %v8718_v9, %v15277_v28  ;;  %v8705_v37 = vadd.f32 1.0, %v9466_v14 }
 0x747   : > { %9283 = vmatprep.mubr.bf16.mxu1 %v8743_v48  ;;  %v8746_v44 = vpack.c.bf16 %v8736_v58, %v8735_v45  ;;  %v8708_v35 = vadd.f32 1.0, %v9468_v18  ;;  %v8723_v55 = vmul.f32 0.5, %v8707_v46  ;;  %v8381_v48 = vld [vmem:[%s9980_s19 + $0x38] sm:$0xff]  ;;  %v8384_v18 = vld [vmem:[%s9980_s19 + $0x50] sm:$0xff] }
 0x748   : > { %v8745_v1 = vpack.c.bf16 %v8734_v5, %v8733_v12  ;;  %v8721_v52 = vmul.f32 0.5, %v8705_v37 }
 0x749   : > { %v9470_v50 = vpop.eup %9469  ;;  %v8724_v24 = vmul.f32 0.5, %v8708_v35  ;;  %v8739_v43 = vmul.f32 %v8723_v55, %v15294_v15  ;;  %v15365_v15 = vld [vmem:[%s15562_s7] ss:$0 sm:$0xff] }
 0x74a   : > { %v8706_v29 = vadd.f32 1.0, %v9470_v50  ;;  %v8737_v2 = vmul.f32 %v8721_v52, %v15301_v38  ;;  %v8385_v50 = vld [vmem:[%s9980_s19 + $0x58] sm:$0xff] }
 0x74b   : > { %v8740_v57 = vmul.f32 %v8724_v24, %v15307_v6  ;;  %v15370_v6 = vld [vmem:[%s15563_s8] ss:$0 sm:$0xff] }
 0x74c   : > { %v8722_v42 = vmul.f32 0.5, %v8706_v29 }
 0x74d   : > { %v8748_v49 = vpack.c.bf16 %v8740_v57, %v8739_v43  ;;  %v8383_v43 = vld [vmem:[%s9980_s19 + $0x48] sm:$0xff] }
 0x74e   : > { %9284 = vmatmul.mubr.bf16.gmra.mrb[20].mxu1 %v8744_v27  ;;  %v8738_v28 = vmul.f32 %v8722_v42, %v15321_v62 }
 0x74f   : > { %9287 = vmatprep.mubr.bf16.mxu1 %v8745_v1 }
 0x750   : > { %v8747_v26 = vpack.c.bf16 %v8738_v28, %v8737_v2 }
 0x756   : > { %9288 = vmatmul.mubr.bf16.gmra.mrb[24].mxu1 %v8746_v44  ;;  %v8382_v44 = vld [vmem:[%s9980_s19 + $0x40] sm:$0xff] }
 0x757   : > { %9291 = vmatprep.mubr.bf16.mxu1 %v8747_v26 }
 0x75e   : > { %9292 = vmatmul.mubr.bf16.gmra.mrb[28].mxu1 %v8748_v49 }
 0x7ee   : > { %v9217_v38 = vpop.f32.mrb[0].mxu1 }
 0x7ef   : > { %v8320_v62 = vadd.f32 %v9217_v38, %v15365_v15  ;;  %v8311_v36 = vpop.f32.mrb[1].mxu1 }
 0x7f0   : > { %v8312_v33 = vadd.f32 %v15365_v15, %v8311_v36  ;;  %v9218_v19 = vpop.f32.mrb[2].mxu1 }
 0x7f1   : > { %v8398_v4 = vmul.f32 %v15370_v6, %v8320_v62  ;;  %v8323_v21 = vadd.f32 %v9218_v19, %v15365_v15  ;;  %v8314_v23 = vpop.f32.mrb[3].mxu1  ;;  %v8388_v62 = vld [vmem:[%s9980_s19 + $0x70] sm:$0xff]  ;;  %v8386_v19 = vld [vmem:[%s9980_s19 + $0x60] sm:$0xff] }
 0x7f2   : > { %v8396_v59 = vmul.f32 %v15370_v6, %v8312_v33  ;;  %v8315_v7 = vadd.f32 %v15365_v15, %v8314_v23  ;;  %v8389_v23 = vld [vmem:[%s9980_s19 + $0x78] sm:$0xff] }
 0x7f3   : > { %v8414_v54 = vadd.f32 %v8398_v4, %v8376_v32  ;;  %v8399_v34 = vmul.f32 %v15370_v6, %v8323_v21 }
 0x7f4   : > { %v8412_v0 = vadd.f32 %v8396_v59, %v8374_v61  ;;  %v8397_v47 = vmul.f32 %v15370_v6, %v8315_v7 }
 0x7f5   : > { %8430 = vst [vmem:[%s15386_s14 + $0x10] sm:$0xff] %v8414_v54  ;;  %v8415_v17 = vadd.f32 %v8399_v34, %v8377_v22  ;;  %v8387_v54 = vld [vmem:[%s9980_s19 + $0x68] sm:$0xff] }
 0x7f6   : > { %8428 = vst [vmem:[%s15386_s14] sm:$0xff] %v8412_v0  ;;  %v8413_v13 = vadd.f32 %v8397_v47, %v8375_v51 }
 0x7f7   : > { %8431 = vst [vmem:[%s15386_s14 + $0x18] sm:$0xff] %v8415_v17 }
 0x7f8   : > { %8429 = vst [vmem:[%s15386_s14 + $0x8] sm:$0xff] %v8413_v13 }
 0x7fb   : > { %v9221_v41 = vpop.f32.mrb[4].mxu1 }
 0x7fc   : > { %v8336_v39 = vadd.f32 %v9221_v41, %v15365_v15  ;;  %v8327_v31 = vpop.f32.mrb[5].mxu1 }
 0x7fd   : > { %v8328_v60 = vadd.f32 %v15365_v15, %v8327_v31  ;;  %v9222_v20 = vpop.f32.mrb[6].mxu1 }
 0x7fe   : > { %v8402_v16 = vmul.f32 %v15370_v6, %v8336_v39  ;;  %v8339_v10 = vadd.f32 %v9222_v20, %v15365_v15  ;;  %v8330_v30 = vpop.f32.mrb[7].mxu1  ;;  %v9066_v39 = vld [vmem:[%s9980_s19 + $0x90] sm:$0xff]  ;;  %v9064_v20 = vld [vmem:[%s9980_s19 + $0x80] sm:$0xff] }
 0x7ff   : > { %v8400_v63 = vmul.f32 %v15370_v6, %v8328_v60  ;;  %v8331_v8 = vadd.f32 %v15365_v15, %v8330_v30  ;;  %v9067_v30 = vld [vmem:[%s9980_s19 + $0x98] sm:$0xff] }
 0x800   : > { %v8418_v11 = vadd.f32 %v8402_v16, %v8380_v3  ;;  %v8403_v56 = vmul.f32 %v15370_v6, %v8339_v10 }
 0x801   : > { %v8416_v53 = vadd.f32 %v8400_v63, %v8378_v40  ;;  %v8401_v27 = vmul.f32 %v15370_v6, %v8331_v8 }
 0x802   : > { %8434 = vst [vmem:[%s15386_s14 + $0x30] sm:$0xff] %v8418_v11  ;;  %v8419_v9 = vadd.f32 %v8403_v56, %v8381_v48  ;;  %v9065_v11 = vld [vmem:[%s9980_s19 + $0x88] sm:$0xff] }
 0x803   : > { %8432 = vst [vmem:[%s15386_s14 + $0x20] sm:$0xff] %v8416_v53  ;;  %v8417_v14 = vadd.f32 %v8401_v27, %v8379_v25 }
 0x804   : > { %8435 = vst [vmem:[%s15386_s14 + $0x38] sm:$0xff] %v8419_v9 }
 0x805   : > { %8433 = vst [vmem:[%s15386_s14 + $0x28] sm:$0xff] %v8417_v14 }
 0x807   : > { %v9225_v45 = vpop.f32.mrb[8].mxu1 }
 0x808   : > { %v8352_v58 = vadd.f32 %v9225_v45, %v15365_v15  ;;  %v8343_v46 = vpop.f32.mrb[9].mxu1 }
 0x809   : > { %v8344_v12 = vadd.f32 %v15365_v15, %v8343_v46  ;;  %v9226_v5 = vpop.f32.mrb[10].mxu1 }
 0x80a   : > { %v8406_v37 = vmul.f32 %v15370_v6, %v8352_v58  ;;  %v8355_v35 = vadd.f32 %v9226_v5, %v15365_v15  ;;  %v8346_v55 = vpop.f32.mrb[11].mxu1  ;;  %v9070_v58 = vld [vmem:[%s9980_s19 + $0xb0] sm:$0xff]  ;;  %v9068_v5 = vld [vmem:[%s9980_s19 + $0xa0] sm:$0xff] }
 0x80b   : > { %v8404_v1 = vmul.f32 %v15370_v6, %v8344_v12  ;;  %v8347_v24 = vadd.f32 %v15365_v15, %v8346_v55  ;;  %v9071_v55 = vld [vmem:[%s9980_s19 + $0xb8] sm:$0xff] }
 0x80c   : > { %v8422_v29 = vadd.f32 %v8406_v37, %v8384_v18  ;;  %v8407_v52 = vmul.f32 %v15370_v6, %v8355_v35 }
 0x80d   : > { %v8420_v57 = vadd.f32 %v8404_v1, %v8382_v44  ;;  %v8405_v42 = vmul.f32 %v15370_v6, %v8347_v24 }
 0x80e   : > { %8438 = vst [vmem:[%s15386_s14 + $0x50] sm:$0xff] %v8422_v29  ;;  %v8423_v49 = vadd.f32 %v8407_v52, %v8385_v50  ;;  %v9069_v29 = vld [vmem:[%s9980_s19 + $0xa8] sm:$0xff] }
 0x80f   : > { %8436 = vst [vmem:[%s15386_s14 + $0x40] sm:$0xff] %v8420_v57  ;;  %v8421_v2 = vadd.f32 %v8405_v42, %v8383_v43 }
 0x810   : > { %8439 = vst [vmem:[%s15386_s14 + $0x58] sm:$0xff] %v8423_v49 }
 0x811   : > { %8437 = vst [vmem:[%s15386_s14 + $0x48] sm:$0xff] %v8421_v2  ;;  %v9229_v28 = vpop.f32.mrb[12].mxu1 }
 0x812   : > { %v8368_v26 = vadd.f32 %v9229_v28, %v15365_v15  ;;  %v8359_v38 = vpop.f32.mrb[13].mxu1 }
 0x813   : > { %v8360_v36 = vadd.f32 %v15365_v15, %v8359_v38  ;;  %v9230_v32 = vpop.f32.mrb[14].mxu1 }
 0x814   : > { %v8410_v33 = vmul.f32 %v15370_v6, %v8368_v26  ;;  %v8371_v4 = vadd.f32 %v9230_v32, %v15365_v15  ;;  %v8362_v61 = vpop.f32.mrb[15].mxu1  ;;  %v9074_v26 = vld [vmem:[%s9980_s19 + $0xd0] sm:$0xff]  ;;  %v9072_v32 = vld [vmem:[%s9980_s19 + $0xc0] sm:$0xff] }
 0x815   : > { %v8408_v21 = vmul.f32 %v15370_v6, %v8360_v36  ;;  %v8363_v59 = vadd.f32 %v15365_v15, %v8362_v61  ;;  %v9075_v61 = vld [vmem:[%s9980_s19 + $0xd8] sm:$0xff] }
 0x816   : > { %v8426_v22 = vadd.f32 %v8410_v33, %v8388_v62  ;;  %v8411_v7 = vmul.f32 %v15370_v6, %v8371_v4 }
 0x817   : > { %v8424_v34 = vadd.f32 %v8408_v21, %v8386_v19  ;;  %v8409_v51 = vmul.f32 %v15370_v6, %v8363_v59 }
 0x818   : > { %8442 = vst [vmem:[%s15386_s14 + $0x70] sm:$0xff] %v8426_v22  ;;  %v8427_v0 = vadd.f32 %v8411_v7, %v8389_v23  ;;  %v9073_v22 = vld [vmem:[%s9980_s19 + $0xc8] sm:$0xff] }
 0x819   : > { %8440 = vst [vmem:[%s15386_s14 + $0x60] sm:$0xff] %v8424_v34  ;;  %v8425_v47 = vadd.f32 %v8409_v51, %v8387_v54  ;;  %v9281_v17 = vpop.f32.mrb[16].mxu1 }
 0x81a   : > { %8443 = vst [vmem:[%s15386_s14 + $0x78] sm:$0xff] %v8427_v0  ;;  %v8792_v13 = vadd.f32 %v9281_v17, %v15365_v15  ;;  %v8783_v41 = vpop.f32.mrb[17].mxu1 }
 0x81b   : > { %8441 = vst [vmem:[%s15386_s14 + $0x68] sm:$0xff] %v8425_v47  ;;  %v8784_v31 = vadd.f32 %v15365_v15, %v8783_v41  ;;  %v9282_v3 = vpop.f32.mrb[18].mxu1 }
 0x81c   : > { %v8865_v60 = vmul.f32 %v15370_v6, %v8792_v13  ;;  %v8795_v16 = vadd.f32 %v9282_v3, %v15365_v15  ;;  %v8786_v40 = vpop.f32.mrb[19].mxu1  ;;  %v9078_v13 = vld [vmem:[%s9980_s19 + $0xf0] sm:$0xff]  ;;  %v9076_v3 = vld [vmem:[%s9980_s19 + $0xe0] sm:$0xff] }
 0x81d   : > { %v8863_v10 = vmul.f32 %v15370_v6, %v8784_v31  ;;  %v8787_v63 = vadd.f32 %v15365_v15, %v8786_v40  ;;  %v9079_v40 = vld [vmem:[%s9980_s19 + $0xf8] sm:$0xff] }
 0x81e   : > { %v8881_v48 = vadd.f32 %v9066_v39, %v8865_v60  ;;  %v8866_v8 = vmul.f32 %v15370_v6, %v8795_v16 }
 0x81f   : > { %v8879_v56 = vadd.f32 %v9064_v20, %v8863_v10  ;;  %v8864_v25 = vmul.f32 %v15370_v6, %v8787_v63 }
 0x820   : > { %9082 = vst [vmem:[%s15386_s14 + $0x90] sm:$0xff] %v8881_v48  ;;  %v8882_v53 = vadd.f32 %v9067_v30, %v8866_v8  ;;  %v9077_v48 = vld [vmem:[%s9980_s19 + $0xe8] sm:$0xff]  ;;  %s9640_s19 = scalar_lea.vmem %s15508_s18, 4096 }
 0x821   : > { %9080 = vst [vmem:[%s15386_s14 + $0x80] sm:$0xff] %v8879_v56  ;;  %v8880_v27 = vadd.f32 %v9065_v11, %v8864_v25  ;;  %v9285_v9 = vpop.f32.mrb[20].mxu1  ;;  %p9641_p10 = scmp.ne.s32.totalorder %s15508_s18, %s9640_s19  ;;  %p9648_p1 = scmp.lt.s32.totalorder %s9646_s24, %s9640_s19 }
 0x822   : > { %9083 = vst [vmem:[%s15386_s14 + $0x98] sm:$0xff] %v8882_v53  ;;  %v8808_v14 = vadd.f32 %v9285_v9, %v15365_v15  ;;  %v8799_v45 = vpop.f32.mrb[21].mxu1 }
 0x823   : > { %9081 = vst [vmem:[%s15386_s14 + $0x88] sm:$0xff] %v8880_v27  ;;  %v8800_v46 = vadd.f32 %v15365_v15, %v8799_v45  ;;  %v9286_v18 = vpop.f32.mrb[22].mxu1  ;;  %p9642_p3 = pnand %p9641_p10, %p9923_p5  ;;  %p9649_p2 = por %p9648_p1, %p9647_p12 }
 0x824   : > { %v8869_v12 = vmul.f32 %v15370_v6, %v8808_v14  ;;  %v8811_v37 = vadd.f32 %v9286_v18, %v15365_v15  ;;  %v8802_v44 = vpop.f32.mrb[23].mxu1 }
 0x825   : > { %v8867_v35 = vmul.f32 %v15370_v6, %v8800_v46  ;;  %v8803_v1 = vadd.f32 %v15365_v15, %v8802_v44  ;;  %p9643_p7 = pneg %p9642_p3 }
 0x826   : > { %v8885_v50 = vadd.f32 %v9070_v58, %v8869_v12  ;;  %v8870_v24 = vmul.f32 %v15370_v6, %v8811_v37 }
 0x827   : > { %v8883_v52 = vadd.f32 %v9068_v5, %v8867_v35  ;;  %v8868_v43 = vmul.f32 %v15370_v6, %v8803_v1  ;;  %p9650_p4 = pnand %p9649_p2, %p9643_p7 }
 0x828   : > { %9086 = vst [vmem:[%s15386_s14 + $0xb0] sm:$0xff] %v8885_v50  ;;  %v8886_v57 = vadd.f32 %v9071_v55, %v8870_v24 }
 0x829   : > { %9084 = vst [vmem:[%s15386_s14 + $0xa0] sm:$0xff] %v8883_v52  ;;  %v8884_v42 = vadd.f32 %v9069_v29, %v8868_v43  ;;  %v9289_v49 = vpop.f32.mrb[24].mxu1 }
 0x82a   : > { %9087 = vst [vmem:[%s15386_s14 + $0xb8] sm:$0xff] %v8886_v57  ;;  %v8824_v2 = vadd.f32 %v9289_v49, %v15365_v15  ;;  %v8815_v28 = vpop.f32.mrb[25].mxu1 }
 0x82b   : > { %9085 = vst [vmem:[%s15386_s14 + $0xa8] sm:$0xff] %v8884_v42  ;;  %v8816_v38 = vadd.f32 %v15365_v15, %v8815_v28  ;;  %v9290_v62 = vpop.f32.mrb[26].mxu1 }
 0x82c   : > { %v8873_v36 = vmul.f32 %v15370_v6, %v8824_v2  ;;  %v8827_v33 = vadd.f32 %v9290_v62, %v15365_v15  ;;  %v8818_v19 = vpop.f32.mrb[27].mxu1 }
 0x82d   : > { %v8871_v4 = vmul.f32 %v15370_v6, %v8816_v38  ;;  %v8819_v21 = vadd.f32 %v15365_v15, %v8818_v19 }
 0x82e   : > { %v8889_v23 = vadd.f32 %v9074_v26, %v8873_v36  ;;  %v8874_v59 = vmul.f32 %v15370_v6, %v8827_v33 }
 0x82f   : > { %v8887_v7 = vadd.f32 %v9072_v32, %v8871_v4  ;;  %v8872_v54 = vmul.f32 %v15370_v6, %v8819_v21 }
 0x830   : > { %9090 = vst [vmem:[%s15386_s14 + $0xd0] sm:$0xff] %v8889_v23  ;;  %v8890_v34 = vadd.f32 %v9075_v61, %v8874_v59 }
 0x831   : > { %9088 = vst [vmem:[%s15386_s14 + $0xc0] sm:$0xff] %v8887_v7  ;;  %v8888_v51 = vadd.f32 %v9073_v22, %v8872_v54  ;;  %v9293_v0 = vpop.f32.mrb[28].mxu1 }
 0x832   : > { %9091 = vst [vmem:[%s15386_s14 + $0xd8] sm:$0xff] %v8890_v34  ;;  %v8840_v47 = vadd.f32 %v9293_v0, %v15365_v15  ;;  %v8831_v17 = vpop.f32.mrb[29].mxu1 }
 0x833   : > { %9089 = vst [vmem:[%s15386_s14 + $0xc8] sm:$0xff] %v8888_v51  ;;  %v8832_v41 = vadd.f32 %v15365_v15, %v8831_v17  ;;  %v9294_v39 = vpop.f32.mrb[30].mxu1 }
 0x834   : > { %v8877_v31 = vmul.f32 %v15370_v6, %v8840_v47  ;;  %v8843_v60 = vadd.f32 %v9294_v39, %v15365_v15  ;;  %v8834_v20 = vpop.f32.mrb[31].mxu1 }
 0x835   : > { %v8875_v16 = vmul.f32 %v15370_v6, %v8832_v41  ;;  %v8835_v10 = vadd.f32 %v15365_v15, %v8834_v20 }
 0x836   : > { %v8893_v30 = vadd.f32 %v9078_v13, %v8877_v31  ;;  %v8878_v63 = vmul.f32 %v15370_v6, %v8843_v60 }
 0x837   : > { %v8891_v8 = vadd.f32 %v9076_v3, %v8875_v16  ;;  %v8876_v11 = vmul.f32 %v15370_v6, %v8835_v10 }
 0x838   : > { %9094 = vst [vmem:[%s15386_s14 + $0xf0] sm:$0xff] %v8893_v30  ;;  %v8894_v56 = vadd.f32 %v9079_v40, %v8878_v63 }
 0x839   : > { %9092 = vst [vmem:[%s15386_s14 + $0xe0] sm:$0xff] %v8891_v8  ;;  %v8892_v15 = vadd.f32 %v9077_v48, %v8876_v11 }
 0x83a   : > { %9095 = vst [vmem:[%s15386_s14 + $0xf8] sm:$0xff] %v8894_v56 }
 0x83b   : > { %9093 = vst [vmem:[%s15386_s14 + $0xe8] sm:$0xff] %v8892_v15 }
 0x83c   : > { %9653 = shalt.err (!%p9650_p4)
}
 0x83d   : > { %s9654_s27 = scalar_lea.hbm %s15506_s25, 4096  ;;  %s9658_s16 = scalar_lea.hbm %s17700_s23, 8192 }
 0x83e   : > { %p9655_p9 = scmp.ne.s32.totalorder %s15506_s25, %s9654_s27  ;;  %p9659_p8 = scmp.lt.u32.totalorder %s15506_s25, %s17700_s23 }
 0x83f   : > { %p9660_p13 = scmp.lt.u32.totalorder %s9658_s16, %s9654_s27  ;;  %p9662_p10 = scmp.lt.u32.totalorder %s9654_s27, %s15506_s25 }
 0x840   : > { %p9656_p0 = pnand %p9655_p9, %p9923_p5 }
 0x841   : > { %p9661_p6 = por %p9660_p13, %p9659_p8 }
 0x842   : > { %p9657_p11 = pneg %p9656_p0 }
 0x843   : > { %p9663_p3 = por %p9662_p10, %p9661_p6 }
 0x845   : > { %p9664_p7 = pnand %p9663_p3, %p9657_p11 }
 0x847   : > { %9667 = shalt.err (!%p9664_p7)
}
 0x848   : > { %s9726_s30 = smov 128   ;;  %s9727_s21 = smov 8  }
 0x849   : > { %9319 = dma.vmem_to_hbm [thread:$0]  (%p9923_p5), %s15508_s18, 4096, %s15506_s25, %s8913_s13, %s9726_s30, %s9726_s30, %s9727_s21  }
 0x84a PF: > { %s17701_s19 = sld [smem:[#allocation17_spill]]  ;;  %s17702_s15 = sld [smem:[#allocation18_spill]] }
 0x84b   : > { %p17704_p1 = scmp.ge.s32.totalorder %s9714_s12, 2 }
 0x850   : > { %s8941_s17 = sand.u32 1, %s17701_s19   ;;  %p17703_p12 = scmp.ne.s32.totalorder %s17702_s15, 0 }
 0x851   : > { %s8942_s24 = scalar_lea.sflag [#allocation6], %s8941_s17 }
 0x852   : > { %p9336_p2 = pnand %p17704_p1, %p17703_p12 }
 0x854   : > { %9697 = dma.done.wait (!%p9336_p2), %s8942_s24, 4096  }
 0x855   : > { %9699 = vsyncadd (!%p9336_p2), %s8942_s24, 4294963200  ;;  %p24_p4 = scmp.ge.s32.totalorder %s9891_s29, 4   ;;  %s17705_s30 = smov %s9706_s10 }
 0x856   : > { %s17706_s10 = smov %s9710_s11  ;;  %s17707_s11 = smov %s9919_s20 }
 0x857   : > { %s17708_s12 = smov %s9891_s29  ;;  %26 = sbr.rel (!%p24_p4) target bundleno = 10 (0xa), region = 129 }
 0x85e   :  { %8947 = vsyncpa [#allocation5], 1 }
 0x85f   :  { %8949 = vsyncpa [#allocation5 + $0x1], 1 }
 0x860   :  { %8950 = vsyncpa [#allocation8], 1 }
 0x861   :  { %8951 = vsyncpa [#allocation11], 1 }
 0x862   :  { %8952 = vsyncpa [#allocation6], 1 }
 0x863   :  { %8954 = vsyncpa [#allocation6 + $0x1], 1 }

</bundles_post_ra>
